<compile_context>
chip_gen: v5e
topology: v5e:2x2
jax: 0.10.0
libtpu: 0.0.40
codegen_flags: <defaults>
</compile_context>

<pallas_src>
import jax
import jax.numpy as jnp
from jax.experimental import pallas as pl
from jax.experimental.pallas import tpu as pltpu

NEG_SLOPE = 0.01          # nn.LeakyReLU default negative_slope


def _round_up(a, b):
    return (a + b - 1) // b * b


# --------------------------------------------------------------------------- #
# Fused ResBlock kernel
# --------------------------------------------------------------------------- #
def _make_resblock_kernel(H, W, Cpad, R, compute_dtype):
    Wp = W + 2
    HWp = H * Wp
    top_pad = Wp + 1                 # first interior row of the padded layout
    tail_start = top_pad + HWp
    tail_len = R - tail_start

    def kernel(x_ref, w1_ref, b1_ref, w2_ref, b2_ref, mask_ref,
               o_ref, xb_ref, hp_ref):
        # MXU-operand-precision copy of the padded input (f32 x stays around for
        # the residual add).
        xb_ref[...] = x_ref[...].astype(compute_dtype)

        # Zero the halo rows of the intermediate padded buffer (only ~40 rows;
        # done every step so it is correct under megacore grid splitting).
        hp_ref[pl.ds(0, top_pad), :] = jnp.zeros((top_pad, Cpad), compute_dtype)
        if tail_len > 0:
            hp_ref[pl.ds(tail_start, tail_len), :] = jnp.zeros(
                (tail_len, Cpad), compute_dtype)

        mask = mask_ref[...]         # (HWp, 1) f32; 0 where row is halo garbage

        def conv3x3(src_ref, w_ref):
            acc = jnp.zeros((HWp, Cpad), jnp.float32)
            for kh in range(3):
                for kw in range(3):
                    # pure sublane row-offset view of the padded image
                    tap = src_ref[pl.ds(kh * Wp + kw, HWp), :]
                    acc = acc + jnp.dot(tap, w_ref[kh * 3 + kw],
                                        preferred_element_type=jnp.float32)
            return acc

        # conv1 -> bias -> LeakyReLU, written back into padded layout for conv2.
        h = conv3x3(xb_ref, w1_ref) + b1_ref[...]
        h = jnp.where(h > 0, h, NEG_SLOPE * h)
        hp_ref[pl.ds(top_pad, HWp), :] = (h * mask).astype(compute_dtype)

        # conv2 -> bias -> + residual (f32) -> LeakyReLU.
        y = conv3x3(hp_ref, w2_ref) + b2_ref[...]
        y = y + x_ref[pl.ds(top_pad, HWp), :]
        y = jnp.where(y > 0, y, NEG_SLOPE * y)
        o_ref[...] = y.astype(o_ref.dtype)

    return kernel


# --------------------------------------------------------------------------- #
# Wrapper: layout plumbing + pallas_call
# --------------------------------------------------------------------------- #
def resblock_forward(x_nchw, params, compute_dtype=jnp.bfloat16):
    """x_nchw: (N, C, H, W) f32;  params: w1/b1/w2/b2 with w in HWIO (3,3,C,C)."""
    N, C, H, W = x_nchw.shape
    Cpad = max(128, _round_up(C, 128))
    Hp, Wp = H + 2, W + 2
    HWp = H * Wp
    # flattened padded rows + slack so every 3x3 tap slice stays in bounds
    R = _round_up(HWp + 2 * Wp + 2, 8)

    # NCHW -> NHWC, zero-pad spatially (halo) and channel-pad to 128 lanes,
    # then flatten (Hp, Wp) -> rows.  (Single pad pass for the whole block.)
    x = jnp.transpose(x_nchw, (0, 2, 3, 1))
    xp = jnp.pad(x, ((0, 0), (1, 1), (1, 1), (0, Cpad - C)))
    xf = jnp.pad(xp.reshape(N, Hp * Wp, Cpad), ((0, 0), (0, R - Hp * Wp), (0, 0)))

    def prep_w(w):  # (3,3,C,C) HWIO -> (9, Cpad, Cpad) in compute_dtype
        wpad = jnp.pad(w, ((0, 0), (0, 0), (0, Cpad - C), (0, Cpad - C)))
        return wpad.reshape(9, Cpad, Cpad).astype(compute_dtype)

    def prep_b(b):  # (C,) -> (1, Cpad) f32
        return jnp.pad(b, (0, Cpad - C)).reshape(1, Cpad).astype(jnp.float32)

    w1, b1 = prep_w(params["w1"]), prep_b(params["b1"])
    w2, b2 = prep_w(params["w2"]), prep_b(params["b2"])

    # Rows of the shifted-conv output whose column index lands in the halo.
    rows = jnp.arange(HWp, dtype=jnp.int32)
    mask = ((rows % Wp) < W).astype(jnp.float32).reshape(HWp, 1)

    kernel = _make_resblock_kernel(H, W, Cpad, R, compute_dtype)

    out_flat = pl.pallas_call(
        kernel,
        out_shape=jax.ShapeDtypeStruct((N, HWp, Cpad), jnp.float32),
        grid_spec=pltpu.PrefetchScalarGridSpec(
            num_scalar_prefetch=0,
            grid=(N,),
            in_specs=[
                pl.BlockSpec((None, R, Cpad), lambda n: (n, 0, 0)),     # x (padded)
                pl.BlockSpec((9, Cpad, Cpad), lambda n: (0, 0, 0)),     # w1
                pl.BlockSpec((1, Cpad), lambda n: (0, 0)),              # b1
                pl.BlockSpec((9, Cpad, Cpad), lambda n: (0, 0, 0)),     # w2
                pl.BlockSpec((1, Cpad), lambda n: (0, 0)),              # b2
                pl.BlockSpec((HWp, 1), lambda n: (0, 0)),               # halo mask
            ],
            out_specs=pl.BlockSpec((None, HWp, Cpad), lambda n: (n, 0, 0)),
            scratch_shapes=[
                pltpu.VMEM((R, Cpad), compute_dtype),   # bf16 copy of padded x
                pltpu.VMEM((R, Cpad), compute_dtype),   # padded conv1 activation
            ],
        ),
        compiler_params=pltpu.CompilerParams(dimension_semantics=("parallel",)),
    )(xf, w1, b1, w2, b2, mask)

    # (N, H*Wp, Cpad) -> (N, H, W, C) -> NCHW  (halo columns / pad channels dropped)
    out = out_flat.reshape(N, H, Wp, Cpad)[:, :, :W, :C]
    return jnp.transpose(out, (0, 3, 1, 2))


# --------------------------------------------------------------------------- #
# Pure-JAX reference (PyTorch ResBlock semantics, f32)
# --------------------------------------------------------------------------- #
def _lrelu(x):
    return jnp.where(x > 0, x, NEG_SLOPE * x)


def _conv_ref(x, w, b):
    y = jax.lax.conv_general_dilated(
        x, w, window_strides=(1, 1), padding=((1, 1), (1, 1)),
        dimension_numbers=("NHWC", "HWIO", "NHWC"))
    return y + b[None, None, None, :]


def resblock_ref(x_nchw, params):
    x = jnp.transpose(x_nchw, (0, 2, 3, 1))
    h = _lrelu(_conv_ref(x, params["w1"], params["b1"]))
    h = _conv_ref(h, params["w2"], params["b2"])
    y = _lrelu(h + x)
    return jnp.transpose(y, (0, 3, 1, 2))


# --------------------------------------------------------------------------- #
if __name__ == "__main__":
    N, C, H, W = 2, 32, 16, 16          # filter = 32, small synthetic config

    key = jax.random.PRNGKey(0)
    k1, k2, k3, k4, kx = jax.random.split(key, 5)
    params = {
        "w1": 0.05 * jax.random.normal(k1, (3, 3, C, C), jnp.float32),
        "b1": 0.05 * jax.random.normal(k2, (C,), jnp.float32),
        "w2": 0.05 * jax.random.normal(k3, (3, 3, C, C), jnp.float32),
        "b2": 0.05 * jax.random.normal(k4, (C,), jnp.float32),
    }
    x = jax.random.normal(kx, (N, C, H, W), jnp.float32)   # NCHW like PyTorch

    fwd = jax.jit(resblock_forward)
    out = jax.block_until_ready(fwd(x, params))
    ref = jax.block_until_ready(resblock_ref(x, params))

    assert out.shape == (N, C, H, W), out.shape
    max_err = float(jnp.max(jnp.abs(out - ref)))
    # bf16 matmul operands with f32 accumulation -> loosened tolerance
    assert jnp.allclose(out, ref, atol=5e-2, rtol=5e-2), max_err
    print("KERNEL_OK")
</pallas_src>

<mosaic_0001>
module attributes {stable_mosaic.version = 11 : i64} {
  func.func @kernel(%arg0: i32, %arg1: memref<1x328x128xf32, #tpu.memory_space<vmem>>, %arg2: memref<9x128x128xbf16, #tpu.memory_space<vmem>>, %arg3: memref<1x128xf32, #tpu.memory_space<vmem>>, %arg4: memref<9x128x128xbf16, #tpu.memory_space<vmem>>, %arg5: memref<1x128xf32, #tpu.memory_space<vmem>>, %arg6: memref<288x1xf32, #tpu.memory_space<vmem>>, %arg7: memref<1x288x128xf32, #tpu.memory_space<vmem>>, %arg8: memref<328x128xbf16, #tpu.memory_space<vmem>>, %arg9: memref<328x128xbf16, #tpu.memory_space<vmem>>) attributes {dimension_semantics = [#tpu.dimension_semantics<parallel>], iteration_bounds = array<i64: 2>, scalar_prefetch = 0 : i64, scratch_operands = 2 : i64, tpu.core_type = #tpu.core_type<tc>, window_params = [{transform_indices = @transform_0, window_bounds = array<i64: 1, 328, 128>}, {pipeline_mode = #tpu.pipeline_mode<synchronous>, transform_indices = @transform_1, window_bounds = array<i64: 9, 128, 128>}, {pipeline_mode = #tpu.pipeline_mode<synchronous>, transform_indices = @transform_2, window_bounds = array<i64: 1, 128>}, {pipeline_mode = #tpu.pipeline_mode<synchronous>, transform_indices = @transform_3, window_bounds = array<i64: 9, 128, 128>}, {pipeline_mode = #tpu.pipeline_mode<synchronous>, transform_indices = @transform_4, window_bounds = array<i64: 1, 128>}, {pipeline_mode = #tpu.pipeline_mode<synchronous>, transform_indices = @transform_5, window_bounds = array<i64: 288, 1>}, {transform_indices = @transform_6, window_bounds = array<i64: 1, 288, 128>}]} {
    %c0 = arith.constant 0 : index
    %c0_0 = arith.constant 0 : index
    %c0_1 = arith.constant 0 : index
    %0 = vector.load %arg1[%c0, %c0_0, %c0_1] : memref<1x328x128xf32, #tpu.memory_space<vmem>>, vector<1x328x128xf32>
    %1 = vector.shape_cast %0 : vector<1x328x128xf32> to vector<328x128xf32>
    %2 = arith.truncf %1 : vector<328x128xf32> to vector<328x128xbf16>
    %c0_2 = arith.constant 0 : index
    %c0_3 = arith.constant 0 : index
    %3 = vector.load %arg8[%c0_2, %c0_3] : memref<328x128xbf16, #tpu.memory_space<vmem>>, vector<328x128xbf16>
    tpu.vector_store %arg8[%c0_2, %c0_3], %2 {strides = array<i32>} : memref<328x128xbf16, #tpu.memory_space<vmem>>, vector<328x128xbf16>,
    %cst = arith.constant 0.000000e+00 : bf16
    %4 = vector.broadcast %cst : bf16 to vector<19x128xbf16>
    %c0_4 = arith.constant 0 : index
    %c0_5 = arith.constant 0 : index
    %5 = vector.load %arg9[%c0_4, %c0_5] : memref<328x128xbf16, #tpu.memory_space<vmem>>, vector<19x128xbf16>
    tpu.vector_store %arg9[%c0_4, %c0_5], %4 {strides = array<i32>} : memref<328x128xbf16, #tpu.memory_space<vmem>>, vector<19x128xbf16>,
    %cst_6 = arith.constant 0.000000e+00 : bf16
    %6 = vector.broadcast %cst_6 : bf16 to vector<21x128xbf16>
    %c307 = arith.constant 307 : index
    %c0_7 = arith.constant 0 : index
    %7 = vector.load %arg9[%c307, %c0_7] : memref<328x128xbf16, #tpu.memory_space<vmem>>, vector<21x128xbf16>
    tpu.vector_store %arg9[%c307, %c0_7], %6 {strides = array<i32>} : memref<328x128xbf16, #tpu.memory_space<vmem>>, vector<21x128xbf16>,
    %c0_8 = arith.constant 0 : index
    %c0_9 = arith.constant 0 : index
    %8 = vector.load %arg6[%c0_8, %c0_9] : memref<288x1xf32, #tpu.memory_space<vmem>>, vector<288x1xf32>
    %cst_10 = arith.constant 0.000000e+00 : f32
    %9 = vector.broadcast %cst_10 : f32 to vector<288x128xf32>
    %c0_11 = arith.constant 0 : index
    %c0_12 = arith.constant 0 : index
    %10 = vector.load %arg8[%c0_11, %c0_12] : memref<328x128xbf16, #tpu.memory_space<vmem>>, vector<288x128xbf16>
    %c0_13 = arith.constant 0 : index
    %c0_14 = arith.constant 0 : index
    %c0_15 = arith.constant 0 : index
    %11 = vector.load %arg2[%c0_13, %c0_14, %c0_15] : memref<9x128x128xbf16, #tpu.memory_space<vmem>>, vector<1x128x128xbf16>
    %12 = vector.shape_cast %11 : vector<1x128x128xbf16> to vector<128x128xbf16>
    %cst_16 = arith.constant dense<0.000000e+00> : vector<288x128xf32>
    %13 = tpu.matmul %10, %12, %cst_16 {dimension_numbers = #tpu.dot_dimension_numbers<[1], [0], [0], [1], [0, 0, 1, 1], [], []>} : vector<288x128xbf16>, vector<128x128xbf16>, vector<288x128xf32> -> vector<288x128xf32>
    %14 = arith.addf %9, %13 : vector<288x128xf32>
    %c1 = arith.constant 1 : index
    %c0_17 = arith.constant 0 : index
    %15 = vector.load %arg8[%c1, %c0_17] : memref<328x128xbf16, #tpu.memory_space<vmem>>, vector<288x128xbf16>
    %c1_18 = arith.constant 1 : index
    %c0_19 = arith.constant 0 : index
    %c0_20 = arith.constant 0 : index
    %16 = vector.load %arg2[%c1_18, %c0_19, %c0_20] : memref<9x128x128xbf16, #tpu.memory_space<vmem>>, vector<1x128x128xbf16>
    %17 = vector.shape_cast %16 : vector<1x128x128xbf16> to vector<128x128xbf16>
    %cst_21 = arith.constant dense<0.000000e+00> : vector<288x128xf32>
    %18 = tpu.matmul %15, %17, %cst_21 {dimension_numbers = #tpu.dot_dimension_numbers<[1], [0], [0], [1], [0, 0, 1, 1], [], []>} : vector<288x128xbf16>, vector<128x128xbf16>, vector<288x128xf32> -> vector<288x128xf32>
    %19 = arith.addf %14, %18 : vector<288x128xf32>
    %c2 = arith.constant 2 : index
    %c0_22 = arith.constant 0 : index
    %20 = vector.load %arg8[%c2, %c0_22] : memref<328x128xbf16, #tpu.memory_space<vmem>>, vector<288x128xbf16>
    %c2_23 = arith.constant 2 : index
    %c0_24 = arith.constant 0 : index
    %c0_25 = arith.constant 0 : index
    %21 = vector.load %arg2[%c2_23, %c0_24, %c0_25] : memref<9x128x128xbf16, #tpu.memory_space<vmem>>, vector<1x128x128xbf16>
    %22 = vector.shape_cast %21 : vector<1x128x128xbf16> to vector<128x128xbf16>
    %cst_26 = arith.constant dense<0.000000e+00> : vector<288x128xf32>
    %23 = tpu.matmul %20, %22, %cst_26 {dimension_numbers = #tpu.dot_dimension_numbers<[1], [0], [0], [1], [0, 0, 1, 1], [], []>} : vector<288x128xbf16>, vector<128x128xbf16>, vector<288x128xf32> -> vector<288x128xf32>
    %24 = arith.addf %19, %23 : vector<288x128xf32>
    %c18 = arith.constant 18 : index
    %c0_27 = arith.constant 0 : index
    %25 = vector.load %arg8[%c18, %c0_27] : memref<328x128xbf16, #tpu.memory_space<vmem>>, vector<288x128xbf16>
    %c3 = arith.constant 3 : index
    %c0_28 = arith.constant 0 : index
    %c0_29 = arith.constant 0 : index
    %26 = vector.load %arg2[%c3, %c0_28, %c0_29] : memref<9x128x128xbf16, #tpu.memory_space<vmem>>, vector<1x128x128xbf16>
    %27 = vector.shape_cast %26 : vector<1x128x128xbf16> to vector<128x128xbf16>
    %cst_30 = arith.constant dense<0.000000e+00> : vector<288x128xf32>
    %28 = tpu.matmul %25, %27, %cst_30 {dimension_numbers = #tpu.dot_dimension_numbers<[1], [0], [0], [1], [0, 0, 1, 1], [], []>} : vector<288x128xbf16>, vector<128x128xbf16>, vector<288x128xf32> -> vector<288x128xf32>
    %29 = arith.addf %24, %28 : vector<288x128xf32>
    %c19 = arith.constant 19 : index
    %c0_31 = arith.constant 0 : index
    %30 = vector.load %arg8[%c19, %c0_31] : memref<328x128xbf16, #tpu.memory_space<vmem>>, vector<288x128xbf16>
    %c4 = arith.constant 4 : index
    %c0_32 = arith.constant 0 : index
    %c0_33 = arith.constant 0 : index
    %31 = vector.load %arg2[%c4, %c0_32, %c0_33] : memref<9x128x128xbf16, #tpu.memory_space<vmem>>, vector<1x128x128xbf16>
    %32 = vector.shape_cast %31 : vector<1x128x128xbf16> to vector<128x128xbf16>
    %cst_34 = arith.constant dense<0.000000e+00> : vector<288x128xf32>
    %33 = tpu.matmul %30, %32, %cst_34 {dimension_numbers = #tpu.dot_dimension_numbers<[1], [0], [0], [1], [0, 0, 1, 1], [], []>} : vector<288x128xbf16>, vector<128x128xbf16>, vector<288x128xf32> -> vector<288x128xf32>
    %34 = arith.addf %29, %33 : vector<288x128xf32>
    %c20 = arith.constant 20 : index
    %c0_35 = arith.constant 0 : index
    %35 = vector.load %arg8[%c20, %c0_35] : memref<328x128xbf16, #tpu.memory_space<vmem>>, vector<288x128xbf16>
    %c5 = arith.constant 5 : index
    %c0_36 = arith.constant 0 : index
    %c0_37 = arith.constant 0 : index
    %36 = vector.load %arg2[%c5, %c0_36, %c0_37] : memref<9x128x128xbf16, #tpu.memory_space<vmem>>, vector<1x128x128xbf16>
    %37 = vector.shape_cast %36 : vector<1x128x128xbf16> to vector<128x128xbf16>
    %cst_38 = arith.constant dense<0.000000e+00> : vector<288x128xf32>
    %38 = tpu.matmul %35, %37, %cst_38 {dimension_numbers = #tpu.dot_dimension_numbers<[1], [0], [0], [1], [0, 0, 1, 1], [], []>} : vector<288x128xbf16>, vector<128x128xbf16>, vector<288x128xf32> -> vector<288x128xf32>
    %39 = arith.addf %34, %38 : vector<288x128xf32>
    %c36 = arith.constant 36 : index
    %c0_39 = arith.constant 0 : index
    %40 = vector.load %arg8[%c36, %c0_39] : memref<328x128xbf16, #tpu.memory_space<vmem>>, vector<288x128xbf16>
    %c6 = arith.constant 6 : index
    %c0_40 = arith.constant 0 : index
    %c0_41 = arith.constant 0 : index
    %41 = vector.load %arg2[%c6, %c0_40, %c0_41] : memref<9x128x128xbf16, #tpu.memory_space<vmem>>, vector<1x128x128xbf16>
    %42 = vector.shape_cast %41 : vector<1x128x128xbf16> to vector<128x128xbf16>
    %cst_42 = arith.constant dense<0.000000e+00> : vector<288x128xf32>
    %43 = tpu.matmul %40, %42, %cst_42 {dimension_numbers = #tpu.dot_dimension_numbers<[1], [0], [0], [1], [0, 0, 1, 1], [], []>} : vector<288x128xbf16>, vector<128x128xbf16>, vector<288x128xf32> -> vector<288x128xf32>
    %44 = arith.addf %39, %43 : vector<288x128xf32>
    %c37 = arith.constant 37 : index
    %c0_43 = arith.constant 0 : index
    %45 = vector.load %arg8[%c37, %c0_43] : memref<328x128xbf16, #tpu.memory_space<vmem>>, vector<288x128xbf16>
    %c7 = arith.constant 7 : index
    %c0_44 = arith.constant 0 : index
    %c0_45 = arith.constant 0 : index
    %46 = vector.load %arg2[%c7, %c0_44, %c0_45] : memref<9x128x128xbf16, #tpu.memory_space<vmem>>, vector<1x128x128xbf16>
    %47 = vector.shape_cast %46 : vector<1x128x128xbf16> to vector<128x128xbf16>
    %cst_46 = arith.constant dense<0.000000e+00> : vector<288x128xf32>
    %48 = tpu.matmul %45, %47, %cst_46 {dimension_numbers = #tpu.dot_dimension_numbers<[1], [0], [0], [1], [0, 0, 1, 1], [], []>} : vector<288x128xbf16>, vector<128x128xbf16>, vector<288x128xf32> -> vector<288x128xf32>
    %49 = arith.addf %44, %48 : vector<288x128xf32>
    %c38 = arith.constant 38 : index
    %c0_47 = arith.constant 0 : index
    %50 = vector.load %arg8[%c38, %c0_47] : memref<328x128xbf16, #tpu.memory_space<vmem>>, vector<288x128xbf16>
    %c8 = arith.constant 8 : index
    %c0_48 = arith.constant 0 : index
    %c0_49 = arith.constant 0 : index
    %51 = vector.load %arg2[%c8, %c0_48, %c0_49] : memref<9x128x128xbf16, #tpu.memory_space<vmem>>, vector<1x128x128xbf16>
    %52 = vector.shape_cast %51 : vector<1x128x128xbf16> to vector<128x128xbf16>
    %cst_50 = arith.constant dense<0.000000e+00> : vector<288x128xf32>
    %53 = tpu.matmul %50, %52, %cst_50 {dimension_numbers = #tpu.dot_dimension_numbers<[1], [0], [0], [1], [0, 0, 1, 1], [], []>} : vector<288x128xbf16>, vector<128x128xbf16>, vector<288x128xf32> -> vector<288x128xf32>
    %54 = arith.addf %49, %53 : vector<288x128xf32>
    %c0_51 = arith.constant 0 : index
    %c0_52 = arith.constant 0 : index
    %55 = vector.load %arg3[%c0_51, %c0_52] : memref<1x128xf32, #tpu.memory_space<vmem>>, vector<1x128xf32>
    %56 = vector.broadcast %55 : vector<1x128xf32> to vector<288x128xf32>
    %57 = arith.addf %54, %56 : vector<288x128xf32>
    %cst_53 = arith.constant 0.000000e+00 : f32
    %58 = vector.broadcast %cst_53 : f32 to vector<288x128xf32>
    %59 = arith.cmpf ogt, %57, %58 : vector<288x128xf32>
    %cst_54 = arith.constant 0.00999999977 : f32
    %60 = vector.broadcast %cst_54 : f32 to vector<288x128xf32>
    %61 = arith.mulf %60, %57 : vector<288x128xf32>
    %62 = arith.select %59, %57, %61 : vector<288x128xi1>, vector<288x128xf32>
    %63 = vector.broadcast %8 : vector<288x1xf32> to vector<288x128xf32>
    %64 = arith.mulf %62, %63 : vector<288x128xf32>
    %65 = arith.truncf %64 : vector<288x128xf32> to vector<288x128xbf16>
    %c19_55 = arith.constant 19 : index
    %c0_56 = arith.constant 0 : index
    %66 = vector.load %arg9[%c19_55, %c0_56] : memref<328x128xbf16, #tpu.memory_space<vmem>>, vector<288x128xbf16>
    tpu.vector_store %arg9[%c19_55, %c0_56], %65 {strides = array<i32>} : memref<328x128xbf16, #tpu.memory_space<vmem>>, vector<288x128xbf16>,
    %cst_57 = arith.constant 0.000000e+00 : f32
    %67 = vector.broadcast %cst_57 : f32 to vector<288x128xf32>
    %c0_58 = arith.constant 0 : index
    %c0_59 = arith.constant 0 : index
    %68 = vector.load %arg9[%c0_58, %c0_59] : memref<328x128xbf16, #tpu.memory_space<vmem>>, vector<288x128xbf16>
    %c0_60 = arith.constant 0 : index
    %c0_61 = arith.constant 0 : index
    %c0_62 = arith.constant 0 : index
    %69 = vector.load %arg4[%c0_60, %c0_61, %c0_62] : memref<9x128x128xbf16, #tpu.memory_space<vmem>>, vector<1x128x128xbf16>
    %70 = vector.shape_cast %69 : vector<1x128x128xbf16> to vector<128x128xbf16>
    %cst_63 = arith.constant dense<0.000000e+00> : vector<288x128xf32>
    %71 = tpu.matmul %68, %70, %cst_63 {dimension_numbers = #tpu.dot_dimension_numbers<[1], [0], [0], [1], [0, 0, 1, 1], [], []>} : vector<288x128xbf16>, vector<128x128xbf16>, vector<288x128xf32> -> vector<288x128xf32>
    %72 = arith.addf %67, %71 : vector<288x128xf32>
    %c1_64 = arith.constant 1 : index
    %c0_65 = arith.constant 0 : index
    %73 = vector.load %arg9[%c1_64, %c0_65] : memref<328x128xbf16, #tpu.memory_space<vmem>>, vector<288x128xbf16>
    %c1_66 = arith.constant 1 : index
    %c0_67 = arith.constant 0 : index
    %c0_68 = arith.constant 0 : index
    %74 = vector.load %arg4[%c1_66, %c0_67, %c0_68] : memref<9x128x128xbf16, #tpu.memory_space<vmem>>, vector<1x128x128xbf16>
    %75 = vector.shape_cast %74 : vector<1x128x128xbf16> to vector<128x128xbf16>
    %cst_69 = arith.constant dense<0.000000e+00> : vector<288x128xf32>
    %76 = tpu.matmul %73, %75, %cst_69 {dimension_numbers = #tpu.dot_dimension_numbers<[1], [0], [0], [1], [0, 0, 1, 1], [], []>} : vector<288x128xbf16>, vector<128x128xbf16>, vector<288x128xf32> -> vector<288x128xf32>
    %77 = arith.addf %72, %76 : vector<288x128xf32>
    %c2_70 = arith.constant 2 : index
    %c0_71 = arith.constant 0 : index
    %78 = vector.load %arg9[%c2_70, %c0_71] : memref<328x128xbf16, #tpu.memory_space<vmem>>, vector<288x128xbf16>
    %c2_72 = arith.constant 2 : index
    %c0_73 = arith.constant 0 : index
    %c0_74 = arith.constant 0 : index
    %79 = vector.load %arg4[%c2_72, %c0_73, %c0_74] : memref<9x128x128xbf16, #tpu.memory_space<vmem>>, vector<1x128x128xbf16>
    %80 = vector.shape_cast %79 : vector<1x128x128xbf16> to vector<128x128xbf16>
    %cst_75 = arith.constant dense<0.000000e+00> : vector<288x128xf32>
    %81 = tpu.matmul %78, %80, %cst_75 {dimension_numbers = #tpu.dot_dimension_numbers<[1], [0], [0], [1], [0, 0, 1, 1], [], []>} : vector<288x128xbf16>, vector<128x128xbf16>, vector<288x128xf32> -> vector<288x128xf32>
    %82 = arith.addf %77, %81 : vector<288x128xf32>
    %c18_76 = arith.constant 18 : index
    %c0_77 = arith.constant 0 : index
    %83 = vector.load %arg9[%c18_76, %c0_77] : memref<328x128xbf16, #tpu.memory_space<vmem>>, vector<288x128xbf16>
    %c3_78 = arith.constant 3 : index
    %c0_79 = arith.constant 0 : index
    %c0_80 = arith.constant 0 : index
    %84 = vector.load %arg4[%c3_78, %c0_79, %c0_80] : memref<9x128x128xbf16, #tpu.memory_space<vmem>>, vector<1x128x128xbf16>
    %85 = vector.shape_cast %84 : vector<1x128x128xbf16> to vector<128x128xbf16>
    %cst_81 = arith.constant dense<0.000000e+00> : vector<288x128xf32>
    %86 = tpu.matmul %83, %85, %cst_81 {dimension_numbers = #tpu.dot_dimension_numbers<[1], [0], [0], [1], [0, 0, 1, 1], [], []>} : vector<288x128xbf16>, vector<128x128xbf16>, vector<288x128xf32> -> vector<288x128xf32>
    %87 = arith.addf %82, %86 : vector<288x128xf32>
    %c19_82 = arith.constant 19 : index
    %c0_83 = arith.constant 0 : index
    %88 = vector.load %arg9[%c19_82, %c0_83] : memref<328x128xbf16, #tpu.memory_space<vmem>>, vector<288x128xbf16>
    %c4_84 = arith.constant 4 : index
    %c0_85 = arith.constant 0 : index
    %c0_86 = arith.constant 0 : index
    %89 = vector.load %arg4[%c4_84, %c0_85, %c0_86] : memref<9x128x128xbf16, #tpu.memory_space<vmem>>, vector<1x128x128xbf16>
    %90 = vector.shape_cast %89 : vector<1x128x128xbf16> to vector<128x128xbf16>
    %cst_87 = arith.constant dense<0.000000e+00> : vector<288x128xf32>
    %91 = tpu.matmul %88, %90, %cst_87 {dimension_numbers = #tpu.dot_dimension_numbers<[1], [0], [0], [1], [0, 0, 1, 1], [], []>} : vector<288x128xbf16>, vector<128x128xbf16>, vector<288x128xf32> -> vector<288x128xf32>
    %92 = arith.addf %87, %91 : vector<288x128xf32>
    %c20_88 = arith.constant 20 : index
    %c0_89 = arith.constant 0 : index
    %93 = vector.load %arg9[%c20_88, %c0_89] : memref<328x128xbf16, #tpu.memory_space<vmem>>, vector<288x128xbf16>
    %c5_90 = arith.constant 5 : index
    %c0_91 = arith.constant 0 : index
    %c0_92 = arith.constant 0 : index
    %94 = vector.load %arg4[%c5_90, %c0_91, %c0_92] : memref<9x128x128xbf16, #tpu.memory_space<vmem>>, vector<1x128x128xbf16>
    %95 = vector.shape_cast %94 : vector<1x128x128xbf16> to vector<128x128xbf16>
    %cst_93 = arith.constant dense<0.000000e+00> : vector<288x128xf32>
    %96 = tpu.matmul %93, %95, %cst_93 {dimension_numbers = #tpu.dot_dimension_numbers<[1], [0], [0], [1], [0, 0, 1, 1], [], []>} : vector<288x128xbf16>, vector<128x128xbf16>, vector<288x128xf32> -> vector<288x128xf32>
    %97 = arith.addf %92, %96 : vector<288x128xf32>
    %c36_94 = arith.constant 36 : index
    %c0_95 = arith.constant 0 : index
    %98 = vector.load %arg9[%c36_94, %c0_95] : memref<328x128xbf16, #tpu.memory_space<vmem>>, vector<288x128xbf16>
    %c6_96 = arith.constant 6 : index
    %c0_97 = arith.constant 0 : index
    %c0_98 = arith.constant 0 : index
    %99 = vector.load %arg4[%c6_96, %c0_97, %c0_98] : memref<9x128x128xbf16, #tpu.memory_space<vmem>>, vector<1x128x128xbf16>
    %100 = vector.shape_cast %99 : vector<1x128x128xbf16> to vector<128x128xbf16>
    %cst_99 = arith.constant dense<0.000000e+00> : vector<288x128xf32>
    %101 = tpu.matmul %98, %100, %cst_99 {dimension_numbers = #tpu.dot_dimension_numbers<[1], [0], [0], [1], [0, 0, 1, 1], [], []>} : vector<288x128xbf16>, vector<128x128xbf16>, vector<288x128xf32> -> vector<288x128xf32>
    %102 = arith.addf %97, %101 : vector<288x128xf32>
    %c37_100 = arith.constant 37 : index
    %c0_101 = arith.constant 0 : index
    %103 = vector.load %arg9[%c37_100, %c0_101] : memref<328x128xbf16, #tpu.memory_space<vmem>>, vector<288x128xbf16>
    %c7_102 = arith.constant 7 : index
    %c0_103 = arith.constant 0 : index
    %c0_104 = arith.constant 0 : index
    %104 = vector.load %arg4[%c7_102, %c0_103, %c0_104] : memref<9x128x128xbf16, #tpu.memory_space<vmem>>, vector<1x128x128xbf16>
    %105 = vector.shape_cast %104 : vector<1x128x128xbf16> to vector<128x128xbf16>
    %cst_105 = arith.constant dense<0.000000e+00> : vector<288x128xf32>
    %106 = tpu.matmul %103, %105, %cst_105 {dimension_numbers = #tpu.dot_dimension_numbers<[1], [0], [0], [1], [0, 0, 1, 1], [], []>} : vector<288x128xbf16>, vector<128x128xbf16>, vector<288x128xf32> -> vector<288x128xf32>
    %107 = arith.addf %102, %106 : vector<288x128xf32>
    %c38_106 = arith.constant 38 : index
    %c0_107 = arith.constant 0 : index
    %108 = vector.load %arg9[%c38_106, %c0_107] : memref<328x128xbf16, #tpu.memory_space<vmem>>, vector<288x128xbf16>
    %c8_108 = arith.constant 8 : index
    %c0_109 = arith.constant 0 : index
    %c0_110 = arith.constant 0 : index
    %109 = vector.load %arg4[%c8_108, %c0_109, %c0_110] : memref<9x128x128xbf16, #tpu.memory_space<vmem>>, vector<1x128x128xbf16>
    %110 = vector.shape_cast %109 : vector<1x128x128xbf16> to vector<128x128xbf16>
    %cst_111 = arith.constant dense<0.000000e+00> : vector<288x128xf32>
    %111 = tpu.matmul %108, %110, %cst_111 {dimension_numbers = #tpu.dot_dimension_numbers<[1], [0], [0], [1], [0, 0, 1, 1], [], []>} : vector<288x128xbf16>, vector<128x128xbf16>, vector<288x128xf32> -> vector<288x128xf32>
    %112 = arith.addf %107, %111 : vector<288x128xf32>
    %c0_112 = arith.constant 0 : index
    %c0_113 = arith.constant 0 : index
    %113 = vector.load %arg5[%c0_112, %c0_113] : memref<1x128xf32, #tpu.memory_space<vmem>>, vector<1x128xf32>
    %114 = vector.broadcast %113 : vector<1x128xf32> to vector<288x128xf32>
    %115 = arith.addf %112, %114 : vector<288x128xf32>
    %c0_114 = arith.constant 0 : index
    %c19_115 = arith.constant 19 : index
    %c0_116 = arith.constant 0 : index
    %116 = vector.load %arg1[%c0_114, %c19_115, %c0_116] : memref<1x328x128xf32, #tpu.memory_space<vmem>>, vector<1x288x128xf32>
    %117 = vector.shape_cast %116 : vector<1x288x128xf32> to vector<288x128xf32>
    %118 = arith.addf %115, %117 : vector<288x128xf32>
    %cst_117 = arith.constant 0.000000e+00 : f32
    %119 = vector.broadcast %cst_117 : f32 to vector<288x128xf32>
    %120 = arith.cmpf ogt, %118, %119 : vector<288x128xf32>
    %cst_118 = arith.constant 0.00999999977 : f32
    %121 = vector.broadcast %cst_118 : f32 to vector<288x128xf32>
    %122 = arith.mulf %121, %118 : vector<288x128xf32>
    %123 = arith.select %120, %118, %122 : vector<288x128xi1>, vector<288x128xf32>
    %c0_119 = arith.constant 0 : index
    %c0_120 = arith.constant 0 : index
    %c0_121 = arith.constant 0 : index
    %124 = vector.load %arg7[%c0_119, %c0_120, %c0_121] : memref<1x288x128xf32, #tpu.memory_space<vmem>>, vector<1x288x128xf32>
    %125 = vector.shape_cast %124 : vector<1x288x128xf32> to vector<288x128xf32>
    %126 = vector.shape_cast %123 : vector<288x128xf32> to vector<1x288x128xf32>
    tpu.vector_store %arg7[%c0_119, %c0_120, %c0_121], %126 {strides = array<i32>} : memref<1x288x128xf32, #tpu.memory_space<vmem>>, vector<1x288x128xf32>,
    return
  }
  func.func @transform_0(%arg0: i32) -> (i32, i32, i32) {
    %c0_i32 = arith.constant 0 : i32
    %c0_i32_0 = arith.constant 0 : i32
    %c0_i32_1 = arith.constant 0 : i32
    return %arg0, %c0_i32, %c0_i32_0 : i32, i32, i32
  }
  func.func @transform_1(%arg0: i32) -> (i32, i32, i32) {
    %c0_i32 = arith.constant 0 : i32
    %c0_i32_0 = arith.constant 0 : i32
    %c0_i32_1 = arith.constant 0 : i32
    %c0_i32_2 = arith.constant 0 : i32
    return %c0_i32, %c0_i32_0, %c0_i32_1 : i32, i32, i32
  }
  func.func @transform_2(%arg0: i32) -> (i32, i32) {
    %c0_i32 = arith.constant 0 : i32
    %c0_i32_0 = arith.constant 0 : i32
    %c0_i32_1 = arith.constant 0 : i32
    return %c0_i32, %c0_i32_0 : i32, i32
  }
  func.func @transform_3(%arg0: i32) -> (i32, i32, i32) {
    %c0_i32 = arith.constant 0 : i32
    %c0_i32_0 = arith.constant 0 : i32
    %c0_i32_1 = arith.constant 0 : i32
    %c0_i32_2 = arith.constant 0 : i32
    return %c0_i32, %c0_i32_0, %c0_i32_1 : i32, i32, i32
  }
  func.func @transform_4(%arg0: i32) -> (i32, i32) {
    %c0_i32 = arith.constant 0 : i32
    %c0_i32_0 = arith.constant 0 : i32
    %c0_i32_1 = arith.constant 0 : i32
    return %c0_i32, %c0_i32_0 : i32, i32
  }
  func.func @transform_5(%arg0: i32) -> (i32, i32) {
    %c0_i32 = arith.constant 0 : i32
    %c0_i32_0 = arith.constant 0 : i32
    %c0_i32_1 = arith.constant 0 : i32
    return %c0_i32, %c0_i32_0 : i32, i32
  }
  func.func @transform_6(%arg0: i32) -> (i32, i32, i32) {
    %c0_i32 = arith.constant 0 : i32
    %c0_i32_0 = arith.constant 0 : i32
    %c0_i32_1 = arith.constant 0 : i32
    return %arg0, %c0_i32, %c0_i32_0 : i32, i32, i32
  }
}

</mosaic_0001>

<bundles_post_ra>
// kernel: resblock_forward.1
= control target key start
LH: loop header
LB: loop body
LE: loop exit
PB: predicated region body
PF: predicated region fallthrough
CT: control target
= control target key end

     0   :  { %s9275_s21 = smov 0   ;;  %s12280_s0 = inlined_call_operand.vmem [shape: f32[2,328,128], index: 0, kind: input, shape index: {}]   ;;  %s12281_s1 = inlined_call_operand.vmem [shape: bf16[9,128,128], index: 1, kind: input, shape index: {}]   ;;  %s12282_s2 = inlined_call_operand.vmem [shape: f32[1,128], index: 2, kind: input, shape index: {}]   ;;  %s12283_s3 = inlined_call_operand.vmem [shape: bf16[9,128,128], index: 3, kind: input, shape index: {}]   ;;  %s12284_s4 = inlined_call_operand.vmem [shape: f32[1,128], index: 4, kind: input, shape index: {}]   ;;  %s12285_s5 = inlined_call_operand.vmem [shape: f32[288,1], index: 5, kind: input, shape index: {}]   ;;  %s12286_s6 = inlined_call_operand.vmem [shape: f32[2,288,128], index: 6, kind: output, shape index: {}]  }
   0x1 LB: > { %s7528_s22 = sadd.s32 4294967295, %s9237_s21   ;;  %p7532_p0 = scmp.ge.s32.totalorder %s9237_s21, 1  ;;  %s9237_s21 = sphi %s9275_s21, %s16_s21  }
   0x2   : > { %p212_p1 = scmp.lt.s32.totalorder %s9237_s21, 3 }
   0x4   : > { %p213_p2 = pnand %p7532_p0, %p212_p1 }
   0x6   : > { %216 = sbr.rel (%p213_p2) target bundleno = 1644 (0x66c), region = 44 }
   0xb   : > { %v8809_v0 = vld [vmem:[%s12281_s1 + $0x78] sm:$0xff]  ;;  %p242_p3 = scmp.lt.s32.totalorder %s7528_s22, 1  ;;  %v8808_v2 = vld [vmem:[%s12281_s1 + $0x70] sm:$0xff]  ;;  %v8807_v4 = vld [vmem:[%s12281_s1 + $0x68] sm:$0xff]  ;;  %vm591_vm0 = vsmask.f32 7424 }
   0xc   : > { %v8801_v1 = vld [vmem:[%s12281_s1 + $0x38] sm:$0xff]  ;;  %806 = vmatpush.bf16.msra.mxu0 %v8809_v0  ;;  %9156 = vmatpush.bf16.msra.mxu2 %v8809_v0  ;;  %v8800_v3 = vld [vmem:[%s12281_s1 + $0x30] sm:$0xff]  ;;  %v8799_v5 = vld [vmem:[%s12281_s1 + $0x28] sm:$0xff]  ;;  %vm1091_vm1 = vcmask 1046528   ;;  %vm1736_vm2 = vsmask.f32 6400 }
   0xd   : > { %s12537_s22 = smov (!%p242_p3, %s7528_s22), 1  ;;  %9164 = vmatpush.bf16.msra.mxu3 %v8801_v1  ;;  %971 = vmatpush.bf16.msra.mxu1 %v8801_v1  ;;  %v8806_v9 = vld [vmem:[%s12281_s1 + $0x60] sm:$0xff]  ;;  %v8805_v26 = vld [vmem:[%s12281_s1 + $0x58] sm:$0xff]  ;;  %v8804_v31 = vld [vmem:[%s12281_s1 + $0x50] sm:$0xff]  ;;  %vm2129_vm3 = vcmask 1045504   ;;  %vm3167_vm4 = vcmask 1044480  }
   0xe   : > { %s9172_s7 = smul.u32 328, %s12537_s22  ;;  %v8798_v23 = vld [vmem:[%s12281_s1 + $0x20] sm:$0xff]  ;;  %v8797_v27 = vld [vmem:[%s12281_s1 + $0x18] sm:$0xff]  ;;  %v8796_v35 = vld [vmem:[%s12281_s1 + $0x10] sm:$0xff]  ;;  %vm2774_vm5 = vsmask.f32 5376 }
   0xf   : > { %v8803_v42 = vld [vmem:[%s12281_s1 + $0x48] sm:$0xff]  ;;  %v8802_v49 = vld [vmem:[%s12281_s1 + $0x40] sm:$0xff]  ;;  %v8817_v55 = vld [vmem:[%s12281_s1 + $0xb8] sm:$0xff]  ;;  %vm378_vm6 = vcmask 1041408   ;;  %vm379_vm7 = vsmask.f32 1280 }
  0x10   : > { %807 = vmatpush.bf16.msra.mxu0 %v8808_v2  ;;  %9157 = vmatpush.bf16.msra.mxu2 %v8808_v2  ;;  %s9307_s14 = scalar_lea.vmem %s12280_s0, %s9172_s7  ;;  %v8795_v47 = vld [vmem:[%s12281_s1 + $0x8] sm:$0xff]  ;;  %v8794_v54 = vld [vmem:[%s12281_s1] sm:$0xff]  ;;  %v8842_v56 = vld [vmem:[%s12281_s1 + $0xf8] sm:$0xff]  ;;  %vm384_vm8 = vcmask 1043457   ;;  %vm385_vm10 = vsmask.f32 7942 }
  0x11   : > { %9165 = vmatpush.bf16.msra.mxu3 %v8800_v3  ;;  %972 = vmatpush.bf16.msra.mxu1 %v8800_v3  ;;  %v253_v6 = vld [vmem:[%s9307_s14] sm:$0xff]  ;;  %v254_v7 = vld [vmem:[%s9307_s14 + $0x8] sm:$0xff]  ;;  %v255_v8 = vld [vmem:[%s9307_s14 + $0x10] sm:$0xff]  ;;  %vm3806_vm14 = vsmask.f32 5392  ;;  %s9173_s13 = smul.u32 288, %s12537_s22 }
  0x12   : > { %v256_v10 = vld [vmem:[%s9307_s14 + $0x18] sm:$0xff]  ;;  %v9316_v11 = vpack.c.bf16 %v254_v7, %v253_v6  ;;  %v271_v12 = vld [vmem:[%s9307_s14 + $0x90] sm:$0xff]  ;;  %v273_v15 = vld [vmem:[%s9307_s14 + $0xa0] sm:$0xff] }
  0x13   : > { %v272_v13 = vld [vmem:[%s9307_s14 + $0x98] sm:$0xff]  ;;  %v9031_v14 = vpack.c.bf16 %v256_v10, %v255_v8  ;;  %v274_v16 = vld [vmem:[%s9307_s14 + $0xa8] sm:$0xff]  ;;  %v257_v18 = vld [vmem:[%s9307_s14 + $0x20] sm:$0xff]  ;;  %s12045_s17 = scalar_lea.vmem %s12286_s6, %s9173_s13 }
  0x14   : > { %v9071_v17 = vpack.c.bf16 %v272_v13, %v271_v12  ;;  %808 = vmatpush.bf16.msra.mxu0 %v8807_v4  ;;  %9158 = vmatpush.bf16.msra.mxu2 %v8807_v4  ;;  %9027 = vst [vmem:[#allocation2] sm:$0xff] %v9316_v11   ;;  %v9076_v19 = vpack.c.bf16 %v274_v16, %v273_v15  ;;  %v258_v20 = vld [vmem:[%s9307_s14 + $0x28] sm:$0xff]  ;;  %v275_v21 = vld [vmem:[%s9307_s14 + $0xb0] sm:$0xff]  ;;  %v276_v22 = vld [vmem:[%s9307_s14 + $0xb8] sm:$0xff]  ;;  %v595_v33 = vshll.u32 %v9316_v11, 16  ;;  %v593_v40 = vshrl.u32 %v9316_v11, 16 }
  0x15   : > { %9166 = vmatpush.bf16.msra.mxu3 %v8799_v5  ;;  %973 = vmatpush.bf16.msra.mxu1 %v8799_v5  ;;  %9131 = vst [vmem:[#allocation2 + $0x8] sm:$0xff] %v9031_v14   ;;  %v9036_v24 = vpack.c.bf16 %v258_v20, %v257_v18  ;;  %v9081_v25 = vpack.c.bf16 %v276_v22, %v275_v21  ;;  %v259_v28 = vld [vmem:[%s9307_s14 + $0x30] sm:$0xff]  ;;  %v260_v29 = vld [vmem:[%s9307_s14 + $0x38] sm:$0xff]  ;;  %v277_v30 = vld [vmem:[%s9307_s14 + $0xc0] sm:$0xff] }
  0x16   : > { %9139 = vst [vmem:[#allocation2 + $0x48] sm:$0xff] %v9071_v17   ;;  %v9041_v34 = vpack.c.bf16 %v260_v29, %v259_v28  ;;  %v278_v37 = vld [vmem:[%s9307_s14 + $0xc8] sm:$0xff]  ;;  %v597_v43 = vrot.slane %v595_v33, 1  ;;  %v8850_v59 = vld [vmem:[%s12281_s1 + $0x138] sm:$0xff]  ;;  %v8816_v60 = vld [vmem:[%s12281_s1 + $0xb0] sm:$0xff] }
  0x17   : > { %9140 = vst [vmem:[#allocation2 + $0x50] sm:$0xff] %v9076_v19   ;;  %v9086_v39 = vpack.c.bf16 %v278_v37, %v277_v30  ;;  %v8841_v61 = vld [vmem:[%s12281_s1 + $0xf0] sm:$0xff]  ;;  %v261_v62 = vld [vmem:[%s9307_s14 + $0x40] sm:$0xff]  ;;  %v262_v63 = vld [vmem:[%s9307_s14 + $0x48] sm:$0xff] }
  0x18   : > { %809 = vmatpush.bf16.msra.mxu0 %v8806_v9  ;;  %9159 = vmatpush.bf16.msra.mxu2 %v8806_v9  ;;  %9132 = vst [vmem:[#allocation2 + $0x10] sm:$0xff] %v9036_v24   ;;  %v598_v50 = vor.u32 %v597_v43, %v593_v40  ;;  %v279_v0 = vld [vmem:[%s9307_s14 + $0xd0] sm:$0xff]  ;;  %v9046_v3 = vpack.c.bf16 %v262_v63, %v261_v62  ;;  %v280_v5 = vld [vmem:[%s9307_s14 + $0xd8] sm:$0xff]  ;;  %v8815_v6 = vld [vmem:[%s12281_s1 + $0xa8] sm:$0xff] }
  0x19   : > { %9167 = vmatpush.bf16.msra.mxu3 %v8798_v23  ;;  %974 = vmatpush.bf16.msra.mxu1 %v8798_v23  ;;  %9141 = vst [vmem:[#allocation2 + $0x58] sm:$0xff] %v9081_v25   ;;  %v8849_v4 = vld [vmem:[%s12281_s1 + $0x130] sm:$0xff]  ;;  %v8840_v7 = vld [vmem:[%s12281_s1 + $0xe8] sm:$0xff]  ;;  %v9091_v8 = vpack.c.bf16 %v280_v5, %v279_v0  ;;  %v264_v23 = vld [vmem:[%s9307_s14 + $0x58] sm:$0xff] }
  0x1a   : > { %9133 = vst [vmem:[#allocation2 + $0x18] sm:$0xff] %v9041_v34   ;;  %v8848_v13 = vld [vmem:[%s12281_s1 + $0x128] sm:$0xff]  ;;  %v263_v22 = vld [vmem:[%s9307_s14 + $0x50] sm:$0xff]  ;;  %v281_v24 = vld [vmem:[%s9307_s14 + $0xe0] sm:$0xff] }
  0x1b   : > { %9142 = vst [vmem:[#allocation2 + $0x60] sm:$0xff] %v9086_v39   ;;  %v8814_v25 = vld [vmem:[%s12281_s1 + $0xa0] sm:$0xff]  ;;  %v282_v28 = vld [vmem:[%s9307_s14 + $0xe8] sm:$0xff]  ;;  %v8846_v5 = vld [vmem:[%s12281_s1 + $0x118] sm:$0xff] }
  0x1c   : > { %810 = vmatpush.bf16.msra.mxu0 %v8805_v26  ;;  %9160 = vmatpush.bf16.msra.mxu2 %v8805_v26  ;;  %v9342_v32 = vld [vmem:[#allocation2 + $0x8] sm:$0xff]  ;;  %9134 = vst [vmem:[#allocation2 + $0x20] sm:$0xff] %v9046_v3   ;;  %v8839_v26 = vld [vmem:[%s12281_s1 + $0xe0] sm:$0xff]  ;;  %v9096_v29 = vpack.c.bf16 %v282_v28, %v281_v24  ;;  %v268_v3 = vld [vmem:[%s9307_s14 + $0x78] sm:$0xff] }
  0x1d   : > { %9168 = vmatpush.bf16.msra.mxu3 %v8797_v27  ;;  %975 = vmatpush.bf16.msra.mxu1 %v8797_v27  ;;  %v8785_v36 = vld [vmem:[#allocation2 + $0x48] sm:$0xff]  ;;  %v600_v44 = vshll.u32 %v9342_v32, 16  ;;  %v604_v9 = vshrl.u32 %v9342_v32, 16  ;;  %9143 = vst [vmem:[#allocation2 + $0x68] sm:$0xff] %v9091_v8   ;;  %v9051_v27 = vpack.c.bf16 %v264_v23, %v263_v22  ;;  %v265_v43 = vld [vmem:[%s9307_s14 + $0x60] sm:$0xff]  ;;  %vm10233_vm9 = vmand %vm378_vm6, %vm379_vm7 }
  0x1e   : > { %v9349_v38 = vld [vmem:[#allocation2 + $0x50] sm:$0xff]  ;;  %v664_v41 = vshll.u32 %v8785_v36, 16  ;;  %v668_v45 = vshrl.u32 %v8785_v36, 16  ;;  %9144 = vst [vmem:[#allocation2 + $0x70] sm:$0xff] %v9096_v29   ;;  %v269_v24 = vld [vmem:[%s9307_s14 + $0x80] sm:$0xff]  ;;  %v8811_v28 = vld [vmem:[%s12281_s1 + $0x88] sm:$0xff] }
  0x1f   : > { %v672_v46 = vshll.u32 %v9349_v38, 16  ;;  %v602_v51 = vrot.slane %v600_v44, 1  ;;  %v9390_v1 = vld [vmem:[#allocation2 + $0x10] sm:$0xff]  ;;  %9135 = vst [vmem:[#allocation2 + $0x28] sm:$0xff] %v9051_v27   ;;  %v266_v44 = vld [vmem:[%s9307_s14 + $0x68] sm:$0xff]  ;;  %vm10239_vm11 = vmand %vm384_vm8, %vm385_vm10 }
  0x20   : > { %811 = vmatpush.bf16.msra.mxu0 %v8804_v31  ;;  %9161 = vmatpush.bf16.msra.mxu2 %v8804_v31  ;;  %v9360_v48 = vrot.slane %v664_v41, 1  ;;  %v8787_v2 = vld [vmem:[#allocation2 + $0x58] sm:$0xff]  ;;  %v608_v10 = vshll.u32 %v9390_v1, 16  ;;  %v612_v30 = vshrl.u32 %v9390_v1, 16  ;;  %v8845_v27 = vld [vmem:[%s12281_s1 + $0x110] sm:$0xff]  ;;  %v8836_v29 = vld [vmem:[%s12281_s1 + $0xc8] sm:$0xff] }
  0x21   : > { %9169 = vmatpush.bf16.msra.mxu3 %v8796_v35  ;;  %976 = vmatpush.bf16.msra.mxu1 %v8796_v35  ;;  %v674_v53 = vrot.slane %v672_v46, 1  ;;  %v603_v57 = vsel %vm591_vm0, %v598_v50, %v602_v51  ;;  %v680_v12 = vshll.u32 %v8787_v2, 16  ;;  %v606_v14 = vor.u32 %v604_v9, %v602_v51  ;;  %v9410_v20 = vld [vmem:[#allocation2 + $0x18] sm:$0xff]  ;;  %v8847_v46 = vld [vmem:[%s12281_s1 + $0x120] sm:$0xff]  ;;  %v286_v9 = vld [vmem:[%s9307_s14 + $0x108] sm:$0xff] }
  0x22   : > { %v670_v52 = vor.u32 %v668_v45, %v9360_v48  ;;  %v610_v15 = vrot.slane %v608_v10, 1  ;;  %v9412_v21 = vld [vmem:[#allocation2 + $0x60] sm:$0xff]  ;;  %v616_v31 = vshll.u32 %v9410_v20, 16  ;;  %v684_v33 = vshrl.u32 %v8787_v2, 16  ;;  %v283_v45 = vld [vmem:[%s9307_s14 + $0xf0] sm:$0xff]  ;;  %v284_v51 = vld [vmem:[%s9307_s14 + $0xf8] sm:$0xff] }
  0x23   : > { %v682_v17 = vrot.slane %v680_v12, 1  ;;  %v688_v34 = vshll.u32 %v9412_v21, 16  ;;  %v9431_v41 = vld [vmem:[#allocation2 + $0x20] sm:$0xff]  ;;  %v9056_v50 = vpack.c.bf16 %v266_v44, %v265_v43  ;;  %vm10327_vm6 = vmor %vm379_vm7, %vm3806_vm14 }
  0x24   : > { %812 = vmatpush.bf16.msra.mxu0 %v8803_v42  ;;  %9162 = vmatpush.bf16.msra.mxu2 %v8803_v42  ;;  %v675_v58 = vsel %vm591_vm0, %v670_v52, %v674_v53  ;;  %v611_v18 = vsel %vm591_vm0, %v606_v14, %v610_v15  ;;  %v614_v35 = vor.u32 %v612_v30, %v610_v15  ;;  %v9433_v42 = vld [vmem:[#allocation2 + $0x68] sm:$0xff] }
  0x25   : > { %9170 = vmatpush.bf16.msra.mxu3 %v8795_v47  ;;  %977 = vmatpush.bf16.msra.mxu1 %v8795_v47  ;;  %v686_v37 = vor.u32 %v684_v33, %v682_v17  ;;  %v8813_v47 = vld [vmem:[%s12281_s1 + $0x98] sm:$0xff]  ;;  %9136 = vst [vmem:[#allocation2 + $0x30] sm:$0xff] %v9056_v50   ;;  %v9101_v52 = vpack.c.bf16 %v284_v51, %v283_v45  ;;  %v9457_v0 = vld [vmem:[#allocation2 + $0x70] sm:$0xff]  ;;  %v289_v45 = vld [vmem:[%s9307_s14 + $0x120] sm:$0xff] }
  0x26   : > { %v9455_v63 = vld [vmem:[#allocation2 + $0x28] sm:$0xff]  ;;  %v704_v14 = vshll.u32 %v9457_v0, 16 }
  0x27   : > { %9145 = vst [vmem:[#allocation2 + $0x78] sm:$0xff] %v9101_v52   ;;  %v632_v12 = vshll.u32 %v9455_v63, 16  ;;  %v8844_v51 = vld [vmem:[%s12281_s1 + $0x108] sm:$0xff] }
  0x28   : > { %813 = vmatpush.bf16.msra.mxu0 %v8802_v49  ;;  %9163 = vmatpush.bf16.msra.mxu2 %v8802_v49  ;;  %v8838_v49 = vld [vmem:[%s12281_s1 + $0xd8] sm:$0xff] }
  0x29   : > { %9171 = vmatpush.bf16.msra.mxu3 %v8794_v54  ;;  %978 = vmatpush.bf16.msra.mxu1 %v8794_v54  ;;  %v624_v54 = vshll.u32 %v9431_v41, 16 }
  0x2b   : > { %814 = vmatmul.bf16.vlgmr.msra.gmra.mxu0 %v603_v57  ;;  %859 = vmatmul.bf16.vlgmr.msra.gmra.mxu2 %v675_v58  ;;  %v626_v58 = vrot.slane %v624_v54, 1 }
  0x2c   : > { %1195 = vmatpush.bf16.msrb.mxu2 %v8817_v55  ;;  %1024 = vmatmul.bf16.vlgmr.msra.gmra.mxu3 %v8785_v36  ;;  %v618_v36 = vrot.slane %v616_v31, 1  ;;  %v692_v55 = vshrl.u32 %v9412_v21, 16  ;;  %v9480_v22 = vld [vmem:[#allocation2 + $0x30] sm:$0xff]  ;;  %v288_v31 = vld [vmem:[%s9307_s14 + $0x118] sm:$0xff] }
  0x2d   : > { %1580 = vmatpush.bf16.msrb.mxu3 %v8842_v56  ;;  %979 = vmatmul.bf16.vlgmr.msra.gmra.mxu1 %v9316_v11  ;;  %v676_v11 = vshrl.u32 %v9349_v38, 16  ;;  %v696_v56 = vshll.u32 %v9433_v42, 16  ;;  %v644_v52 = vshrl.u32 %v9480_v22, 16 }
  0x2e   : > { %1973 = vmatpush.bf16.msrb.mxu0 %v8850_v59  ;;  %v619_v39 = vsel %vm591_vm0, %v614_v35, %v618_v36  ;;  %v8791_v23 = vld [vmem:[#allocation2 + $0x78] sm:$0xff]  ;;  %v640_v35 = vshll.u32 %v9480_v22, 16 }
  0x2f   : > { %v678_v16 = vor.u32 %v676_v11, %v674_v53  ;;  %v620_v53 = vshrl.u32 %v9410_v20, 16  ;;  %v628_v11 = vshrl.u32 %v9431_v41, 16  ;;  %v716_v54 = vshrl.u32 %v8791_v23, 16 }
  0x30   : > { %1196 = vmatpush.bf16.msrb.mxu2 %v8816_v60  ;;  %v698_v60 = vrot.slane %v696_v56, 1 }
  0x31   : > { %1581 = vmatpush.bf16.msrb.mxu3 %v8841_v61  ;;  %v683_v19 = vsel %vm591_vm0, %v678_v16, %v682_v17  ;;  %v622_v57 = vor.u32 %v620_v53, %v618_v36  ;;  %v630_v15 = vor.u32 %v628_v11, %v626_v58  ;;  %v634_v16 = vrot.slane %v632_v12, 1  ;;  %v8843_v11 = vld [vmem:[%s12281_s1 + $0x100] sm:$0xff] }
  0x32   : > { %1974 = vmatpush.bf16.msrb.mxu0 %v8849_v4  ;;  %v285_v4 = vld [vmem:[%s9307_s14 + $0x100] sm:$0xff]  ;;  %v708_v36 = vshrl.u32 %v9457_v0, 16 }
  0x33   : > { %v627_v61 = vsel %vm591_vm0, %v622_v57, %v626_v58  ;;  %v9106_v10 = vpack.c.bf16 %v286_v9, %v285_v4  ;;  %v8855_v12 = vld [vmem:[%s12281_s1 + $0x160] sm:$0xff] }
  0x34   : > { %1197 = vmatpush.bf16.msrb.mxu2 %v8815_v6  ;;  %v8812_v6 = vld [vmem:[%s12281_s1 + $0x90] sm:$0xff] }
  0x35   : > { %1582 = vmatpush.bf16.msrb.mxu3 %v8840_v7  ;;  %v8837_v7 = vld [vmem:[%s12281_s1 + $0xd0] sm:$0xff]  ;;  %9146 = vst [vmem:[#allocation2 + $0x80] sm:$0xff] %v9106_v10  }
  0x36   : > { %1975 = vmatpush.bf16.msrb.mxu0 %v8848_v13  ;;  %v700_v13 = vshrl.u32 %v9433_v42, 16 }
  0x38   : > { %1198 = vmatpush.bf16.msrb.mxu2 %v8814_v25  ;;  %v702_v17 = vor.u32 %v700_v13, %v698_v60  ;;  %v270_v25 = vld [vmem:[%s9307_s14 + $0x88] sm:$0xff] }
  0x39   : > { %1583 = vmatpush.bf16.msrb.mxu3 %v8839_v26  ;;  %v287_v26 = vld [vmem:[%s9307_s14 + $0x110] sm:$0xff]  ;;  %v9066_v30 = vpack.c.bf16 %v270_v25, %v269_v24 }
  0x3a   : > { %1976 = vmatpush.bf16.msrb.mxu0 %v8847_v46  ;;  %v9111_v33 = vpack.c.bf16 %v288_v31, %v287_v26  ;;  %v290_v46 = vld [vmem:[%s9307_s14 + $0x128] sm:$0xff]  ;;  %v8853_v24 = vld [vmem:[%s12281_s1 + $0x150] sm:$0xff]  ;;  %v8883_v26 = vld [vmem:[%s12281_s1 + $0x1b8] sm:$0xff] }
  0x3b   : > { %819 = vmatmul.bf16.gmra.mxu0 %v611_v18  ;;  %864 = vmatmul.bf16.gmra.mxu2 %v683_v19  ;;  %v706_v18 = vrot.slane %v704_v14, 1  ;;  %v635_v19 = vsel %vm591_vm0, %v630_v15, %v634_v16  ;;  %9138 = vst [vmem:[#allocation2 + $0x40] sm:$0xff] %v9066_v30  }
  0x3c   : > { %1029 = vmatmul.bf16.gmra.mxu3 %v9349_v38  ;;  %v690_v38 = vrot.slane %v688_v34, 1  ;;  %1199 = vmatpush.bf16.msrb.mxu2 %v8813_v47  ;;  %v636_v34 = vshrl.u32 %v9455_v63, 16  ;;  %9147 = vst [vmem:[#allocation2 + $0x88] sm:$0xff] %v9111_v33   ;;  %v9116_v47 = vpack.c.bf16 %v290_v46, %v289_v45  ;;  %v8792_v50 = vld [vmem:[#allocation2 + $0x80] sm:$0xff]  ;;  %v1330_v33 = vld [vmem:[#allocation2 + $0x8] sm:$0xe] }
  0x3d   : > { %984 = vmatmul.bf16.gmra.mxu1 %v9342_v32  ;;  %1584 = vmatpush.bf16.msrb.mxu3 %v8838_v49  ;;  %v724_v9 = vshrl.u32 %v8792_v50, 16 }
  0x3e   : > { %v691_v40 = vsel %vm591_vm0, %v686_v37, %v690_v38  ;;  %v694_v59 = vor.u32 %v692_v55, %v690_v38  ;;  %1977 = vmatpush.bf16.msrb.mxu0 %v8846_v5  ;;  %v712_v37 = vshll.u32 %v8791_v23, 16  ;;  %v638_v38 = vor.u32 %v636_v34, %v634_v16  ;;  %9148 = vst [vmem:[#allocation2 + $0x90] sm:$0xff] %v9116_v47   ;;  %v8835_v5 = vld [vmem:[%s12281_s1 + $0xc0] sm:$0xff]  ;;  %v1331_v34 = vld [vmem:[#allocation2 + $0xc] sm:$0xf]  ;;  %v9572_v47 = vld [vmem:[#allocation2 + $0x10] sm:$0xff] }
  0x3f   : > { %v720_v55 = vshll.u32 %v8792_v50, 16 }
  0x40   : > { %v699_v62 = vsel %vm591_vm0, %v694_v59, %v698_v60  ;;  %1200 = vmatpush.bf16.msrb.mxu2 %v8812_v6  ;;  %v8858_v60 = vld [vmem:[%s12281_s1 + $0x178] sm:$0xff]  ;;  %v8856_v6 = vld [vmem:[%s12281_s1 + $0x168] sm:$0xff] }
  0x41   : > { %1585 = vmatpush.bf16.msrb.mxu3 %v8837_v7  ;;  %v722_v59 = vrot.slane %v720_v55, 1  ;;  %2233 = vmatpush.bf16.msrb.mxu1 %v8858_v60  ;;  %v9150_v55 = vld [vmem:[#allocation2] sm:$0xf0] }
  0x42   : > { %1978 = vmatpush.bf16.msrb.mxu0 %v8845_v27  ;;  %v8891_v27 = vld [vmem:[%s12281_s1 + $0x1f8] sm:$0xff] }
  0x43   : > { %v8793_v4 = vld [vmem:[#allocation2 + $0x88] sm:$0xff]  ;;  %v726_v15 = vor.u32 %v724_v9, %v722_v59 }
  0x44   : > { %1201 = vmatpush.bf16.msrb.mxu2 %v8811_v28  ;;  %v728_v10 = vshll.u32 %v8793_v4, 16  ;;  %v732_v30 = vshrl.u32 %v8793_v4, 16 }
  0x45   : > { %1586 = vmatpush.bf16.msrb.mxu3 %v8836_v29  ;;  %v8852_v29 = vld [vmem:[%s12281_s1 + $0x148] sm:$0xff] }
  0x46   : > { %1979 = vmatpush.bf16.msrb.mxu0 %v8844_v51  ;;  %v730_v16 = vrot.slane %v728_v10, 1 }
  0x49   : > { %1587 = vmatpush.bf16.msrb.mxu3 %v8835_v5 }
  0x4a   : > { %1980 = vmatpush.bf16.msrb.mxu0 %v8843_v11  ;;  %v1093_v11 = vrot.slane %v9342_v32, 1 }
  0x4b   : > { %824 = vmatmul.bf16.gmra.mxu0 %v619_v39  ;;  %869 = vmatmul.bf16.gmra.mxu2 %v691_v40  ;;  %v642_v39 = vrot.slane %v640_v35, 1  ;;  %v710_v40 = vor.u32 %v708_v36, %v706_v18  ;;  %v8851_v35 = vld [vmem:[%s12281_s1 + $0x140] sm:$0xff]  ;;  %v8899_v36 = vld [vmem:[%s12281_s1 + $0x238] sm:$0xff] }
  0x4c   : > { %1034 = vmatmul.bf16.gmra.mxu3 %v8787_v2  ;;  %v267_v2 = vld [vmem:[%s9307_s14 + $0x70] sm:$0xff] }
  0x4d   : > { %989 = vmatmul.bf16.gmra.mxu1 %v9390_v1  ;;  %v9061_v8 = vpack.c.bf16 %v268_v3, %v267_v2  ;;  %v643_v43 = vsel %vm591_vm0, %v638_v38, %v642_v39  ;;  %v646_v56 = vor.u32 %v644_v52, %v642_v39  ;;  %v8857_v2 = vld [vmem:[%s12281_s1 + $0x170] sm:$0xff]  ;;  %v9525_v3 = vld [vmem:[#allocation2 + $0x40] sm:$0xff]  ;;  %3011 = vmatpush.bf16.msra.mxu3 %v8891_v27  ;;  %v1422_v38 = vunpack.c.l.b16 %v1331_v34  ;;  %v2108_v52 = vld [vmem:[#allocation2 + $0x8] sm:$0xc] }
  0x4e   : > { %2234 = vmatpush.bf16.msrb.mxu1 %v8857_v2  ;;  %v660_v28 = vshrl.u32 %v9525_v3, 16  ;;  %3271 = vmatpush.bf16.msra.mxu0 %v8899_v36 }
  0x4f   : > { %9137 = vst [vmem:[#allocation2 + $0x38] sm:$0xff] %v9061_v8   ;;  %v656_v8 = vshll.u32 %v9525_v3, 16 }
  0x51   : > { %v658_v14 = vrot.slane %v656_v8, 1 }
  0x52   : > { %2235 = vmatpush.bf16.msrb.mxu1 %v8856_v6 }
  0x53   : > { %v662_v39 = vor.u32 %v660_v28, %v658_v14 }
  0x55   : > { %v667_v45 = vsel %vm591_vm0, %v662_v39, %v9360_v48  ;;  %v1749_v48 = vshll.u32 %v9572_v47, 16 }
  0x56   : > { %v9506_v49 = vld [vmem:[#allocation2 + $0x38] sm:$0xff]  ;;  %2236 = vmatpush.bf16.msrb.mxu1 %v8855_v12 }
  0x57   : > { %v648_v53 = vshll.u32 %v9506_v49, 16  ;;  %v652_v7 = vshrl.u32 %v9506_v49, 16 }
  0x59   : > { %v650_v57 = vrot.slane %v648_v53, 1 }
  0x5b   : > { %829 = vmatmul.bf16.gmra.mxu0 %v627_v61  ;;  %874 = vmatmul.bf16.gmra.mxu2 %v699_v62  ;;  %v651_v61 = vsel %vm591_vm0, %v646_v56, %v650_v57  ;;  %v654_v13 = vor.u32 %v652_v7, %v650_v57  ;;  %v9151_v56 = vld [vmem:[#allocation2] sm:$0xe]  ;;  %v1746_v57 = vshrl.u32 %v9572_v47, 16  ;;  %v1751_v7 = vrot.slane %v1749_v48, 2 }
  0x5c   : > { %1039 = vmatmul.bf16.gmra.mxu3 %v9412_v21  ;;  %v707_v21 = vsel %vm591_vm0, %v702_v17, %v706_v18  ;;  %v480_v17 = vld [vmem:[#allocation2 + $0x90] sm:$0x1]  ;;  %v8854_v18 = vld [vmem:[%s12281_s1 + $0x158] sm:$0xff]  ;;  %v9615_v48 = vld [vmem:[#allocation2 + $0x20] sm:$0xff] }
  0x5d   : > { %994 = vmatmul.bf16.gmra.mxu1 %v9410_v20  ;;  %v1748_v6 = vrot.slane %v1746_v57, 1 }
  0x5e   : > { %2237 = vmatpush.bf16.msrb.mxu1 %v8854_v18 }
  0x62   : > { %2238 = vmatpush.bf16.msrb.mxu1 %v8853_v24 }
  0x66   : > { %2239 = vmatpush.bf16.msrb.mxu1 %v8852_v29 }
  0x6a   : > { %2240 = vmatpush.bf16.msrb.mxu1 %v8851_v35 }
  0x6b   : > { %834 = vmatmul.bf16.gmra.mxu0 %v635_v19  ;;  %879 = vmatmul.bf16.gmra.mxu2 %v707_v21  ;;  %v659_v19 = vsel %vm591_vm0, %v654_v13, %v658_v14  ;;  %v731_v21 = vsel %vm591_vm0, %v726_v15, %v730_v16  ;;  %v1478_v13 = vrot.slane %v9572_v47, 1  ;;  %v1752_v15 = vor.u32 %v1751_v7, %v1748_v6 }
  0x6c   : > { %1044 = vmatmul.bf16.gmra.mxu3 %v9433_v42  ;;  %v714_v42 = vrot.slane %v712_v37, 1  ;;  %v1421_v37 = vunpack.c.l.b16 %v1330_v33 }
  0x6d   : > { %999 = vmatmul.bf16.gmra.mxu1 %v9431_v41 }
  0x6e   : > { %v715_v44 = vsel %vm591_vm0, %v710_v40, %v714_v42  ;;  %v718_v58 = vor.u32 %v716_v54, %v714_v42  ;;  %v734_v40 = vor.u32 %v732_v30, %v730_v16 }
  0x70   : > { %v723_v62 = vsel %vm591_vm0, %v718_v58, %v722_v59  ;;  %v2127_v58 = vunpack.c.l.b16 %v2108_v52 }
  0x72   : > { %v2128_v8 = vpack.c.b16 %v1422_v38, %v2127_v58 }
  0x74   : > { %v2130_v16 = vrot.slane %v2128_v8, 2 }
  0x7b   : > { %839 = vmatmul.bf16.gmra.mxu0 %v643_v43  ;;  %884 = vmatmul.bf16.gmra.mxu2 %v715_v44  ;;  %v1458_v43 = vpack.c.b16 %v1422_v38, %v1421_v37 }
  0x7c   : > { %1049 = vmatmul.bf16.gmra.mxu3 %v9457_v0  ;;  %v8810_v0 = vld [vmem:[%s12281_s1 + $0x80] sm:$0xff] }
  0x7d   : > { %1004 = vmatmul.bf16.gmra.mxu1 %v9455_v63  ;;  %1202 = vmatpush.bf16.msrb.mxu2 %v8810_v0  ;;  %v1738_v53 = vshrl.u32 %v1458_v43, 16  ;;  %v1741_v54 = vshll.u32 %v1458_v43, 16  ;;  %v1477_v12 = vrot.slane %v1458_v43, 1 }
  0x7f   : > { %v1743_v5 = vrot.slane %v1741_v54, 2  ;;  %v1479_v28 = vsel %vm1091_vm1, %v1477_v12, %v1478_v13 }
  0x81   : > { %2618 = vmatpush.bf16.msra.mxu2 %v8883_v26  ;;  %v9590_v26 = vld [vmem:[#allocation2 + $0x18] sm:$0xff] }
  0x82   : > { %v1758_v33 = vshll.u32 %v9590_v26, 16 }
  0x84   : > { %v1760_v39 = vrot.slane %v1758_v33, 2 }
  0x8b   : > { %844 = vmatmul.bf16.gmra.mxu0 %v651_v61  ;;  %889 = vmatmul.bf16.gmra.mxu2 %v723_v62  ;;  %v9152_v61 = vor.u32 %v9151_v56, %v9150_v55  ;;  %v1740_v62 = vrot.slane %v1738_v53, 1 }
  0x8c   : > { %1054 = vmatmul.bf16.gmra.mxu3 %v8791_v23  ;;  %v571_v23 = vunpack.c.l.b16 %v480_v17  ;;  %v2131_v17 = vrot.slane %v9572_v47, 2  ;;  %v1480_v47 = vrot.slane %v9590_v26, 1 }
  0x8d   : > { %1009 = vmatmul.bf16.gmra.mxu1 %v9480_v22  ;;  %v1092_v10 = vrot.slane %v9152_v61, 1  ;;  %v1744_v14 = vor.u32 %v1743_v5, %v1740_v62  ;;  %v1764_v62 = vshrl.u32 %v9615_v48, 16 }
  0x8e   : > { %v9550_v25 = vpack.c.b16 %v571_v23, %v571_v23  ;;  %v2132_v29 = vsel %vm2129_vm3, %v2130_v16, %v2131_v17  ;;  %v2135_v16 = vrot.slane %v9615_v48, 2 }
  0x8f   : > { %v1094_v24 = vsel %vm1091_vm1, %v1092_v10, %v1093_v11  ;;  %v1753_v32 = vsel %vm1736_vm2, %v1744_v14, %v1752_v15  ;;  %v1766_v8 = vrot.slane %v1764_v62, 1 }
  0x90   : > { %v736_v31 = vshll.u32 %v9550_v25, 16 }
  0x92   : > { %v738_v42 = vrot.slane %v736_v31, 1  ;;  %v1755_v31 = vshrl.u32 %v9590_v26, 16 }
  0x94   : > { %v739_v46 = vsel %vm591_vm0, %v734_v40, %v738_v42  ;;  %v1757_v38 = vrot.slane %v1755_v31, 1  ;;  %v8882_v40 = vld [vmem:[%s12281_s1 + $0x1b0] sm:$0xff] }
  0x95   : > { %v8890_v42 = vld [vmem:[%s12281_s1 + $0x1f0] sm:$0xff]  ;;  %2619 = vmatpush.bf16.msra.mxu2 %v8882_v40 }
  0x96   : > { %3012 = vmatpush.bf16.msra.mxu3 %v8890_v42 }
  0x9b   : > { %849 = vmatmul.bf16.gmra.mxu0 %v659_v19  ;;  %894 = vmatmul.bf16.gmra.mxu2 %v731_v21 }
  0x9c   : > { %1059 = vmatmul.bf16.gmra.mxu3 %v8792_v50 }
  0x9d   : > { %1014 = vmatmul.bf16.gmra.mxu1 %v9506_v49 }
  0xa8   : > { %v815_v44 = vpop.f32.mrf.mxu0 }
  0xaa   : > { %v980_v50 = vpop.f32.mrf.mxu1 }
  0xab   : > { %v9574_v51 = vadd.f32 %v980_v50, %v815_v44  ;;  %854 = vmatmul.bf16.gmra.mxu0 %v667_v45  ;;  %899 = vmatmul.bf16.gmra.mxu2 %v739_v46  ;;  %v1095_v45 = vrot.slane %v9390_v1, 1  ;;  %v1761_v46 = vor.u32 %v1760_v39, %v1757_v38  ;;  %v2133_v50 = vrot.slane %v9590_v26, 2  ;;  %v8898_v1 = vld [vmem:[%s12281_s1 + $0x230] sm:$0xff]  ;;  %v9637_v26 = vld [vmem:[#allocation2 + $0x28] sm:$0xff] }
  0xac   : > { %1064 = vmatmul.bf16.gmra.mxu3 %v8793_v4  ;;  %3272 = vmatpush.bf16.msra.mxu0 %v8898_v1  ;;  %v1773_v31 = vshrl.u32 %v9637_v26, 16  ;;  %v1776_v33 = vshll.u32 %v9637_v26, 16 }
  0xad   : > { %1019 = vmatmul.bf16.gmra.mxu1 %v9525_v3  ;;  %v1096_v56 = vsel %vm1091_vm1, %v1093_v11, %v1095_v45  ;;  %v1762_v57 = vsel %vm1736_vm2, %v1752_v15, %v1761_v46  ;;  %v1482_v15 = vrot.slane %v9615_v48, 1 }
  0xae   : > { %v860_v59 = vpop.f32.mrf.mxu2  ;;  %v1775_v39 = vrot.slane %v1773_v31, 1  ;;  %v1778_v40 = vrot.slane %v1776_v33, 2 }
  0xaf   : > { %v1025_v60 = vpop.f32.mrf.mxu3 }
  0xb0   : > { %v9579_v0 = vadd.f32 %v1025_v60, %v860_v59  ;;  %v817_v2 = vpop.f32.mrf.mxu0  ;;  %v1481_v59 = vsel %vm1091_vm1, %v1478_v13, %v1480_v47  ;;  %v2134_v60 = vsel %vm2129_vm3, %v2131_v17, %v2133_v50  ;;  %v1097_v13 = vrot.slane %v9410_v20, 1 }
  0xb1   : > { %v2136_v20 = vsel %vm2129_vm3, %v2133_v50, %v2135_v16  ;;  %v1779_v50 = vor.u32 %v1778_v40, %v1775_v39 }
  0xb2   : > { %v982_v4 = vpop.f32.mrf.mxu1 }
  0xb3   : > { %v9581_v9 = vadd.f32 %v982_v4, %v817_v2  ;;  %v1767_v2 = vshll.u32 %v9615_v48, 16 }
  0xb5   : > { %v1769_v10 = vrot.slane %v1767_v2, 2 }
  0xb6   : > { %v862_v18 = vpop.f32.mrf.mxu2 }
  0xb7   : > { %v1027_v19 = vpop.f32.mrf.mxu3  ;;  %v1770_v14 = vor.u32 %v1769_v10, %v1766_v8 }
  0xb8   : > { %v9586_v21 = vadd.f32 %v1027_v19, %v862_v18  ;;  %v820_v23 = vpop.f32.mrf.mxu0 }
  0xba   : > { %v985_v27 = vpop.f32.mrf.mxu1 }
  0xbb   : > { %v9594_v30 = vadd.f32 %v985_v27, %v820_v23  ;;  %1203 = vmatmul.bf16.vlgmr.msrb.gmra.mxu2 %v1094_v24  ;;  %1981 = vmatmul.bf16.vlgmr.msrb.gmra.mxu0 %v1753_v32  ;;  %v1098_v24 = vsel %vm1091_vm1, %v1095_v45, %v1097_v13  ;;  %v1771_v32 = vsel %vm1736_vm2, %v1761_v46, %v1770_v14  ;;  %v8881_v45 = vld [vmem:[%s12281_s1 + $0x1a8] sm:$0xff] }
  0xbc   : > { %1588 = vmatmul.bf16.vlgmr.msrb.gmra.mxu3 %v1479_v28  ;;  %v1483_v28 = vsel %vm1091_vm1, %v1480_v47, %v1482_v15  ;;  %v8889_v46 = vld [vmem:[%s12281_s1 + $0x1e8] sm:$0xff]  ;;  %v1099_v47 = vrot.slane %v9431_v41, 1  ;;  %2620 = vmatpush.bf16.msra.mxu2 %v8881_v45 }
  0xbd   : > { %2241 = vmatmul.bf16.vlgmr.msrb.gmra.mxu1 %v2132_v29  ;;  %3013 = vmatpush.bf16.msra.mxu3 %v8889_v46 }
  0xbe   : > { %v865_v34 = vpop.f32.mrf.mxu2  ;;  %v1100_v1 = vsel %vm1091_vm1, %v1097_v13, %v1099_v47 }
  0xbf   : > { %v1030_v35 = vpop.f32.mrf.mxu3 }
  0xc0   : > { %v9598_v36 = vadd.f32 %v1030_v35, %v865_v34  ;;  %v822_v37 = vpop.f32.mrf.mxu0 }
  0xc2   : > { %v987_v43 = vpop.f32.mrf.mxu1 }
  0xc3   : > { %v9606_v44 = vadd.f32 %v987_v43, %v822_v37 }
  0xc6   : > { %v867_v52 = vpop.f32.mrf.mxu2 }
  0xc7   : > { %v1032_v53 = vpop.f32.mrf.mxu3 }
  0xc8   : > { %v9611_v54 = vadd.f32 %v1032_v53, %v867_v52  ;;  %v825_v55 = vpop.f32.mrf.mxu0  ;;  %v1484_v52 = vrot.slane %v9637_v26, 1  ;;  %v2137_v53 = vrot.slane %v9637_v26, 2 }
  0xca   : > { %v990_v58 = vpop.f32.mrf.mxu1  ;;  %v1485_v41 = vsel %vm1091_vm1, %v1482_v15, %v1484_v52  ;;  %v2138_v62 = vsel %vm2129_vm3, %v2135_v16, %v2137_v53 }
  0xcb   : > { %v9622_v61 = vadd.f32 %v990_v58, %v825_v55  ;;  %1208 = vmatmul.bf16.gmra.mxu2 %v1096_v56  ;;  %1986 = vmatmul.bf16.gmra.mxu0 %v1762_v57  ;;  %v1780_v58 = vsel %vm1736_vm2, %v1770_v14, %v1779_v50 }
  0xcc   : > { %1593 = vmatmul.bf16.gmra.mxu3 %v1481_v59  ;;  %v9662_v59 = vld [vmem:[#allocation2 + $0x30] sm:$0xff] }
  0xcd   : > { %2246 = vmatmul.bf16.gmra.mxu1 %v2134_v60 }
  0xce   : > { %v870_v5 = vpop.f32.mrf.mxu2 }
  0xcf   : > { %v1035_v6 = vpop.f32.mrf.mxu3 }
  0xd0   : > { %v9626_v7 = vadd.f32 %v1035_v6, %v870_v5  ;;  %v827_v4 = vpop.f32.mrf.mxu0  ;;  %v1782_v5 = vshrl.u32 %v9662_v59, 16  ;;  %v1785_v6 = vshll.u32 %v9662_v59, 16 }
  0xd2   : > { %v992_v11 = vpop.f32.mrf.mxu1  ;;  %v1784_v14 = vrot.slane %v1782_v5, 1  ;;  %v1787_v15 = vrot.slane %v1785_v6, 2 }
  0xd3   : > { %v9628_v12 = vadd.f32 %v992_v11, %v827_v4  ;;  %v8897_v4 = vld [vmem:[%s12281_s1 + $0x228] sm:$0xff] }
  0xd4   : > { %3273 = vmatpush.bf16.msra.mxu0 %v8897_v4 }
  0xd6   : > { %v872_v17 = vpop.f32.mrf.mxu2 }
  0xd7   : > { %v1037_v18 = vpop.f32.mrf.mxu3 }
  0xd8   : > { %v9633_v19 = vadd.f32 %v1037_v18, %v872_v17  ;;  %v830_v23 = vpop.f32.mrf.mxu0  ;;  %v1101_v18 = vrot.slane %v9455_v63, 1 }
  0xda   : > { %v995_v27 = vpop.f32.mrf.mxu1  ;;  %v1102_v31 = vsel %vm1091_vm1, %v1099_v47, %v1101_v18 }
  0xdb   : > { %v9641_v29 = vadd.f32 %v995_v27, %v830_v23  ;;  %1213 = vmatmul.bf16.gmra.mxu2 %v1098_v24  ;;  %1991 = vmatmul.bf16.gmra.mxu0 %v1771_v32  ;;  %v1788_v23 = vor.u32 %v1787_v15, %v1784_v14  ;;  %v1486_v24 = vrot.slane %v9662_v59, 1  ;;  %v2139_v32 = vrot.slane %v9662_v59, 2 }
  0xdc   : > { %1598 = vmatmul.bf16.gmra.mxu3 %v1483_v28 }
  0xdd   : > { %2251 = vmatmul.bf16.gmra.mxu1 %v2136_v20  ;;  %v1789_v33 = vsel %vm1736_vm2, %v1779_v50, %v1788_v23  ;;  %v2140_v63 = vsel %vm2129_vm3, %v2137_v53, %v2139_v32  ;;  %v1103_v53 = vrot.slane %v9480_v22, 1  ;;  %v8880_v22 = vld [vmem:[%s12281_s1 + $0x1a0] sm:$0xff] }
  0xde   : > { %v875_v34 = vpop.f32.mrf.mxu2  ;;  %2621 = vmatpush.bf16.msra.mxu2 %v8880_v22 }
  0xdf   : > { %v1040_v35 = vpop.f32.mrf.mxu3  ;;  %v1104_v6 = vsel %vm1091_vm1, %v1101_v18, %v1103_v53 }
  0xe0   : > { %v9645_v37 = vadd.f32 %v1040_v35, %v875_v34  ;;  %v832_v38 = vpop.f32.mrf.mxu0  ;;  %v9684_v34 = vld [vmem:[#allocation2 + $0x38] sm:$0xff] }
  0xe1   : > { %v1791_v40 = vshrl.u32 %v9684_v34, 16  ;;  %v2141_v59 = vrot.slane %v9684_v34, 2 }
  0xe2   : > { %v997_v42 = vpop.f32.mrf.mxu1 }
  0xe3   : > { %v9647_v43 = vadd.f32 %v997_v42, %v832_v38  ;;  %v1487_v38 = vsel %vm1091_vm1, %v1484_v52, %v1486_v24  ;;  %v1794_v42 = vshll.u32 %v9684_v34, 16  ;;  %v2142_v15 = vsel %vm2129_vm3, %v2139_v32, %v2141_v59  ;;  %v8896_v32 = vld [vmem:[%s12281_s1 + $0x220] sm:$0xff] }
  0xe4   : > { %3274 = vmatpush.bf16.msra.mxu0 %v8896_v32 }
  0xe6   : > { %v877_v55 = vpop.f32.mrf.mxu2 }
  0xe7   : > { %v1042_v56 = vpop.f32.mrf.mxu3 }
  0xe8   : > { %v9658_v57 = vadd.f32 %v1042_v56, %v877_v55  ;;  %v835_v48 = vpop.f32.mrf.mxu0  ;;  %v1793_v55 = vrot.slane %v1791_v40, 1  ;;  %v1796_v56 = vrot.slane %v1794_v42, 2 }
  0xea   : > { %v1000_v60 = vpop.f32.mrf.mxu1 }
  0xeb   : > { %v9666_v2 = vadd.f32 %v1000_v60, %v835_v48  ;;  %1218 = vmatmul.bf16.gmra.mxu2 %v1100_v1  ;;  %1996 = vmatmul.bf16.gmra.mxu0 %v1780_v58  ;;  %v1797_v1 = vor.u32 %v1796_v56, %v1793_v55  ;;  %v1488_v58 = vrot.slane %v9684_v34, 1 }
  0xec   : > { %1603 = vmatmul.bf16.gmra.mxu3 %v1485_v41 }
  0xed   : > { %2256 = vmatmul.bf16.gmra.mxu1 %v2138_v62  ;;  %v1798_v4 = vsel %vm1736_vm2, %v1788_v23, %v1797_v1  ;;  %v1489_v14 = vsel %vm1091_vm1, %v1486_v24, %v1488_v58 }
  0xee   : > { %v880_v8 = vpop.f32.mrf.mxu2 }
  0xef   : > { %v1045_v10 = vpop.f32.mrf.mxu3 }
  0xf0   : > { %v9673_v11 = vadd.f32 %v1045_v10, %v880_v8  ;;  %v837_v13 = vpop.f32.mrf.mxu0  ;;  %v9703_v8 = vld [vmem:[#allocation2 + $0x40] sm:$0xff] }
  0xf1   : > { %v8888_v10 = vld [vmem:[%s12281_s1 + $0x1e0] sm:$0xff]  ;;  %v1800_v18 = vshrl.u32 %v9703_v8, 16  ;;  %v1803_v23 = vshll.u32 %v9703_v8, 16  ;;  %v1490_v40 = vrot.slane %v9703_v8, 1  ;;  %v2143_v42 = vrot.slane %v9703_v8, 2 }
  0xf2   : > { %v1002_v16 = vpop.f32.mrf.mxu1  ;;  %3014 = vmatpush.bf16.msra.mxu3 %v8888_v10 }
  0xf3   : > { %v9675_v17 = vadd.f32 %v1002_v16, %v837_v13  ;;  %v1802_v24 = vrot.slane %v1800_v18, 1 }
  0xf6   : > { %v882_v26 = vpop.f32.mrf.mxu2 }
  0xf7   : > { %v1047_v27 = vpop.f32.mrf.mxu3 }
  0xf8   : > { %v9680_v28 = vadd.f32 %v1047_v27, %v882_v26  ;;  %v840_v20 = vpop.f32.mrf.mxu0 }
  0xfa   : > { %v1005_v35 = vpop.f32.mrf.mxu1 }
  0xfb   : > { %v9688_v39 = vadd.f32 %v1005_v35, %v840_v20  ;;  %1223 = vmatmul.bf16.gmra.mxu2 %v1102_v31  ;;  %2001 = vmatmul.bf16.gmra.mxu0 %v1789_v33  ;;  %v1805_v33 = vrot.slane %v1803_v23, 2 }
  0xfc   : > { %1608 = vmatmul.bf16.gmra.mxu3 %v1487_v38  ;;  %v1105_v38 = vrot.slane %v9506_v49, 1  ;;  %v2144_v49 = vsel %vm2129_vm3, %v2141_v59, %v2143_v42  ;;  %v1107_v59 = vrot.slane %v9525_v3, 1 }
  0xfd   : > { %2261 = vmatmul.bf16.gmra.mxu1 %v2140_v63  ;;  %v1806_v63 = vor.u32 %v1805_v33, %v1802_v24 }
  0xfe   : > { %v885_v45 = vpop.f32.mrf.mxu2  ;;  %v1106_v56 = vsel %vm1091_vm1, %v1103_v53, %v1105_v38  ;;  %v1108_v32 = vsel %vm1091_vm1, %v1105_v38, %v1107_v59  ;;  %v8879_v38 = vld [vmem:[%s12281_s1 + $0x198] sm:$0xff] }
  0xff   : > { %v1050_v46 = vpop.f32.mrf.mxu3  ;;  %2622 = vmatpush.bf16.msra.mxu2 %v8879_v38 }
 0x100   : > { %v9692_v47 = vadd.f32 %v1050_v46, %v885_v45  ;;  %v842_v50 = vpop.f32.mrf.mxu0 }
 0x102   : > { %v1007_v52 = vpop.f32.mrf.mxu1 }
 0x103   : > { %v9694_v48 = vadd.f32 %v1007_v52, %v842_v50  ;;  %v1807_v52 = vsel %vm1736_vm2, %v1797_v1, %v1806_v63 }
 0x106   : > { %v887_v60 = vpop.f32.mrf.mxu2 }
 0x107   : > { %v1052_v41 = vpop.f32.mrf.mxu3 }
 0x108   : > { %v9699_v62 = vadd.f32 %v1052_v41, %v887_v60  ;;  %v845_v5 = vpop.f32.mrf.mxu0  ;;  %v9731_v60 = vld [vmem:[#allocation2 + $0x48] sm:$0xff] }
 0x109   : > { %v1812_v8 = vshll.u32 %v9731_v60, 16  ;;  %v1492_v23 = vrot.slane %v9731_v60, 1 }
 0x10a   : > { %v1010_v13 = vpop.f32.mrf.mxu1 }
 0x10b   : > { %v9713_v16 = vadd.f32 %v1010_v13, %v845_v5  ;;  %1228 = vmatmul.bf16.gmra.mxu2 %v1104_v6  ;;  %2006 = vmatmul.bf16.gmra.mxu0 %v1798_v4  ;;  %v1491_v5 = vsel %vm1091_vm1, %v1488_v58, %v1490_v40  ;;  %v1809_v4 = vshrl.u32 %v9731_v60, 16 }
 0x10c   : > { %1613 = vmatmul.bf16.gmra.mxu3 %v1489_v14  ;;  %v1814_v14 = vrot.slane %v1812_v8, 2 }
 0x10d   : > { %2266 = vmatmul.bf16.gmra.mxu1 %v2142_v15  ;;  %v1811_v13 = vrot.slane %v1809_v4, 1 }
 0x10e   : > { %v890_v26 = vpop.f32.mrf.mxu2 }
 0x10f   : > { %v1055_v27 = vpop.f32.mrf.mxu3  ;;  %v1815_v18 = vor.u32 %v1814_v14, %v1811_v13 }
 0x110   : > { %v9717_v20 = vadd.f32 %v1055_v27, %v890_v26  ;;  %v847_v31 = vpop.f32.mrf.mxu0  ;;  %v2145_v26 = vrot.slane %v9731_v60, 2 }
 0x112   : > { %v1012_v34 = vpop.f32.mrf.mxu1  ;;  %v2146_v3 = vsel %vm2129_vm3, %v2143_v42, %v2145_v26 }
 0x113   : > { %v9722_v35 = vadd.f32 %v1012_v34, %v847_v31  ;;  %v1816_v34 = vsel %vm1736_vm2, %v1806_v63, %v1815_v18  ;;  %v8887_v63 = vld [vmem:[%s12281_s1 + $0x1d8] sm:$0xff] }
 0x114   : > { %3015 = vmatpush.bf16.msra.mxu3 %v8887_v63 }
 0x116   : > { %v892_v45 = vpop.f32.mrf.mxu2 }
 0x117   : > { %v1057_v46 = vpop.f32.mrf.mxu3 }
 0x118   : > { %v9727_v50 = vadd.f32 %v1057_v46, %v892_v45  ;;  %v850_v55 = vpop.f32.mrf.mxu0  ;;  %v9750_v45 = vld [vmem:[#allocation2 + $0x50] sm:$0xff] }
 0x119   : > { %v1821_v60 = vshll.u32 %v9750_v45, 16  ;;  %v1494_v14 = vrot.slane %v9750_v45, 1 }
 0x11a   : > { %v1015_v41 = vpop.f32.mrf.mxu1 }
 0x11b   : > { %v9735_v6 = vadd.f32 %v1015_v41, %v850_v55  ;;  %1233 = vmatmul.bf16.gmra.mxu2 %v1106_v56  ;;  %2011 = vmatmul.bf16.gmra.mxu0 %v1807_v52  ;;  %v1493_v55 = vsel %vm1091_vm1, %v1490_v40, %v1492_v23  ;;  %v1818_v52 = vshrl.u32 %v9750_v45, 16  ;;  %v1823_v4 = vrot.slane %v1821_v60, 2 }
 0x11c   : > { %1618 = vmatmul.bf16.gmra.mxu3 %v1491_v5 }
 0x11d   : > { %2271 = vmatmul.bf16.gmra.mxu1 %v2144_v49  ;;  %v1820_v49 = vrot.slane %v1818_v52, 1  ;;  %v1495_v52 = vsel %vm1091_vm1, %v1492_v23, %v1494_v14 }
 0x11e   : > { %v895_v53 = vpop.f32.mrf.mxu2 }
 0x11f   : > { %v1060_v22 = vpop.f32.mrf.mxu3  ;;  %v1824_v13 = vor.u32 %v1823_v4, %v1820_v49 }
 0x120   : > { %v9739_v1 = vadd.f32 %v1060_v22, %v895_v53  ;;  %v852_v10 = vpop.f32.mrf.mxu0  ;;  %v9188_v22 = vld [vmem:[#allocation2 + $0x48] sm:$0xff] }
 0x122   : > { %v1017_v58 = vpop.f32.mrf.mxu1 }
 0x123   : > { %v9741_v15 = vadd.f32 %v1017_v58, %v852_v10  ;;  %v1109_v10 = vrot.slane %v9188_v22, 1  ;;  %v2147_v58 = vrot.slane %v9750_v45, 2  ;;  %v9189_v22 = vld [vmem:[#allocation2 + $0x50] sm:$0xff] }
 0x125   : > { %v2148_v45 = vsel %vm2129_vm3, %v2145_v26, %v2147_v58  ;;  %v1111_v26 = vrot.slane %v9189_v22, 1 }
 0x126   : > { %v897_v27 = vpop.f32.mrf.mxu2 }
 0x127   : > { %v1062_v31 = vpop.f32.mrf.mxu3 }
 0x128   : > { %v9746_v24 = vadd.f32 %v1062_v31, %v897_v27  ;;  %v855_v33 = vpop.f32.mrf.mxu0  ;;  %v8895_v27 = vld [vmem:[%s12281_s1 + $0x218] sm:$0xff] }
 0x129   : > { %3275 = vmatpush.bf16.msra.mxu0 %v8895_v27 }
 0x12a   : > { %v1020_v46 = vpop.f32.mrf.mxu1 }
 0x12b   : > { %v9754_v56 = vadd.f32 %v1020_v46, %v855_v33  ;;  %1238 = vmatmul.bf16.gmra.mxu2 %v1108_v32  ;;  %2016 = vmatmul.bf16.gmra.mxu0 %v1816_v34  ;;  %v1110_v46 = vsel %vm1091_vm1, %v1107_v59, %v1109_v10 }
 0x12c   : > { %1623 = vmatmul.bf16.gmra.mxu3 %v1493_v55  ;;  %v1825_v55 = vsel %vm1736_vm2, %v1815_v18, %v1824_v13 }
 0x12d   : > { %2276 = vmatmul.bf16.gmra.mxu1 %v2146_v3  ;;  %v9777_v3 = vld [vmem:[#allocation2 + $0x58] sm:$0xff] }
 0x12e   : > { %v900_v40 = vpop.f32.mrf.mxu2  ;;  %v1827_v38 = vshrl.u32 %v9777_v3, 16  ;;  %v1830_v63 = vshll.u32 %v9777_v3, 16 }
 0x12f   : > { %v1065_v42 = vpop.f32.mrf.mxu3 }
 0x130   : > { %v9764_v41 = vadd.f32 %v1065_v42, %v900_v40  ;;  %v857_v5 = vpop.f32.mrf.mxu0  ;;  %v1832_v49 = vrot.slane %v1830_v63, 2 }
 0x132   : > { %v1022_v8 = vpop.f32.mrf.mxu1 }
 0x133   : > { %v9766_v53 = vadd.f32 %v1022_v8, %v857_v5  ;;  %v1829_v5 = vrot.slane %v1827_v38, 1  ;;  %v1112_v38 = vsel %vm1091_vm1, %v1109_v10, %v1111_v26 }
 0x135   : > { %v1833_v27 = vor.u32 %v1832_v49, %v1829_v5 }
 0x136   : > { %v902_v31 = vpop.f32.mrf.mxu2 }
 0x137   : > { %v1067_v33 = vpop.f32.mrf.mxu3  ;;  %v1834_v63 = vsel %vm1736_vm2, %v1824_v13, %v1833_v27  ;;  %v8932_v13 = vld [vmem:[%s12283_s3 + $0x78] sm:$0xff] }
 0x138   : > { %v9773_v32 = vadd.f32 %v1067_v33, %v902_v31  ;;  %v1982_v34 = vpop.f32.mrf.mxu0  ;;  %v1496_v33 = vrot.slane %v9777_v3, 1  ;;  %4622 = vmatpush.bf16.msra.mxu1 %v8932_v13 }
 0x13a   : > { %v2242_v60 = vpop.f32.mrf.mxu1 }
 0x13b   : > { %1243 = vmatmul.bf16.gmra.mxu2 %v1110_v46  ;;  %2021 = vmatmul.bf16.gmra.mxu0 %v1825_v55  ;;  %v2149_v46 = vrot.slane %v9777_v3, 2 }
 0x13c   : > { %1628 = vmatmul.bf16.gmra.mxu3 %v1495_v52 }
 0x13d   : > { %2281 = vmatmul.bf16.gmra.mxu1 %v2148_v45 }
 0x13e   : > { %v1204_v40 = vpop.f32.mrf.mxu2 }
 0x13f   : > { %v1294_v59 = vadd.f32 %v1204_v40, %v9574_v51  ;;  %v1589_v42 = vpop.f32.mrf.mxu3  ;;  %v9791_v40 = vld [vmem:[#allocation2 + $0x60] sm:$0xff] }
 0x140   : > { %v1984_v18 = vpop.f32.mrf.mxu0  ;;  %v1839_v5 = vshll.u32 %v9791_v40, 16 }
 0x141   : > { %v1679_v4 = vadd.f32 %v1589_v42, %v1294_v59  ;;  %v1497_v59 = vsel %vm1091_vm1, %v1494_v14, %v1496_v33  ;;  %v2150_v42 = vsel %vm2129_vm3, %v2147_v58, %v2149_v46 }
 0x142   : > { %v2244_v23 = vpop.f32.mrf.mxu1 }
 0x143   : > { %v2072_v8 = vadd.f32 %v1982_v34, %v1679_v4 }
 0x145   : > { %v9784_v31 = vadd.f32 %v2242_v60, %v2072_v8 }
 0x146   : > { %v1206_v55 = vpop.f32.mrf.mxu2 }
 0x147   : > { %v1295_v52 = vadd.f32 %v1206_v55, %v9581_v9  ;;  %v1591_v51 = vpop.f32.mrf.mxu3  ;;  %v1836_v9 = vshrl.u32 %v9791_v40, 16 }
 0x148   : > { %v1987_v45 = vpop.f32.mrf.mxu0 }
 0x149   : > { %v1680_v34 = vadd.f32 %v1591_v51, %v1295_v52  ;;  %v1838_v8 = vrot.slane %v1836_v9, 1  ;;  %v8878_v52 = vld [vmem:[%s12281_s1 + $0x190] sm:$0xff] }
 0x14a   : > { %v2247_v60 = vpop.f32.mrf.mxu1  ;;  %2623 = vmatpush.bf16.msra.mxu2 %v8878_v52 }
 0x14b   : > { %1248 = vmatmul.bf16.gmra.mxu2 %v1112_v38  ;;  %2026 = vmatmul.bf16.gmra.mxu0 %v1834_v63  ;;  %v2073_v3 = vadd.f32 %v1984_v18, %v1680_v34  ;;  %v1841_v18 = vrot.slane %v1839_v5, 2  ;;  %v9190_v38 = vld [vmem:[#allocation2 + $0x58] sm:$0xff] }
 0x14c   : > { %1633 = vmatmul.bf16.gmra.mxu3 %v1497_v59  ;;  %v1498_v59 = vrot.slane %v9791_v40, 1 }
 0x14d   : > { %2286 = vmatmul.bf16.gmra.mxu1 %v2150_v42  ;;  %v9797_v10 = vadd.f32 %v2244_v23, %v2073_v3  ;;  %v8886_v23 = vld [vmem:[%s12281_s1 + $0x1d0] sm:$0xff]  ;;  %v1842_v63 = vor.u32 %v1841_v18, %v1838_v8  ;;  %v2151_v42 = vrot.slane %v9791_v40, 2 }
 0x14e   : > { %v1209_v49 = vpop.f32.mrf.mxu2  ;;  %3016 = vmatpush.bf16.msra.mxu3 %v8886_v23  ;;  %v1499_v8 = vsel %vm1091_vm1, %v1496_v33, %v1498_v59  ;;  %v8894_v40 = vld [vmem:[%s12281_s1 + $0x210] sm:$0xff] }
 0x14f   : > { %v1296_v14 = vadd.f32 %v1209_v49, %v9594_v30  ;;  %v1594_v4 = vpop.f32.mrf.mxu3  ;;  %v1113_v30 = vrot.slane %v9190_v38, 1  ;;  %v2152_v18 = vsel %vm2129_vm3, %v2149_v46, %v2151_v42  ;;  %3276 = vmatpush.bf16.msra.mxu0 %v8894_v40 }
 0x150   : > { %v1989_v58 = vpop.f32.mrf.mxu0 }
 0x151   : > { %v1681_v22 = vadd.f32 %v1594_v4, %v1296_v14  ;;  %v1114_v49 = vsel %vm1091_vm1, %v1111_v26, %v1113_v30  ;;  %v9816_v14 = vld [vmem:[#allocation2 + $0x68] sm:$0xff] }
 0x152   : > { %v2249_v55 = vpop.f32.mrf.mxu1  ;;  %v1845_v26 = vshrl.u32 %v9816_v14, 16 }
 0x153   : > { %v2074_v51 = vadd.f32 %v1987_v45, %v1681_v22  ;;  %v1843_v45 = vsel %vm1736_vm2, %v1833_v27, %v1842_v63  ;;  %v1848_v27 = vshll.u32 %v9816_v14, 16 }
 0x155   : > { %v9809_v34 = vadd.f32 %v2247_v60, %v2074_v51  ;;  %v1847_v51 = vrot.slane %v1845_v26, 1  ;;  %v1850_v38 = vrot.slane %v1848_v27, 2 }
 0x156   : > { %v1211_v3 = vpop.f32.mrf.mxu2 }
 0x157   : > { %v1297_v9 = vadd.f32 %v1211_v3, %v9606_v44  ;;  %v1596_v5 = vpop.f32.mrf.mxu3 }
 0x158   : > { %v1992_v13 = vpop.f32.mrf.mxu0 }
 0x159   : > { %v1682_v4 = vadd.f32 %v1596_v5, %v1297_v9 }
 0x15a   : > { %v2252_v60 = vpop.f32.mrf.mxu1 }
 0x15b   : > { %1253 = vmatmul.bf16.gmra.mxu2 %v1114_v49  ;;  %2031 = vmatmul.bf16.gmra.mxu0 %v1843_v45  ;;  %v2075_v44 = vadd.f32 %v1989_v58, %v1682_v4  ;;  %v9191_v58 = vld [vmem:[#allocation2 + $0x60] sm:$0xff]  ;;  %v1851_v45 = vor.u32 %v1850_v38, %v1847_v51 }
 0x15c   : > { %1638 = vmatmul.bf16.gmra.mxu3 %v1499_v8  ;;  %v1115_v49 = vrot.slane %v9191_v58, 1  ;;  %v1500_v8 = vrot.slane %v9816_v14, 1 }
 0x15d   : > { %2291 = vmatmul.bf16.gmra.mxu1 %v2152_v18  ;;  %v9825_v22 = vadd.f32 %v2249_v55, %v2075_v44  ;;  %v2153_v55 = vrot.slane %v9816_v14, 2  ;;  %v1852_v27 = vsel %vm1736_vm2, %v1842_v63, %v1851_v45 }
 0x15e   : > { %v1214_v33 = vpop.f32.mrf.mxu2  ;;  %v1116_v26 = vsel %vm1091_vm1, %v1113_v30, %v1115_v49 }
 0x15f   : > { %v1298_v52 = vadd.f32 %v1214_v33, %v9622_v61  ;;  %v1599_v46 = vpop.f32.mrf.mxu3  ;;  %v9835_v33 = vld [vmem:[#allocation2 + $0x70] sm:$0xff] }
 0x160   : > { %v1994_v23 = vpop.f32.mrf.mxu0  ;;  %v1857_v51 = vshll.u32 %v9835_v33, 16 }
 0x161   : > { %v1683_v3 = vadd.f32 %v1599_v46, %v1298_v52  ;;  %v1501_v52 = vsel %vm1091_vm1, %v1498_v59, %v1500_v8  ;;  %v2154_v46 = vsel %vm2129_vm3, %v2151_v42, %v2153_v55 }
 0x162   : > { %v2254_v9 = vpop.f32.mrf.mxu1  ;;  %v1859_v58 = vrot.slane %v1857_v51, 2 }
 0x163   : > { %v2076_v5 = vadd.f32 %v1992_v13, %v1683_v3 }
 0x165   : > { %v9828_v4 = vadd.f32 %v2252_v60, %v2076_v5 }
 0x166   : > { %v1216_v18 = vpop.f32.mrf.mxu2 }
 0x167   : > { %v1299_v40 = vadd.f32 %v1216_v18, %v9628_v12  ;;  %v1601_v61 = vpop.f32.mrf.mxu3  ;;  %v1854_v12 = vshrl.u32 %v9835_v33, 16 }
 0x168   : > { %v1997_v44 = vpop.f32.mrf.mxu0 }
 0x169   : > { %v1684_v13 = vadd.f32 %v1601_v61, %v1299_v40  ;;  %v1856_v59 = vrot.slane %v1854_v12, 1  ;;  %v8877_v40 = vld [vmem:[%s12281_s1 + $0x188] sm:$0xff] }
 0x16a   : > { %v2257_v60 = vpop.f32.mrf.mxu1  ;;  %2624 = vmatpush.bf16.msra.mxu2 %v8877_v40 }
 0x16b   : > { %1258 = vmatmul.bf16.gmra.mxu2 %v1116_v26  ;;  %2036 = vmatmul.bf16.gmra.mxu0 %v1852_v27  ;;  %v2077_v14 = vadd.f32 %v1994_v23, %v1684_v13  ;;  %v8931_v23 = vld [vmem:[%s12283_s3 + $0x70] sm:$0xff]  ;;  %v1502_v13 = vrot.slane %v9835_v33, 1 }
 0x16c   : > { %1643 = vmatmul.bf16.gmra.mxu3 %v1501_v52  ;;  %4623 = vmatpush.bf16.msra.mxu1 %v8931_v23  ;;  %v2155_v52 = vrot.slane %v9835_v33, 2 }
 0x16d   : > { %2296 = vmatmul.bf16.gmra.mxu1 %v2154_v46  ;;  %v9841_v30 = vadd.f32 %v2254_v9, %v2077_v14  ;;  %v9192_v9 = vld [vmem:[#allocation2 + $0x68] sm:$0xff] }
 0x16e   : > { %v1219_v63 = vpop.f32.mrf.mxu2  ;;  %v1117_v26 = vrot.slane %v9192_v9, 1  ;;  %v8885_v46 = vld [vmem:[%s12281_s1 + $0x1c8] sm:$0xff] }
 0x16f   : > { %v1300_v38 = vadd.f32 %v1219_v63, %v9641_v29  ;;  %v1604_v3 = vpop.f32.mrf.mxu3  ;;  %v1860_v29 = vor.u32 %v1859_v58, %v1856_v59  ;;  %3017 = vmatpush.bf16.msra.mxu3 %v8885_v46  ;;  %v1503_v59 = vsel %vm1091_vm1, %v1500_v8, %v1502_v13  ;;  %v2156_v58 = vsel %vm2129_vm3, %v2153_v55, %v2155_v52 }
 0x170   : > { %v1999_v5 = vpop.f32.mrf.mxu0  ;;  %v1118_v63 = vsel %vm1091_vm1, %v1115_v49, %v1117_v26  ;;  %v9239_v8 = vmov 0  }
 0x171   : > { %v1685_v18 = vadd.f32 %v1604_v3, %v1300_v38  ;;  %v1861_v38 = vsel %vm1736_vm2, %v1851_v45, %v1860_v29  ;;  %v8893_v45 = vld [vmem:[%s12281_s1 + $0x208] sm:$0xff]  ;;  %9183 = vset.pattern.permute.xlu0 %v9239_v8  ;;  %376 = vst [vmem:[#allocation3] sm:$0xf] %v9239_v8  ;;  %9184 = vset.pattern.permute.xlu1 %v9239_v8 }
 0x172   : > { %v2259_v42 = vpop.f32.mrf.mxu1  ;;  %3277 = vmatpush.bf16.msra.mxu0 %v8893_v45  ;;  %377 = vst [vmem:[#allocation3 + $0x4] sm:$0xf] %v9239_v8  ;;  %9185 = vset.pattern.permute.xlu2 %v9239_v8 }
 0x173   : > { %v2078_v61 = vadd.f32 %v1997_v44, %v1685_v18  ;;  %390 = vst [vmem:[#allocation3 + $0x9c] sm:$0xf] %v9239_v8 }
 0x174   : > { %391 = vst [vmem:[#allocation3 + $0xa0] sm:$0xf] %v9239_v8 }
 0x175   : > { %v9850_v27 = vadd.f32 %v2257_v60, %v2078_v61  ;;  %v9860_v60 = vld [vmem:[#allocation2 + $0x78] sm:$0xff]  ;;  %v392_v61 = vld [vmem:[%s12285_s5] sm:$0xff] }
 0x176   : > { %v1221_v14 = vpop.f32.mrf.mxu2  ;;  %v1866_v23 = vshll.u32 %v9860_v60, 16  ;;  %3556 = vperm.xlu0 %9183, %v392_v61  }
 0x177   : > { %v1301_v12 = vadd.f32 %v1221_v14, %v9647_v43  ;;  %v1606_v51 = vpop.f32.mrf.mxu3  ;;  %v1863_v43 = vshrl.u32 %v9860_v60, 16 }
 0x178   : > { %v2002_v44 = vpop.f32.mrf.mxu0  ;;  %v1868_v46 = vrot.slane %v1866_v23, 2  ;;  %v393_v23 = vld [vmem:[%s12285_s5 + $0x8] sm:$0xff] }
 0x179   : > { %v1686_v3 = vadd.f32 %v1606_v51, %v1301_v12  ;;  %v1865_v9 = vrot.slane %v1863_v43, 1 }
 0x17a   : > { %v2262_v33 = vpop.f32.mrf.mxu1 }
 0x17b   : > { %1263 = vmatmul.bf16.gmra.mxu2 %v1118_v63  ;;  %2041 = vmatmul.bf16.gmra.mxu0 %v1861_v38  ;;  %v2079_v18 = vadd.f32 %v1999_v5, %v1686_v3  ;;  %v9193_v63 = vld [vmem:[#allocation2 + $0x70] sm:$0xff] }
 0x17c   : > { %1648 = vmatmul.bf16.gmra.mxu3 %v1503_v59  ;;  %v1119_v38 = vrot.slane %v9193_v63, 1  ;;  %v1504_v59 = vrot.slane %v9860_v60, 1 }
 0x17d   : > { %2301 = vmatmul.bf16.gmra.mxu1 %v2156_v58  ;;  %v9866_v49 = vadd.f32 %v2259_v42, %v2079_v18  ;;  %v2157_v58 = vrot.slane %v9860_v60, 2 }
 0x17e   : > { %v1224_v40 = vpop.f32.mrf.mxu2  ;;  %3561 = vperm.xlu0 %9183, %v393_v23  }
 0x17f   : > { %v1302_v55 = vadd.f32 %v1224_v40, %v9666_v2  ;;  %v1609_v5 = vpop.f32.mrf.mxu3  ;;  %v1869_v2 = vor.u32 %v1868_v46, %v1865_v9  ;;  %v2158_v61 = vsel %vm2129_vm3, %v2155_v52, %v2157_v58  ;;  %v398_v52 = vld [vmem:[%s12285_s5 + $0x30] sm:$0xff] }
 0x180   : > { %v2004_v42 = vpop.f32.mrf.mxu0 }
 0x181   : > { %v1687_v14 = vadd.f32 %v1609_v5, %v1302_v55  ;;  %v1870_v8 = vsel %vm1736_vm2, %v1860_v29, %v1869_v2  ;;  %v9885_v55 = vld [vmem:[#allocation2 + $0x80] sm:$0xff]  ;;  %v1505_v5 = vsel %vm1091_vm1, %v1502_v13, %v1504_v59  ;;  %v394_v13 = vld [vmem:[%s12285_s5 + $0x10] sm:$0xff] }
 0x182   : > { %v2264_v12 = vpop.f32.mrf.mxu1  ;;  %v1872_v9 = vshrl.u32 %v9885_v55, 16  ;;  %3566 = vperm.xlu1 %9184, %v394_v13  }
 0x183   : > { %v2080_v51 = vadd.f32 %v2002_v44, %v1687_v14  ;;  %v1120_v44 = vsel %vm1091_vm1, %v1117_v26, %v1119_v38  ;;  %v1875_v26 = vshll.u32 %v9885_v55, 16 }
 0x184   : > { %v1874_v63 = vrot.slane %v1872_v9, 1  ;;  %v291_v9 = vld [vmem:[%s9307_s14 + $0x130] sm:$0xff] }
 0x185   : > { %v9875_v3 = vadd.f32 %v2262_v33, %v2080_v51 }
 0x186   : > { %v1226_v18 = vpop.f32.mrf.mxu2  ;;  %3586 = vperm.xlu0 %9183, %v398_v52  }
 0x187   : > { %v1303_v45 = vadd.f32 %v1226_v18, %v9675_v17  ;;  %v1611_v43 = vpop.f32.mrf.mxu3  ;;  %v1877_v18 = vrot.slane %v1875_v26, 2  ;;  %v292_v26 = vld [vmem:[%s9307_s14 + $0x138] sm:$0xff] }
 0x188   : > { %v2007_v40 = vpop.f32.mrf.mxu0 }
 0x189   : > { %v1688_v33 = vadd.f32 %v1611_v43, %v1303_v45 }
 0x18a   : > { %v2267_v60 = vpop.f32.mrf.mxu1 }
 0x18b   : > { %1268 = vmatmul.bf16.gmra.mxu2 %v1120_v44  ;;  %2046 = vmatmul.bf16.gmra.mxu0 %v1870_v8  ;;  %v2081_v17 = vadd.f32 %v2004_v42, %v1688_v33  ;;  %v9903_v44 = vor.u32 %v1877_v18, %v1874_v63  ;;  %v1506_v33 = vrot.slane %v9885_v55, 1  ;;  %v9926_v63 = vld [vmem:[#allocation2 + $0x88] sm:$0xff] }
 0x18c   : > { %1653 = vmatmul.bf16.gmra.mxu3 %v1505_v5  ;;  %v2159_v5 = vrot.slane %v9885_v55, 2  ;;  %v405_v55 = vld [vmem:[%s12285_s5 + $0x68] sm:$0xff] }
 0x18d   : > { %2306 = vmatmul.bf16.gmra.mxu1 %v2158_v61  ;;  %v9891_v46 = vadd.f32 %v2264_v12, %v2081_v17  ;;  %v8930_v61 = vld [vmem:[%s12283_s3 + $0x68] sm:$0xff]  ;;  %v1879_v52 = vsel %vm1736_vm2, %v1869_v2, %v9903_v44  ;;  %v8884_v2 = vld [vmem:[%s12281_s1 + $0x1c0] sm:$0xff] }
 0x18e   : > { %v1229_v29 = vpop.f32.mrf.mxu2  ;;  %4624 = vmatpush.bf16.msra.mxu1 %v8930_v61  ;;  %v2160_v61 = vsel %vm2129_vm3, %v2157_v58, %v2159_v5  ;;  %3018 = vmatpush.bf16.msra.mxu3 %v8884_v2 }
 0x18f   : > { %v1304_v14 = vadd.f32 %v1229_v29, %v9688_v39  ;;  %v1614_v51 = vpop.f32.mrf.mxu3  ;;  %v9900_v39 = vld [vmem:[#allocation2 + $0x78] sm:$0xff] }
 0x190   : > { %v2009_v42 = vpop.f32.mrf.mxu0  ;;  %v1121_v23 = vrot.slane %v9900_v39, 1 }
 0x191   : > { %v1689_v12 = vadd.f32 %v1614_v51, %v1304_v14  ;;  %v401_v14 = vld [vmem:[%s12285_s5 + $0x48] sm:$0xff] }
 0x192   : > { %v2269_v45 = vpop.f32.mrf.mxu1  ;;  %v1122_v13 = vsel %vm1091_vm1, %v1119_v38, %v1121_v23  ;;  %3601 = vperm.xlu0 %9183, %v401_v14   ;;  %v8876_v38 = vld [vmem:[%s12281_s1 + $0x180] sm:$0xff] }
 0x193   : > { %v2082_v43 = vadd.f32 %v2007_v40, %v1689_v12  ;;  %v1507_v12 = vsel %vm1091_vm1, %v1504_v59, %v1506_v33  ;;  %v1881_v59 = vshrl.u32 %v9926_v63, 16  ;;  %2625 = vmatpush.bf16.msra.mxu2 %v8876_v38 }
 0x195   : > { %v9905_v8 = vadd.f32 %v2267_v60, %v2082_v43  ;;  %v395_v60 = vld [vmem:[%s12285_s5 + $0x18] sm:$0xff] }
 0x196   : > { %v1231_v17 = vpop.f32.mrf.mxu2  ;;  %3571 = vperm.xlu1 %9184, %v395_v60   ;;  %v399_v60 = vld [vmem:[%s12285_s5 + $0x38] sm:$0xff] }
 0x197   : > { %v1305_v40 = vadd.f32 %v1231_v17, %v9694_v48  ;;  %v1616_v29 = vpop.f32.mrf.mxu3  ;;  %v9121_v48 = vpack.c.bf16 %v292_v26, %v291_v9  ;;  %v1884_v9 = vshll.u32 %v9926_v63, 16 }
 0x198   : > { %v2012_v51 = vpop.f32.mrf.mxu0 }
 0x199   : > { %v1690_v18 = vadd.f32 %v1616_v29, %v1305_v40  ;;  %9149 = vst [vmem:[#allocation2 + $0x98] sm:$0xff] %v9121_v48  }
 0x19a   : > { %v2272_v43 = vpop.f32.mrf.mxu1 }
 0x19b   : > { %1273 = vmatmul.bf16.gmra.mxu2 %v1122_v13  ;;  %2051 = vmatmul.bf16.gmra.mxu0 %v1879_v52  ;;  %v2083_v17 = vadd.f32 %v2009_v42, %v1690_v18  ;;  %v404_v42 = vld [vmem:[%s12285_s5 + $0x60] sm:$0xff]  ;;  %v1883_v13 = vrot.slane %v1881_v59, 1  ;;  %v1886_v52 = vrot.slane %v1884_v9, 2  ;;  %v2161_v59 = vrot.slane %v9926_v63, 2 }
 0x19c   : > { %1658 = vmatmul.bf16.gmra.mxu3 %v1507_v12  ;;  %3616 = vperm.xlu0 %9183, %v404_v42   ;;  %v9195_v12 = vld [vmem:[#allocation2 + $0x80] sm:$0xff]  ;;  %v9972_v42 = vld [vmem:[#allocation2 + $0x90] sm:$0xff] }
 0x19d   : > { %2311 = vmatmul.bf16.gmra.mxu1 %v2160_v61  ;;  %v9942_v26 = vadd.f32 %v2269_v45, %v2083_v17  ;;  %v1123_v61 = vrot.slane %v9195_v12, 1  ;;  %v1887_v38 = vor.u32 %v1886_v52, %v1883_v13  ;;  %v1508_v17 = vrot.slane %v9926_v63, 1 }
 0x19e   : > { %v1234_v58 = vpop.f32.mrf.mxu2  ;;  %3591 = vperm.xlu1 %9184, %v399_v60  }
 0x19f   : > { %v1306_v40 = vadd.f32 %v1234_v58, %v9713_v16  ;;  %v1619_v29 = vpop.f32.mrf.mxu3  ;;  %v8892_v16 = vld [vmem:[%s12281_s1 + $0x200] sm:$0xff]  ;;  %v1888_v63 = vsel %vm1736_vm2, %v9903_v44, %v1887_v38  ;;  %v1509_v13 = vsel %vm1091_vm1, %v1506_v33, %v1508_v17  ;;  %v1893_v44 = vshll.u32 %v9972_v42, 16  ;;  %v410_v33 = vld [vmem:[%s12285_s5 + $0x90] sm:$0xff] }
 0x1a0   : > { %v2014_v14 = vpop.f32.mrf.mxu0  ;;  %3278 = vmatpush.bf16.msra.mxu0 %v8892_v16 }
 0x1a1   : > { %v1691_v45 = vadd.f32 %v1619_v29, %v1306_v40  ;;  %v402_v29 = vld [vmem:[%s12285_s5 + $0x50] sm:$0xff] }
 0x1a2   : > { %v9951_v48 = vpop.f32.mrf.mxu1 }
 0x1a3   : > { %v2084_v18 = vadd.f32 %v2012_v51, %v1691_v45  ;;  %v407_v51 = vld [vmem:[%s12285_s5 + $0x78] sm:$0xff]  ;;  %v2162_v45 = vsel %vm2129_vm3, %v2159_v5, %v2161_v59 }
 0x1a4   : > { %3631 = vperm.xlu0 %9183, %v407_v51  }
 0x1a5   : > { %v9956_v2 = vadd.f32 %v2272_v43, %v2084_v18  ;;  %v1124_v43 = vsel %vm1091_vm1, %v1121_v23, %v1123_v61  ;;  %v1890_v23 = vshrl.u32 %v9972_v42, 16 }
 0x1a6   : > { %v1236_v9 = vpop.f32.mrf.mxu2  ;;  %3606 = vperm.xlu1 %9184, %v402_v29   ;;  %v1715_v29 = vld [vmem:[#allocation2 + $0x98] sm:$0x3] }
 0x1a7   : > { %v1307_v58 = vadd.f32 %v1236_v9, %v9722_v35  ;;  %v1621_v40 = vpop.f32.mrf.mxu3  ;;  %v1895_v9 = vrot.slane %v1893_v44, 2 }
 0x1a8   : > { %v2017_v60 = vpop.f32.mrf.mxu0 }
 0x1a9   : > { %v1692_v35 = vadd.f32 %v1621_v40, %v1307_v58 }
 0x1aa   : > { %v2277_v52 = vpop.f32.mrf.mxu1 }
 0x1ab   : > { %1278 = vmatmul.bf16.gmra.mxu2 %v1124_v43  ;;  %2056 = vmatmul.bf16.gmra.mxu0 %v1888_v63  ;;  %v9980_v39 = vadd.f32 %v2014_v14, %v1692_v35  ;;  %v1892_v14 = vrot.slane %v1890_v23, 1  ;;  %v1734_v35 = vunpack.c.l.b16 %v1715_v29  ;;  %v12287_v23 = vrot.slane %v9972_v42, 2 }
 0x1ac   : > { %1663 = vmatmul.bf16.gmra.mxu3 %v1509_v13  ;;  %3646 = vperm.xlu0 %9183, %v410_v33  }
 0x1ad   : > { %2316 = vmatmul.bf16.gmra.mxu1 %v2162_v45  ;;  %v9996_v63 = vor.u32 %v1895_v9, %v1892_v14  ;;  %v12288_v45 = vrot.slane %v9972_v42, 1  ;;  %v1735_v14 = vpack.c.b16 %v1734_v35, %v1734_v35 }
 0x1ae   : > { %v1239_v16 = vpop.f32.mrf.mxu2  ;;  %3621 = vperm.xlu1 %9184, %v405_v55  }
 0x1af   : > { %v1308_v18 = vadd.f32 %v1239_v16, %v9735_v6  ;;  %v1624_v12 = vpop.f32.mrf.mxu3  ;;  %v9993_v6 = vld [vmem:[#allocation2 + $0x88] sm:$0xff]  ;;  %v1899_v35 = vshrl.u32 %v1735_v14, 16 }
 0x1b0   : > { %v2019_v5 = vpop.f32.mrf.mxu0  ;;  %v12289_v43 = vrot.slane %v9993_v6, 1 }
 0x1b1   : > { %v1693_v58 = vadd.f32 %v1624_v12, %v1308_v18  ;;  %v408_v12 = vld [vmem:[%s12285_s5 + $0x80] sm:$0xff] }
 0x1b2   : > { %v9991_v40 = vpop.f32.mrf.mxu1  ;;  %v1126_v33 = vsel %vm1091_vm1, %v1123_v61, %v12289_v43  ;;  %v8929_v61 = vld [vmem:[%s12283_s3 + $0x60] sm:$0xff] }
 0x1b3   : > { %12326 = vst [vmem:[#allocation4_spill] sm:$0xff] %v9991_v40  ;;  %v2086_v51 = vadd.f32 %v2017_v60, %v1693_v58  ;;  %v396_v60 = vld [vmem:[%s12285_s5 + $0x20] sm:$0xff]  ;;  %v1511_v58 = vsel %vm1091_vm1, %v1508_v17, %v12288_v45  ;;  %4625 = vmatpush.bf16.msra.mxu1 %v8929_v61  ;;  %v2368_v61 = vld [vmem:[#allocation2 + $0x10] sm:$0xc] }
 0x1b4   : > { %3576 = vperm.xlu2 %9185, %v396_v60   ;;  %v2459_v43 = vunpack.c.l.b16 %v2368_v61 }
 0x1b5   : > { %v9998_v13 = vadd.f32 %v2277_v52, %v2086_v51  ;;  %v413_v52 = vld [vmem:[%s12285_s5 + $0xa8] sm:$0xff]  ;;  %v2164_v51 = vsel %vm2129_vm3, %v2161_v59, %v12287_v23  ;;  %v1127_v23 = vrot.slane %v9550_v25, 1  ;;  %v419_v25 = vld [vmem:[%s12285_s5 + $0xd8] sm:$0xff] }
 0x1b6   : > { %v1241_v44 = vpop.f32.mrf.mxu2  ;;  %3636 = vperm.xlu1 %9184, %v408_v12   ;;  %3661 = vperm.xlu0 %9183, %v413_v52   ;;  %v397_v12 = vld [vmem:[%s12285_s5 + $0x28] sm:$0xff]  ;;  %v411_v52 = vld [vmem:[%s12285_s5 + $0x98] sm:$0xff] }
 0x1b7   : > { %12327 = vst [vmem:[#allocation5_spill] sm:$0xff] %v9998_v13  ;;  %v1309_v16 = vadd.f32 %v1241_v44, %v9741_v15  ;;  %v1626_v18 = vpop.f32.mrf.mxu3  ;;  %v1897_v15 = vsel %vm1736_vm2, %v1887_v38, %v9996_v63  ;;  %v1366_v44 = vld [vmem:[#allocation2 + $0x98] sm:$0x1] }
 0x1b8   : > { %v2022_v55 = vpop.f32.mrf.mxu0  ;;  %v1457_v17 = vunpack.c.l.b16 %v1366_v44  ;;  %v2369_v44 = vld [vmem:[#allocation2 + $0x14] sm:$0xf] }
 0x1b9   : > { %v1694_v9 = vadd.f32 %v1626_v18, %v1309_v16  ;;  %v1902_v16 = vshll.u32 %v1735_v14, 16  ;;  %v2460_v40 = vunpack.c.l.b16 %v2369_v44  ;;  %v10064_v44 = vld [vmem:[#allocation2 + $0x18] sm:$0xff] }
 0x1ba   : > { %v2282_v29 = vpop.f32.mrf.mxu1 }
 0x1bb   : > { %1283 = vmatmul.bf16.gmra.mxu2 %v1126_v33  ;;  %2061 = vmatmul.bf16.gmra.mxu0 %v1897_v15  ;;  %v10026_v38 = vadd.f32 %v2019_v5, %v1694_v9  ;;  %v416_v5 = vld [vmem:[%s12285_s5 + $0xc0] sm:$0xff]  ;;  %v1901_v15 = vrot.slane %v1899_v35, 1  ;;  %v1904_v9 = vrot.slane %v1902_v16, 2  ;;  %v2165_v35 = vrot.slane %v1735_v14, 2 }
 0x1bc   : > { %1668 = vmatmul.bf16.gmra.mxu3 %v1511_v58  ;;  %3581 = vperm.xlu2 %9185, %v397_v12  }
 0x1bd   : > { %12328 = vst [vmem:[#allocation6_spill] sm:$0xff] %v10026_v38  ;;  %2321 = vmatmul.bf16.gmra.mxu1 %v2164_v51  ;;  %v1905_v45 = vor.u32 %v1904_v9, %v1901_v15  ;;  %v12330_v15 = vrot.slane %v9972_v42, 1 }
 0x1be   : > { %v1244_v18 = vpop.f32.mrf.mxu2  ;;  %3651 = vperm.xlu1 %9184, %v411_v52   ;;  %3676 = vperm.xlu0 %9183, %v416_v5   ;;  %v2496_v52 = vpack.c.b16 %v2460_v40, %v2459_v43 }
 0x1bf   : > { %v1310_v60 = vadd.f32 %v1244_v18, %v9754_v56  ;;  %v1629_v59 = vpop.f32.mrf.mxu3  ;;  %v1476_v56 = vpack.c.b16 %v1457_v17, %v1457_v17  ;;  %v400_v17 = vld [vmem:[%s12285_s5 + $0x40] sm:$0xff] }
 0x1c0   : > { %v2024_v33 = vpop.f32.mrf.mxu0  ;;  %v2776_v43 = vshrl.u32 %v2496_v52, 16 }
 0x1c1   : > { %v1695_v58 = vadd.f32 %v1629_v59, %v1310_v60  ;;  %v1512_v13 = vrot.slane %v1476_v56, 1  ;;  %v12329_v59 = vrot.slane %v9993_v6, 1  ;;  %v12331_v56 = vrot.slane %v9972_v42, 2  ;;  %v3146_v6 = vld [vmem:[#allocation2 + $0x10] sm:$0x8] }
 0x1c2   : > { %v10038_v51 = vpop.f32.mrf.mxu1 }
 0x1c3   : > { %v2088_v18 = vadd.f32 %v2022_v55, %v1695_v58  ;;  %v414_v55 = vld [vmem:[%s12285_s5 + $0xb0] sm:$0xff]  ;;  %v1128_v14 = vsel %vm1091_vm1, %v12329_v59, %v1127_v23  ;;  %v1513_v9 = vsel %vm1091_vm1, %v12330_v15, %v1512_v13  ;;  %v2166_v61 = vsel %vm2129_vm3, %v12331_v56, %v2165_v35 }
 0x1c4   : > { %3596 = vperm.xlu2 %9185, %v400_v17   ;;  %v2779_v23 = vshll.u32 %v2496_v52, 16  ;;  %v2784_v13 = vshrl.u32 %v10064_v44, 16  ;;  %v2516_v56 = vrot.slane %v10064_v44, 2 }
 0x1c5   : > { %v10041_v38 = vadd.f32 %v2282_v29, %v2088_v18  ;;  %v2787_v18 = vshll.u32 %v10064_v44, 16 }
 0x1c6   : > { %v1246_v16 = vpop.f32.mrf.mxu2  ;;  %3666 = vperm.xlu1 %9184, %v414_v55   ;;  %3691 = vperm.xlu0 %9183, %v419_v25   ;;  %v2778_v55 = vrot.slane %v2776_v43, 2 }
 0x1c7   : > { %v1311_v12 = vadd.f32 %v1246_v16, %v9766_v53  ;;  %v1631_v60 = vpop.f32.mrf.mxu3  ;;  %v1906_v53 = vsel %vm1736_vm2, %v9996_v63, %v1905_v45  ;;  %v3165_v45 = vunpack.c.l.b16 %v3146_v6  ;;  %v3169_v6 = vrot.slane %v10064_v44, 3 }
 0x1c8   : > { %v2027_v29 = vpop.f32.mrf.mxu0 }
 0x1c9   : > { %v1696_v5 = vadd.f32 %v1631_v60, %v1311_v12  ;;  %v403_v12 = vld [vmem:[%s12285_s5 + $0x58] sm:$0xff]  ;;  %v422_v60 = vld [vmem:[%s12285_s5 + $0xf0] sm:$0xff]  ;;  %v3166_v25 = vpack.c.b16 %v2460_v40, %v3165_v45 }
 0x1ca   : > { %v2287_v58 = vpop.f32.mrf.mxu1 }
 0x1cb   : > { %1288 = vmatmul.bf16.gmra.mxu2 %v1128_v14  ;;  %2066 = vmatmul.bf16.gmra.mxu0 %v1906_v53  ;;  %v10066_v63 = vadd.f32 %v2024_v33, %v1696_v5  ;;  %v417_v33 = vld [vmem:[%s12285_s5 + $0xc8] sm:$0xff]  ;;  %v2786_v14 = vrot.slane %v2784_v13, 2  ;;  %v2789_v53 = vrot.slane %v2787_v18, 3 }
 0x1cc   : > { %1673 = vmatmul.bf16.gmra.mxu3 %v1513_v9  ;;  %3611 = vperm.xlu2 %9185, %v403_v12   ;;  %v2515_v9 = vrot.slane %v2496_v52, 2  ;;  %v420_v52 = vld [vmem:[%s12285_s5 + $0xe0] sm:$0xff] }
 0x1cd   : > { %2326 = vmatmul.bf16.gmra.mxu1 %v2166_v61  ;;  %v3168_v61 = vrot.slane %v3166_v25, 3  ;;  %v2790_v40 = vor.u32 %v2789_v53, %v2786_v14 }
 0x1ce   : > { %v1249_v42 = vpop.f32.mrf.mxu2  ;;  %3681 = vperm.xlu1 %9184, %v417_v33   ;;  %3706 = vperm.xlu0 %9183, %v422_v60   ;;  %v2517_v18 = vsel %vm2129_vm3, %v2515_v9, %v2516_v56  ;;  %v10099_v33 = vld [vmem:[#allocation2 + $0x20] sm:$0xff] }
 0x1cf   : > { %v1312_v35 = vadd.f32 %v1249_v42, %v9579_v0  ;;  %v1634_v16 = vpop.f32.mrf.mxu3  ;;  %v2781_v0 = vrot.slane %v2779_v23, 3  ;;  %v2796_v25 = vshll.u32 %v10099_v33, 16 }
 0x1d0   : > { %v2029_v17 = vpop.f32.mrf.mxu0 }
 0x1d1   : > { %v1697_v59 = vadd.f32 %v1634_v16, %v1312_v35  ;;  %v2782_v43 = vor.u32 %v2781_v0, %v2778_v55  ;;  %v3170_v35 = vsel %vm3167_vm4, %v3168_v61, %v3169_v6  ;;  %v2793_v55 = vshrl.u32 %v10099_v33, 16 }
 0x1d2   : > { %v10080_v5 = vpop.f32.mrf.mxu1 }
 0x1d3   : > { %v2090_v15 = vadd.f32 %v2027_v29, %v1697_v59  ;;  %v406_v29 = vld [vmem:[%s12285_s5 + $0x70] sm:$0xff]  ;;  %v2791_v16 = vsel %vm2774_vm5, %v2782_v43, %v2790_v40  ;;  %v8928_v59 = vld [vmem:[%s12283_s3 + $0x58] sm:$0xff]  ;;  %v2795_v43 = vrot.slane %v2793_v55, 2 }
 0x1d4   : > { %3626 = vperm.xlu2 %9185, %v406_v29   ;;  %4626 = vmatpush.bf16.msra.mxu1 %v8928_v59  ;;  %v3171_v29 = vrot.slane %v10099_v33, 3  ;;  %v426_v55 = vld [vmem:[%s12285_s5 + $0x110] sm:$0xff] }
 0x1d5   : > { %v10084_v42 = vadd.f32 %v2287_v58, %v2090_v15  ;;  %v425_v58 = vld [vmem:[%s12285_s5 + $0x108] sm:$0xff] }
 0x1d6   : > { %v1251_v45 = vpop.f32.mrf.mxu2  ;;  %3696 = vperm.xlu1 %9184, %v420_v52   ;;  %3721 = vperm.xlu0 %9183, %v425_v58   ;;  %v409_v15 = vld [vmem:[%s12285_s5 + $0x88] sm:$0xff] }
 0x1d7   : > { %v1313_v23 = vadd.f32 %v1251_v45, %v9586_v21  ;;  %v1636_v13 = vpop.f32.mrf.mxu3  ;;  %v2798_v45 = vrot.slane %v2796_v25, 3 }
 0x1d8   : > { %v2032_v44 = vpop.f32.mrf.mxu0 }
 0x1d9   : > { %v1698_v21 = vadd.f32 %v1636_v13, %v1313_v23  ;;  %v2799_v58 = vor.u32 %v2798_v45, %v2795_v43 }
 0x1da   : > { %v2292_v12 = vpop.f32.mrf.mxu1 }
 0x1db   : > { %2626 = vmatmul.bf16.vlgmr.msra.gmra.mxu2 %v2517_v18  ;;  %3279 = vmatmul.bf16.vlgmr.msra.gmra.mxu0 %v3170_v35  ;;  %v10101_v60 = vadd.f32 %v2029_v17, %v1698_v21  ;;  %v423_v17 = vld [vmem:[%s12285_s5 + $0xf8] sm:$0xff]  ;;  %v2800_v59 = vsel %vm2774_vm5, %v2790_v40, %v2799_v58 }
 0x1dc   : > { %3019 = vmatmul.bf16.vlgmr.msra.gmra.mxu3 %v2791_v16  ;;  %3641 = vperm.xlu2 %9185, %v409_v15   ;;  %v412_v16 = vld [vmem:[%s12285_s5 + $0xa0] sm:$0xff]  ;;  %v415_v40 = vld [vmem:[%s12285_s5 + $0xb8] sm:$0xff] }
 0x1de   : > { %v1254_v0 = vpop.f32.mrf.mxu2  ;;  %3711 = vperm.xlu1 %9184, %v423_v17  }
 0x1df   : > { %v1314_v14 = vadd.f32 %v1254_v0, %v9598_v36  ;;  %v1639_v53 = vpop.f32.mrf.mxu3  ;;  %v2518_v36 = vrot.slane %v10099_v33, 2  ;;  %v3172_v33 = vsel %vm3167_vm4, %v3169_v6, %v3171_v29  ;;  %v10131_v0 = vld [vmem:[#allocation2 + $0x28] sm:$0xff] }
 0x1e0   : > { %v2034_v9 = vpop.f32.mrf.mxu0  ;;  %v2805_v15 = vshll.u32 %v10131_v0, 16 }
 0x1e1   : > { %v1699_v61 = vadd.f32 %v1639_v53, %v1314_v14  ;;  %v2519_v25 = vsel %vm2129_vm3, %v2516_v56, %v2518_v36  ;;  %v2802_v53 = vshrl.u32 %v10131_v0, 16 }
 0x1e2   : > { %v10115_v23 = vpop.f32.mrf.mxu1 }
 0x1e3   : > { %v2092_v13 = vadd.f32 %v2032_v44, %v1699_v61  ;;  %v2804_v45 = vrot.slane %v2802_v53, 2 }
 0x1e4   : > { %3656 = vperm.xlu2 %9185, %v412_v16  }
 0x1e5   : > { %v10119_v52 = vadd.f32 %v2292_v12, %v2092_v13  ;;  %v2807_v13 = vrot.slane %v2805_v15, 3 }
 0x1e6   : > { %v1256_v18 = vpop.f32.mrf.mxu2  ;;  %3726 = vperm.xlu1 %9184, %v426_v55  }
 0x1e7   : > { %v1315_v35 = vadd.f32 %v1256_v18, %v9611_v54  ;;  %v1641_v21 = vpop.f32.mrf.mxu3 }
 0x1e8   : > { %v2037_v44 = vpop.f32.mrf.mxu0 }
 0x1e9   : > { %v1700_v12 = vadd.f32 %v1641_v21, %v1315_v35  ;;  %v2520_v35 = vrot.slane %v10131_v0, 2  ;;  %v3173_v21 = vrot.slane %v10131_v0, 3 }
 0x1ea   : > { %v2297_v54 = vpop.f32.mrf.mxu1 }
 0x1eb   : > { %2631 = vmatmul.bf16.gmra.mxu2 %v2519_v25  ;;  %3284 = vmatmul.bf16.gmra.mxu0 %v3172_v33  ;;  %v10133_v14 = vadd.f32 %v2034_v9, %v1700_v12  ;;  %v418_v12 = vld [vmem:[%s12285_s5 + $0xd0] sm:$0xff]  ;;  %v2521_v53 = vsel %vm2129_vm3, %v2518_v36, %v2520_v35 }
 0x1ec   : > { %3024 = vmatmul.bf16.gmra.mxu3 %v2800_v59  ;;  %3671 = vperm.xlu2 %9185, %v415_v40  }
 0x1ee   : > { %v1259_v56 = vpop.f32.mrf.mxu2 }
 0x1ef   : > { %v1316_v6 = vadd.f32 %v1259_v56, %v9626_v7  ;;  %v1644_v17 = vpop.f32.mrf.mxu3  ;;  %v2808_v7 = vor.u32 %v2807_v13, %v2804_v45  ;;  %v10154_v56 = vld [vmem:[#allocation2 + $0x30] sm:$0xff] }
 0x1f0   : > { %v2039_v61 = vpop.f32.mrf.mxu0 }
 0x1f1   : > { %v1701_v43 = vadd.f32 %v1644_v17, %v1316_v6  ;;  %v2809_v0 = vsel %vm2774_vm5, %v2799_v58, %v2808_v7  ;;  %v2811_v6 = vshrl.u32 %v10154_v56, 16  ;;  %v2814_v17 = vshll.u32 %v10154_v56, 16  ;;  %v421_v58 = vld [vmem:[%s12285_s5 + $0xe8] sm:$0xff] }
 0x1f2   : > { %v10141_v9 = vpop.f32.mrf.mxu1 }
 0x1f3   : > { %v2094_v18 = vadd.f32 %v2037_v44, %v1701_v43  ;;  %v3174_v44 = vsel %vm3167_vm4, %v3171_v29, %v3173_v21  ;;  %v2813_v13 = vrot.slane %v2811_v6, 2  ;;  %v424_v6 = vld [vmem:[%s12285_s5 + $0x100] sm:$0xff] }
 0x1f4   : > { %3686 = vperm.xlu2 %9185, %v418_v12  }
 0x1f5   : > { %v10145_v16 = vadd.f32 %v2297_v54, %v2094_v18  ;;  %v2816_v18 = vrot.slane %v2814_v17, 3 }
 0x1f6   : > { %v1261_v55 = vpop.f32.mrf.mxu2 }
 0x1f7   : > { %v1317_v25 = vadd.f32 %v1261_v55, %v9633_v19  ;;  %v1646_v33 = vpop.f32.mrf.mxu3  ;;  %v8927_v55 = vld [vmem:[%s12283_s3 + $0x50] sm:$0xff] }
 0x1f8   : > { %v2042_v59 = vpop.f32.mrf.mxu0  ;;  %4627 = vmatpush.bf16.msra.mxu1 %v8927_v55 }
 0x1f9   : > { %v1702_v15 = vadd.f32 %v1646_v33, %v1317_v25  ;;  %v3175_v33 = vrot.slane %v10154_v56, 3 }
 0x1fa   : > { %v2302_v54 = vpop.f32.mrf.mxu1 }
 0x1fb   : > { %2636 = vmatmul.bf16.gmra.mxu2 %v2521_v53  ;;  %3289 = vmatmul.bf16.gmra.mxu0 %v3174_v44  ;;  %v10156_v19 = vadd.f32 %v2039_v61, %v1702_v15  ;;  %v2817_v53 = vor.u32 %v2816_v18, %v2813_v13 }
 0x1fc   : > { %3029 = vmatmul.bf16.gmra.mxu3 %v2809_v0  ;;  %3701 = vperm.xlu2 %9185, %v421_v58  }
 0x1fe   : > { %v1264_v40 = vpop.f32.mrf.mxu2 }
 0x1ff   : > { %v1318_v36 = vadd.f32 %v1264_v40, %v9645_v37  ;;  %v1649_v29 = vpop.f32.mrf.mxu3  ;;  %v2522_v37 = vrot.slane %v10154_v56, 2  ;;  %v2818_v56 = vsel %vm2774_vm5, %v2808_v7, %v2817_v53 }
 0x200   : > { %v2044_v43 = vpop.f32.mrf.mxu0 }
 0x201   : > { %v1703_v45 = vadd.f32 %v1649_v29, %v1318_v36  ;;  %v2523_v40 = vsel %vm2129_vm3, %v2520_v35, %v2522_v37  ;;  %v8863_v29 = vld [vmem:[#allocation2 + $0x38] sm:$0xff] }
 0x202   : > { %v10164_v61 = vpop.f32.mrf.mxu1  ;;  %v427_v35 = vld [vmem:[%s12285_s5 + $0x118] sm:$0xff] }
 0x203   : > { %12332 = vst [vmem:[#allocation7_spill] sm:$0xff] %v10164_v61  ;;  %v2096_v25 = vadd.f32 %v2042_v59, %v1703_v45  ;;  %v3176_v59 = vsel %vm3167_vm4, %v3173_v21, %v3175_v33  ;;  %v2823_v45 = vshll.u32 %v8863_v29, 16 }
 0x204   : > { %3716 = vperm.xlu2 %9185, %v424_v6   ;;  %v3177_v6 = vrot.slane %v8863_v29, 3 }
 0x205   : > { %v10171_v12 = vadd.f32 %v2302_v54, %v2096_v25 }
 0x206   : > { %v1266_v44 = vpop.f32.mrf.mxu2 }
 0x207   : > { %v1319_v15 = vadd.f32 %v1266_v44, %v9658_v57  ;;  %v1651_v0 = vpop.f32.mrf.mxu3  ;;  %v2820_v57 = vshrl.u32 %v8863_v29, 16  ;;  %v2825_v44 = vrot.slane %v2823_v45, 3 }
 0x208   : > { %v2047_v17 = vpop.f32.mrf.mxu0 }
 0x209   : > { %v1704_v36 = vadd.f32 %v1651_v0, %v1319_v15  ;;  %v2822_v25 = vrot.slane %v2820_v57, 2  ;;  %v2524_v0 = vrot.slane %v8863_v29, 2 }
 0x20a   : > { %v2307_v54 = vpop.f32.mrf.mxu1 }
 0x20b   : > { %2641 = vmatmul.bf16.gmra.mxu2 %v2523_v40  ;;  %3294 = vmatmul.bf16.gmra.mxu0 %v3176_v59  ;;  %v10180_v58 = vadd.f32 %v2044_v43, %v1704_v36  ;;  %v2826_v59 = vor.u32 %v2825_v44, %v2822_v25  ;;  %v2525_v61 = vsel %vm2129_vm3, %v2522_v37, %v2524_v0 }
 0x20c   : > { %3034 = vmatmul.bf16.gmra.mxu3 %v2818_v56  ;;  %3731 = vperm.xlu2 %9185, %v427_v35   ;;  %v3178_v35 = vsel %vm3167_vm4, %v3175_v33, %v3177_v6 }
 0x20d   : > { %v2827_v57 = vsel %vm2774_vm5, %v2817_v53, %v2826_v59 }
 0x20e   : > { %v1269_v13 = vpop.f32.mrf.mxu2 }
 0x20f   : > { %v1320_v18 = vadd.f32 %v1269_v13, %v9673_v11  ;;  %v1654_v55 = vpop.f32.mrf.mxu3 }
 0x210   : > { %v2049_v21 = vpop.f32.mrf.mxu0 }
 0x211   : > { %v1705_v7 = vadd.f32 %v1654_v55, %v1320_v18  ;;  %v8864_v55 = vld [vmem:[#allocation2 + $0x40] sm:$0xff] }
 0x212   : > { %v10186_v15 = vpop.f32.mrf.mxu1  ;;  %v2832_v29 = vshll.u32 %v8864_v55, 16 }
 0x213   : > { %12333 = vst [vmem:[#allocation8_spill] sm:$0xff] %v10186_v15  ;;  %v2098_v43 = vadd.f32 %v2047_v17, %v1705_v7 }
 0x214   : > { %v2834_v33 = vrot.slane %v2832_v29, 3 }
 0x215   : > { %v10188_v40 = vadd.f32 %v2307_v54, %v2098_v43  ;;  %v2829_v54 = vshrl.u32 %v8864_v55, 16 }
 0x216   : > { %v1271_v36 = vpop.f32.mrf.mxu2 }
 0x217   : > { %v1321_v11 = vadd.f32 %v1271_v36, %v9680_v28  ;;  %v1656_v56 = vpop.f32.mrf.mxu3  ;;  %v2831_v43 = vrot.slane %v2829_v54, 2 }
 0x218   : > { %v2052_v13 = vpop.f32.mrf.mxu0 }
 0x219   : > { %v1706_v18 = vadd.f32 %v1656_v56, %v1321_v11  ;;  %v2526_v11 = vrot.slane %v8864_v55, 2  ;;  %v3179_v56 = vrot.slane %v8864_v55, 3 }
 0x21a   : > { %v2312_v45 = vpop.f32.mrf.mxu1 }
 0x21b   : > { %2646 = vmatmul.bf16.gmra.mxu2 %v2525_v61  ;;  %3299 = vmatmul.bf16.gmra.mxu0 %v3178_v35  ;;  %v10194_v17 = vadd.f32 %v2049_v21, %v1706_v18  ;;  %v2835_v21 = vor.u32 %v2834_v33, %v2831_v43  ;;  %v8926_v35 = vld [vmem:[%s12283_s3 + $0x48] sm:$0xff]  ;;  %v2527_v54 = vsel %vm2129_vm3, %v2524_v0, %v2526_v11 }
 0x21c   : > { %3039 = vmatmul.bf16.gmra.mxu3 %v2827_v57  ;;  %4628 = vmatpush.bf16.msra.mxu1 %v8926_v35  ;;  %v3180_v29 = vsel %vm3167_vm4, %v3177_v6, %v3179_v56 }
 0x21d   : > { %v2836_v55 = vsel %vm2774_vm5, %v2826_v59, %v2835_v21 }
 0x21e   : > { %v1274_v7 = vpop.f32.mrf.mxu2 }
 0x21f   : > { %v1322_v28 = vadd.f32 %v1274_v7, %v9692_v47  ;;  %v1659_v25 = vpop.f32.mrf.mxu3 }
 0x220   : > { %v2054_v44 = vpop.f32.mrf.mxu0 }
 0x221   : > { %v1707_v37 = vadd.f32 %v1659_v25, %v1322_v28 }
 0x222   : > { %v10197_v36 = vpop.f32.mrf.mxu1 }
 0x223   : > { %12334 = vst [vmem:[#allocation9_spill] sm:$0xff] %v10197_v36  ;;  %v2100_v53 = vadd.f32 %v2052_v13, %v1707_v37 }
 0x225   : > { %v10199_v61 = vadd.f32 %v2312_v45, %v2100_v53  ;;  %v10208_v45 = vld [vmem:[#allocation2 + $0x48] sm:$0xff] }
 0x226   : > { %v1276_v18 = vpop.f32.mrf.mxu2  ;;  %v2841_v37 = vshll.u32 %v10208_v45, 16 }
 0x227   : > { %12335 = vst [vmem:[#allocation10_spill] sm:$0xff] %v10199_v61  ;;  %v1323_v47 = vadd.f32 %v1276_v18, %v9699_v62  ;;  %v1661_v57 = vpop.f32.mrf.mxu3  ;;  %v2838_v62 = vshrl.u32 %v10208_v45, 16 }
 0x228   : > { %v2057_v7 = vpop.f32.mrf.mxu0  ;;  %v2843_v59 = vrot.slane %v2841_v37, 3 }
 0x229   : > { %v1708_v13 = vadd.f32 %v1661_v57, %v1323_v47  ;;  %v2840_v35 = vrot.slane %v2838_v62, 2  ;;  %v2528_v47 = vrot.slane %v10208_v45, 2  ;;  %v3181_v57 = vrot.slane %v10208_v45, 3 }
 0x22a   : > { %v2317_v28 = vpop.f32.mrf.mxu1 }
 0x22b   : > { %2651 = vmatmul.bf16.gmra.mxu2 %v2527_v54  ;;  %3304 = vmatmul.bf16.gmra.mxu0 %v3180_v29  ;;  %v10210_v25 = vadd.f32 %v2054_v44, %v1708_v13  ;;  %v2844_v29 = vor.u32 %v2843_v59, %v2840_v35  ;;  %v3182_v62 = vsel %vm3167_vm4, %v3179_v56, %v3181_v57 }
 0x22c   : > { %3044 = vmatmul.bf16.gmra.mxu3 %v2836_v55 }
 0x22d   : > { %12336 = vst [vmem:[#allocation11_spill] sm:$0xff] %v10210_v25 }
 0x22e   : > { %v1279_v43 = vpop.f32.mrf.mxu2 }
 0x22f   : > { %v1324_v0 = vadd.f32 %v1279_v43, %v9717_v20  ;;  %v1664_v33 = vpop.f32.mrf.mxu3  ;;  %v2529_v43 = vsel %vm2129_vm3, %v2526_v11, %v2528_v47 }
 0x230   : > { %v2059_v6 = vpop.f32.mrf.mxu0 }
 0x231   : > { %v1709_v53 = vadd.f32 %v1664_v33, %v1324_v0  ;;  %v10225_v0 = vld [vmem:[#allocation2 + $0x50] sm:$0xff] }
 0x232   : > { %v10217_v44 = vpop.f32.mrf.mxu1 }
 0x233   : > { %v2102_v18 = vadd.f32 %v2057_v7, %v1709_v53  ;;  %12337 = vst [vmem:[#allocation12_spill] sm:$0xff] %v10217_v44  ;;  %v2845_v7 = vsel %vm2774_vm5, %v2835_v21, %v2844_v29  ;;  %v12340_v21 = vmov 0 }
 0x234   : > { %v12341_v21 = vsel %vm10233_vm9, 4294967295, %v12340_v21 }
 0x235   : > { %v10219_v54 = vadd.f32 %v2317_v28, %v2102_v18  ;;  %v2847_v28 = vshrl.u32 %v10225_v0, 16  ;;  %12342 = vst [vmem:[#allocation15_spill] sm:$0xff] %v12341_v21 }
 0x236   : > { %v1281_v13 = vpop.f32.mrf.mxu2 }
 0x237   : > { %12338 = vst [vmem:[#allocation13_spill] sm:$0xff] %v10219_v54  ;;  %v1325_v55 = vadd.f32 %v1281_v13, %v9727_v50  ;;  %v1666_v36 = vpop.f32.mrf.mxu3  ;;  %v2850_v50 = vshll.u32 %v10225_v0, 16  ;;  %v2849_v18 = vrot.slane %v2847_v28, 2 }
 0x238   : > { %v2062_v20 = vpop.f32.mrf.mxu0 }
 0x239   : > { %v1710_v37 = vadd.f32 %v1666_v36, %v1325_v55  ;;  %v381_v36 = vld [vmem:[#allocation3 + $0x8] sm:$0x3]  ;;  %v2852_v13 = vrot.slane %v2850_v50, 3 }
 0x23a   : > { %v2322_v53 = vpop.f32.mrf.mxu1  ;;  %v382_v55 = vsel %vm10233_vm9, 0, %v381_v36 }
 0x23b   : > { %2656 = vmatmul.bf16.gmra.mxu2 %v2529_v43  ;;  %3309 = vmatmul.bf16.gmra.mxu0 %v3182_v62  ;;  %v10227_v45 = vadd.f32 %v2059_v6, %v1710_v37  ;;  %v387_v6 = vld [vmem:[#allocation3 + $0x98] sm:$0xe]  ;;  %383 = vst [vmem:[#allocation3 + $0x8] sm:$0x3] %v382_v55  ;;  %v2530_v37 = vrot.slane %v10225_v0, 2  ;;  %v2853_v28 = vor.u32 %v2852_v13, %v2849_v18 }
 0x23c   : > { %3049 = vmatmul.bf16.gmra.mxu3 %v2845_v7  ;;  %v388_v43 = vsel %vm10239_vm11, 0, %v387_v6  ;;  %v3183_v7 = vrot.slane %v10225_v0, 3 }
 0x23d   : > { %12339 = vst [vmem:[#allocation14_spill] sm:$0xff] %v10227_v45  ;;  %v2531_v21 = vsel %vm2129_vm3, %v2528_v47, %v2530_v37  ;;  %v2854_v6 = vsel %vm2774_vm5, %v2844_v29, %v2853_v28 }
 0x23e   : > { %v1284_v33 = vpop.f32.mrf.mxu2  ;;  %389 = vst [vmem:[#allocation3 + $0x98] sm:$0xe] %v388_v43  ;;  %v3184_v55 = vsel %vm3167_vm4, %v3181_v57, %v3183_v7 }
 0x23f   : > { %v1326_v11 = vadd.f32 %v1284_v33, %v9739_v1  ;;  %v1669_v35 = vpop.f32.mrf.mxu3 }
 0x240   : > { %v2064_v56 = vpop.f32.mrf.mxu0 }
 0x241   : > { %v1711_v59 = vadd.f32 %v1669_v35, %v1326_v11 }
 0x242   : > { %v10252_v44 = vpop.f32.mrf.mxu1 }
 0x243   : > { %v2104_v62 = vadd.f32 %v2062_v20, %v1711_v59  ;;  %12346 = vst [vmem:[#allocation17_spill] sm:$0xff] %v10252_v44  ;;  %v8867_v59 = vld [vmem:[#allocation2 + $0x58] sm:$0xff] }
 0x244   : > { %v2859_v18 = vshll.u32 %v8867_v59, 16  ;;  %v3185_v29 = vrot.slane %v8867_v59, 3 }
 0x245   : > { %v10247_v33 = vadd.f32 %v2322_v53, %v2104_v62  ;;  %v2856_v53 = vshrl.u32 %v8867_v59, 16 }
 0x246   : > { %v1286_v50 = vpop.f32.mrf.mxu2 }
 0x247   : > { %12345 = vst [vmem:[#allocation16_spill] sm:$0xff] %v10247_v33  ;;  %v1327_v11 = vadd.f32 %v1286_v50, %v9746_v24  ;;  %v1671_v35 = vpop.f32.mrf.mxu3  ;;  %v2858_v57 = vrot.slane %v2856_v53, 2  ;;  %v2861_v50 = vrot.slane %v2859_v18, 3  ;;  %v10264_v18 = vld [vmem:[#allocation2 + $0x60] sm:$0xff] }
 0x248   : > { %v2067_v36 = vpop.f32.mrf.mxu0 }
 0x249   : > { %v1712_v20 = vadd.f32 %v1671_v35, %v1327_v11  ;;  %v2532_v35 = vrot.slane %v8867_v59, 2 }
 0x24a   : > { %v2327_v44 = vpop.f32.mrf.mxu1 }
 0x24b   : > { %2661 = vmatmul.bf16.gmra.mxu2 %v2531_v21  ;;  %3314 = vmatmul.bf16.gmra.mxu0 %v3184_v55  ;;  %v10255_v0 = vadd.f32 %v2064_v56, %v1712_v20  ;;  %v2862_v21 = vor.u32 %v2861_v50, %v2858_v57  ;;  %v12292_v50 = vrot.slane %v10264_v18, 2 }
 0x24c   : > { %3054 = vmatmul.bf16.gmra.mxu3 %v2854_v6 }
 0x24d   : > { %12347 = vst [vmem:[#allocation18_spill] sm:$0xff] %v10255_v0  ;;  %v2533_v0 = vsel %vm2129_vm3, %v2530_v37, %v2532_v35  ;;  %v2863_v53 = vsel %vm2774_vm5, %v2853_v28, %v2862_v21  ;;  %v2868_v37 = vshll.u32 %v10264_v18, 16 }
 0x24e   : > { %v1289_v24 = vpop.f32.mrf.mxu2 }
 0x24f   : > { %v1328_v13 = vadd.f32 %v1289_v24, %v9764_v41  ;;  %v1674_v43 = vpop.f32.mrf.mxu3  ;;  %v3186_v41 = vsel %vm3167_vm4, %v3183_v7, %v3185_v29 }
 0x250   : > { %v2069_v47 = vpop.f32.mrf.mxu0 }
 0x251   : > { %v1713_v62 = vadd.f32 %v1674_v43, %v1328_v13 }
 0x253   : > { %v2106_v11 = vadd.f32 %v2067_v36, %v1713_v62  ;;  %v2870_v62 = vrot.slane %v2868_v37, 3 }
 0x255   : > { %v10258_v33 = vadd.f32 %v2327_v44, %v2106_v11  ;;  %v2865_v44 = vshrl.u32 %v10264_v18, 16  ;;  %v12291_v11 = vrot.slane %v10264_v18, 3 }
 0x256   : > { %v1291_v56 = vpop.f32.mrf.mxu2 }
 0x257   : > { %12348 = vst [vmem:[#allocation19_spill] sm:$0xff] %v10258_v33  ;;  %v1329_v55 = vadd.f32 %v1291_v56, %v9773_v32  ;;  %v1676_v20 = vpop.f32.mrf.mxu3  ;;  %v8925_v32 = vld [vmem:[%s12283_s3 + $0x40] sm:$0xff] }
 0x258   : > { %v3280_v6 = vpop.f32.mrf.mxu0  ;;  %4629 = vmatpush.bf16.msra.mxu1 %v8925_v32 }
 0x259   : > { %v1714_v24 = vadd.f32 %v1676_v20, %v1329_v55  ;;  %v3557_v20 = vpop.permute.xlu0 %3556 }
 0x25b   : > { %2666 = vmatmul.bf16.gmra.mxu2 %v2533_v0  ;;  %3319 = vmatmul.bf16.gmra.mxu0 %v3186_v41  ;;  %v10266_v36 = vadd.f32 %v2069_v47, %v1714_v24  ;;  %v10277_v0 = vld [vmem:[%s12282_s2] ss:$0 sm:$0xff]  ;;  %v2867_v47 = vrot.slane %v2865_v44, 2  ;;  %v3188_v44 = vsel %vm3167_vm4, %v3185_v29, %v12291_v11 }
 0x25c   : > { %3059 = vmatmul.bf16.gmra.mxu3 %v2863_v53 }
 0x25d   : > { %12349 = vst [vmem:[#allocation20_spill] sm:$0xff] %v10266_v36  ;;  %v10282_v55 = vor.u32 %v2870_v62, %v2867_v47 }
 0x25e   : > { %v2627_v59 = vpop.f32.mrf.mxu2 }
 0x25f   : > { %v2717_v7 = vadd.f32 %v2627_v59, %v9784_v31  ;;  %v3020_v13 = vpop.f32.mrf.mxu3 }
 0x260   : > { %v3282_v28 = vpop.f32.mrf.mxu0 }
 0x261   : > { %v3110_v43 = vadd.f32 %v3020_v13, %v2717_v7  ;;  %v2872_v7 = vsel %vm2774_vm5, %v2862_v21, %v10282_v55  ;;  %v10293_v13 = vld [vmem:[#allocation2 + $0x68] sm:$0xff] }
 0x262   : > { %v12294_v33 = vrot.slane %v10293_v13, 2 }
 0x263   : > { %v3370_v57 = vadd.f32 %v3280_v6, %v3110_v43  ;;  %v2535_v6 = vsel %vm2129_vm3, %v2532_v35, %v12292_v50  ;;  %v2874_v35 = vshrl.u32 %v10293_v13, 16 }
 0x265   : > { %v3410_v56 = vadd.f32 %v10277_v0, %v3370_v57  ;;  %v2877_v57 = vshll.u32 %v10293_v13, 16 }
 0x266   : > { %v2629_v31 = vpop.f32.mrf.mxu2 }
 0x267   : > { %vm3446_vm12 = vcmp.gt.f32.partialorder %v3410_v56, 0.0  ;;  %v3482_v41 = vmul.f32 0.01, %v3410_v56  ;;  %v2718_v24 = vadd.f32 %v2629_v31, %v9797_v10  ;;  %v3022_v53 = vpop.f32.mrf.mxu3 }
 0x268   : > { %v3285_v32 = vpop.f32.mrf.mxu0 }
 0x269   : > { %v3518_v37 = vsel %vm3446_vm12, %v3410_v56, %v3482_v41  ;;  %v3111_v59 = vadd.f32 %v3022_v53, %v2718_v24 }
 0x26a   : > { %v3734_v43 = vmul.f32 %v3557_v20, %v3518_v37 }
 0x26b   : > { %v3371_v47 = vadd.f32 %v3282_v28, %v3111_v59  ;;  %2671 = vmatmul.bf16.gmra.mxu2 %v2535_v6  ;;  %3324 = vmatmul.bf16.gmra.mxu0 %v3188_v44  ;;  %v3562_v6 = vpop.permute.xlu0 %3561  ;;  %v4204_v44 = vld [vmem:[#allocation3 + $0x8] sm:$0xe] }
 0x26c   : > { %v3770_v10 = vpack.c.bf16 %v3734_v43, %v3734_v43  ;;  %3064 = vmatmul.bf16.gmra.mxu3 %v2872_v7  ;;  %v2876_v7 = vrot.slane %v2874_v35, 2  ;;  %v2879_v43 = vrot.slane %v2877_v57, 3  ;;  %v3567_v57 = vpop.permute.xlu1 %3566 }
 0x26d   : > { %v3411_v62 = vadd.f32 %v10277_v0, %v3371_v47 }
 0x26e   : > { %v3809_v29 = vshrl.u32 %v3770_v10, 16  ;;  %v3812_v56 = vshll.u32 %v3770_v10, 16  ;;  %v2632_v31 = vpop.f32.mrf.mxu2 }
 0x26f   : > { %vm3447_vm13 = vcmp.gt.f32.partialorder %v3411_v62, 0.0  ;;  %v3483_v41 = vmul.f32 0.01, %v3411_v62  ;;  %v2719_v21 = vadd.f32 %v2632_v31, %v9809_v34  ;;  %v3025_v24 = vpop.f32.mrf.mxu3  ;;  %v12293_v34 = vrot.slane %v10293_v13, 3 }
 0x270   : > { %v3811_v20 = vrot.slane %v3809_v29, 6  ;;  %v3814_v28 = vrot.slane %v3812_v56, 7  ;;  %v3287_v53 = vpop.f32.mrf.mxu0  ;;  %v10304_v56 = vor.u32 %v2879_v43, %v2876_v7 }
 0x271   : > { %v3519_v37 = vsel %vm3447_vm13, %v3411_v62, %v3483_v41  ;;  %v3112_v59 = vadd.f32 %v3025_v24, %v2719_v21  ;;  %v8924_v62 = vld [vmem:[%s12283_s3 + $0x38] sm:$0xff]  ;;  %v10313_v21 = vld [vmem:[#allocation2 + $0x70] sm:$0xff] }
 0x272   : > { %v3815_v47 = vor.u32 %v3814_v28, %v3811_v20  ;;  %v3735_v11 = vmul.f32 %v3562_v6, %v3519_v37  ;;  %4787 = vmatpush.bf16.msrb.mxu2 %v8924_v62  ;;  %v12350_v6 = vrot.slane %v10264_v18, 2  ;;  %v2881_v43 = vsel %vm2774_vm5, %v10282_v55, %v10304_v56  ;;  %v8965_v55 = vld [vmem:[%s12283_s3 + $0xf8] sm:$0xff] }
 0x273   : > { %v3372_v50 = vadd.f32 %v3285_v32, %v3112_v59  ;;  %v8940_v32 = vld [vmem:[%s12283_s3 + $0xb8] sm:$0xff]  ;;  %5395 = vmatpush.bf16.msrb.mxu0 %v8965_v55 }
 0x274   : > { %v4205_v10 = vsel %vm10239_vm11, %v3815_v47, %v4204_v44  ;;  %v3771_v36 = vpack.c.bf16 %v3735_v11, %v3735_v11  ;;  %5010 = vmatpush.bf16.msrb.mxu3 %v8940_v32  ;;  %v12351_v44 = vrot.slane %v10264_v18, 3  ;;  %v2883_v18 = vshrl.u32 %v10313_v21, 16  ;;  %v10348_v55 = vld [vmem:[#allocation2 + $0x78] sm:$0xff] }
 0x275   : > { %4206 = vst [vmem:[#allocation3 + $0x8] sm:$0xe] %v4205_v10  ;;  %v3412_v29 = vadd.f32 %v10277_v0, %v3372_v50  ;;  %v3816_v10 = vrot.slane %v3815_v47, 4 }
 0x276   : > { %v3818_v1 = vshrl.u32 %v3771_v36, 16  ;;  %v3821_v11 = vshll.u32 %v3771_v36, 16  ;;  %v2634_v35 = vpop.f32.mrf.mxu2  ;;  %v2537_v36 = vsel %vm2129_vm3, %v12350_v6, %v12294_v33 }
 0x277   : > { %vm3448_vm15 = vcmp.gt.f32.partialorder %v3412_v29, 0.0  ;;  %v3484_v31 = vmul.f32 0.01, %v3412_v29  ;;  %v2720_v41 = vadd.f32 %v2634_v35, %v9825_v22  ;;  %v3027_v50 = vpop.f32.mrf.mxu3  ;;  %v3190_v22 = vsel %vm3167_vm4, %v12351_v44, %v12293_v34 }
 0x278   : > { %v3820_v24 = vrot.slane %v3818_v1, 6  ;;  %v3823_v20 = vrot.slane %v3821_v11, 7  ;;  %v3290_v28 = vpop.f32.mrf.mxu0  ;;  %v9128_v1 = vld [vmem:[#allocation3] sm:$0xff]   ;;  %v2885_v44 = vrot.slane %v2883_v18, 2  ;;  %v2538_v34 = vrot.slane %v10313_v21, 2 }
 0x279   : > { %v3520_v59 = vsel %vm3448_vm15, %v3412_v29, %v3484_v31  ;;  %v3113_v7 = vadd.f32 %v3027_v50, %v2720_v41  ;;  %v2886_v29 = vshll.u32 %v10313_v21, 16  ;;  %v4411_v47 = vshll.u32 %v9128_v1, 16 }
 0x27a   : > { %v3824_v62 = vor.u32 %v3823_v20, %v3820_v24  ;;  %v3736_v32 = vmul.f32 %v3567_v57, %v3520_v59 }
 0x27b   : > { %v3373_v11 = vadd.f32 %v3287_v53, %v3113_v7  ;;  %2676 = vmatmul.bf16.gmra.mxu2 %v2537_v36  ;;  %3329 = vmatmul.bf16.gmra.mxu0 %v3190_v22  ;;  %v8973_v53 = vld [vmem:[%s12283_s3 + $0x138] sm:$0xff] }
 0x27c   : > { %v3825_v35 = vsel %vm10327_vm6, %v3816_v10, %v3824_v62  ;;  %v3772_v6 = vpack.c.bf16 %v3736_v32, %v3736_v32  ;;  %3069 = vmatmul.bf16.gmra.mxu3 %v2881_v43  ;;  %5787 = vmatpush.bf16.msrb.mxu1 %v8973_v53  ;;  %v2888_v43 = vrot.slane %v2886_v29, 3  ;;  %v4409_v10 = vshrl.u32 %v9128_v1, 16  ;;  %v3572_v32 = vpop.permute.xlu1 %3571 }
 0x27d   : > { %4207 = vst [vmem:[#allocation3 + $0xc] sm:$0xf] %v3825_v35  ;;  %v3413_v31 = vadd.f32 %v10277_v0, %v3373_v11  ;;  %v3826_v33 = vrot.slane %v3824_v62, 4  ;;  %v12354_v62 = vrot.slane %v10293_v13, 2 }
 0x27e   : > { %v3828_v57 = vshrl.u32 %v3772_v6, 16  ;;  %v3831_v41 = vshll.u32 %v3772_v6, 16  ;;  %v2637_v50 = vpop.f32.mrf.mxu2  ;;  %v4413_v6 = vrot.slane %v4411_v47, 1  ;;  %v10360_v47 = vor.u32 %v2888_v43, %v2885_v44 }
 0x27f   : > { %vm3449_vm7 = vcmp.gt.f32.partialorder %v3413_v31, 0.0  ;;  %v3485_v24 = vmul.f32 0.01, %v3413_v31  ;;  %v2721_v20 = vadd.f32 %v2637_v50, %v9828_v4  ;;  %v3030_v36 = vpop.f32.mrf.mxu3  ;;  %v3191_v4 = vrot.slane %v10313_v21, 3 }
 0x280   : > { %v3830_v22 = vrot.slane %v3828_v57, 6  ;;  %v3833_v59 = vrot.slane %v3831_v41, 7  ;;  %v3292_v7 = vpop.f32.mrf.mxu0  ;;  %v2892_v44 = vshrl.u32 %v10348_v55, 16 }
 0x281   : > { %v3521_v11 = vsel %vm3449_vm7, %v3413_v31, %v3485_v24  ;;  %v3114_v35 = vadd.f32 %v3030_v36, %v2721_v20  ;;  %v2539_v31 = vsel %vm2129_vm3, %v12354_v62, %v2538_v34  ;;  %v3577_v36 = vpop.permute.xlu2 %3576 }
 0x282   : > { %v3834_v45 = vor.u32 %v3833_v59, %v3830_v22  ;;  %v3737_v54 = vmul.f32 %v3572_v32, %v3521_v11 }
 0x283   : > { %v3374_v50 = vadd.f32 %v3290_v28, %v3114_v35  ;;  %v4414_v28 = vor.u32 %v4413_v6, %v4409_v10  ;;  %v2895_v6 = vshll.u32 %v10348_v55, 16 }
 0x284   : > { %v3835_v18 = vsel %vm10327_vm6, %v3826_v33, %v3834_v45  ;;  %v3773_v53 = vpack.c.bf16 %v3737_v54, %v3737_v54  ;;  %v10352_v29 = vld [vmem:[#allocation3 + $0x8] sm:$0xff]  ;;  %v12355_v54 = vrot.slane %v10293_v13, 3 }
 0x285   : > { %4208 = vst [vmem:[#allocation3 + $0x10] sm:$0xf] %v3835_v18  ;;  %v3414_v1 = vadd.f32 %v10277_v0, %v3374_v50  ;;  %v4416_v20 = vshll.u32 %v10352_v29, 16  ;;  %v2890_v18 = vsel %vm2774_vm5, %v10304_v56, %v10360_v47  ;;  %v4420_v21 = vshrl.u32 %v10352_v29, 16 }
 0x286   : > { %v3838_v57 = vshrl.u32 %v3773_v53, 16  ;;  %v3841_v41 = vshll.u32 %v3773_v53, 16  ;;  %v2639_v24 = vpop.f32.mrf.mxu2  ;;  %v3192_v33 = vsel %vm3167_vm4, %v12355_v54, %v3191_v4  ;;  %v3836_v53 = vrot.slane %v3834_v45, 4 }
 0x287   : > { %vm3450_vm8 = vcmp.gt.f32.partialorder %v3414_v1, 0.0  ;;  %v3486_v22 = vmul.f32 0.01, %v3414_v1  ;;  %v2722_v59 = vadd.f32 %v2639_v24, %v9841_v30  ;;  %v3032_v32 = vpop.f32.mrf.mxu3  ;;  %v10370_v35 = vrot.slane %v4416_v20, 1 }
 0x288   : > { %v3840_v43 = vrot.slane %v3838_v57, 6  ;;  %v3843_v10 = vrot.slane %v3841_v41, 7  ;;  %v3295_v11 = vpop.f32.mrf.mxu0  ;;  %v2897_v20 = vrot.slane %v2895_v6, 3  ;;  %v12295_v6 = vrot.slane %v10348_v55, 3 }
 0x289   : > { %v3522_v13 = vsel %vm3450_vm8, %v3414_v1, %v3486_v22  ;;  %v3115_v50 = vadd.f32 %v3032_v32, %v2722_v59  ;;  %v4419_v30 = vsel %vm591_vm0, %v4414_v28, %v10370_v35  ;;  %v2894_v1 = vrot.slane %v2892_v44, 2  ;;  %v10381_v59 = vld [vmem:[#allocation3 + $0xc] sm:$0xf] }
 0x28a   : > { %v3844_v62 = vor.u32 %v3843_v10, %v3840_v43  ;;  %v3738_v54 = vmul.f32 %v3577_v36, %v3522_v13  ;;  %4630 = vmatmul.bf16.vlgmr.msra.gmra.mxu1 %v4419_v30  ;;  %v5145_v13 = vld [vmem:[#allocation3 + $0x8] sm:$0xe]  ;;  %v5237_v30 = vunpack.c.l.b16 %v10381_v59  ;;  %v8923_v59 = vld [vmem:[%s12283_s3 + $0x30] sm:$0xff] }
 0x28b   : > { %v3375_v24 = vadd.f32 %v3292_v7, %v3115_v50  ;;  %2681 = vmatmul.bf16.gmra.mxu2 %v2539_v31  ;;  %3334 = vmatmul.bf16.gmra.mxu0 %v3192_v33  ;;  %v12296_v33 = vrot.slane %v10348_v55, 2  ;;  %v10385_v44 = vor.u32 %v2897_v20, %v2894_v1  ;;  %v3582_v50 = vpop.permute.xlu2 %3581  ;;  %v5236_v20 = vunpack.c.l.b16 %v5145_v13 }
 0x28c   : > { %v3845_v57 = vsel %vm10327_vm6, %v3836_v53, %v3844_v62  ;;  %v3774_v41 = vpack.c.bf16 %v3738_v54, %v3738_v54  ;;  %3074 = vmatmul.bf16.gmra.mxu3 %v2890_v18  ;;  %v10388_v54 = vld [vmem:[#allocation2 + $0x80] sm:$0xff]  ;;  %4788 = vmatpush.bf16.msrb.mxu2 %v8923_v59 }
 0x28d   : > { %4209 = vst [vmem:[#allocation3 + $0x14] sm:$0xf] %v3845_v57  ;;  %v3415_v56 = vadd.f32 %v10277_v0, %v3375_v24  ;;  %v3846_v24 = vrot.slane %v3844_v62, 4  ;;  %v2541_v1 = vsel %vm2129_vm3, %v2538_v34, %v12296_v33 }
 0x28e   : > { %v3848_v45 = vshrl.u32 %v3774_v41, 16  ;;  %v3851_v22 = vshll.u32 %v3774_v41, 16  ;;  %v2642_v36 = vpop.f32.mrf.mxu2  ;;  %v5922_v41 = vld [vmem:[#allocation3 + $0x8] sm:$0xc] }
 0x28f   : > { %vm3451_vm10 = vcmp.gt.f32.partialorder %v3415_v56, 0.0  ;;  %v3487_v7 = vmul.f32 0.01, %v3415_v56  ;;  %v2723_v31 = vadd.f32 %v2642_v36, %v9850_v27  ;;  %v3035_v28 = vpop.f32.mrf.mxu3 }
 0x290   : > { %v3850_v32 = vrot.slane %v3848_v45, 6  ;;  %v3853_v43 = vrot.slane %v3851_v22, 7  ;;  %v3297_v10 = vpop.f32.mrf.mxu0  ;;  %v2899_v22 = vsel %vm2774_vm5, %v10360_v47, %v10385_v44  ;;  %v5941_v47 = vunpack.c.l.b16 %v5922_v41 }
 0x291   : > { %v3523_v18 = vsel %vm3451_vm10, %v3415_v56, %v3487_v7  ;;  %v3116_v53 = vadd.f32 %v3035_v28, %v2723_v31  ;;  %v2901_v7 = vshrl.u32 %v10388_v54, 16  ;;  %v10413_v31 = vpack.c.b16 %v5237_v30, %v5236_v20 }
 0x292   : > { %v3854_v27 = vor.u32 %v3853_v43, %v3850_v32  ;;  %v3739_v57 = vmul.f32 %v3582_v50, %v3523_v18  ;;  %v4422_v41 = vor.u32 %v4420_v21, %v10370_v35  ;;  %v5942_v35 = vpack.c.b16 %v5237_v30, %v5941_v47 }
 0x293   : > { %v3376_v36 = vadd.f32 %v3295_v11, %v3116_v53  ;;  %v3194_v11 = vsel %vm3167_vm4, %v3191_v4, %v12295_v6  ;;  %v2904_v53 = vshll.u32 %v10388_v54, 16  ;;  %v5552_v6 = vshrl.u32 %v10413_v31, 16 }
 0x294   : > { %v3855_v56 = vsel %vm10327_vm6, %v3846_v24, %v3854_v27  ;;  %v3775_v45 = vpack.c.bf16 %v3739_v57, %v3739_v57  ;;  %v10406_v62 = vld [vmem:[#allocation3 + $0x10] sm:$0xff]  ;;  %v5555_v33 = vshll.u32 %v10413_v31, 16  ;;  %v3856_v25 = vrot.slane %v3854_v27, 4 }
 0x295   : > { %4210 = vst [vmem:[#allocation3 + $0x18] sm:$0xf] %v3855_v56  ;;  %v3416_v34 = vadd.f32 %v10277_v0, %v3376_v36  ;;  %v4424_v4 = vshll.u32 %v10406_v62, 16  ;;  %v3587_v56 = vpop.permute.xlu0 %3586 }
 0x296   : > { %v3858_v28 = vshrl.u32 %v3775_v45, 16  ;;  %v3861_v32 = vshll.u32 %v3775_v45, 16  ;;  %v2644_v43 = vpop.f32.mrf.mxu2 }
 0x297   : > { %vm3452_vm11 = vcmp.gt.f32.partialorder %v3416_v34, 0.0  ;;  %v3488_v13 = vmul.f32 0.01, %v3416_v34  ;;  %v2724_v50 = vadd.f32 %v2644_v43, %v9866_v49  ;;  %v3037_v18 = vpop.f32.mrf.mxu3  ;;  %v10420_v20 = vrot.slane %v4424_v4, 1 }
 0x298   : > { %v3860_v24 = vrot.slane %v3858_v28, 6  ;;  %v3863_v57 = vrot.slane %v3861_v32, 7  ;;  %v3300_v36 = vpop.f32.mrf.mxu0  ;;  %v10426_v28 = vld [vmem:[#allocation3 + $0x10] sm:$0xff]  ;;  %v2903_v4 = vrot.slane %v2901_v7, 2 }
 0x299   : > { %v3524_v45 = vsel %vm3452_vm11, %v3416_v34, %v3488_v13  ;;  %v3117_v29 = vadd.f32 %v3037_v18, %v2724_v50  ;;  %v4427_v59 = vsel %vm591_vm0, %v4422_v41, %v10420_v20  ;;  %v2906_v13 = vrot.slane %v2904_v53, 3  ;;  %v8939_v50 = vld [vmem:[%s12283_s3 + $0xb0] sm:$0xff] }
 0x29a   : > { %v3864_v49 = vor.u32 %v3863_v57, %v3860_v24  ;;  %v3740_v43 = vmul.f32 %v3587_v56, %v3524_v45  ;;  %4635 = vmatmul.bf16.gmra.mxu1 %v4427_v59  ;;  %5011 = vmatpush.bf16.msrb.mxu3 %v8939_v50  ;;  %v5943_v57 = vrot.slane %v5942_v35, 2  ;;  %v3195_v50 = vrot.slane %v10388_v54, 3 }
 0x29b   : > { %v3377_v32 = vadd.f32 %v3297_v10, %v3117_v29  ;;  %2686 = vmatmul.bf16.gmra.mxu2 %v2541_v1  ;;  %3339 = vmatmul.bf16.gmra.mxu0 %v3194_v11  ;;  %v5554_v1 = vrot.slane %v5552_v6, 1  ;;  %v5557_v11 = vrot.slane %v5555_v33, 2  ;;  %v3592_v33 = vpop.permute.xlu1 %3591 }
 0x29c   : > { %v3865_v34 = vsel %vm10327_vm6, %v3856_v25, %v3864_v49  ;;  %v3776_v21 = vpack.c.bf16 %v3740_v43, %v3740_v43  ;;  %3079 = vmatmul.bf16.gmra.mxu3 %v2899_v22  ;;  %v5560_v25 = vshrl.u32 %v10426_v28, 16  ;;  %v5563_v22 = vshll.u32 %v10426_v28, 16 }
 0x29d   : > { %4211 = vst [vmem:[#allocation3 + $0x1c] sm:$0xf] %v3865_v34  ;;  %v3417_v27 = vadd.f32 %v10277_v0, %v3377_v32  ;;  %v5558_v32 = vor.u32 %v5557_v11, %v5554_v1  ;;  %v12297_v34 = vrot.slane %v10426_v28, 2  ;;  %v12357_v11 = vrot.slane %v10388_v54, 2 }
 0x29e   : > { %v3868_v30 = vshrl.u32 %v3776_v21, 16  ;;  %v3871_v47 = vshll.u32 %v3776_v21, 16  ;;  %v2647_v18 = vpop.f32.mrf.mxu2  ;;  %v5562_v29 = vrot.slane %v5560_v25, 1  ;;  %v5565_v6 = vrot.slane %v5563_v22, 2  ;;  %v8972_v22 = vld [vmem:[%s12283_s3 + $0x130] sm:$0xff] }
 0x29f   : > { %vm3453_vm12 = vcmp.gt.f32.partialorder %v3417_v27, 0.0  ;;  %v3489_v7 = vmul.f32 0.01, %v3417_v27  ;;  %v2725_v53 = vadd.f32 %v2647_v18, %v9875_v3  ;;  %v3040_v24 = vpop.f32.mrf.mxu3  ;;  %v3866_v21 = vrot.slane %v3864_v49, 4  ;;  %5788 = vmatpush.bf16.msrb.mxu1 %v8972_v22 }
 0x2a0   : > { %v3870_v41 = vrot.slane %v3868_v30, 6  ;;  %v3873_v56 = vrot.slane %v3871_v47, 7  ;;  %v3302_v45 = vpop.f32.mrf.mxu0  ;;  %v10439_v15 = vor.u32 %v5565_v6, %v5562_v29  ;;  %v10445_v35 = vsel %vm2129_vm3, %v5943_v57, %v12297_v34 }
 0x2a1   : > { %v3525_v43 = vsel %vm3453_vm12, %v3417_v27, %v3489_v7  ;;  %v3118_v59 = vadd.f32 %v3040_v24, %v2725_v53  ;;  %12356 = vst [vmem:[#allocation21_spill] sm:$0xff] %v10445_v35  ;;  %v12358_v47 = vrot.slane %v10348_v55, 2  ;;  %v10461_v25 = vor.u32 %v2906_v13, %v2903_v4 }
 0x2a2   : > { %v3874_v10 = vor.u32 %v3873_v56, %v3870_v41  ;;  %v3741_v61 = vmul.f32 %v3592_v33, %v3525_v43  ;;  %v10453_v49 = vsel %vm1736_vm2, %v5558_v32, %v10439_v15  ;;  %v4428_v57 = vshrl.u32 %v10406_v62, 16  ;;  %v10477_v33 = vld [vmem:[#allocation2 + $0x88] sm:$0xff] }
 0x2a3   : > { %v3378_v3 = vadd.f32 %v3300_v36, %v3118_v59  ;;  %v2543_v18 = vsel %vm2129_vm3, %v12358_v47, %v12357_v11  ;;  %v12359_v29 = vrot.slane %v10348_v55, 3  ;;  %v2908_v55 = vsel %vm2774_vm5, %v10385_v44, %v10461_v25 }
 0x2a4   : > { %v3875_v27 = vsel %vm10327_vm6, %v3866_v21, %v3874_v10  ;;  %v3777_v30 = vpack.c.bf16 %v3741_v61, %v3741_v61  ;;  %v10449_v1 = vld [vmem:[#allocation3 + $0x18] sm:$0xff]  ;;  %v8964_v61 = vld [vmem:[%s12283_s3 + $0xf0] sm:$0xff]  ;;  %v4430_v32 = vor.u32 %v4428_v57, %v10420_v20  ;;  %v2910_v20 = vshrl.u32 %v10477_v33, 16 }
 0x2a5   : > { %4212 = vst [vmem:[#allocation3 + $0x20] sm:$0xf] %v3875_v27  ;;  %v3418_v36 = vadd.f32 %v10277_v0, %v3378_v3  ;;  %v4432_v41 = vshll.u32 %v10449_v1, 16  ;;  %v3196_v6 = vsel %vm3167_vm4, %v12359_v29, %v3195_v50  ;;  %5396 = vmatpush.bf16.msrb.mxu0 %v8964_v61  ;;  %v3597_v3 = vpop.permute.xlu2 %3596  ;;  %v10487_v22 = vld [vmem:[#allocation3 + $0x18] sm:$0xff] }
 0x2a6   : > { %v3878_v7 = vshrl.u32 %v3777_v30, 16  ;;  %v3881_v53 = vshll.u32 %v3777_v30, 16  ;;  %v2649_v24 = vpop.f32.mrf.mxu2  ;;  %v3876_v30 = vrot.slane %v3874_v10, 4  ;;  %v2913_v10 = vshll.u32 %v10477_v33, 16 }
 0x2a7   : > { %vm3454_vm13 = vcmp.gt.f32.partialorder %v3418_v36, 0.0  ;;  %v3490_v56 = vmul.f32 0.01, %v3418_v36  ;;  %v2726_v4 = vadd.f32 %v2649_v24, %v9891_v46  ;;  %v3042_v13 = vpop.f32.mrf.mxu3  ;;  %v10480_v21 = vrot.slane %v4432_v41, 1 }
 0x2a8   : > { %v3880_v43 = vrot.slane %v3878_v7, 6  ;;  %v3883_v59 = vrot.slane %v3881_v53, 7  ;;  %v3305_v62 = vpop.f32.mrf.mxu0  ;;  %v2912_v29 = vrot.slane %v2910_v20, 2 }
 0x2a9   : > { %v3526_v46 = vsel %vm3454_vm13, %v3418_v36, %v3490_v56  ;;  %v3119_v27 = vadd.f32 %v3042_v13, %v2726_v4  ;;  %v4435_v61 = vsel %vm591_vm0, %v4430_v32, %v10480_v21 }
 0x2aa   : > { %v3884_v11 = vor.u32 %v3883_v59, %v3880_v43  ;;  %v3742_v47 = vmul.f32 %v3597_v3, %v3526_v46  ;;  %4640 = vmatmul.bf16.gmra.mxu1 %v4435_v61  ;;  %v3602_v46 = vpop.permute.xlu0 %3601 }
 0x2ab   : > { %v3379_v7 = vadd.f32 %v3302_v45, %v3119_v27  ;;  %2691 = vmatmul.bf16.gmra.mxu2 %v2543_v18  ;;  %3344 = vmatmul.bf16.gmra.mxu0 %v3196_v6  ;;  %v5569_v45 = vshrl.u32 %v10487_v22, 16  ;;  %v5572_v18 = vshll.u32 %v10487_v22, 16 }
 0x2ac   : > { %v3885_v36 = vsel %vm10327_vm6, %v3876_v30, %v3884_v11  ;;  %v3778_v53 = vpack.c.bf16 %v3742_v47, %v3742_v47  ;;  %3084 = vmatmul.bf16.gmra.mxu3 %v2908_v55  ;;  %v2544_v30 = vrot.slane %v10477_v33, 2  ;;  %v2915_v47 = vrot.slane %v2913_v10, 3 }
 0x2ad   : > { %4213 = vst [vmem:[#allocation3 + $0x24] sm:$0xf] %v3885_v36  ;;  %v3419_v44 = vadd.f32 %v10277_v0, %v3379_v7  ;;  %v5571_v32 = vrot.slane %v5569_v45, 1  ;;  %v5574_v3 = vrot.slane %v5572_v18, 2  ;;  %v3886_v61 = vrot.slane %v3884_v11, 4  ;;  %v10518_v45 = vld [vmem:[#allocation2 + $0x90] sm:$0xff] }
 0x2ae   : > { %v3888_v24 = vshrl.u32 %v3778_v53, 16  ;;  %v3891_v57 = vshll.u32 %v3778_v53, 16  ;;  %v2652_v41 = vpop.f32.mrf.mxu2 }
 0x2af   : > { %vm3455_vm14 = vcmp.gt.f32.partialorder %v3419_v44, 0.0  ;;  %v3491_v56 = vmul.f32 0.01, %v3419_v44  ;;  %v2727_v4 = vadd.f32 %v2652_v41, %v9905_v8  ;;  %v3045_v13 = vpop.f32.mrf.mxu3  ;;  %v10498_v53 = vor.u32 %v5574_v3, %v5571_v32 }
 0x2b0   : > { %v3890_v6 = vrot.slane %v3888_v24, 6  ;;  %v3893_v43 = vrot.slane %v3891_v57, 7  ;;  %v3307_v59 = vpop.f32.mrf.mxu0  ;;  %v3197_v8 = vrot.slane %v10477_v33, 3  ;;  %v10516_v41 = vor.u32 %v2915_v47, %v2912_v29 }
 0x2b1   : > { %v3527_v27 = vsel %vm3455_vm14, %v3419_v44, %v3491_v56  ;;  %v3120_v55 = vadd.f32 %v3045_v13, %v2727_v4  ;;  %v10508_v44 = vsel %vm1736_vm2, %v10439_v15, %v10498_v53  ;;  %v4436_v13 = vshrl.u32 %v10449_v1, 16 }
 0x2b2   : > { %v3894_v7 = vor.u32 %v3893_v43, %v3890_v6  ;;  %v3743_v36 = vmul.f32 %v3602_v46, %v3527_v27  ;;  %v3198_v29 = vsel %vm3167_vm4, %v3195_v50, %v3197_v8 }
 0x2b3   : > { %v3380_v34 = vadd.f32 %v3305_v62, %v3120_v55  ;;  %v12360_v62 = vrot.slane %v10388_v54, 2  ;;  %v4438_v27 = vor.u32 %v4436_v13, %v10480_v21  ;;  %v3607_v55 = vpop.permute.xlu1 %3606 }
 0x2b4   : > { %v3895_v20 = vsel %vm10327_vm6, %v3886_v61, %v3894_v7  ;;  %v3779_v24 = vpack.c.bf16 %v3743_v36, %v3743_v36  ;;  %v10503_v57 = vld [vmem:[#allocation3 + $0x20] sm:$0xff]  ;;  %v2919_v36 = vshrl.u32 %v10518_v45, 16  ;;  %v3896_v54 = vrot.slane %v3894_v7, 4 }
 0x2b5   : > { %4214 = vst [vmem:[#allocation3 + $0x28] sm:$0xf] %v3895_v20  ;;  %v3420_v11 = vadd.f32 %v10277_v0, %v3380_v34  ;;  %v2545_v10 = vsel %vm2129_vm3, %v12360_v62, %v2544_v30  ;;  %v4440_v15 = vshll.u32 %v10503_v57, 16  ;;  %v293_v62 = vld [vmem:[%s9307_s14 + $0x140] sm:$0xff] }
 0x2b6   : > { %v3898_v18 = vshrl.u32 %v3779_v24, 16  ;;  %v3901_v56 = vshll.u32 %v3779_v24, 16  ;;  %v2654_v4 = vpop.f32.mrf.mxu2  ;;  %v334_v13 = vpack.c.bf16 %v293_v62, %v293_v62  ;;  %v3612_v62 = vpop.permute.xlu2 %3611 }
 0x2b7   : > { %vm3456_vm15 = vcmp.gt.f32.partialorder %v3420_v11, 0.0  ;;  %v3492_v6 = vmul.f32 0.01, %v3420_v11  ;;  %v2728_v34 = vadd.f32 %v2654_v4, %v9942_v26  ;;  %v3047_v43 = vpop.f32.mrf.mxu3  ;;  %v10529_v1 = vrot.slane %v4440_v15, 1  ;;  %v8922_v4 = vld [vmem:[%s12283_s3 + $0x28] sm:$0xff] }
 0x2b8   : > { %v3900_v32 = vrot.slane %v3898_v18, 6  ;;  %v3903_v3 = vrot.slane %v3901_v56, 7  ;;  %v3310_v46 = vpop.f32.mrf.mxu0  ;;  %v2917_v26 = vsel %vm2774_vm5, %v10461_v25, %v10516_v41  ;;  %v10538_v18 = vld [vmem:[#allocation3 + $0x20] sm:$0xff]  ;;  %v2922_v25 = vshll.u32 %v10518_v45, 16  ;;  %4789 = vmatpush.bf16.msrb.mxu2 %v8922_v4  ;;  %375 = vst [vmem:[#allocation2 + $0xa0] sm:$0xf] %v334_v13 }
 0x2b9   : > { %v3528_v47 = vsel %vm3456_vm15, %v3420_v11, %v3492_v6  ;;  %v3121_v61 = vadd.f32 %v3047_v43, %v2728_v34  ;;  %v4443_v50 = vsel %vm591_vm0, %v4438_v27, %v10529_v1  ;;  %v2546_v43 = vrot.slane %v10518_v45, 2 }
 0x2ba   : > { %v3904_v20 = vor.u32 %v3903_v3, %v3900_v32  ;;  %v3744_v24 = vmul.f32 %v3607_v55, %v3528_v47  ;;  %4645 = vmatmul.bf16.gmra.mxu1 %v4443_v50  ;;  %v5581_v55 = vshll.u32 %v10538_v18, 16  ;;  %v2345_v50 = vadd.f32 %v9951_v48, %v9980_v39  ;;  %v8963_v48 = vld [vmem:[%s12283_s3 + $0xe8] sm:$0xff] }
 0x2bb   : > { %v3381_v21 = vadd.f32 %v3307_v59, %v3121_v61  ;;  %2696 = vmatmul.bf16.gmra.mxu2 %v2545_v10  ;;  %3349 = vmatmul.bf16.gmra.mxu0 %v3198_v29  ;;  %v8938_v59 = vld [vmem:[%s12283_s3 + $0xa8] sm:$0xff]  ;;  %v2921_v10 = vrot.slane %v2919_v36, 2  ;;  %v5578_v29 = vshrl.u32 %v10538_v18, 16  ;;  %v2924_v36 = vrot.slane %v2922_v25, 3 }
 0x2bc   : > { %v3905_v11 = vsel %vm10327_vm6, %v3896_v54, %v3904_v20  ;;  %v3780_v56 = vpack.c.bf16 %v3744_v24, %v3744_v24  ;;  %3089 = vmatmul.bf16.gmra.mxu3 %v2917_v26  ;;  %v10554_v54 = vld [vmem:[#allocation2 + $0x98] sm:$0xff]  ;;  %v12299_v13 = vrot.slane %v10518_v45, 3  ;;  %v2547_v25 = vsel %vm2129_vm3, %v2544_v30, %v2546_v43  ;;  %5397 = vmatpush.bf16.msrb.mxu0 %v8963_v48 }
 0x2bd   : > { %4215 = vst [vmem:[#allocation3 + $0x2c] sm:$0xf] %v3905_v11  ;;  %v3421_v7 = vadd.f32 %v10277_v0, %v3381_v21  ;;  %5012 = vmatpush.bf16.msrb.mxu3 %v8938_v59  ;;  %v5580_v24 = vrot.slane %v5578_v29, 1  ;;  %v5583_v11 = vrot.slane %v5581_v55, 2  ;;  %v2928_v29 = vshrl.u32 %v10554_v54, 16 }
 0x2be   : > { %v3908_v15 = vshrl.u32 %v3780_v56, 16  ;;  %v3911_v6 = vshll.u32 %v3780_v56, 16  ;;  %v2657_v34 = vpop.f32.mrf.mxu2  ;;  %v3906_v56 = vrot.slane %v3904_v20, 4 }
 0x2bf   : > { %vm3457_vm7 = vcmp.gt.f32.partialorder %v3421_v7, 0.0  ;;  %v3493_v32 = vmul.f32 0.01, %v3421_v7  ;;  %v2729_v3 = vadd.f32 %v2657_v34, %v9956_v2  ;;  %v3050_v27 = vpop.f32.mrf.mxu3  ;;  %v10568_v39 = vor.u32 %v5583_v11, %v5580_v24 }
 0x2c0   : > { %v3910_v47 = vrot.slane %v3908_v15, 6  ;;  %v3913_v61 = vrot.slane %v3911_v6, 7  ;;  %v3312_v26 = vpop.f32.mrf.mxu0  ;;  %v10573_v34 = vor.u32 %v2924_v36, %v2921_v10  ;;  %v12361_v10 = vrot.slane %v10426_v28, 2 }
 0x2c1   : > { %v3529_v21 = vsel %vm3457_vm7, %v3421_v7, %v3493_v32  ;;  %v3122_v2 = vadd.f32 %v3050_v27, %v2729_v3  ;;  %v12298_v7 = vrot.slane %v10487_v22, 2  ;;  %v8971_v32 = vld [vmem:[%s12283_s3 + $0x128] sm:$0xff]  ;;  %v2931_v3 = vshll.u32 %v10554_v54, 16 }
 0x2c2   : > { %v3914_v4 = vor.u32 %v3913_v61, %v3910_v47  ;;  %v3745_v59 = vmul.f32 %v3612_v62, %v3529_v21  ;;  %v10586_v27 = vsel %vm1736_vm2, %v10498_v53, %v10568_v39  ;;  %v4444_v24 = vshrl.u32 %v10503_v57, 16  ;;  %5789 = vmatpush.bf16.msrb.mxu1 %v8971_v32  ;;  %v8937_v57 = vld [vmem:[%s12283_s3 + $0xa0] sm:$0xff] }
 0x2c3   : > { %v3382_v15 = vadd.f32 %v3310_v46, %v3122_v2  ;;  %v10593_v55 = vsel %vm2129_vm3, %v12361_v10, %v12298_v7  ;;  %v3200_v53 = vsel %vm3167_vm4, %v3197_v8, %v12299_v13  ;;  %v3617_v8 = vpop.permute.xlu0 %3616  ;;  %v2926_v10 = vsel %vm2774_vm5, %v10516_v41, %v10573_v34  ;;  %5013 = vmatpush.bf16.msrb.mxu3 %v8937_v57  ;;  %v8936_v41 = vld [vmem:[%s12283_s3 + $0x98] sm:$0xff]  ;;  %v12363_v57 = vld [vmem:[#allocation5_spill] sm:$0xff] }
 0x2c4   : > { %v3915_v20 = vsel %vm10327_vm6, %v3906_v56, %v3914_v4  ;;  %v3781_v6 = vpack.c.bf16 %v3745_v59, %v3745_v59  ;;  %v10575_v46 = vld [vmem:[#allocation3 + $0x28] sm:$0xff]  ;;  %12362 = vst [vmem:[#allocation22_spill] sm:$0xff] %v10593_v55  ;;  %v8921_v56 = vld [vmem:[%s12283_s3 + $0x20] sm:$0xff]  ;;  %v4446_v33 = vor.u32 %v4444_v24, %v10529_v1  ;;  %v8920_v1 = vld [vmem:[%s12283_s3 + $0x18] sm:$0xff] }
 0x2c5   : > { %4216 = vst [vmem:[#allocation3 + $0x30] sm:$0xf] %v3915_v20  ;;  %v3422_v30 = vadd.f32 %v10277_v0, %v3382_v15  ;;  %v4448_v62 = vshll.u32 %v10575_v46, 16  ;;  %4790 = vmatpush.bf16.msrb.mxu2 %v8921_v56 }
 0x2c6   : > { %v3918_v47 = vshrl.u32 %v3781_v6, 16  ;;  %v3921_v61 = vshll.u32 %v3781_v6, 16  ;;  %v2659_v36 = vpop.f32.mrf.mxu2 }
 0x2c7   : > { %vm3458_vm8 = vcmp.gt.f32.partialorder %v3422_v30, 0.0  ;;  %v3494_v21 = vmul.f32 0.01, %v3422_v30  ;;  %v2730_v2 = vadd.f32 %v2659_v36, %v2345_v50  ;;  %v3052_v11 = vpop.f32.mrf.mxu3  ;;  %v8962_v50 = vld [vmem:[%s12283_s3 + $0xe0] sm:$0xff]  ;;  %v10612_v20 = vrot.slane %v4448_v62, 1  ;;  %5014 = vmatpush.bf16.msrb.mxu3 %v8936_v41  ;;  %v12364_v41 = vld [vmem:[#allocation6_spill] sm:$0xff] }
 0x2c8   : > { %v3920_v59 = vrot.slane %v3918_v47, 6  ;;  %v3923_v15 = vrot.slane %v3921_v61, 7  ;;  %v3315_v48 = vpop.f32.mrf.mxu0  ;;  %v3916_v36 = vrot.slane %v3914_v4, 4  ;;  %5398 = vmatpush.bf16.msrb.mxu0 %v8962_v50  ;;  %v8961_v4 = vld [vmem:[%s12283_s3 + $0xd8] sm:$0xff] }
 0x2c9   : > { %v3530_v6 = vsel %vm3458_vm8, %v3422_v30, %v3494_v21  ;;  %v3123_v32 = vadd.f32 %v3052_v11, %v2730_v2  ;;  %v4451_v47 = vsel %vm591_vm0, %v4446_v33, %v10612_v20  ;;  %4791 = vmatpush.bf16.msrb.mxu2 %v8920_v1  ;;  %v10631_v21 = vld [vmem:[#allocation3 + $0x28] sm:$0xff] }
 0x2ca   : > { %v3924_v7 = vor.u32 %v3923_v15, %v3920_v59  ;;  %v3746_v13 = vmul.f32 %v3617_v8, %v3530_v6  ;;  %4650 = vmatmul.bf16.gmra.mxu1 %v4451_v47  ;;  %v12301_v59 = vrot.slane %v10554_v54, 2  ;;  %v12300_v6 = vrot.slane %v10554_v54, 3 }
 0x2cb   : > { %v3383_v61 = vadd.f32 %v3312_v26, %v3123_v32  ;;  %2701 = vmatmul.bf16.gmra.mxu2 %v2547_v25  ;;  %3354 = vmatmul.bf16.gmra.mxu0 %v3200_v53  ;;  %v2930_v26 = vrot.slane %v2928_v29, 2  ;;  %v2933_v25 = vrot.slane %v2931_v3, 3  ;;  %v8919_v29 = vld [vmem:[%s12283_s3 + $0x10] sm:$0xff]  ;;  %v5590_v1 = vshll.u32 %v10631_v21, 16 }
 0x2cc   : > { %v3925_v30 = vsel %vm10327_vm6, %v3916_v36, %v3924_v7  ;;  %v3782_v24 = vpack.c.bf16 %v3746_v13, %v3746_v13  ;;  %3094 = vmatmul.bf16.gmra.mxu3 %v2926_v10  ;;  %5399 = vmatpush.bf16.msrb.mxu0 %v8961_v4  ;;  %v8960_v32 = vld [vmem:[%s12283_s3 + $0xd0] sm:$0xff]  ;;  %v3622_v10 = vpop.permute.xlu1 %3621  ;;  %v12365_v4 = vld [vmem:[#allocation4_spill] sm:$0xff] }
 0x2cd   : > { %4217 = vst [vmem:[#allocation3 + $0x34] sm:$0xf] %v3925_v30  ;;  %v3423_v62 = vadd.f32 %v10277_v0, %v3383_v61  ;;  %v8935_v0 = vld [vmem:[%s12283_s3 + $0x90] sm:$0xff]  ;;  %v10643_v8 = vor.u32 %v2933_v25, %v2930_v26  ;;  %4792 = vmatpush.bf16.msrb.mxu2 %v8919_v29  ;;  %v5587_v61 = vshrl.u32 %v10631_v21, 16  ;;  %v2347_v30 = vadd.f32 %v12365_v4, %v12364_v41 }
 0x2ce   : > { %v3928_v2 = vshrl.u32 %v3782_v24, 16  ;;  %v3931_v11 = vshll.u32 %v3782_v24, 16  ;;  %v2662_v53 = vpop.f32.mrf.mxu2  ;;  %5015 = vmatpush.bf16.msrb.mxu3 %v8935_v0  ;;  %v3926_v24 = vrot.slane %v3924_v7, 4  ;;  %v8934_v7 = vld [vmem:[%s12283_s3 + $0x88] sm:$0xff]  ;;  %v12366_v0 = vrot.slane %v10518_v45, 3 }
 0x2cf   : > { %vm3459_vm10 = vcmp.gt.f32.partialorder %v3423_v62, 0.0  ;;  %v3495_v56 = vmul.f32 0.01, %v3423_v62  ;;  %v2731_v50 = vadd.f32 %v2662_v53, %v12363_v57  ;;  %v3055_v13 = vpop.f32.mrf.mxu3  ;;  %v8959_v57 = vld [vmem:[%s12283_s3 + $0xc8] sm:$0xff] }
 0x2d0   : > { %v3930_v3 = vrot.slane %v3928_v2, 6  ;;  %v3933_v15 = vrot.slane %v3931_v11, 7  ;;  %v10641_v33 = vpop.f32.mrf.mxu0  ;;  %v2404_v2 = vld [vmem:[#allocation2 + $0xa0] sm:$0x3]  ;;  %5400 = vmatpush.bf16.msrb.mxu0 %v8960_v32 }
 0x2d1   : > { %v3531_v36 = vsel %vm3459_vm10, %v3423_v62, %v3495_v56  ;;  %v3124_v47 = vadd.f32 %v3055_v13, %v2731_v50  ;;  %v2753_v11 = vld [vmem:[#allocation2 + $0xa0] sm:$0x7]  ;;  %v2549_v62 = vsel %vm2129_vm3, %v2546_v43, %v12301_v59  ;;  %v8918_v56 = vld [vmem:[%s12283_s3 + $0x8] sm:$0xff]  ;;  %v5589_v50 = vrot.slane %v5587_v61, 1 }
 0x2d2   : > { %v10653_v26 = vor.u32 %v3933_v15, %v3930_v3  ;;  %v3747_v25 = vmul.f32 %v3622_v10, %v3531_v36  ;;  %v2935_v43 = vsel %vm2774_vm5, %v10573_v34, %v10643_v8  ;;  %v3202_v3 = vsel %vm3167_vm4, %v12366_v0, %v12300_v6  ;;  %v10685_v32 = vld [vmem:[%s12282_s2] ss:$0 sm:$0xff]  ;;  %4793 = vmatpush.bf16.msrb.mxu2 %v8918_v56 }
 0x2d3   : > { %v3384_v53 = vadd.f32 %v3315_v48, %v3124_v47  ;;  %v5592_v48 = vrot.slane %v5590_v1, 2  ;;  %v4452_v36 = vshrl.u32 %v10575_v46, 16  ;;  %v2772_v47 = vunpack.c.l.b16 %v2753_v11  ;;  %5016 = vmatpush.bf16.msrb.mxu3 %v8934_v7  ;;  %v8917_v46 = vld [vmem:[%s12283_s3] sm:$0xff] }
 0x2d4   : > { %v3935_v13 = vsel %vm10327_vm6, %v3926_v24, %v10653_v26  ;;  %v3783_v29 = vpack.c.bf16 %v3747_v25, %v3747_v25  ;;  %v10680_v15 = vld [vmem:[#allocation3 + $0x30] sm:$0xff]  ;;  %v2495_v24 = vunpack.c.l.b16 %v2404_v2  ;;  %5401 = vmatpush.bf16.msrb.mxu0 %v8959_v57  ;;  %v8933_v11 = vld [vmem:[%s12283_s3 + $0x80] sm:$0xff]  ;;  %v3936_v55 = vrot.slane %v10653_v26, 4 }
 0x2d5   : > { %4218 = vst [vmem:[#allocation3 + $0x38] sm:$0xf] %v3935_v13  ;;  %v3424_v10 = vadd.f32 %v10685_v32, %v3384_v53  ;;  %v10689_v34 = vld [vmem:[#allocation3 + $0x30] sm:$0xff]  ;;  %v10691_v45 = vor.u32 %v5592_v48, %v5589_v50  ;;  %v4456_v4 = vshll.u32 %v10680_v15, 16  ;;  %v8958_v56 = vld [vmem:[%s12283_s3 + $0xc0] sm:$0xff]  ;;  %v4454_v50 = vor.u32 %v4452_v36, %v10612_v20 }
 0x2d6   : > { %v3938_v61 = vshrl.u32 %v3783_v29, 16  ;;  %v3941_v1 = vshll.u32 %v3783_v29, 16  ;;  %v2664_v41 = vpop.f32.mrf.mxu2  ;;  %v3627_v29 = vpop.permute.xlu2 %3626  ;;  %v10711_v6 = vpack.c.b16 %v2772_v47, %v2772_v47  ;;  %4794 = vmatpush.bf16.msrb.mxu2 %v8917_v46  ;;  %v5596_v59 = vshrl.u32 %v10689_v34, 16 }
 0x2d7   : > { %vm3460_vm11 = vcmp.gt.f32.partialorder %v3424_v10, 0.0  ;;  %v3496_v25 = vmul.f32 0.01, %v3424_v10  ;;  %v2732_v13 = vadd.f32 %v2664_v41, %v2347_v30  ;;  %v3057_v53 = vpop.f32.mrf.mxu3  ;;  %v10706_v2 = vsel %vm1736_vm2, %v10568_v39, %v10691_v45  ;;  %5017 = vmatpush.bf16.msrb.mxu3 %v8933_v11 }
 0x2d8   : > { %v3940_v7 = vrot.slane %v3938_v61, 6  ;;  %v3943_v30 = vrot.slane %v3941_v1, 7  ;;  %v3320_v57 = vpop.f32.mrf.mxu0  ;;  %v10709_v48 = vrot.slane %v4456_v4, 1  ;;  %5402 = vmatpush.bf16.msrb.mxu0 %v8958_v56  ;;  %v5598_v1 = vrot.slane %v5596_v59, 1 }
 0x2d9   : > { %v3532_v0 = vsel %vm3460_vm11, %v3424_v10, %v3496_v25  ;;  %v3125_v41 = vadd.f32 %v3057_v53, %v2732_v13  ;;  %v2514_v10 = vpack.c.b16 %v2495_v24, %v2495_v24  ;;  %v5599_v26 = vshll.u32 %v10689_v34, 16 }
 0x2da   : > { %v3944_v39 = vor.u32 %v3943_v30, %v3940_v7  ;;  %v3748_v35 = vmul.f32 %v3627_v29, %v3532_v0  ;;  %v4459_v61 = vsel %vm591_vm0, %v4454_v50, %v10709_v48  ;;  %v2937_v25 = vshrl.u32 %v10711_v6, 16  ;;  %v3632_v29 = vpop.permute.xlu0 %3631 }
 0x2db   : > { %v3385_v20 = vadd.f32 %v10641_v33, %v3125_v41  ;;  %2706 = vmatmul.bf16.gmra.mxu2 %v2549_v62  ;;  %3359 = vmatmul.bf16.gmra.mxu0 %v3202_v3  ;;  %v2940_v13 = vshll.u32 %v10711_v6, 16  ;;  %v5948_v33 = vrot.slane %v10538_v18, 2  ;;  %v5601_v53 = vrot.slane %v5599_v26, 2 }
 0x2dc   : > { %v3945_v36 = vsel %vm10327_vm6, %v3936_v55, %v3944_v39  ;;  %v3784_v47 = vpack.c.bf16 %v3748_v35, %v3748_v35  ;;  %3099 = vmatmul.bf16.gmra.mxu3 %v2935_v43  ;;  %4655 = vmatmul.bf16.gmra.mxu1 %v4459_v61  ;;  %v2550_v43 = vrot.slane %v2514_v10, 2  ;;  %v12367_v30 = vrot.slane %v10487_v22, 2 }
 0x2dd   : > { %4219 = vst [vmem:[#allocation3 + $0x3c] sm:$0xf] %v3945_v36  ;;  %v3425_v4 = vadd.f32 %v10685_v32, %v3385_v20  ;;  %v10726_v7 = vor.u32 %v5601_v53, %v5598_v1  ;;  %v2939_v61 = vrot.slane %v2937_v25, 2  ;;  %v2942_v20 = vrot.slane %v2940_v13, 3 }
 0x2de   : > { %v3948_v62 = vshrl.u32 %v3784_v47, 16  ;;  %v3951_v3 = vshll.u32 %v3784_v47, 16  ;;  %v2667_v24 = vpop.f32.mrf.mxu2  ;;  %v10731_v50 = vsel %vm2129_vm3, %v12367_v30, %v5948_v33  ;;  %v3946_v36 = vrot.slane %v3944_v39, 4 }
 0x2df   : > { %vm3461_vm12 = vcmp.gt.f32.partialorder %v3425_v4, 0.0  ;;  %v3497_v35 = vmul.f32 0.01, %v3425_v4  ;;  %v2733_v55 = vadd.f32 %v2667_v24, %v10041_v38  ;;  %v3060_v59 = vpop.f32.mrf.mxu3  ;;  %12368 = vst [vmem:[#allocation5_spill] sm:$0xff] %v10731_v50  ;;  %v10736_v10 = vsel %vm1736_vm2, %v10691_v45, %v10726_v7 }
 0x2e0   : > { %v3950_v46 = vrot.slane %v3948_v62, 6  ;;  %v3953_v11 = vrot.slane %v3951_v3, 7  ;;  %v3322_v56 = vpop.f32.mrf.mxu0  ;;  %v3203_v26 = vrot.slane %v10711_v6, 3  ;;  %v5950_v62 = vrot.slane %v10631_v21, 2 }
 0x2e1   : > { %v3533_v0 = vsel %vm3461_vm12, %v3425_v4, %v3497_v35  ;;  %v3126_v41 = vadd.f32 %v3060_v59, %v2733_v55  ;;  %v2349_v3 = vadd.f32 %v10038_v51, %v10066_v63  ;;  %v12369_v45 = vrot.slane %v10554_v54, 2 }
 0x2e2   : > { %v3954_v47 = vor.u32 %v3953_v11, %v3950_v46  ;;  %v3749_v38 = vmul.f32 %v3632_v29, %v3533_v0  ;;  %v2943_v24 = vor.u32 %v2942_v20, %v2939_v61  ;;  %v10755_v51 = vsel %vm2129_vm3, %v5948_v33, %v5950_v62 }
 0x2e3   : > { %v3386_v1 = vadd.f32 %v3320_v57, %v3126_v41  ;;  %v2551_v57 = vsel %vm2129_vm3, %v12369_v45, %v2550_v43  ;;  %12370 = vst [vmem:[#allocation6_spill] sm:$0xff] %v10755_v51  ;;  %v4460_v55 = vshrl.u32 %v10680_v15, 16  ;;  %v12371_v43 = vrot.slane %v10554_v54, 3 }
 0x2e4   : > { %v3955_v4 = vsel %vm10327_vm6, %v3946_v36, %v3954_v47  ;;  %v3785_v25 = vpack.c.bf16 %v3749_v38, %v3749_v38  ;;  %v10744_v39 = vld [vmem:[#allocation3 + $0x38] sm:$0xff]  ;;  %v3637_v36 = vpop.permute.xlu1 %3636 }
 0x2e5   : > { %4220 = vst [vmem:[#allocation3 + $0x40] sm:$0xf] %v3955_v4  ;;  %v3426_v13 = vadd.f32 %v10685_v32, %v3386_v1  ;;  %v10750_v6 = vld [vmem:[#allocation3 + $0x38] sm:$0xff]  ;;  %v4464_v59 = vshll.u32 %v10744_v39, 16  ;;  %v3204_v29 = vsel %vm3167_vm4, %v12371_v43, %v3203_v26  ;;  %v4462_v33 = vor.u32 %v4460_v55, %v10709_v48 }
 0x2e6   : > { %v3958_v63 = vshrl.u32 %v3785_v25, 16  ;;  %v3961_v53 = vshll.u32 %v3785_v25, 16  ;;  %v2669_v35 = vpop.f32.mrf.mxu2  ;;  %v2944_v1 = vsel %vm2774_vm5, %v10643_v8, %v2943_v24  ;;  %v3956_v4 = vrot.slane %v3954_v47, 4  ;;  %v9153_v8 = vld [vmem:[#allocation3] sm:$0xf0]  ;;  %v8970_v24 = vld [vmem:[%s12283_s3 + $0x120] sm:$0xff] }
 0x2e7   : > { %vm3462_vm13 = vcmp.gt.f32.partialorder %v3426_v13, 0.0  ;;  %v3498_v46 = vmul.f32 0.01, %v3426_v13  ;;  %v2734_v11 = vadd.f32 %v2669_v35, %v2349_v3  ;;  %v3062_v30 = vpop.f32.mrf.mxu3  ;;  %v10763_v20 = vrot.slane %v4464_v59, 1  ;;  %5790 = vmatpush.bf16.msrb.mxu1 %v8970_v24 }
 0x2e8   : > { %v3960_v0 = vrot.slane %v3958_v63, 6  ;;  %v3963_v41 = vrot.slane %v3961_v53, 7  ;;  %v3325_v61 = vpop.f32.mrf.mxu0  ;;  %v5605_v3 = vshrl.u32 %v10750_v6, 16  ;;  %v5608_v63 = vshll.u32 %v10750_v6, 16 }
 0x2e9   : > { %v3534_v38 = vsel %vm3462_vm13, %v3426_v13, %v3498_v46  ;;  %v3127_v15 = vadd.f32 %v3062_v30, %v2734_v11  ;;  %v4467_v26 = vsel %vm591_vm0, %v4462_v33, %v10763_v20  ;;  %v5952_v46 = vrot.slane %v10689_v34, 2 }
 0x2ea   : > { %v3964_v25 = vor.u32 %v3963_v41, %v3960_v0  ;;  %v3750_v54 = vmul.f32 %v3637_v36, %v3534_v38  ;;  %v5607_v48 = vrot.slane %v5605_v3, 1 }
 0x2eb   : > { %v3387_v45 = vadd.f32 %v3322_v56, %v3127_v15  ;;  %2711 = vmatmul.bf16.gmra.mxu2 %v2551_v57  ;;  %3364 = vmatmul.bf16.gmra.mxu0 %v3204_v29  ;;  %v9154_v56 = vld [vmem:[#allocation3] sm:$0xe]  ;;  %v5610_v57 = vrot.slane %v5608_v63, 2  ;;  %v10784_v38 = vsel %vm2129_vm3, %v5950_v62, %v5952_v46  ;;  %v3642_v15 = vpop.permute.xlu2 %3641  ;;  %v2351_v63 = vadd.f32 %v10080_v5, %v10101_v60 }
 0x2ec   : > { %v3965_v13 = vsel %vm10327_vm6, %v3956_v4, %v3964_v25  ;;  %v3786_v53 = vpack.c.bf16 %v3750_v54, %v3750_v54  ;;  %3104 = vmatmul.bf16.gmra.mxu3 %v2944_v1  ;;  %4660 = vmatmul.bf16.gmra.mxu1 %v4467_v26  ;;  %v9155_v36 = vor.u32 %v9154_v56, %v9153_v8  ;;  %v3966_v4 = vrot.slane %v3964_v25, 4 }
 0x2ed   : > { %4221 = vst [vmem:[#allocation3 + $0x44] sm:$0xf] %v3965_v13  ;;  %v3427_v47 = vadd.f32 %v10685_v32, %v3387_v45  ;;  %v10779_v29 = vor.u32 %v5610_v57, %v5607_v48  ;;  %v5954_v48 = vrot.slane %v10750_v6, 2 }
 0x2ee   : > { %v3968_v35 = vshrl.u32 %v3786_v53, 16  ;;  %v3971_v55 = vshll.u32 %v3786_v53, 16  ;;  %v2672_v59 = vpop.f32.mrf.mxu2  ;;  %12372 = vst [vmem:[#allocation4_spill] sm:$0xff] %v10784_v38  ;;  %v4907_v53 = vrot.slane %v9155_v36, 1 }
 0x2ef   : > { %vm3463_vm14 = vcmp.gt.f32.partialorder %v3427_v47, 0.0  ;;  %v3499_v11 = vmul.f32 0.01, %v3427_v47  ;;  %v2735_v30 = vadd.f32 %v2672_v59, %v10084_v42  ;;  %v3065_v43 = vpop.f32.mrf.mxu3  ;;  %v10789_v42 = vsel %vm1736_vm2, %v10726_v7, %v10779_v29 }
 0x2f0   : > { %v3970_v0 = vrot.slane %v3968_v35, 6  ;;  %v3973_v41 = vrot.slane %v3971_v55, 7  ;;  %v3327_v33 = vpop.f32.mrf.mxu0  ;;  %12373 = vst [vmem:[#allocation23_spill] sm:$0xff] %v10789_v42  ;;  %v10808_v5 = vsel %vm2129_vm3, %v5952_v46, %v5954_v48  ;;  %v4468_v35 = vshrl.u32 %v10744_v39, 16 }
 0x2f1   : > { %v3535_v1 = vsel %vm3463_vm14, %v3427_v47, %v3499_v11  ;;  %v3128_v3 = vadd.f32 %v3065_v43, %v2735_v30  ;;  %v10799_v47 = vld [vmem:[#allocation3 + $0x8] sm:$0xff]  ;;  %12374 = vst [vmem:[#allocation24_spill] sm:$0xff] %v10808_v5  ;;  %v5292_v43 = vrot.slane %v10413_v31, 1 }
 0x2f2   : > { %v3974_v54 = vor.u32 %v3973_v41, %v3970_v0  ;;  %v3751_v26 = vmul.f32 %v3642_v15, %v3535_v1  ;;  %v4908_v25 = vrot.slane %v10799_v47, 1  ;;  %v4470_v15 = vor.u32 %v4468_v35, %v10763_v20  ;;  %v3647_v1 = vpop.permute.xlu0 %3646 }
 0x2f3   : > { %v3388_v45 = vadd.f32 %v3325_v61, %v3128_v3  ;;  %v5293_v61 = vrot.slane %v10426_v28, 1 }
 0x2f4   : > { %v3975_v62 = vsel %vm10327_vm6, %v3966_v4, %v3974_v54  ;;  %v3787_v13 = vpack.c.bf16 %v3751_v26, %v3751_v26  ;;  %v10796_v8 = vld [vmem:[#allocation3 + $0x40] sm:$0xff]  ;;  %v4909_v20 = vsel %vm1091_vm1, %v4907_v53, %v4908_v25 }
 0x2f5   : > { %4222 = vst [vmem:[#allocation3 + $0x48] sm:$0xf] %v3975_v62  ;;  %v3428_v7 = vadd.f32 %v10685_v32, %v3388_v45  ;;  %v10803_v24 = vld [vmem:[#allocation3 + $0x40] sm:$0xff]  ;;  %v4472_v55 = vshll.u32 %v10796_v8, 16  ;;  %v5294_v39 = vsel %vm1091_vm1, %v5292_v43, %v5293_v61  ;;  %v3976_v45 = vrot.slane %v3974_v54, 4 }
 0x2f6   : > { %v3978_v60 = vshrl.u32 %v3787_v13, 16  ;;  %v3981_v56 = vshll.u32 %v3787_v13, 16  ;;  %v2674_v57 = vpop.f32.mrf.mxu2  ;;  %v5614_v26 = vshrl.u32 %v10803_v24, 16  ;;  %v9207_v42 = vld [vmem:[#allocation3 + $0x40] sm:$0xff] }
 0x2f7   : > { %vm3464_vm15 = vcmp.gt.f32.partialorder %v3428_v7, 0.0  ;;  %v3500_v59 = vmul.f32 0.01, %v3428_v7  ;;  %v2736_v11 = vadd.f32 %v2674_v57, %v2351_v63  ;;  %v3067_v30 = vpop.f32.mrf.mxu3  ;;  %v10814_v46 = vrot.slane %v4472_v55, 1 }
 0x2f8   : > { %v3980_v0 = vrot.slane %v3978_v60, 6  ;;  %v3983_v41 = vrot.slane %v3981_v56, 7  ;;  %v3330_v36 = vpop.f32.mrf.mxu0  ;;  %v9199_v60 = vld [vmem:[#allocation3] sm:$0xff]   ;;  %v5617_v56 = vshll.u32 %v10803_v24, 16 }
 0x2f9   : > { %v3536_v3 = vsel %vm3464_vm15, %v3428_v7, %v3500_v59  ;;  %v3129_v4 = vadd.f32 %v3067_v30, %v2736_v11  ;;  %v4475_v31 = vsel %vm591_vm0, %v4470_v15, %v10814_v46  ;;  %v5616_v7 = vrot.slane %v5614_v26, 1 }
 0x2fa   : > { %v3984_v63 = vor.u32 %v3983_v41, %v3980_v0  ;;  %v3752_v62 = vmul.f32 %v3647_v1, %v3536_v3  ;;  %v3652_v3 = vpop.permute.xlu1 %3651 }
 0x2fb   : > { %v3389_v13 = vadd.f32 %v3327_v33, %v3129_v4  ;;  %4795 = vmatmul.bf16.vlgmr.msrb.gmra.mxu2 %v9199_v60  ;;  %5403 = vmatmul.bf16.vlgmr.msrb.gmra.mxu0 %v5294_v39  ;;  %v5619_v33 = vrot.slane %v5617_v56, 2  ;;  %v10832_v4 = vpop.f32.mrf.mxu1 }
 0x2fc   : > { %v3985_v57 = vsel %vm10327_vm6, %v3976_v45, %v3984_v63  ;;  %v3788_v54 = vpack.c.bf16 %v3752_v62, %v3752_v62  ;;  %5018 = vmatmul.bf16.vlgmr.msrb.gmra.mxu3 %v4909_v20  ;;  %4665 = vmatmul.bf16.gmra.mxu1 %v4475_v31  ;;  %v3986_v62 = vrot.slane %v3984_v63, 4 }
 0x2fd   : > { %4223 = vst [vmem:[#allocation3 + $0x4c] sm:$0xf] %v3985_v57  ;;  %v3429_v35 = vadd.f32 %v10685_v32, %v3389_v13  ;;  %v10830_v0 = vor.u32 %v5619_v33, %v5616_v7 }
 0x2fe   : > { %v3988_v55 = vshrl.u32 %v3788_v54, 16  ;;  %v3991_v59 = vshll.u32 %v3788_v54, 16  ;;  %v2677_v11 = vpop.f32.mrf.mxu2 }
 0x2ff   : > { %vm3465_vm7 = vcmp.gt.f32.partialorder %v3429_v35, 0.0  ;;  %v3501_v30 = vmul.f32 0.01, %v3429_v35  ;;  %v2737_v53 = vadd.f32 %v2677_v11, %v10119_v52  ;;  %v3070_v43 = vpop.f32.mrf.mxu3  ;;  %v10837_v45 = vsel %vm1736_vm2, %v10779_v29, %v10830_v0 }
 0x300   : > { %v3990_v41 = vrot.slane %v3988_v55, 6  ;;  %v3993_v15 = vrot.slane %v3991_v59, 7  ;;  %v3332_v1 = vpop.f32.mrf.mxu0  ;;  %12375 = vst [vmem:[#allocation25_spill] sm:$0xff] %v10837_v45  ;;  %v12306_v52 = vrot.slane %v10803_v24, 2  ;;  %v2353_v29 = vadd.f32 %v10115_v23, %v10133_v14  ;;  %v10860_v14 = vld [vmem:[#allocation3 + $0x20] sm:$0xff] }
 0x301   : > { %v3537_v39 = vsel %vm3465_vm7, %v3429_v35, %v3501_v30  ;;  %v3130_v26 = vadd.f32 %v3070_v43, %v2737_v53  ;;  %v4476_v55 = vshrl.u32 %v10796_v8, 16  ;;  %v10857_v53 = vld [vmem:[#allocation3 + $0x10] sm:$0xff]  ;;  %12377 = vst [vmem:[#allocation27_spill] sm:$0xff] %v10860_v14  ;;  %v10862_v43 = vld [vmem:[#allocation3 + $0x28] sm:$0xff]  ;;  %v12303_v28 = vrot.slane %v10860_v14, 3 }
 0x302   : > { %v3994_v31 = vor.u32 %v3993_v15, %v3990_v41  ;;  %v3753_v13 = vmul.f32 %v3652_v3, %v3537_v39  ;;  %v10849_v57 = vsel %vm2129_vm3, %v5954_v48, %v12306_v52  ;;  %v12302_v23 = vrot.slane %v10857_v53, 1 }
 0x303   : > { %v3390_v60 = vadd.f32 %v3330_v36, %v3130_v26  ;;  %12376 = vst [vmem:[#allocation26_spill] sm:$0xff] %v10849_v57  ;;  %v12305_v36 = vrot.slane %v10487_v22, 1  ;;  %v4478_v39 = vor.u32 %v4476_v55, %v10814_v46 }
 0x304   : > { %v3995_v20 = vsel %vm10327_vm6, %v3986_v62, %v3994_v31  ;;  %v3789_v7 = vpack.c.bf16 %v3753_v13, %v3753_v13  ;;  %v10842_v56 = vld [vmem:[#allocation3 + $0x48] sm:$0xff]  ;;  %v3657_v13 = vpop.permute.xlu2 %3656 }
 0x305   : > { %4224 = vst [vmem:[#allocation3 + $0x50] sm:$0xf] %v3995_v20  ;;  %v3430_v63 = vadd.f32 %v10685_v32, %v3390_v60  ;;  %v4480_v59 = vshll.u32 %v10842_v56, 16  ;;  %v10867_v62 = vld [vmem:[#allocation3 + $0x48] sm:$0xff] }
 0x306   : > { %v3998_v54 = vshrl.u32 %v3789_v7, 16  ;;  %v4001_v35 = vshll.u32 %v3789_v7, 16  ;;  %v2679_v33 = vpop.f32.mrf.mxu2 }
 0x307   : > { %vm3466_vm8 = vcmp.gt.f32.partialorder %v3430_v63, 0.0  ;;  %v3502_v11 = vmul.f32 0.01, %v3430_v63  ;;  %v2738_v30 = vadd.f32 %v2679_v33, %v2353_v29  ;;  %v3072_v48 = vpop.f32.mrf.mxu3  ;;  %v10865_v26 = vrot.slane %v4480_v59, 1  ;;  %v10869_v7 = vpop.f32.mrf.mxu1 }
 0x308   : > { %v4000_v41 = vrot.slane %v3998_v54, 6  ;;  %v4003_v15 = vrot.slane %v4001_v35, 7  ;;  %v3335_v3 = vpop.f32.mrf.mxu0  ;;  %v5296_v29 = vsel %vm1091_vm1, %v5293_v61, %v12305_v36  ;;  %v3996_v54 = vrot.slane %v3994_v31, 4 }
 0x309   : > { %v3538_v60 = vsel %vm3466_vm8, %v3430_v63, %v3502_v11  ;;  %v3131_v20 = vadd.f32 %v3072_v48, %v2738_v30  ;;  %v4483_v46 = vsel %vm591_vm0, %v4478_v39, %v10865_v26  ;;  %v4911_v63 = vsel %vm1091_vm1, %v4908_v25, %v12302_v23 }
 0x30a   : > { %v4004_v35 = vor.u32 %v4003_v15, %v4000_v41  ;;  %v3754_v33 = vmul.f32 %v3657_v13, %v3538_v60  ;;  %v12304_v61 = vrot.slane %v10862_v43, 3  ;;  %v5626_v25 = vshll.u32 %v10867_v62, 16 }
 0x30b   : > { %v3391_v55 = vadd.f32 %v3332_v1, %v3131_v20  ;;  %4800 = vmatmul.bf16.gmra.mxu2 %v10799_v47  ;;  %5408 = vmatmul.bf16.gmra.mxu0 %v5296_v29  ;;  %v5623_v1 = vshrl.u32 %v10867_v62, 16  ;;  %v8969_v47 = vld [vmem:[%s12283_s3 + $0x118] sm:$0xff]  ;;  %v12307_v36 = vrot.slane %v10867_v62, 2 }
 0x30c   : > { %v4005_v31 = vsel %vm10327_vm6, %v3996_v54, %v4004_v35  ;;  %v3790_v59 = vpack.c.bf16 %v3754_v33, %v3754_v33  ;;  %5023 = vmatmul.bf16.gmra.mxu3 %v4911_v63  ;;  %4670 = vmatmul.bf16.gmra.mxu1 %v4483_v46  ;;  %v10899_v30 = vsel %vm3167_vm4, %v12303_v28, %v12304_v61  ;;  %v5628_v29 = vrot.slane %v5626_v25, 2 }
 0x30d   : > { %4225 = vst [vmem:[#allocation3 + $0x54] sm:$0xf] %v4005_v31  ;;  %v3431_v11 = vadd.f32 %v10685_v32, %v3391_v55  ;;  %v5625_v39 = vrot.slane %v5623_v1, 1  ;;  %5791 = vmatpush.bf16.msrb.mxu1 %v8969_v47  ;;  %v3662_v55 = vpop.permute.xlu0 %3661 }
 0x30e   : > { %12378 = vst [vmem:[#allocation28_spill] sm:$0xff] %v10899_v30  ;;  %v4008_v48 = vshrl.u32 %v3790_v59, 16  ;;  %v4011_v41 = vshll.u32 %v3790_v59, 16  ;;  %v2682_v15 = vpop.f32.mrf.mxu2  ;;  %v4006_v59 = vrot.slane %v4004_v35, 4  ;;  %v12380_v35 = vrot.slane %v10803_v24, 2 }
 0x30f   : > { %vm3467_vm10 = vcmp.gt.f32.partialorder %v3431_v11, 0.0  ;;  %v3503_v13 = vmul.f32 0.01, %v3431_v11  ;;  %v2739_v60 = vadd.f32 %v2682_v15, %v10145_v16  ;;  %v3075_v20 = vpop.f32.mrf.mxu3  ;;  %v10902_v23 = vpop.f32.mrf.mxu1  ;;  %v10904_v28 = vor.u32 %v5628_v29, %v5625_v39 }
 0x310   : > { %v4010_v54 = vrot.slane %v4008_v48, 6  ;;  %v4013_v33 = vrot.slane %v4011_v41, 7  ;;  %v3337_v46 = vpop.f32.mrf.mxu0  ;;  %v10921_v48 = vsel %vm2129_vm3, %v12380_v35, %v12307_v36  ;;  %v12309_v41 = vrot.slane %v10538_v18, 1 }
 0x311   : > { %v3539_v63 = vsel %vm3467_vm10, %v3431_v11, %v3503_v13  ;;  %v3132_v31 = vadd.f32 %v3075_v20, %v2739_v60  ;;  %v10910_v16 = vsel %vm1736_vm2, %v10830_v0, %v10904_v28  ;;  %12381 = vst [vmem:[#allocation30_spill] sm:$0xff] %v10921_v48  ;;  %v4484_v60 = vshrl.u32 %v10842_v56, 16 }
 0x312   : > { %v4014_v61 = vor.u32 %v4013_v33, %v4010_v54  ;;  %v3755_v1 = vmul.f32 %v3662_v55, %v3539_v63  ;;  %12379 = vst [vmem:[#allocation29_spill] sm:$0xff] %v10910_v16  ;;  %v10929_v55 = vld [vmem:[#allocation3 + $0x18] sm:$0xff] }
 0x313   : > { %v3392_v52 = vadd.f32 %v3335_v3, %v3132_v31  ;;  %v2355_v3 = vadd.f32 %v10141_v9, %v10156_v19  ;;  %v10932_v19 = vld [vmem:[#allocation3 + $0x30] sm:$0xff] }
 0x314   : > { %v4015_v47 = vsel %vm10327_vm6, %v4006_v59, %v4014_v61  ;;  %v3791_v11 = vpack.c.bf16 %v3755_v1, %v3755_v1  ;;  %v10914_v25 = vld [vmem:[#allocation3 + $0x50] sm:$0xff]  ;;  %v4486_v59 = vor.u32 %v4484_v60, %v10865_v26 }
 0x315   : > { %4226 = vst [vmem:[#allocation3 + $0x58] sm:$0xf] %v4015_v47  ;;  %v3432_v0 = vadd.f32 %v10685_v32, %v3392_v52  ;;  %v4488_v20 = vshll.u32 %v10914_v25, 16  ;;  %v10937_v47 = vld [vmem:[#allocation3 + $0x50] sm:$0xff] }
 0x316   : > { %v4018_v15 = vshrl.u32 %v3791_v11, 16  ;;  %v4021_v39 = vshll.u32 %v3791_v11, 16  ;;  %v2684_v13 = vpop.f32.mrf.mxu2  ;;  %v3667_v11 = vpop.permute.xlu1 %3666 }
 0x317   : > { %vm3468_vm11 = vcmp.gt.f32.partialorder %v3432_v0, 0.0  ;;  %v3504_v29 = vmul.f32 0.01, %v3432_v0  ;;  %v2740_v54 = vadd.f32 %v2684_v13, %v2355_v3  ;;  %v3077_v33 = vpop.f32.mrf.mxu3  ;;  %v10935_v1 = vrot.slane %v4488_v20, 1  ;;  %v10939_v3 = vpop.f32.mrf.mxu1 }
 0x318   : > { %v4020_v52 = vrot.slane %v4018_v15, 6  ;;  %v4023_v63 = vrot.slane %v4021_v39, 7  ;;  %v3340_v31 = vpop.f32.mrf.mxu0  ;;  %v12382_v13 = vrot.slane %v10487_v22, 1  ;;  %v4016_v15 = vrot.slane %v4014_v61, 4 }
 0x319   : > { %v3540_v35 = vsel %vm3468_vm11, %v3432_v0, %v3504_v29  ;;  %v3133_v36 = vadd.f32 %v3077_v33, %v2740_v54  ;;  %v4491_v26 = vsel %vm591_vm0, %v4486_v59, %v10935_v1  ;;  %v12383_v0 = vrot.slane %v10929_v55, 1 }
 0x31a   : > { %v5298_v9 = vsel %vm1091_vm1, %v12382_v13, %v12309_v41  ;;  %v4024_v39 = vor.u32 %v4023_v63, %v4020_v52  ;;  %v3756_v30 = vmul.f32 %v3667_v11, %v3540_v35  ;;  %v12384_v20 = vrot.slane %v10857_v53, 1 }
 0x31b   : > { %v3393_v60 = vadd.f32 %v3337_v46, %v3133_v36  ;;  %4805 = vmatmul.bf16.gmra.mxu2 %v10857_v53  ;;  %5413 = vmatmul.bf16.gmra.mxu0 %v5298_v9  ;;  %v12308_v22 = vrot.slane %v10932_v19, 3  ;;  %v5632_v33 = vshrl.u32 %v10937_v47, 16  ;;  %v5635_v46 = vshll.u32 %v10937_v47, 16 }
 0x31c   : > { %v4913_v29 = vsel %vm1091_vm1, %v12384_v20, %v12383_v0  ;;  %v4025_v61 = vsel %vm10327_vm6, %v4016_v15, %v4024_v39  ;;  %v3792_v54 = vpack.c.bf16 %v3756_v30, %v3756_v30  ;;  %4675 = vmatmul.bf16.gmra.mxu1 %v4491_v26  ;;  %v12385_v53 = vrot.slane %v10862_v43, 3  ;;  %v3672_v20 = vpop.permute.xlu2 %3671 }
 0x31d   : > { %5028 = vmatmul.bf16.gmra.mxu3 %v4913_v29  ;;  %4227 = vst [vmem:[#allocation3 + $0x5c] sm:$0xf] %v4025_v61  ;;  %v3433_v36 = vadd.f32 %v10685_v32, %v3393_v60  ;;  %v5634_v30 = vrot.slane %v5632_v33, 1  ;;  %v5637_v15 = vrot.slane %v5635_v46, 2  ;;  %v12310_v33 = vrot.slane %v10937_v47, 2 }
 0x31e   : > { %v10965_v9 = vsel %vm3167_vm4, %v12385_v53, %v12308_v22  ;;  %v4028_v52 = vshrl.u32 %v3792_v54, 16  ;;  %v4031_v63 = vshll.u32 %v3792_v54, 16  ;;  %v2687_v59 = vpop.f32.mrf.mxu2  ;;  %v4026_v22 = vrot.slane %v4024_v39, 4 }
 0x31f   : > { %12386 = vst [vmem:[#allocation31_spill] sm:$0xff] %v10965_v9  ;;  %vm3469_vm12 = vcmp.gt.f32.partialorder %v3433_v36, 0.0  ;;  %v3505_v11 = vmul.f32 0.01, %v3433_v36  ;;  %v2741_v35 = vadd.f32 %v2687_v59, %v10171_v12  ;;  %v3080_v13 = vpop.f32.mrf.mxu3  ;;  %v10968_v43 = vpop.f32.mrf.mxu1  ;;  %v10970_v53 = vor.u32 %v5637_v15, %v5634_v30 }
 0x320   : > { %v4030_v26 = vrot.slane %v4028_v52, 6  ;;  %v4033_v60 = vrot.slane %v4031_v63, 7  ;;  %v3342_v0 = vpop.f32.mrf.mxu0  ;;  %v12388_v39 = vrot.slane %v10867_v62, 2 }
 0x321   : > { %v3541_v29 = vsel %vm3469_vm12, %v3433_v36, %v3505_v11  ;;  %v3134_v61 = vadd.f32 %v3080_v13, %v2741_v35  ;;  %v10976_v12 = vsel %vm1736_vm2, %v10904_v28, %v10970_v53  ;;  %v4492_v35 = vshrl.u32 %v10914_v25, 16 }
 0x322   : > { %v4034_v54 = vor.u32 %v4033_v60, %v4030_v26  ;;  %v3757_v41 = vmul.f32 %v3672_v20, %v3541_v29  ;;  %12387 = vst [vmem:[#allocation32_spill] sm:$0xff] %v10976_v12  ;;  %v10987_v63 = vsel %vm2129_vm3, %v12388_v39, %v12310_v33  ;;  %v10995_v20 = vld [vmem:[#allocation3 + $0x20] sm:$0xff]  ;;  %v10998_v29 = vld [vmem:[#allocation3 + $0x38] sm:$0xff] }
 0x323   : > { %v3394_v9 = vadd.f32 %v3340_v31, %v3134_v61  ;;  %12389 = vst [vmem:[#allocation33_spill] sm:$0xff] %v10987_v63  ;;  %v12390_v31 = vld [vmem:[#allocation7_spill] sm:$0xff] }
 0x324   : > { %v4035_v46 = vsel %vm10327_vm6, %v4026_v22, %v4034_v54  ;;  %v3793_v36 = vpack.c.bf16 %v3757_v41, %v3757_v41  ;;  %v10980_v52 = vld [vmem:[#allocation3 + $0x58] sm:$0xff]  ;;  %v2357_v59 = vadd.f32 %v12390_v31, %v10180_v58  ;;  %v3677_v31 = vpop.permute.xlu0 %3676  ;;  %v4036_v63 = vrot.slane %v4034_v54, 4 }
 0x325   : > { %4228 = vst [vmem:[#allocation3 + $0x60] sm:$0xf] %v4035_v46  ;;  %v3434_v28 = vadd.f32 %v10685_v32, %v3394_v9  ;;  %v4496_v13 = vshll.u32 %v10980_v52, 16 }
 0x326   : > { %v4038_v11 = vshrl.u32 %v3793_v36, 16  ;;  %v4041_v22 = vshll.u32 %v3793_v36, 16  ;;  %v2689_v41 = vpop.f32.mrf.mxu2  ;;  %v4494_v36 = vor.u32 %v4492_v35, %v10935_v1  ;;  %v11012_v1 = vld [vmem:[#allocation3 + $0x58] sm:$0xff] }
 0x327   : > { %vm3470_vm13 = vcmp.gt.f32.partialorder %v3434_v28, 0.0  ;;  %v3506_v15 = vmul.f32 0.01, %v3434_v28  ;;  %v2742_v26 = vadd.f32 %v2689_v41, %v2357_v59  ;;  %v3082_v60 = vpop.f32.mrf.mxu3  ;;  %v11001_v39 = vrot.slane %v4496_v13, 1  ;;  %v11003_v14 = vpop.f32.mrf.mxu1 }
 0x328   : > { %v4040_v9 = vrot.slane %v4038_v11, 6  ;;  %v4043_v61 = vrot.slane %v4041_v22, 7  ;;  %v3345_v46 = vpop.f32.mrf.mxu0  ;;  %v12391_v59 = vrot.slane %v10631_v21, 1  ;;  %v12392_v41 = vrot.slane %v10538_v18, 1 }
 0x329   : > { %v3542_v33 = vsel %vm3470_vm13, %v3434_v28, %v3506_v15  ;;  %v3135_v30 = vadd.f32 %v3082_v60, %v2742_v26  ;;  %v4499_v22 = vsel %vm591_vm0, %v4494_v36, %v11001_v39  ;;  %v12393_v28 = vrot.slane %v10995_v20, 1 }
 0x32a   : > { %v5300_v58 = vsel %vm1091_vm1, %v12392_v41, %v12391_v59  ;;  %v4044_v48 = vor.u32 %v4043_v61, %v4040_v9  ;;  %v3758_v11 = vmul.f32 %v3677_v31, %v3542_v33  ;;  %v12394_v13 = vrot.slane %v10929_v55, 1 }
 0x32b   : > { %v3395_v35 = vadd.f32 %v3342_v0, %v3135_v30  ;;  %4810 = vmatmul.bf16.gmra.mxu2 %v10929_v55  ;;  %5418 = vmatmul.bf16.gmra.mxu0 %v5300_v58  ;;  %v12312_v18 = vrot.slane %v10998_v29, 3  ;;  %v12395_v30 = vrot.slane %v10932_v19, 3  ;;  %v5641_v9 = vshrl.u32 %v11012_v1, 16 }
 0x32c   : > { %v4915_v15 = vsel %vm1091_vm1, %v12394_v13, %v12393_v28  ;;  %v4045_v54 = vsel %vm10327_vm6, %v4036_v63, %v4044_v48  ;;  %v3794_v33 = vpack.c.bf16 %v3758_v11, %v3758_v11  ;;  %4680 = vmatmul.bf16.gmra.mxu1 %v4499_v22  ;;  %v5644_v63 = vshll.u32 %v11012_v1, 16 }
 0x32d   : > { %5033 = vmatmul.bf16.gmra.mxu3 %v4915_v15  ;;  %4229 = vst [vmem:[#allocation3 + $0x64] sm:$0xf] %v4045_v54  ;;  %v3435_v0 = vadd.f32 %v10685_v32, %v3395_v35  ;;  %v11029_v55 = vsel %vm3167_vm4, %v12395_v30, %v12312_v18  ;;  %v5643_v22 = vrot.slane %v5641_v9, 1  ;;  %v3682_v35 = vpop.permute.xlu1 %3681  ;;  %v4046_v54 = vrot.slane %v4044_v48, 4  ;;  %v12398_v48 = vld [vmem:[#allocation8_spill] sm:$0xff] }
 0x32e   : > { %12396 = vst [vmem:[#allocation7_spill] sm:$0xff] %v11029_v55  ;;  %v4048_v26 = vshrl.u32 %v3794_v33, 16  ;;  %v4051_v60 = vshll.u32 %v3794_v33, 16  ;;  %v2692_v58 = vpop.f32.mrf.mxu2  ;;  %v5646_v19 = vrot.slane %v5644_v63, 2  ;;  %v12313_v57 = vrot.slane %v11012_v1, 2  ;;  %v8968_v63 = vld [vmem:[%s12283_s3 + $0x110] sm:$0xff] }
 0x32f   : > { %vm3471_vm14 = vcmp.gt.f32.partialorder %v3435_v0, 0.0  ;;  %v3507_v61 = vmul.f32 0.01, %v3435_v0  ;;  %v2743_v36 = vadd.f32 %v2692_v58, %v10188_v40  ;;  %v3085_v31 = vpop.f32.mrf.mxu3  ;;  %v11034_v15 = vpop.f32.mrf.mxu1  ;;  %v2359_v58 = vadd.f32 %v12398_v48, %v10194_v17  ;;  %5792 = vmatpush.bf16.msrb.mxu1 %v8968_v63 }
 0x330   : > { %v4050_v59 = vrot.slane %v4048_v26, 6  ;;  %v4053_v41 = vrot.slane %v4051_v60, 7  ;;  %v3347_v11 = vpop.f32.mrf.mxu0  ;;  %v11036_v18 = vor.u32 %v5646_v19, %v5643_v22  ;;  %v4500_v17 = vshrl.u32 %v10980_v52, 16 }
 0x331   : > { %v3543_v28 = vsel %vm3471_vm14, %v3435_v0, %v3507_v61  ;;  %v3136_v13 = vadd.f32 %v3085_v31, %v2743_v36  ;;  %v12399_v61 = vrot.slane %v10937_v47, 2 }
 0x332   : > { %v4054_v33 = vor.u32 %v4053_v41, %v4050_v59  ;;  %v3759_v30 = vmul.f32 %v3682_v35, %v3543_v28  ;;  %v11046_v0 = vsel %vm1736_vm2, %v10970_v53, %v11036_v18  ;;  %v11064_v35 = vld [vmem:[#allocation3 + $0x28] sm:$0xff] }
 0x333   : > { %v3396_v55 = vadd.f32 %v3345_v46, %v3136_v13  ;;  %12397 = vst [vmem:[#allocation34_spill] sm:$0xff] %v11046_v0  ;;  %v11060_v36 = vsel %vm2129_vm3, %v12399_v61, %v12313_v57  ;;  %v11067_v13 = vld [vmem:[#allocation3 + $0x40] sm:$0xff]  ;;  %v3687_v61 = vpop.permute.xlu2 %3686 }
 0x334   : > { %v4055_v40 = vsel %vm10327_vm6, %v4046_v54, %v4054_v33  ;;  %v3795_v26 = vpack.c.bf16 %v3759_v30, %v3759_v30  ;;  %v11041_v60 = vld [vmem:[#allocation3 + $0x60] sm:$0xff]  ;;  %12400 = vst [vmem:[#allocation8_spill] sm:$0xff] %v11060_v36  ;;  %v4056_v28 = vrot.slane %v4054_v33, 4 }
 0x335   : > { %4230 = vst [vmem:[#allocation3 + $0x68] sm:$0xf] %v4055_v40  ;;  %v3436_v9 = vadd.f32 %v10685_v32, %v3396_v55  ;;  %v4504_v55 = vshll.u32 %v11041_v60, 16 }
 0x336   : > { %v4058_v53 = vshrl.u32 %v3795_v26, 16  ;;  %v4061_v31 = vshll.u32 %v3795_v26, 16  ;;  %v2694_v59 = vpop.f32.mrf.mxu2  ;;  %v4502_v26 = vor.u32 %v4500_v17, %v11001_v39  ;;  %v11081_v39 = vld [vmem:[#allocation3 + $0x60] sm:$0xff] }
 0x337   : > { %vm3472_vm15 = vcmp.gt.f32.partialorder %v3436_v9, 0.0  ;;  %v3508_v41 = vmul.f32 0.01, %v3436_v9  ;;  %v2744_v22 = vadd.f32 %v2694_v59, %v2359_v58  ;;  %v3087_v19 = vpop.f32.mrf.mxu3  ;;  %v11070_v48 = vrot.slane %v4504_v55, 1  ;;  %v11072_v36 = vpop.f32.mrf.mxu1 }
 0x338   : > { %v4060_v54 = vrot.slane %v4058_v53, 6  ;;  %v4063_v30 = vrot.slane %v4061_v31, 7  ;;  %v3350_v40 = vpop.f32.mrf.mxu0  ;;  %v12401_v58 = vrot.slane %v10689_v34, 1  ;;  %v12402_v59 = vrot.slane %v10631_v21, 1 }
 0x339   : > { %v3544_v57 = vsel %vm3472_vm15, %v3436_v9, %v3508_v41  ;;  %v3137_v46 = vadd.f32 %v3087_v19, %v2744_v22  ;;  %v4507_v31 = vsel %vm591_vm0, %v4502_v26, %v11070_v48  ;;  %v12403_v9 = vrot.slane %v11064_v35, 1 }
 0x33a   : > { %v5302_v63 = vsel %vm1091_vm1, %v12402_v59, %v12401_v58  ;;  %v4064_v5 = vor.u32 %v4063_v30, %v4060_v54  ;;  %v3760_v53 = vmul.f32 %v3687_v61, %v3544_v57  ;;  %v12404_v55 = vrot.slane %v10995_v20, 1  ;;  %v12407_v61 = vld [vmem:[#allocation10_spill] sm:$0xff] }
 0x33b   : > { %v3397_v17 = vadd.f32 %v3347_v11, %v3137_v46  ;;  %4815 = vmatmul.bf16.gmra.mxu2 %v10995_v20  ;;  %5423 = vmatmul.bf16.gmra.mxu0 %v5302_v63  ;;  %v12314_v21 = vrot.slane %v11067_v13, 3  ;;  %v12405_v46 = vrot.slane %v10998_v29, 3  ;;  %v5650_v30 = vshrl.u32 %v11081_v39, 16 }
 0x33c   : > { %v4917_v41 = vsel %vm1091_vm1, %v12404_v55, %v12403_v9  ;;  %v4065_v57 = vsel %vm10327_vm6, %v4056_v28, %v4064_v5  ;;  %v3796_v33 = vpack.c.bf16 %v3760_v53, %v3760_v53  ;;  %4685 = vmatmul.bf16.gmra.mxu1 %v4507_v31  ;;  %v5653_v28 = vshll.u32 %v11081_v39, 16 }
 0x33d   : > { %5038 = vmatmul.bf16.gmra.mxu3 %v4917_v41  ;;  %4231 = vst [vmem:[#allocation3 + $0x6c] sm:$0xf] %v4065_v57  ;;  %v3437_v11 = vadd.f32 %v10685_v32, %v3397_v17  ;;  %v11098_v20 = vsel %vm3167_vm4, %v12405_v46, %v12314_v21  ;;  %v5652_v31 = vrot.slane %v5650_v30, 1  ;;  %v3692_v17 = vpop.permute.xlu0 %3691  ;;  %v4066_v57 = vrot.slane %v4064_v5, 4  ;;  %v12409_v30 = vld [vmem:[#allocation11_spill] sm:$0xff]  ;;  %v12410_v5 = vld [vmem:[#allocation9_spill] sm:$0xff] }
 0x33e   : > { %12406 = vst [vmem:[#allocation35_spill] sm:$0xff] %v11098_v20  ;;  %v4068_v22 = vshrl.u32 %v3796_v33, 16  ;;  %v4071_v19 = vshll.u32 %v3796_v33, 16  ;;  %v2697_v54 = vpop.f32.mrf.mxu2  ;;  %v5655_v29 = vrot.slane %v5653_v28, 2  ;;  %v12315_v38 = vrot.slane %v11081_v39, 2 }
 0x33f   : > { %vm3473_vm7 = vcmp.gt.f32.partialorder %v3437_v11, 0.0  ;;  %v3509_v26 = vmul.f32 0.01, %v3437_v11  ;;  %v2745_v58 = vadd.f32 %v2697_v54, %v12407_v61  ;;  %v3090_v59 = vpop.f32.mrf.mxu3  ;;  %v11103_v41 = vpop.f32.mrf.mxu1  ;;  %v2361_v28 = vadd.f32 %v12410_v5, %v12409_v30 }
 0x340   : > { %v4070_v32 = vrot.slane %v4068_v22, 6  ;;  %v4073_v63 = vrot.slane %v4071_v19, 7  ;;  %v3352_v53 = vpop.f32.mrf.mxu0  ;;  %v11105_v21 = vor.u32 %v5655_v29, %v5652_v31  ;;  %v4508_v31 = vshrl.u32 %v11041_v60, 16 }
 0x341   : > { %v3545_v9 = vsel %vm3473_vm7, %v3437_v11, %v3509_v26  ;;  %v3138_v55 = vadd.f32 %v3090_v59, %v2745_v58  ;;  %v12411_v58 = vrot.slane %v11012_v1, 2 }
 0x342   : > { %v4074_v33 = vor.u32 %v4073_v63, %v4070_v32  ;;  %v3761_v46 = vmul.f32 %v3692_v17, %v3545_v9  ;;  %v11115_v11 = vsel %vm1736_vm2, %v11036_v18, %v11105_v21 }
 0x343   : > { %v3398_v20 = vadd.f32 %v3350_v40, %v3138_v55  ;;  %12408 = vst [vmem:[#allocation10_spill] sm:$0xff] %v11115_v11  ;;  %v11122_v40 = vld [vmem:[%s12282_s2] ss:$0 sm:$0xff]  ;;  %v11131_v18 = vsel %vm2129_vm3, %v12411_v58, %v12315_v38  ;;  %v11135_v55 = vld [vmem:[#allocation3 + $0x30] sm:$0xff]  ;;  %v3697_v38 = vpop.permute.xlu1 %3696 }
 0x344   : > { %v4075_v22 = vsel %vm10327_vm6, %v4066_v57, %v4074_v33  ;;  %v3797_v19 = vpack.c.bf16 %v3761_v46, %v3761_v46  ;;  %v11110_v54 = vld [vmem:[#allocation3 + $0x68] sm:$0xff]  ;;  %12412 = vst [vmem:[#allocation11_spill] sm:$0xff] %v11131_v18  ;;  %v4076_v51 = vrot.slane %v4074_v33, 4 }
 0x345   : > { %4232 = vst [vmem:[#allocation3 + $0x70] sm:$0xf] %v4075_v22  ;;  %v3438_v26 = vadd.f32 %v11122_v40, %v3398_v20  ;;  %v4512_v29 = vshll.u32 %v11110_v54, 16  ;;  %v11138_v46 = vld [vmem:[#allocation3 + $0x48] sm:$0xff] }
 0x346   : > { %v4078_v59 = vshrl.u32 %v3797_v19, 16  ;;  %v4081_v32 = vshll.u32 %v3797_v19, 16  ;;  %v2699_v63 = vpop.f32.mrf.mxu2  ;;  %v4510_v19 = vor.u32 %v4508_v31, %v11070_v48  ;;  %v11152_v48 = vld [vmem:[#allocation3 + $0x68] sm:$0xff] }
 0x347   : > { %vm3474_vm8 = vcmp.gt.f32.partialorder %v3438_v26, 0.0  ;;  %v3510_v17 = vmul.f32 0.01, %v3438_v26  ;;  %v2746_v9 = vadd.f32 %v2699_v63, %v2361_v28  ;;  %v3092_v20 = vpop.f32.mrf.mxu3  ;;  %v11141_v58 = vrot.slane %v4512_v29, 1  ;;  %v11143_v11 = vpop.f32.mrf.mxu1  ;;  %12415 = vst [vmem:[#allocation9_spill] sm:$0xff] %v11152_v48 }
 0x348   : > { %v4080_v22 = vrot.slane %v4078_v59, 6  ;;  %v4083_v30 = vrot.slane %v4081_v32, 7  ;;  %v3355_v5 = vpop.f32.mrf.mxu0  ;;  %v12413_v28 = vrot.slane %v10750_v6, 1  ;;  %v12414_v63 = vrot.slane %v10689_v34, 1 }
 0x349   : > { %v3546_v61 = vsel %vm3474_vm8, %v3438_v26, %v3510_v17  ;;  %v3139_v18 = vadd.f32 %v3092_v20, %v2746_v9  ;;  %v4515_v32 = vsel %vm591_vm0, %v4510_v19, %v11141_v58  ;;  %v12416_v26 = vrot.slane %v11135_v55, 1 }
 0x34a   : > { %v5304_v57 = vsel %vm1091_vm1, %v12414_v63, %v12413_v28  ;;  %v4084_v0 = vor.u32 %v4083_v30, %v4080_v22  ;;  %v3762_v59 = vmul.f32 %v3697_v38, %v3546_v61  ;;  %v12417_v29 = vrot.slane %v11064_v35, 1  ;;  %v12420_v30 = vld [vmem:[#allocation13_spill] sm:$0xff] }
 0x34b   : > { %v3399_v31 = vadd.f32 %v3352_v53, %v3139_v18  ;;  %4820 = vmatmul.bf16.gmra.mxu2 %v11064_v35  ;;  %5428 = vmatmul.bf16.gmra.mxu0 %v5304_v57  ;;  %v12316_v34 = vrot.slane %v11138_v46, 3  ;;  %v12418_v61 = vrot.slane %v11067_v13, 3  ;;  %v5659_v57 = vshrl.u32 %v11152_v48, 16 }
 0x34c   : > { %v4919_v17 = vsel %vm1091_vm1, %v12417_v29, %v12416_v26  ;;  %v4085_v38 = vsel %vm10327_vm6, %v4076_v51, %v4084_v0  ;;  %v3798_v33 = vpack.c.bf16 %v3762_v59, %v3762_v59  ;;  %4690 = vmatmul.bf16.gmra.mxu1 %v4515_v32  ;;  %v5662_v51 = vshll.u32 %v11152_v48, 16  ;;  %v3702_v26 = vpop.permute.xlu2 %3701 }
 0x34d   : > { %5043 = vmatmul.bf16.gmra.mxu3 %v4919_v17  ;;  %4233 = vst [vmem:[#allocation3 + $0x74] sm:$0xf] %v4085_v38  ;;  %v3439_v53 = vadd.f32 %v11122_v40, %v3399_v31  ;;  %v11169_v35 = vsel %vm3167_vm4, %v12418_v61, %v12316_v34  ;;  %v5661_v31 = vrot.slane %v5659_v57, 1  ;;  %v12317_v12 = vrot.slane %v11152_v48, 2  ;;  %v12423_v57 = vld [vmem:[#allocation14_spill] sm:$0xff] }
 0x34e   : > { %12419 = vst [vmem:[#allocation36_spill] sm:$0xff] %v11169_v35  ;;  %v4088_v18 = vshrl.u32 %v3798_v33, 16  ;;  %v4091_v9 = vshll.u32 %v3798_v33, 16  ;;  %v2702_v20 = vpop.f32.mrf.mxu2  ;;  %v5664_v13 = vrot.slane %v5662_v51, 2  ;;  %v4086_v33 = vrot.slane %v4084_v0, 4  ;;  %v12424_v0 = vld [vmem:[#allocation12_spill] sm:$0xff] }
 0x34f   : > { %vm3475_vm10 = vcmp.gt.f32.partialorder %v3439_v53, 0.0  ;;  %v3511_v22 = vmul.f32 0.01, %v3439_v53  ;;  %v2747_v19 = vadd.f32 %v2702_v20, %v12420_v30  ;;  %v3095_v28 = vpop.f32.mrf.mxu3  ;;  %v11174_v38 = vpop.f32.mrf.mxu1  ;;  %v2363_v51 = vadd.f32 %v12424_v0, %v12423_v57  ;;  %v8967_v30 = vld [vmem:[%s12283_s3 + $0x108] sm:$0xff] }
 0x350   : > { %v4090_v63 = vrot.slane %v4088_v18, 6  ;;  %v4093_v59 = vrot.slane %v4091_v9, 7  ;;  %v3357_v32 = vpop.f32.mrf.mxu0  ;;  %v11176_v35 = vor.u32 %v5664_v13, %v5661_v31  ;;  %5793 = vmatpush.bf16.msrb.mxu1 %v8967_v30 }
 0x351   : > { %v3547_v29 = vsel %vm3475_vm10, %v3439_v53, %v3511_v22  ;;  %v3140_v17 = vadd.f32 %v3095_v28, %v2747_v19 }
 0x352   : > { %v4094_v61 = vor.u32 %v4093_v59, %v4090_v63  ;;  %v3763_v34 = vmul.f32 %v3702_v26, %v3547_v29  ;;  %12421 = vst [vmem:[#allocation13_spill] sm:$0xff] %v11176_v35  ;;  %v11186_v53 = vsel %vm1736_vm2, %v11105_v21, %v11176_v35  ;;  %v4516_v59 = vshrl.u32 %v11110_v54, 16  ;;  %v11204_v29 = vld [vmem:[#allocation3 + $0x38] sm:$0xff] }
 0x353   : > { %v3400_v50 = vadd.f32 %v3355_v5, %v3140_v17  ;;  %12422 = vst [vmem:[#allocation37_spill] sm:$0xff] %v11186_v53 }
 0x354   : > { %v4095_v18 = vsel %vm10327_vm6, %v4086_v33, %v4094_v61  ;;  %v3799_v9 = vpack.c.bf16 %v3763_v34, %v3763_v34  ;;  %v11181_v20 = vld [vmem:[#allocation3 + $0x70] sm:$0xff]  ;;  %v12425_v34 = vrot.slane %v11081_v39, 2  ;;  %v4096_v30 = vrot.slane %v4094_v61, 4 }
 0x355   : > { %4234 = vst [vmem:[#allocation3 + $0x78] sm:$0xf] %v4095_v18  ;;  %v3440_v22 = vadd.f32 %v11122_v40, %v3400_v50  ;;  %v4520_v50 = vshll.u32 %v11181_v20, 16  ;;  %v11207_v33 = vld [vmem:[#allocation3 + $0x50] sm:$0xff] }
 0x356   : > { %v11200_v19 = vsel %vm2129_vm3, %v12425_v34, %v12317_v12  ;;  %v4098_v21 = vshrl.u32 %v3799_v9, 16  ;;  %v4101_v28 = vshll.u32 %v3799_v9, 16  ;;  %v2704_v63 = vpop.f32.mrf.mxu2  ;;  %v4518_v9 = vor.u32 %v4516_v59, %v11141_v58  ;;  %v3707_v12 = vpop.permute.xlu0 %3706 }
 0x357   : > { %12426 = vst [vmem:[#allocation14_spill] sm:$0xff] %v11200_v19  ;;  %vm3476_vm11 = vcmp.gt.f32.partialorder %v3440_v22, 0.0  ;;  %v3512_v31 = vmul.f32 0.01, %v3440_v22  ;;  %v2748_v13 = vadd.f32 %v2704_v63, %v2363_v51  ;;  %v3097_v26 = vpop.f32.mrf.mxu3  ;;  %v4522_v34 = vrot.slane %v4520_v50, 1 }
 0x358   : > { %v4100_v18 = vrot.slane %v4098_v21, 6  ;;  %v4103_v57 = vrot.slane %v4101_v28, 7  ;;  %v3360_v0 = vpop.f32.mrf.mxu0  ;;  %v12427_v51 = vrot.slane %v10803_v24, 1  ;;  %v12428_v63 = vrot.slane %v10750_v6, 1 }
 0x359   : > { %v3548_v5 = vsel %vm3476_vm11, %v3440_v22, %v3512_v31  ;;  %v3141_v19 = vadd.f32 %v3097_v26, %v2748_v13  ;;  %v11210_v35 = vpop.f32.mrf.mxu1  ;;  %v4523_v21 = vsel %vm591_vm0, %v4518_v9, %v4522_v34  ;;  %v12429_v58 = vrot.slane %v11204_v29, 1  ;;  %v12433_v26 = vld [vmem:[#allocation16_spill] sm:$0xff] }
 0x35a   : > { %v5306_v17 = vsel %vm1091_vm1, %v12428_v63, %v12427_v51  ;;  %v4104_v53 = vor.u32 %v4103_v57, %v4100_v18  ;;  %v3764_v16 = vmul.f32 %v3707_v12, %v3548_v5  ;;  %v12430_v22 = vrot.slane %v11135_v55, 1  ;;  %v3712_v51 = vpop.permute.xlu1 %3711 }
 0x35b   : > { %v3401_v28 = vadd.f32 %v3357_v32, %v3141_v19  ;;  %4825 = vmatmul.bf16.gmra.mxu2 %v11135_v55  ;;  %5433 = vmatmul.bf16.gmra.mxu0 %v5306_v17  ;;  %v12319_v50 = vrot.slane %v11207_v33, 3  ;;  %v12431_v32 = vrot.slane %v11138_v46, 3 }
 0x35c   : > { %v4921_v59 = vsel %vm1091_vm1, %v12430_v22, %v12429_v58  ;;  %v4105_v6 = vsel %vm10327_vm6, %v4096_v30, %v4104_v53  ;;  %v3800_v61 = vpack.c.bf16 %v3764_v16, %v3764_v16  ;;  %4695 = vmatmul.bf16.gmra.mxu1 %v4523_v21  ;;  %v4106_v46 = vrot.slane %v4104_v53, 4 }
 0x35d   : > { %5048 = vmatmul.bf16.gmra.mxu3 %v4921_v59  ;;  %4235 = vst [vmem:[#allocation3 + $0x7c] sm:$0xf] %v4105_v6  ;;  %v3441_v12 = vadd.f32 %v11122_v40, %v3401_v28  ;;  %v11233_v55 = vsel %vm3167_vm4, %v12431_v32, %v12319_v50  ;;  %v12434_v32 = vld [vmem:[#allocation18_spill] sm:$0xff] }
 0x35e   : > { %12432 = vst [vmem:[#allocation12_spill] sm:$0xff] %v11233_v55  ;;  %v4108_v5 = vshrl.u32 %v3800_v61, 16  ;;  %v4111_v19 = vshll.u32 %v3800_v61, 16  ;;  %v2707_v31 = vpop.f32.mrf.mxu2 }
 0x35f   : > { %vm3477_vm12 = vcmp.gt.f32.partialorder %v3441_v12, 0.0  ;;  %v3513_v13 = vmul.f32 0.01, %v3441_v12  ;;  %v2749_v17 = vadd.f32 %v2707_v31, %v12433_v26  ;;  %v3100_v16 = vpop.f32.mrf.mxu3  ;;  %v12435_v31 = vld [vmem:[#allocation17_spill] sm:$0xff] }
 0x360   : > { %v4110_v18 = vrot.slane %v4108_v5, 6  ;;  %v4113_v57 = vrot.slane %v4111_v19, 7  ;;  %v3362_v9 = vpop.f32.mrf.mxu0  ;;  %v2365_v5 = vadd.f32 %v12435_v31, %v12434_v32 }
 0x361   : > { %v3549_v63 = vsel %vm3477_vm12, %v3441_v12, %v3513_v13  ;;  %v3142_v30 = vadd.f32 %v3100_v16, %v2749_v17  ;;  %v11236_v21 = vpop.f32.mrf.mxu1  ;;  %v5307_v12 = vrot.slane %v10867_v62, 1  ;;  %v4524_v17 = vshrl.u32 %v11181_v20, 16 }
 0x362   : > { %v4114_v28 = vor.u32 %v4113_v57, %v4110_v18  ;;  %v3765_v58 = vmul.f32 %v3712_v51, %v3549_v63  ;;  %v11249_v63 = vld [vmem:[#allocation3 + $0x58] sm:$0xff] }
 0x363   : > { %v3402_v22 = vadd.f32 %v3360_v0, %v3142_v30 }
 0x364   : > { %v4115_v59 = vsel %vm10327_vm6, %v4106_v46, %v4114_v28  ;;  %v3801_v6 = vpack.c.bf16 %v3765_v58, %v3765_v58  ;;  %v11240_v61 = vld [vmem:[#allocation3 + $0x78] sm:$0xff]  ;;  %v4116_v51 = vrot.slane %v4114_v28, 4 }
 0x365   : > { %4236 = vst [vmem:[#allocation3 + $0x80] sm:$0xf] %v4115_v59  ;;  %v3442_v19 = vadd.f32 %v11122_v40, %v3402_v22  ;;  %v4528_v0 = vshll.u32 %v11240_v61, 16  ;;  %v4526_v22 = vor.u32 %v4524_v17, %v4522_v34 }
 0x366   : > { %v4118_v13 = vshrl.u32 %v3801_v6, 16  ;;  %v4121_v26 = vshll.u32 %v3801_v6, 16  ;;  %v2709_v53 = vpop.f32.mrf.mxu2  ;;  %v3717_v6 = vpop.permute.xlu2 %3716 }
 0x367   : > { %vm3478_vm13 = vcmp.gt.f32.partialorder %v3442_v19, 0.0  ;;  %v3514_v16 = vmul.f32 0.01, %v3442_v19  ;;  %v2750_v18 = vadd.f32 %v2709_v53, %v2365_v5  ;;  %v3102_v57 = vpop.f32.mrf.mxu3  ;;  %v11251_v59 = vrot.slane %v4528_v0, 1 }
 0x368   : > { %v4120_v30 = vrot.slane %v4118_v13, 6  ;;  %v4123_v46 = vrot.slane %v4121_v26, 7  ;;  %v3365_v58 = vpop.f32.mrf.mxu0  ;;  %v12436_v5 = vrot.slane %v10803_v24, 1  ;;  %v12438_v26 = vrot.slane %v11204_v29, 1 }
 0x369   : > { %v3550_v32 = vsel %vm3478_vm13, %v3442_v19, %v3514_v16  ;;  %v3143_v31 = vadd.f32 %v3102_v57, %v2750_v18  ;;  %v11253_v50 = vpop.f32.mrf.mxu1  ;;  %v4531_v13 = vsel %vm591_vm0, %v4526_v22, %v11251_v59  ;;  %v12437_v19 = vrot.slane %v10796_v8, 1  ;;  %v12441_v22 = vld [vmem:[#allocation19_spill] sm:$0xff] }
 0x36a   : > { %v5308_v53 = vsel %vm1091_vm1, %v12436_v5, %v5307_v12  ;;  %v4124_v55 = vor.u32 %v4123_v46, %v4120_v30  ;;  %v3766_v45 = vmul.f32 %v3717_v6, %v3550_v32  ;;  %v12320_v24 = vrot.slane %v11249_v63, 3  ;;  %v8966_v6 = vld [vmem:[%s12283_s3 + $0x100] sm:$0xff] }
 0x36b   : > { %v3403_v34 = vadd.f32 %v3362_v9, %v3143_v31  ;;  %4830 = vmatmul.bf16.gmra.mxu2 %v11204_v29  ;;  %v4923_v17 = vsel %vm1091_vm1, %v12438_v26, %v12437_v19  ;;  %5438 = vmatmul.bf16.gmra.mxu0 %v5308_v53  ;;  %v12439_v16 = vrot.slane %v11207_v33, 3  ;;  %v3722_v53 = vpop.permute.xlu0 %3721 }
 0x36c   : > { %v4125_v28 = vsel %vm10327_vm6, %v4116_v51, %v4124_v55  ;;  %v3802_v0 = vpack.c.bf16 %v3766_v45, %v3766_v45  ;;  %4700 = vmatmul.bf16.gmra.mxu1 %v4531_v13  ;;  %v4126_v19 = vrot.slane %v4124_v55, 4 }
 0x36d   : > { %5053 = vmatmul.bf16.gmra.mxu3 %v4923_v17  ;;  %4237 = vst [vmem:[#allocation3 + $0x84] sm:$0xf] %v4125_v28  ;;  %v3443_v9 = vadd.f32 %v11122_v40, %v3403_v34  ;;  %v11277_v29 = vsel %vm3167_vm4, %v12439_v16, %v12320_v24  ;;  %5794 = vmatpush.bf16.msrb.mxu1 %v8966_v6 }
 0x36e   : > { %12440 = vst [vmem:[#allocation16_spill] sm:$0xff] %v11277_v29  ;;  %v4128_v18 = vshrl.u32 %v3802_v0, 16  ;;  %v4131_v57 = vshll.u32 %v3802_v0, 16  ;;  %v2712_v30 = vpop.f32.mrf.mxu2 }
 0x36f   : > { %vm3479_vm14 = vcmp.gt.f32.partialorder %v3443_v9, 0.0  ;;  %v3515_v46 = vmul.f32 0.01, %v3443_v9  ;;  %v2751_v51 = vadd.f32 %v2712_v30, %v12441_v22  ;;  %v3105_v45 = vpop.f32.mrf.mxu3  ;;  %v12442_v22 = vld [vmem:[#allocation20_spill] sm:$0xff] }
 0x370   : > { %v4130_v32 = vrot.slane %v4128_v18, 6  ;;  %v4133_v31 = vrot.slane %v4131_v57, 7  ;;  %v3367_v5 = vpop.f32.mrf.mxu0  ;;  %v2367_v18 = vadd.f32 %v10832_v4, %v12442_v22  ;;  %v5309_v57 = vrot.slane %v10937_v47, 1 }
 0x371   : > { %v3551_v33 = vsel %vm3479_vm14, %v3443_v9, %v3515_v46  ;;  %v3144_v13 = vadd.f32 %v3105_v45, %v2751_v51  ;;  %v11283_v34 = vpop.f32.mrf.mxu1  ;;  %v4532_v45 = vshrl.u32 %v11240_v61, 16  ;;  %v12447_v47 = vrot.slane %v10842_v56, 1 }
 0x372   : > { %v4134_v26 = vor.u32 %v4133_v31, %v4130_v32  ;;  %v3767_v17 = vmul.f32 %v3722_v53, %v3551_v33  ;;  %v11296_v33 = vld [vmem:[#allocation3 + $0x60] sm:$0xff] }
 0x373   : > { %v3404_v28 = vadd.f32 %v3365_v58, %v3144_v13 }
 0x374   : > { %v4135_v0 = vsel %vm10327_vm6, %v4126_v19, %v4134_v26  ;;  %v3803_v16 = vpack.c.bf16 %v3767_v17, %v3767_v17  ;;  %v11287_v30 = vld [vmem:[#allocation3 + $0x80] sm:$0xff]  ;;  %v4534_v17 = vor.u32 %v4532_v45, %v11251_v59  ;;  %v12443_v59 = vrot.slane %v10842_v56, 1 }
 0x375   : > { %4238 = vst [vmem:[#allocation3 + $0x88] sm:$0xf] %v4135_v0  ;;  %v3444_v9 = vadd.f32 %v11122_v40, %v3404_v28  ;;  %v4536_v58 = vshll.u32 %v11287_v30, 16  ;;  %v3727_v0 = vpop.permute.xlu1 %3726 }
 0x376   : > { %v4138_v46 = vshrl.u32 %v3803_v16, 16  ;;  %v4141_v51 = vshll.u32 %v3803_v16, 16  ;;  %v2714_v55 = vpop.f32.mrf.mxu2 }
 0x377   : > { %vm3480_vm15 = vcmp.gt.f32.partialorder %v3444_v9, 0.0  ;;  %v3516_v6 = vmul.f32 0.01, %v3444_v9  ;;  %v2752_v32 = vadd.f32 %v2714_v55, %v2367_v18  ;;  %v3107_v31 = vpop.f32.mrf.mxu3  ;;  %v4538_v28 = vrot.slane %v4536_v58, 1 }
 0x378   : > { %v4140_v4 = vrot.slane %v4138_v46, 6  ;;  %v4143_v13 = vrot.slane %v4141_v51, 7  ;;  %v11298_v19 = vpop.f32.mrf.mxu0  ;;  %v5310_v18 = vsel %vm1091_vm1, %v5307_v12, %v5309_v57  ;;  %v4136_v55 = vrot.slane %v4134_v26, 4 }
 0x379   : > { %v3552_v16 = vsel %vm3480_vm15, %v3444_v9, %v3516_v6  ;;  %v3145_v22 = vadd.f32 %v3107_v31, %v2752_v32  ;;  %v11301_v24 = vpop.f32.mrf.mxu1  ;;  %v4539_v51 = vsel %vm591_vm0, %v4534_v17, %v4538_v28  ;;  %v12444_v9 = vrot.slane %v10796_v8, 1 }
 0x37a   : > { %v4144_v53 = vor.u32 %v4143_v13, %v4140_v4  ;;  %v3768_v46 = vmul.f32 %v3727_v0, %v3552_v16  ;;  %v6998_v58 = vrot.slane %v11296_v33, 3 }
 0x37b   : > { %v3405_v29 = vadd.f32 %v3367_v5, %v3145_v22  ;;  %4835 = vmatmul.bf16.gmra.mxu2 %v9207_v42  ;;  %v4925_v45 = vsel %vm1091_vm1, %v12444_v9, %v12443_v59  ;;  %5443 = vmatmul.bf16.gmra.mxu0 %v5310_v18  ;;  %v12445_v42 = vrot.slane %v11249_v63, 3  ;;  %v8981_v63 = vld [vmem:[%s12283_s3 + $0x178] sm:$0xff] }
 0x37c   : > { %v4145_v62 = vsel %vm10327_vm6, %v4136_v55, %v4144_v53  ;;  %v3804_v12 = vpack.c.bf16 %v3768_v46, %v3768_v46  ;;  %4705 = vmatmul.bf16.gmra.mxu1 %v4539_v51  ;;  %v9006_v55 = vld [vmem:[%s12283_s3 + $0x1b8] sm:$0xff]  ;;  %v4146_v46 = vrot.slane %v4144_v53, 4  ;;  %6046 = vmatpush.bf16.msra.mxu2 %v8981_v63 }
 0x37d   : > { %5058 = vmatmul.bf16.gmra.mxu3 %v4925_v45  ;;  %4239 = vst [vmem:[#allocation3 + $0x8c] sm:$0xf] %v4145_v62  ;;  %v3445_v5 = vadd.f32 %v11122_v40, %v3405_v29  ;;  %v11323_v8 = vsel %vm3167_vm4, %v12445_v42, %v6998_v58  ;;  %v3732_v40 = vpop.permute.xlu2 %3731  ;;  %v5311_v62 = vrot.slane %v11012_v1, 1 }
 0x37e   : > { %12446 = vst [vmem:[#allocation18_spill] sm:$0xff] %v11323_v8  ;;  %v4148_v26 = vshrl.u32 %v3804_v12, 16  ;;  %v4151_v6 = vshll.u32 %v3804_v12, 16  ;;  %v4796_v32 = vpop.f32.mrf.mxu2  ;;  %6431 = vmatpush.bf16.msra.mxu3 %v9006_v55 }
 0x37f   : > { %vm3481_vm7 = vcmp.gt.f32.partialorder %v3445_v5, 0.0  ;;  %v3517_v31 = vmul.f32 0.01, %v3445_v5  ;;  %v4797_v4 = vadd.f32 %v4796_v32, %v10869_v7  ;;  %v5019_v13 = vpop.f32.mrf.mxu3 }
 0x380   : > { %v4150_v17 = vrot.slane %v4148_v26, 6  ;;  %v4153_v0 = vrot.slane %v4151_v6, 7  ;;  %v11326_v16 = vpop.f32.mrf.mxu0  ;;  %v4540_v26 = vshrl.u32 %v11287_v30, 16  ;;  %v11343_v6 = vld [vmem:[#allocation3 + $0x68] sm:$0xff] }
 0x381   : > { %v3553_v29 = vsel %vm3481_vm7, %v3445_v5, %v3517_v31  ;;  %v5109_v22 = vadd.f32 %v5019_v13, %v4797_v4  ;;  %v11328_v18 = vpop.f32.mrf.mxu1  ;;  %v4926_v4 = vrot.slane %v10914_v25, 1 }
 0x382   : > { %v4154_v7 = vor.u32 %v4153_v0, %v4150_v17  ;;  %v3769_v51 = vmul.f32 %v3732_v40, %v3553_v29  ;;  %v4542_v40 = vor.u32 %v4540_v26, %v4538_v28 }
 0x383   : > { %v11358_v25 = vadd.f32 %v11298_v19, %v5109_v22  ;;  %v9022_v22 = vld [vmem:[%s12283_s3 + $0x238] sm:$0xff] }
 0x384   : > { %v4155_v59 = vsel %vm10327_vm6, %v4146_v46, %v4154_v7  ;;  %v3805_v9 = vpack.c.bf16 %v3769_v51, %v3769_v51  ;;  %v11338_v45 = vld [vmem:[#allocation3 + $0x88] sm:$0xff]  ;;  %v5312_v46 = vsel %vm1091_vm1, %v5309_v57, %v5311_v62  ;;  %v4156_v51 = vrot.slane %v4154_v7, 4  ;;  %7082 = vmatpush.bf16.msra.mxu1 %v9022_v22  ;;  %v9209_v22 = vld [vmem:[#allocation3 + $0x50] sm:$0xff] }
 0x385   : > { %4240 = vst [vmem:[#allocation3 + $0x90] sm:$0xf] %v4155_v59  ;;  %v4544_v53 = vshll.u32 %v11338_v45, 16  ;;  %v4927_v57 = vsel %vm1091_vm1, %v12447_v47, %v4926_v4 }
 0x386   : > { %v4158_v12 = vshrl.u32 %v3805_v9, 16  ;;  %v4161_v5 = vshll.u32 %v3805_v9, 16  ;;  %v4798_v42 = vpop.f32.mrf.mxu2  ;;  %v7000_v9 = vrot.slane %v11343_v6, 3 }
 0x387   : > { %v4799_v32 = vadd.f32 %v4798_v42, %v10902_v23  ;;  %v5021_v31 = vpop.f32.mrf.mxu3  ;;  %v4546_v29 = vrot.slane %v4544_v53, 1  ;;  %v9014_v23 = vld [vmem:[%s12283_s3 + $0x1f8] sm:$0xff] }
 0x388   : > { %v4160_v13 = vrot.slane %v4158_v12, 6  ;;  %v4163_v17 = vrot.slane %v4161_v5, 7  ;;  %v5409_v0 = vpop.f32.mrf.mxu0  ;;  %v4242_v12 = vld [vmem:[#allocation3 + $0x98] sm:$0x3]  ;;  %v9208_v5 = vld [vmem:[#allocation3 + $0x48] sm:$0xff]  ;;  %v11373_v7 = vsel %vm3167_vm4, %v6998_v58, %v7000_v9  ;;  %6823 = vmatpush.bf16.msra.mxu0 %v9014_v23 }
 0x389   : > { %v5110_v63 = vadd.f32 %v5021_v31, %v4799_v32  ;;  %v11347_v55 = vpop.f32.mrf.mxu1  ;;  %v4547_v28 = vsel %vm591_vm0, %v4542_v40, %v4546_v29  ;;  %12448 = vst [vmem:[#allocation17_spill] sm:$0xff] %v11373_v7 }
 0x38a   : > { %v4164_v59 = vor.u32 %v4163_v17, %v4160_v13 }
 0x38b   : > { %4840 = vmatmul.bf16.gmra.mxu2 %v9208_v5  ;;  %5448 = vmatmul.bf16.gmra.mxu0 %v5312_v46  ;;  %v11383_v58 = vadd.f32 %v11326_v16, %v5110_v63  ;;  %v4548_v5 = vshrl.u32 %v11338_v45, 16 }
 0x38c   : > { %v4165_v42 = vsel %vm10327_vm6, %v4156_v51, %v4164_v59  ;;  %v4166_v26 = vrot.slane %v4164_v59, 4  ;;  %4710 = vmatmul.bf16.gmra.mxu1 %v4547_v28  ;;  %v4297_v19 = vld [vmem:[#allocation3 + $0x90] sm:$0x1]  ;;  %v5313_v51 = vrot.slane %v11081_v39, 1 }
 0x38d   : > { %5063 = vmatmul.bf16.gmra.mxu3 %v4927_v57  ;;  %4241 = vst [vmem:[#allocation3 + $0x94] sm:$0xf] %v4165_v42  ;;  %v4388_v56 = vunpack.c.l.b16 %v4297_v19  ;;  %v8993_v59 = vld [vmem:[#allocation3 + $0x70] sm:$0xff]  ;;  %v4550_v16 = vor.u32 %v4548_v5, %v4546_v29 }
 0x38e   : > { %v4243_v37 = vsel %vm10233_vm9, %v4166_v26, %v4242_v12  ;;  %v4801_v6 = vpop.f32.mrf.mxu2  ;;  %v5314_v39 = vsel %vm1091_vm1, %v5311_v62, %v5313_v51  ;;  %v7002_v19 = vrot.slane %v8993_v59, 3  ;;  %v8994_v59 = vld [vmem:[#allocation3 + $0x78] sm:$0xff]  ;;  %v9005_v5 = vld [vmem:[%s12283_s3 + $0x1b0] sm:$0xff] }
 0x38f   : > { %4244 = vst [vmem:[#allocation3 + $0x98] sm:$0x3] %v4243_v37  ;;  %v4802_v32 = vadd.f32 %v4801_v6, %v10939_v3  ;;  %v5024_v31 = vpop.f32.mrf.mxu3  ;;  %v11378_v13 = vpack.c.b16 %v4388_v56, %v4388_v56  ;;  %v4928_v3 = vrot.slane %v10980_v52, 1  ;;  %6432 = vmatpush.bf16.msra.mxu3 %v9005_v5 }
 0x390   : > { %v5411_v17 = vpop.f32.mrf.mxu0  ;;  %v11400_v53 = vsel %vm3167_vm4, %v7000_v9, %v7002_v19 }
 0x391   : > { %v5111_v40 = vadd.f32 %v5024_v31, %v4802_v32  ;;  %v11380_v33 = vpop.f32.mrf.mxu1  ;;  %v4552_v46 = vshll.u32 %v11378_v13, 16  ;;  %12450 = vst [vmem:[#allocation19_spill] sm:$0xff] %v11400_v53 }
 0x393   : > { %v4554_v47 = vrot.slane %v4552_v46, 1  ;;  %v11392_v63 = vadd.f32 %v5409_v0, %v5111_v40  ;;  %v5315_v40 = vrot.slane %v11152_v48, 1 }
 0x395   : > { %v4555_v56 = vsel %vm591_vm0, %v4550_v16, %v4554_v47 }
 0x396   : > { %v4803_v23 = vpop.f32.mrf.mxu2 }
 0x397   : > { %v4804_v28 = vadd.f32 %v4803_v23, %v10968_v43  ;;  %v5026_v12 = vpop.f32.mrf.mxu3  ;;  %v4929_v43 = vsel %vm1091_vm1, %v4926_v4, %v4928_v3  ;;  %v8980_v4 = vld [vmem:[%s12283_s3 + $0x170] sm:$0xff] }
 0x398   : > { %v5414_v57 = vpop.f32.mrf.mxu0  ;;  %6047 = vmatpush.bf16.msra.mxu2 %v8980_v4 }
 0x399   : > { %v5112_v42 = vadd.f32 %v5026_v12, %v4804_v28  ;;  %v11390_v26 = vpop.f32.mrf.mxu1 }
 0x39b   : > { %4845 = vmatmul.bf16.gmra.mxu2 %v9209_v22  ;;  %5453 = vmatmul.bf16.gmra.mxu0 %v5314_v39  ;;  %v11408_v32 = vadd.f32 %v5411_v17, %v5112_v42  ;;  %v5316_v17 = vsel %vm1091_vm1, %v5313_v51, %v5315_v40  ;;  %v7004_v42 = vrot.slane %v8994_v59, 3 }
 0x39c   : > { %4715 = vmatmul.bf16.gmra.mxu1 %v4555_v56 }
 0x39d   : > { %5068 = vmatmul.bf16.gmra.mxu3 %v4929_v43  ;;  %v11425_v16 = vsel %vm3167_vm4, %v7002_v19, %v7004_v42 }
 0x39e   : > { %v4806_v29 = vpop.f32.mrf.mxu2  ;;  %12451 = vst [vmem:[#allocation20_spill] sm:$0xff] %v11425_v16 }
 0x39f   : > { %v4807_v0 = vadd.f32 %v4806_v29, %v11003_v14  ;;  %v4930_v14 = vrot.slane %v11041_v60, 1 }
 0x3a0   : > { %v5029_v37 = vpop.f32.mrf.mxu3  ;;  %v5416_v1 = vpop.f32.mrf.mxu0 }
 0x3a1   : > { %v5113_v6 = vadd.f32 %v5029_v37, %v4807_v0  ;;  %v11403_v62 = vpop.f32.mrf.mxu1  ;;  %v4931_v47 = vsel %vm1091_vm1, %v4928_v3, %v4930_v14  ;;  %v9013_v3 = vld [vmem:[%s12283_s3 + $0x1f0] sm:$0xff] }
 0x3a2   : > { %6824 = vmatpush.bf16.msra.mxu0 %v9013_v3 }
 0x3a6   : > { %v4808_v31 = vpop.f32.mrf.mxu2 }
 0x3a7   : > { %v4809_v9 = vadd.f32 %v4808_v31, %v11034_v15  ;;  %v11421_v15 = vadd.f32 %v5414_v57, %v5113_v6  ;;  %v11436_v57 = vld [vmem:[#allocation3 + $0x70] sm:$0xff]  ;;  %v4932_v6 = vrot.slane %v11110_v54, 1  ;;  %v8995_v31 = vld [vmem:[#allocation3 + $0x80] sm:$0xff] }
 0x3a8   : > { %v5031_v46 = vpop.f32.mrf.mxu3  ;;  %v5419_v23 = vpop.f32.mrf.mxu0  ;;  %v5317_v29 = vrot.slane %v11436_v57, 1  ;;  %v7006_v5 = vrot.slane %v8995_v31, 3 }
 0x3a9   : > { %v5114_v28 = vadd.f32 %v5031_v46, %v4809_v9  ;;  %v11413_v12 = vpop.f32.mrf.mxu1 }
 0x3aa   : > { %v5318_v59 = vsel %vm1091_vm1, %v5315_v40, %v5317_v29 }
 0x3ab   : > { %4850 = vmatmul.bf16.gmra.mxu2 %v10980_v52  ;;  %5458 = vmatmul.bf16.gmra.mxu0 %v5316_v17  ;;  %v11438_v19 = vadd.f32 %v5416_v1, %v5114_v28  ;;  %v4933_v1 = vsel %vm1091_vm1, %v4930_v14, %v4932_v6 }
 0x3ac   : > { %5795 = vmatmul.bf16.vlgmr.msrb.gmra.mxu1 %v10453_v49  ;;  %v9021_v49 = vld [vmem:[%s12283_s3 + $0x230] sm:$0xff] }
 0x3ad   : > { %5073 = vmatmul.bf16.gmra.mxu3 %v4931_v47  ;;  %7083 = vmatpush.bf16.msra.mxu1 %v9021_v49 }
 0x3ae   : > { %v4811_v39 = vpop.f32.mrf.mxu2 }
 0x3af   : > { %v4812_v22 = vadd.f32 %v4811_v39, %v11072_v36 }
 0x3b0   : > { %v5034_v43 = vpop.f32.mrf.mxu3  ;;  %v5421_v51 = vpop.f32.mrf.mxu0 }
 0x3b1   : > { %v5115_v56 = vadd.f32 %v5034_v43, %v4812_v22  ;;  %v11428_v52 = vpop.f32.mrf.mxu1 }
 0x3b3   : > { %v11448_v28 = vadd.f32 %v5419_v23, %v5115_v56 }
 0x3b6   : > { %v4813_v36 = vpop.f32.mrf.mxu2 }
 0x3b7   : > { %v4814_v0 = vadd.f32 %v4813_v36, %v11103_v41  ;;  %v11452_v41 = vsel %vm3167_vm4, %v7004_v42, %v7006_v5  ;;  %v4934_v42 = vrot.slane %v11181_v20, 1  ;;  %v8996_v36 = vld [vmem:[#allocation3 + $0x88] sm:$0xff] }
 0x3b8   : > { %v5036_v37 = vpop.f32.mrf.mxu3  ;;  %v5424_v4 = vpop.f32.mrf.mxu0  ;;  %12452 = vst [vmem:[#allocation15_spill] sm:$0xff] %v11452_v41 }
 0x3b9   : > { %v5116_v9 = vadd.f32 %v5036_v37, %v4814_v0  ;;  %v11443_v46 = vpop.f32.mrf.mxu1  ;;  %v8979_v37 = vld [vmem:[%s12283_s3 + $0x168] sm:$0xff] }
 0x3ba   : > { %6048 = vmatpush.bf16.msra.mxu2 %v8979_v37  ;;  %v6566_v37 = vld [vmem:[#allocation3 + $0xa0] sm:$0x7] }
 0x3bb   : > { %4855 = vmatmul.bf16.gmra.mxu2 %v11041_v60  ;;  %5463 = vmatmul.bf16.gmra.mxu0 %v5318_v59  ;;  %v11457_v60 = vld [vmem:[#allocation3 + $0x78] sm:$0xff]  ;;  %v11459_v14 = vadd.f32 %v5421_v51, %v5116_v9  ;;  %v9004_v51 = vld [vmem:[%s12283_s3 + $0x1a8] sm:$0xff]  ;;  %v7008_v59 = vrot.slane %v8996_v36, 3  ;;  %v4936_v36 = vrot.slane %v11240_v61, 1 }
 0x3bc   : > { %5800 = vmatmul.bf16.gmra.mxu1 %v10508_v44  ;;  %v5319_v56 = vrot.slane %v11457_v60, 1  ;;  %6433 = vmatpush.bf16.msra.mxu3 %v9004_v51 }
 0x3bd   : > { %5078 = vmatmul.bf16.gmra.mxu3 %v4933_v1  ;;  %v11479_v1 = vsel %vm3167_vm4, %v7006_v5, %v7008_v59 }
 0x3be   : > { %v4816_v17 = vpop.f32.mrf.mxu2  ;;  %v5320_v31 = vsel %vm1091_vm1, %v5317_v29, %v5319_v56  ;;  %12453 = vst [vmem:[#allocation38_spill] sm:$0xff] %v11479_v1 }
 0x3bf   : > { %v4817_v47 = vadd.f32 %v4816_v17, %v11143_v11 }
 0x3c0   : > { %v5039_v39 = vpop.f32.mrf.mxu3  ;;  %v5426_v22 = vpop.f32.mrf.mxu0 }
 0x3c1   : > { %v5117_v40 = vadd.f32 %v5039_v39, %v4817_v47  ;;  %v11455_v43 = vpop.f32.mrf.mxu1 }
 0x3c3   : > { %v11475_v9 = vadd.f32 %v5424_v4, %v5117_v40  ;;  %v11490_v4 = vld [vmem:[#allocation3 + $0x80] sm:$0xff] }
 0x3c4   : > { %v5321_v40 = vrot.slane %v11490_v4, 1 }
 0x3c6   : > { %v4818_v23 = vpop.f32.mrf.mxu2 }
 0x3c7   : > { %v4819_v44 = vadd.f32 %v4818_v23, %v11174_v38  ;;  %v4935_v38 = vsel %vm1091_vm1, %v4932_v6, %v4934_v42  ;;  %v9012_v6 = vld [vmem:[%s12283_s3 + $0x1e8] sm:$0xff] }
 0x3c8   : > { %v5041_v3 = vpop.f32.mrf.mxu3  ;;  %v5429_v49 = vpop.f32.mrf.mxu0  ;;  %6825 = vmatpush.bf16.msra.mxu0 %v9012_v6  ;;  %v8998_v6 = vld [vmem:[#allocation3 + $0x98] sm:$0xff] }
 0x3c9   : > { %v5118_v11 = vadd.f32 %v5041_v3, %v4819_v44  ;;  %v11464_v0 = vpop.f32.mrf.mxu1 }
 0x3cb   : > { %4860 = vmatmul.bf16.gmra.mxu2 %v11110_v54  ;;  %5468 = vmatmul.bf16.gmra.mxu0 %v5320_v31  ;;  %v11492_v5 = vadd.f32 %v5426_v22, %v5118_v11  ;;  %v8997_v31 = vld [vmem:[#allocation3 + $0x90] sm:$0xff]  ;;  %v4937_v22 = vsel %vm1091_vm1, %v4934_v42, %v4936_v36 }
 0x3cc   : > { %5805 = vmatmul.bf16.gmra.mxu1 %v10586_v27  ;;  %v9020_v27 = vld [vmem:[%s12283_s3 + $0x228] sm:$0xff] }
 0x3cd   : > { %5083 = vmatmul.bf16.gmra.mxu3 %v4935_v38  ;;  %7084 = vmatpush.bf16.msra.mxu1 %v9020_v27 }
 0x3ce   : > { %v4821_v17 = vpop.f32.mrf.mxu2 }
 0x3cf   : > { %v4822_v47 = vadd.f32 %v4821_v17, %v11210_v35 }
 0x3d0   : > { %v5044_v29 = vpop.f32.mrf.mxu3  ;;  %v5431_v39 = vpop.f32.mrf.mxu0 }
 0x3d1   : > { %v5119_v54 = vadd.f32 %v5044_v29, %v4822_v47  ;;  %v11482_v23 = vpop.f32.mrf.mxu1  ;;  %v5322_v47 = vsel %vm1091_vm1, %v5319_v56, %v5321_v40  ;;  %v6585_v29 = vunpack.c.l.b16 %v6566_v37 }
 0x3d3   : > { %v11502_v11 = vadd.f32 %v5429_v49, %v5119_v54  ;;  %v7012_v49 = vrot.slane %v8998_v6, 3  ;;  %v11513_v54 = vld [vmem:[#allocation3 + $0x88] sm:$0xff]  ;;  %v4938_v6 = vrot.slane %v11287_v30, 1 }
 0x3d6   : > { %v4823_v35 = vpop.f32.mrf.mxu2 }
 0x3d7   : > { %v4824_v44 = vadd.f32 %v4823_v35, %v11236_v21  ;;  %v7010_v21 = vrot.slane %v8997_v31, 3  ;;  %v11505_v35 = vpack.c.b16 %v6585_v29, %v6585_v29 }
 0x3d8   : > { %v5046_v3 = vpop.f32.mrf.mxu3  ;;  %v5434_v51 = vpop.f32.mrf.mxu0 }
 0x3d9   : > { %v5120_v38 = vadd.f32 %v5046_v3, %v4824_v44  ;;  %v11497_v17 = vpop.f32.mrf.mxu1  ;;  %12454 = vst [vmem:[#allocation39_spill] sm:$0xff] %v11505_v35  ;;  %v11508_v44 = vsel %vm3167_vm4, %v7008_v59, %v7010_v21  ;;  %v7014_v31 = vrot.slane %v11505_v35, 3 }
 0x3da   : > { %12455 = vst [vmem:[#allocation40_spill] sm:$0xff] %v11508_v44 }
 0x3db   : > { %4865 = vmatmul.bf16.gmra.mxu2 %v11181_v20  ;;  %5473 = vmatmul.bf16.gmra.mxu0 %v5322_v47  ;;  %v11519_v47 = vsel %vm3167_vm4, %v7010_v21, %v7012_v49  ;;  %v11522_v59 = vsel %vm3167_vm4, %v7012_v49, %v7014_v31  ;;  %v4939_v49 = vsel %vm1091_vm1, %v4936_v36, %v4938_v6 }
 0x3dc   : > { %5810 = vmatmul.bf16.gmra.mxu1 %v10706_v2  ;;  %v11516_v2 = vadd.f32 %v5431_v39, %v5120_v38  ;;  %12456 = vst [vmem:[#allocation41_spill] sm:$0xff] %v11519_v47  ;;  %v8978_v39 = vld [vmem:[%s12283_s3 + $0x160] sm:$0xff] }
 0x3dd   : > { %5088 = vmatmul.bf16.gmra.mxu3 %v4937_v22  ;;  %12457 = vst [vmem:[#allocation42_spill] sm:$0xff] %v11522_v59  ;;  %v9003_v38 = vld [vmem:[%s12283_s3 + $0x1a0] sm:$0xff]  ;;  %6049 = vmatpush.bf16.msra.mxu2 %v8978_v39  ;;  %v8976_v39 = vld [vmem:[%s12283_s3 + $0x150] sm:$0xff] }
 0x3de   : > { %v4826_v27 = vpop.f32.mrf.mxu2  ;;  %6434 = vmatpush.bf16.msra.mxu3 %v9003_v38  ;;  %v9001_v38 = vld [vmem:[%s12283_s3 + $0x190] sm:$0xff]  ;;  %v8974_v59 = vld [vmem:[%s12283_s3 + $0x140] sm:$0xff] }
 0x3df   : > { %v4827_v56 = vadd.f32 %v4826_v27, %v11253_v50  ;;  %v5323_v50 = vrot.slane %v11513_v54, 1 }
 0x3e0   : > { %v5049_v3 = vpop.f32.mrf.mxu3  ;;  %v5436_v20 = vpop.f32.mrf.mxu0 }
 0x3e1   : > { %v5121_v37 = vadd.f32 %v5049_v3, %v4827_v56  ;;  %v11511_v42 = vpop.f32.mrf.mxu1  ;;  %v5324_v21 = vsel %vm1091_vm1, %v5321_v40, %v5323_v50  ;;  %v8977_v40 = vld [vmem:[%s12283_s3 + $0x158] sm:$0xff] }
 0x3e2   : > { %6050 = vmatpush.bf16.msra.mxu2 %v8977_v40  ;;  %v9000_v40 = vld [vmem:[%s12283_s3 + $0x188] sm:$0xff] }
 0x3e3   : > { %v11541_v31 = vadd.f32 %v5434_v51, %v5121_v37 }
 0x3e6   : > { %v4828_v29 = vpop.f32.mrf.mxu2  ;;  %6051 = vmatpush.bf16.msra.mxu2 %v8976_v39 }
 0x3e7   : > { %v4829_v22 = vadd.f32 %v4828_v29, %v11283_v34  ;;  %v9011_v34 = vld [vmem:[%s12283_s3 + $0x1e0] sm:$0xff]  ;;  %v9002_v29 = vld [vmem:[%s12283_s3 + $0x198] sm:$0xff] }
 0x3e8   : > { %v5051_v27 = vpop.f32.mrf.mxu3  ;;  %v5439_v56 = vpop.f32.mrf.mxu0  ;;  %6826 = vmatpush.bf16.msra.mxu0 %v9011_v34  ;;  %6435 = vmatpush.bf16.msra.mxu3 %v9002_v29 }
 0x3e9   : > { %v5122_v3 = vadd.f32 %v5051_v27, %v4829_v22  ;;  %v11527_v44 = vpop.f32.mrf.mxu1 }
 0x3eb   : > { %4870 = vmatmul.bf16.gmra.mxu2 %v11240_v61  ;;  %5478 = vmatmul.bf16.gmra.mxu0 %v5324_v21  ;;  %v9010_v61 = vld [vmem:[%s12283_s3 + $0x1d8] sm:$0xff]  ;;  %v11567_v34 = vadd.f32 %v5436_v20, %v5122_v3 }
 0x3ec   : > { %5815 = vmatmul.bf16.gmra.mxu1 %v10736_v10  ;;  %v11562_v21 = vld [vmem:[#allocation3 + $0x90] sm:$0xff]  ;;  %6827 = vmatpush.bf16.msra.mxu0 %v9010_v61  ;;  %v9008_v61 = vld [vmem:[%s12283_s3 + $0x1c8] sm:$0xff] }
 0x3ed   : > { %5093 = vmatmul.bf16.gmra.mxu3 %v4939_v49  ;;  %v8975_v49 = vld [vmem:[%s12283_s3 + $0x148] sm:$0xff] }
 0x3ee   : > { %v4831_v22 = vpop.f32.mrf.mxu2  ;;  %6436 = vmatpush.bf16.msra.mxu3 %v9001_v38  ;;  %6052 = vmatpush.bf16.msra.mxu2 %v8975_v49  ;;  %v9019_v49 = vld [vmem:[%s12283_s3 + $0x220] sm:$0xff] }
 0x3ef   : > { %v4832_v36 = vadd.f32 %v4831_v22, %v11301_v24  ;;  %v9009_v24 = vld [vmem:[%s12283_s3 + $0x1d0] sm:$0xff]  ;;  %v5325_v22 = vrot.slane %v11562_v21, 1  ;;  %7085 = vmatpush.bf16.msra.mxu1 %v9019_v49 }
 0x3f0   : > { %v5054_v51 = vpop.f32.mrf.mxu3  ;;  %v5441_v10 = vpop.f32.mrf.mxu0  ;;  %6828 = vmatpush.bf16.msra.mxu0 %v9009_v24  ;;  %v8999_v24 = vld [vmem:[%s12283_s3 + $0x180] sm:$0xff]  ;;  %v6181_v49 = vld [vmem:[#allocation3 + $0x10] sm:$0xc] }
 0x3f1   : > { %v5123_v37 = vadd.f32 %v5054_v51, %v4832_v36  ;;  %v11554_v27 = vpop.f32.mrf.mxu1  ;;  %v4940_v36 = vrot.slane %v11338_v45, 1  ;;  %v5326_v47 = vsel %vm1091_vm1, %v5323_v50, %v5325_v22 }
 0x3f2   : > { %6437 = vmatpush.bf16.msra.mxu3 %v9000_v40  ;;  %6053 = vmatpush.bf16.msra.mxu2 %v8974_v59 }
 0x3f3   : > { %v4941_v40 = vsel %vm1091_vm1, %v4938_v6, %v4940_v36 }
 0x3f4   : > { %6829 = vmatpush.bf16.msra.mxu0 %v9008_v61 }
 0x3f6   : > { %v4833_v29 = vpop.f32.mrf.mxu2  ;;  %6438 = vmatpush.bf16.msra.mxu3 %v8999_v24 }
 0x3f7   : > { %v4834_v20 = vadd.f32 %v4833_v29, %v11328_v18  ;;  %v9007_v18 = vld [vmem:[%s12283_s3 + $0x1c0] sm:$0xff]  ;;  %v5181_v29 = vld [vmem:[#allocation3 + $0x98] sm:$0x1] }
 0x3f8   : > { %v5056_v3 = vpop.f32.mrf.mxu3  ;;  %v5444_v51 = vpop.f32.mrf.mxu0  ;;  %v5272_v61 = vunpack.c.l.b16 %v5181_v29  ;;  %6830 = vmatpush.bf16.msra.mxu0 %v9007_v18  ;;  %v4942_v18 = vrot.slane %v11378_v13, 1  ;;  %v12460_v13 = vld [vmem:[#allocation25_spill] sm:$0xff] }
 0x3f9   : > { %v5124_v39 = vadd.f32 %v5056_v3, %v4834_v20  ;;  %v11581_v38 = vpop.f32.mrf.mxu1  ;;  %v11598_v20 = vadd.f32 %v5439_v56, %v5123_v37  ;;  %v12458_v3 = vld [vmem:[#allocation23_spill] sm:$0xff]  ;;  %v11606_v56 = vld [vmem:[#allocation3 + $0x14] sm:$0xf] }
 0x3fb   : > { %4875 = vmatmul.bf16.gmra.mxu2 %v11287_v30  ;;  %5483 = vmatmul.bf16.gmra.mxu0 %v5326_v47  ;;  %v5291_v47 = vpack.c.b16 %v5272_v61, %v5272_v61  ;;  %v11604_v6 = vadd.f32 %v5441_v10, %v5124_v39  ;;  %v11614_v10 = vld [vmem:[#allocation3 + $0x18] sm:$0xff]  ;;  %v6272_v39 = vunpack.c.l.b16 %v6181_v49 }
 0x3fc   : > { %5820 = vmatmul.bf16.gmra.mxu1 %v12458_v3  ;;  %12459 = vst [vmem:[#allocation23_spill] sm:$0xff] %v11614_v10 }
 0x3fd   : > { %5098 = vmatmul.bf16.gmra.mxu3 %v4941_v40  ;;  %v5327_v40 = vrot.slane %v5291_v47, 1 }
 0x3fe   : > { %v4836_v50 = vpop.f32.mrf.mxu2 }
 0x3ff   : > { %v4837_v1 = vadd.f32 %v4836_v50, %v11347_v55  ;;  %v12321_v55 = vunpack.c.l.b16 %v11606_v56  ;;  %v4943_v50 = vsel %vm1091_vm1, %v4940_v36, %v4942_v18 }
 0x400   : > { %v5059_v41 = vpop.f32.mrf.mxu3  ;;  %v5446_v16 = vpop.f32.mrf.mxu0 }
 0x401   : > { %v5125_v30 = vadd.f32 %v5059_v41, %v4837_v1  ;;  %v11602_v53 = vpop.f32.mrf.mxu1  ;;  %v5328_v1 = vsel %vm1091_vm1, %v5325_v22, %v5327_v40  ;;  %v6309_v61 = vpack.c.b16 %v12321_v55, %v6272_v39  ;;  %v6599_v22 = vshll.u32 %v11614_v10, 16 }
 0x406   : > { %v4838_v37 = vpop.f32.mrf.mxu2 }
 0x407   : > { %v4839_v59 = vadd.f32 %v4838_v37, %v11380_v33  ;;  %v11618_v33 = vadd.f32 %v5444_v51, %v5125_v30  ;;  %v6596_v37 = vshrl.u32 %v11614_v10, 16  ;;  %v6601_v30 = vrot.slane %v6599_v22, 3  ;;  %v12461_v22 = vld [vmem:[#allocation21_spill] sm:$0xff] }
 0x408   : > { %v5061_v24 = vpop.f32.mrf.mxu3  ;;  %v5449_v3 = vpop.f32.mrf.mxu0 }
 0x409   : > { %v5126_v29 = vadd.f32 %v5061_v24, %v4839_v59  ;;  %v11611_v41 = vpop.f32.mrf.mxu1  ;;  %v6591_v24 = vshll.u32 %v6309_v61, 16  ;;  %v6598_v51 = vrot.slane %v6596_v37, 2 }
 0x40b   : > { %4880 = vmatmul.bf16.gmra.mxu2 %v11338_v45  ;;  %5488 = vmatmul.bf16.gmra.mxu0 %v5328_v1  ;;  %v6588_v45 = vshrl.u32 %v6309_v61, 16  ;;  %v11628_v1 = vadd.f32 %v5446_v16, %v5126_v29  ;;  %v6593_v39 = vrot.slane %v6591_v24, 3  ;;  %v6602_v55 = vor.u32 %v6601_v30, %v6598_v51 }
 0x40c   : > { %5825 = vmatmul.bf16.gmra.mxu1 %v12460_v13 }
 0x40d   : > { %5103 = vmatmul.bf16.gmra.mxu3 %v4943_v50  ;;  %v6590_v50 = vrot.slane %v6588_v45, 2  ;;  %v9210_v45 = vld [vmem:[#allocation3 + $0x20] sm:$0xff] }
 0x40e   : > { %v4841_v47 = vpop.f32.mrf.mxu2  ;;  %v6608_v24 = vshll.u32 %v9210_v45, 16 }
 0x40f   : > { %v4842_v40 = vadd.f32 %v4841_v47, %v11390_v26  ;;  %v6329_v26 = vrot.slane %v11614_v10, 2  ;;  %v6594_v47 = vor.u32 %v6593_v39, %v6590_v50 }
 0x410   : > { %v5064_v59 = vpop.f32.mrf.mxu3  ;;  %v5451_v49 = vpop.f32.mrf.mxu0 }
 0x411   : > { %v5127_v36 = vadd.f32 %v5064_v59, %v4842_v40  ;;  %v11626_v18 = vpop.f32.mrf.mxu1  ;;  %v6328_v40 = vrot.slane %v6309_v61, 2  ;;  %v6603_v37 = vsel %vm2774_vm5, %v6594_v47, %v6602_v55  ;;  %v12462_v59 = vld [vmem:[#allocation29_spill] sm:$0xff]  ;;  %v6605_v61 = vshrl.u32 %v9210_v45, 16 }
 0x413   : > { %v6330_v16 = vsel %vm2129_vm3, %v6328_v40, %v6329_v26  ;;  %v11637_v29 = vadd.f32 %v5449_v3, %v5127_v36  ;;  %v6607_v3 = vrot.slane %v6605_v61, 2  ;;  %v6610_v36 = vrot.slane %v6608_v24, 3  ;;  %v12463_v61 = vld [vmem:[#allocation22_spill] sm:$0xff]  ;;  %v12464_v24 = vld [vmem:[#allocation32_spill] sm:$0xff] }
 0x415   : > { %v6611_v40 = vor.u32 %v6610_v36, %v6607_v3 }
 0x416   : > { %v4843_v13 = vpop.f32.mrf.mxu2 }
 0x417   : > { %v4844_v7 = vadd.f32 %v4843_v13, %v11403_v62  ;;  %v9018_v62 = vld [vmem:[%s12283_s3 + $0x218] sm:$0xff] }
 0x418   : > { %v5066_v8 = vpop.f32.mrf.mxu3  ;;  %7086 = vmatpush.bf16.msra.mxu1 %v9018_v62 }
 0x419   : > { %v5128_v35 = vadd.f32 %v5066_v8, %v4844_v7  ;;  %v11632_v48 = vpop.f32.mrf.mxu1  ;;  %v5454_v8 = vpop.f32.mrf.mxu0 }
 0x41b   : > { %6054 = vmatmul.bf16.vlgmr.msra.gmra.mxu2 %v12461_v22  ;;  %6831 = vmatmul.bf16.vlgmr.msra.gmra.mxu0 %v6603_v37  ;;  %v11646_v13 = vadd.f32 %v5451_v49, %v5128_v35 }
 0x41c   : > { %5830 = vmatmul.bf16.gmra.mxu1 %v12462_v59  ;;  %v6331_v59 = vrot.slane %v9210_v45, 2  ;;  %v9211_v45 = vld [vmem:[#allocation3 + $0x28] sm:$0xff] }
 0x41d   : > { %6439 = vmatmul.bf16.vlgmr.msra.gmra.mxu3 %v6330_v16 }
 0x41e   : > { %v4846_v7 = vpop.f32.mrf.mxu2  ;;  %v6332_v35 = vsel %vm2129_vm3, %v6329_v26, %v6331_v59 }
 0x41f   : > { %v4847_v51 = vadd.f32 %v4846_v7, %v11413_v12  ;;  %v6612_v7 = vsel %vm2774_vm5, %v6602_v55, %v6611_v40 }
 0x420   : > { %v5069_v30 = vpop.f32.mrf.mxu3 }
 0x421   : > { %v5129_v50 = vadd.f32 %v5069_v30, %v4847_v51  ;;  %v11644_v39 = vpop.f32.mrf.mxu1  ;;  %v11648_v37 = vpop.f32.mrf.mxu0  ;;  %v6614_v51 = vshrl.u32 %v9211_v45, 16  ;;  %v6617_v30 = vshll.u32 %v9211_v45, 16 }
 0x423   : > { %v11659_v49 = vadd.f32 %v5454_v8, %v5129_v50  ;;  %v6616_v8 = vrot.slane %v6614_v51, 2  ;;  %v6619_v50 = vrot.slane %v6617_v30, 3  ;;  %v12466_v30 = vld [vmem:[#allocation34_spill] sm:$0xff] }
 0x426   : > { %v4848_v47 = vpop.f32.mrf.mxu2 }
 0x427   : > { %v4849_v22 = vadd.f32 %v4848_v47, %v11428_v52 }
 0x428   : > { %v5071_v16 = vpop.f32.mrf.mxu3 }
 0x429   : > { %v11651_v10 = vadd.f32 %v5071_v16, %v4849_v22  ;;  %v5796_v62 = vpop.f32.mrf.mxu1  ;;  %v11663_v36 = vpop.f32.mrf.mxu0  ;;  %v6620_v16 = vor.u32 %v6619_v50, %v6616_v8 }
 0x42a   : > { %v11654_v12 = vadd.f32 %v5796_v62, %v11358_v25 }
 0x42b   : > { %6059 = vmatmul.bf16.gmra.mxu2 %v12463_v61  ;;  %6836 = vmatmul.bf16.gmra.mxu0 %v6612_v7  ;;  %v6333_v61 = vrot.slane %v9211_v45, 2  ;;  %v9212_v45 = vld [vmem:[#allocation3 + $0x30] sm:$0xff] }
 0x42c   : > { %5835 = vmatmul.bf16.gmra.mxu1 %v12464_v24 }
 0x42d   : > { %6444 = vmatmul.bf16.gmra.mxu3 %v6332_v35  ;;  %v6334_v51 = vsel %vm2129_vm3, %v6331_v59, %v6333_v61 }
 0x42e   : > { %v4851_v52 = vpop.f32.mrf.mxu2 }
 0x42f   : > { %v4852_v3 = vadd.f32 %v4851_v52, %v11443_v46  ;;  %v6621_v52 = vsel %vm2774_vm5, %v6611_v40, %v6620_v16 }
 0x430   : > { %v5074_v25 = vpop.f32.mrf.mxu3 }
 0x431   : > { %v11665_v55 = vadd.f32 %v5074_v25, %v4852_v3  ;;  %v5798_v47 = vpop.f32.mrf.mxu1  ;;  %v11677_v3 = vpop.f32.mrf.mxu0  ;;  %v6623_v25 = vshrl.u32 %v9212_v45, 16 }
 0x432   : > { %v11668_v26 = vadd.f32 %v5798_v47, %v11383_v58  ;;  %v12465_v58 = vld [vmem:[#allocation5_spill] sm:$0xff]  ;;  %v6626_v47 = vshll.u32 %v9212_v45, 16 }
 0x436   : > { %v4853_v22 = vpop.f32.mrf.mxu2 }
 0x437   : > { %v4854_v62 = vadd.f32 %v4853_v22, %v11455_v43  ;;  %v9017_v22 = vld [vmem:[%s12283_s3 + $0x210] sm:$0xff] }
 0x438   : > { %v5076_v7 = vpop.f32.mrf.mxu3  ;;  %7087 = vmatpush.bf16.msra.mxu1 %v9017_v22 }
 0x439   : > { %v11671_v35 = vadd.f32 %v5076_v7, %v4854_v62  ;;  %v5801_v46 = vpop.f32.mrf.mxu1  ;;  %v6625_v62 = vrot.slane %v6623_v25, 2  ;;  %v6628_v7 = vrot.slane %v6626_v47, 3  ;;  %v12470_v47 = vld [vmem:[#allocation10_spill] sm:$0xff] }
 0x43a   : > { %v11674_v24 = vadd.f32 %v5801_v46, %v11392_v63  ;;  %v11691_v46 = vpop.f32.mrf.mxu0 }
 0x43b   : > { %6064 = vmatmul.bf16.gmra.mxu2 %v12465_v58  ;;  %6841 = vmatmul.bf16.gmra.mxu0 %v6621_v52  ;;  %12467 = vst [vmem:[#allocation25_spill] sm:$0xff] %v11691_v46  ;;  %v6629_v58 = vor.u32 %v6628_v7, %v6625_v62 }
 0x43c   : > { %5840 = vmatmul.bf16.gmra.mxu1 %v12466_v30  ;;  %v6335_v30 = vrot.slane %v9212_v45, 2 }
 0x43d   : > { %6449 = vmatmul.bf16.gmra.mxu3 %v6334_v51 }
 0x43e   : > { %v4856_v43 = vpop.f32.mrf.mxu2  ;;  %v6336_v25 = vsel %vm2129_vm3, %v6333_v61, %v6335_v30 }
 0x43f   : > { %v4857_v8 = vadd.f32 %v4856_v43, %v11464_v0 }
 0x440   : > { %v5079_v63 = vpop.f32.mrf.mxu3 }
 0x441   : > { %v11683_v50 = vadd.f32 %v5079_v63, %v4857_v8  ;;  %v5803_v40 = vpop.f32.mrf.mxu1 }
 0x442   : > { %v11689_v59 = vadd.f32 %v5803_v40, %v11408_v32  ;;  %v6630_v32 = vsel %vm2774_vm5, %v6620_v16, %v6629_v58  ;;  %v12469_v40 = vld [vmem:[#allocation6_spill] sm:$0xff]  ;;  %v11703_v7 = vpop.f32.mrf.mxu0 }
 0x443   : > { %12471 = vst [vmem:[#allocation29_spill] sm:$0xff] %v11703_v7 }
 0x446   : > { %v4858_v52 = vpop.f32.mrf.mxu2 }
 0x447   : > { %v4859_v0 = vadd.f32 %v4858_v52, %v11482_v23  ;;  %v9213_v23 = vld [vmem:[#allocation3 + $0x38] sm:$0xff] }
 0x448   : > { %v5081_v51 = vpop.f32.mrf.mxu3  ;;  %v6632_v62 = vshrl.u32 %v9213_v23, 16  ;;  %v6635_v45 = vshll.u32 %v9213_v23, 16 }
 0x449   : > { %v11694_v43 = vadd.f32 %v5081_v51, %v4859_v0  ;;  %v5806_v8 = vpop.f32.mrf.mxu1 }
 0x44a   : > { %v11697_v63 = vadd.f32 %v5806_v8, %v11421_v15  ;;  %v6634_v61 = vrot.slane %v6632_v62, 2  ;;  %v6637_v8 = vrot.slane %v6635_v45, 3  ;;  %v11712_v46 = vpop.f32.mrf.mxu0  ;;  %v12474_v45 = vld [vmem:[#allocation37_spill] sm:$0xff] }
 0x44b   : > { %12468 = vst [vmem:[#allocation21_spill] sm:$0xff] %v11694_v43  ;;  %6069 = vmatmul.bf16.gmra.mxu2 %v12469_v40  ;;  %6846 = vmatmul.bf16.gmra.mxu0 %v6630_v32  ;;  %v6337_v43 = vrot.slane %v9213_v23, 2  ;;  %v11723_v23 = vld [vmem:[#allocation3 + $0x40] sm:$0xff] }
 0x44c   : > { %5845 = vmatmul.bf16.gmra.mxu1 %v12470_v47  ;;  %v6638_v40 = vor.u32 %v6637_v8, %v6634_v61  ;;  %v5671_v8 = vshll.u32 %v11436_v57, 16 }
 0x44d   : > { %6454 = vmatmul.bf16.gmra.mxu3 %v6336_v25  ;;  %v6338_v62 = vsel %vm2129_vm3, %v6335_v30, %v6337_v43 }
 0x44e   : > { %v4861_v22 = vpop.f32.mrf.mxu2 }
 0x44f   : > { %v4862_v52 = vadd.f32 %v4861_v22, %v11497_v17 }
 0x450   : > { %v5084_v15 = vpop.f32.mrf.mxu3 }
 0x451   : > { %v11706_v0 = vadd.f32 %v5084_v15, %v4862_v52  ;;  %v5808_v16 = vpop.f32.mrf.mxu1  ;;  %v6639_v52 = vsel %vm2774_vm5, %v6629_v58, %v6638_v40  ;;  %v6641_v15 = vshrl.u32 %v11723_v23, 16  ;;  %v5668_v58 = vshrl.u32 %v11436_v57, 16 }
 0x452   : > { %v11709_v51 = vadd.f32 %v5808_v16, %v11438_v19  ;;  %v12473_v19 = vld [vmem:[#allocation4_spill] sm:$0xff]  ;;  %v6644_v16 = vshll.u32 %v11723_v23, 16 }
 0x456   : > { %v4863_v32 = vpop.f32.mrf.mxu2 }
 0x457   : > { %v4864_v25 = vadd.f32 %v4863_v32, %v11511_v42 }
 0x458   : > { %v5086_v47 = vpop.f32.mrf.mxu3 }
 0x459   : > { %v11714_v7 = vadd.f32 %v5086_v47, %v4864_v25  ;;  %v5811_v17 = vpop.f32.mrf.mxu1  ;;  %v6643_v47 = vrot.slane %v6641_v15, 2 }
 0x45a   : > { %v11717_v22 = vadd.f32 %v5811_v17, %v11448_v28  ;;  %v6646_v17 = vrot.slane %v6644_v16, 3 }
 0x45b   : > { %12472 = vst [vmem:[#allocation22_spill] sm:$0xff] %v11714_v7  ;;  %6074 = vmatmul.bf16.gmra.mxu2 %v12473_v19  ;;  %6851 = vmatmul.bf16.gmra.mxu0 %v6639_v52  ;;  %v9016_v52 = vld [vmem:[%s12283_s3 + $0x208] sm:$0xff]  ;;  %v11738_v19 = vpop.f32.mrf.mxu0 }
 0x45c   : > { %5850 = vmatmul.bf16.gmra.mxu1 %v12474_v45  ;;  %12476 = vst [vmem:[#allocation5_spill] sm:$0xff] %v11738_v19  ;;  %v12478_v19 = vld [vmem:[#allocation24_spill] sm:$0xff] }
 0x45d   : > { %6459 = vmatmul.bf16.gmra.mxu3 %v6338_v62  ;;  %v5673_v62 = vrot.slane %v5671_v8, 2  ;;  %7088 = vmatpush.bf16.msra.mxu1 %v9016_v52  ;;  %v12479_v8 = vld [vmem:[#allocation13_spill] sm:$0xff] }
 0x45e   : > { %v4866_v42 = vpop.f32.mrf.mxu2 }
 0x45f   : > { %v4867_v28 = vadd.f32 %v4866_v42, %v11527_v44  ;;  %v5670_v44 = vrot.slane %v5668_v58, 1  ;;  %v6647_v42 = vor.u32 %v6646_v17, %v6643_v47  ;;  %v9215_v17 = vld [vmem:[#allocation3 + $0x48] sm:$0xff] }
 0x460   : > { %v5089_v61 = vpop.f32.mrf.mxu3  ;;  %v6650_v52 = vshrl.u32 %v9215_v17, 16 }
 0x461   : > { %v11730_v32 = vadd.f32 %v5089_v61, %v4867_v28  ;;  %v5813_v30 = vpop.f32.mrf.mxu1  ;;  %v6339_v61 = vrot.slane %v11723_v23, 2 }
 0x462   : > { %v11733_v25 = vadd.f32 %v5813_v30, %v11459_v14  ;;  %v5674_v14 = vor.u32 %v5673_v62, %v5670_v44  ;;  %v6653_v44 = vshll.u32 %v9215_v17, 16 }
 0x463   : > { %12475 = vst [vmem:[#allocation32_spill] sm:$0xff] %v11730_v32  ;;  %v6648_v32 = vsel %vm2774_vm5, %v6638_v40, %v6647_v42  ;;  %v6340_v58 = vsel %vm2129_vm3, %v6337_v43, %v6339_v61  ;;  %v11752_v23 = vpop.f32.mrf.mxu0  ;;  %v5677_v40 = vshrl.u32 %v11457_v60, 16 }
 0x464   : > { %12480 = vst [vmem:[#allocation6_spill] sm:$0xff] %v11752_v23  ;;  %v6341_v23 = vrot.slane %v9215_v17, 2  ;;  %v11774_v17 = vld [vmem:[#allocation3 + $0x50] sm:$0xff] }
 0x466   : > { %v4868_v45 = vpop.f32.mrf.mxu2 }
 0x467   : > { %v4869_v57 = vadd.f32 %v4868_v45, %v11554_v27  ;;  %v5675_v27 = vsel %vm1736_vm2, %v12479_v8, %v5674_v14 }
 0x468   : > { %v5091_v28 = vpop.f32.mrf.mxu3 }
 0x469   : > { %v11742_v30 = vadd.f32 %v5091_v28, %v4869_v57  ;;  %v5816_v15 = vpop.f32.mrf.mxu1  ;;  %v6652_v57 = vrot.slane %v6650_v52, 2  ;;  %v6655_v28 = vrot.slane %v6653_v44, 3  ;;  %v12481_v52 = vld [vmem:[#allocation26_spill] sm:$0xff]  ;;  %v6342_v44 = vsel %vm2129_vm3, %v6339_v61, %v6341_v23 }
 0x46a   : > { %v11745_v16 = vadd.f32 %v5816_v15, %v11475_v9  ;;  %v5679_v15 = vrot.slane %v5677_v40, 1 }
 0x46b   : > { %12477 = vst [vmem:[#allocation34_spill] sm:$0xff] %v11742_v30  ;;  %6079 = vmatmul.bf16.gmra.mxu2 %v12478_v19  ;;  %6856 = vmatmul.bf16.gmra.mxu0 %v6648_v32  ;;  %v5680_v19 = vshll.u32 %v11457_v60, 16  ;;  %v11762_v30 = vpop.f32.mrf.mxu0 }
 0x46c   : > { %5855 = vmatmul.bf16.gmra.mxu1 %v5675_v27  ;;  %v6656_v27 = vor.u32 %v6655_v28, %v6652_v57  ;;  %v5689_v28 = vshll.u32 %v11490_v4, 16 }
 0x46d   : > { %6464 = vmatmul.bf16.gmra.mxu3 %v6340_v58  ;;  %v5682_v58 = vrot.slane %v5680_v19, 2  ;;  %v6659_v19 = vshrl.u32 %v11774_v17, 16 }
 0x46e   : > { %v4871_v47 = vpop.f32.mrf.mxu2 }
 0x46f   : > { %v4872_v9 = vadd.f32 %v4871_v47, %v11581_v38  ;;  %v5683_v7 = vor.u32 %v5682_v58, %v5679_v15 }
 0x470   : > { %v5094_v62 = vpop.f32.mrf.mxu3 }
 0x471   : > { %v11757_v43 = vadd.f32 %v5094_v62, %v4872_v9  ;;  %v5818_v32 = vpop.f32.mrf.mxu1  ;;  %v5684_v40 = vsel %vm1736_vm2, %v5674_v14, %v5683_v7 }
 0x472   : > { %v11760_v45 = vadd.f32 %v5818_v32, %v11492_v5  ;;  %v6657_v5 = vsel %vm2774_vm5, %v6647_v42, %v6656_v27  ;;  %v6662_v32 = vshll.u32 %v11774_v17, 16  ;;  %v5686_v42 = vshrl.u32 %v11490_v4, 16 }
 0x473   : > { %v11781_v61 = vpop.f32.mrf.mxu0 }
 0x476   : > { %v4873_v8 = vpop.f32.mrf.mxu2 }
 0x477   : > { %v4874_v38 = vadd.f32 %v4873_v8, %v11602_v53  ;;  %v6661_v8 = vrot.slane %v6659_v19, 2 }
 0x478   : > { %v5096_v47 = vpop.f32.mrf.mxu3 }
 0x479   : > { %v11765_v60 = vadd.f32 %v5096_v47, %v4874_v38  ;;  %v5821_v9 = vpop.f32.mrf.mxu1  ;;  %v6664_v38 = vrot.slane %v6662_v32, 3  ;;  %v5688_v47 = vrot.slane %v5686_v42, 1  ;;  %v12482_v42 = vld [vmem:[#allocation30_spill] sm:$0xff] }
 0x47a   : > { %v11768_v62 = vadd.f32 %v5821_v9, %v11502_v11  ;;  %v5691_v9 = vrot.slane %v5689_v28, 2 }
 0x47b   : > { %6084 = vmatmul.bf16.gmra.mxu2 %v12481_v52  ;;  %6861 = vmatmul.bf16.gmra.mxu0 %v6657_v5  ;;  %v6665_v52 = vor.u32 %v6664_v38, %v6661_v8 }
 0x47c   : > { %5860 = vmatmul.bf16.gmra.mxu1 %v5684_v40  ;;  %v6343_v40 = vrot.slane %v11774_v17, 2  ;;  %v5692_v4 = vor.u32 %v5691_v9, %v5688_v47  ;;  %v5695_v47 = vshrl.u32 %v11513_v54, 16 }
 0x47d   : > { %6469 = vmatmul.bf16.gmra.mxu3 %v6342_v44  ;;  %v6666_v32 = vsel %vm2774_vm5, %v6656_v27, %v6665_v52 }
 0x47e   : > { %v4876_v53 = vpop.f32.mrf.mxu2  ;;  %v5693_v17 = vsel %vm1736_vm2, %v5683_v7, %v5692_v4 }
 0x47f   : > { %v4877_v11 = vadd.f32 %v4876_v53, %v11611_v41 }
 0x480   : > { %v5099_v57 = vpop.f32.mrf.mxu3 }
 0x481   : > { %v11783_v15 = vadd.f32 %v5099_v57, %v4877_v11  ;;  %v5823_v14 = vpop.f32.mrf.mxu1  ;;  %v11799_v57 = vpop.f32.mrf.mxu0 }
 0x482   : > { %v11786_v58 = vadd.f32 %v5823_v14, %v11516_v2  ;;  %v9015_v2 = vld [vmem:[%s12283_s3 + $0x200] sm:$0xff] }
 0x483   : > { %7089 = vmatpush.bf16.msra.mxu1 %v9015_v2  ;;  %v11804_v14 = vld [vmem:[#allocation3 + $0x58] sm:$0xff] }
 0x484   : > { %v6671_v8 = vshll.u32 %v11804_v14, 16 }
 0x486   : > { %v4878_v5 = vpop.f32.mrf.mxu2 }
 0x487   : > { %v4879_v41 = vadd.f32 %v4878_v5, %v11626_v18  ;;  %v6344_v18 = vsel %vm2129_vm3, %v6341_v23, %v6343_v40  ;;  %v5698_v23 = vshll.u32 %v11513_v54, 16 }
 0x488   : > { %v5101_v44 = vpop.f32.mrf.mxu3 }
 0x489   : > { %v11790_v53 = vadd.f32 %v5101_v44, %v4879_v41  ;;  %v5826_v11 = vpop.f32.mrf.mxu1  ;;  %v6673_v44 = vrot.slane %v6671_v8, 3  ;;  %v5700_v2 = vrot.slane %v5698_v23, 2  ;;  %v12485_v8 = vld [vmem:[#allocation33_spill] sm:$0xff] }
 0x48a   : > { %v11796_v19 = vadd.f32 %v5826_v11, %v11541_v31  ;;  %v6668_v31 = vshrl.u32 %v11804_v14, 16  ;;  %v5697_v11 = vrot.slane %v5695_v47, 1 }
 0x48b   : > { %6089 = vmatmul.bf16.gmra.mxu2 %v12482_v42  ;;  %6866 = vmatmul.bf16.gmra.mxu0 %v6666_v32  ;;  %v11816_v32 = vpop.f32.mrf.mxu0 }
 0x48c   : > { %5865 = vmatmul.bf16.gmra.mxu1 %v5693_v17  ;;  %v6670_v41 = vrot.slane %v6668_v31, 2  ;;  %v5701_v54 = vor.u32 %v5700_v2, %v5697_v11  ;;  %v5704_v11 = vshrl.u32 %v11562_v21, 16 }
 0x48d   : > { %6474 = vmatmul.bf16.gmra.mxu3 %v6344_v18 }
 0x48e   : > { %v4881_v28 = vpop.f32.mrf.mxu2  ;;  %v6674_v18 = vor.u32 %v6673_v44, %v6670_v41  ;;  %v5702_v23 = vsel %vm1736_vm2, %v5692_v4, %v5701_v54 }
 0x48f   : > { %v4882_v27 = vadd.f32 %v4881_v28, %v11632_v48  ;;  %v6345_v28 = vrot.slane %v11804_v14, 2  ;;  %v11829_v14 = vld [vmem:[#allocation3 + $0x60] sm:$0xff] }
 0x490   : > { %v5104_v38 = vpop.f32.mrf.mxu3  ;;  %v6675_v31 = vsel %vm2774_vm5, %v6665_v52, %v6674_v18  ;;  %v6680_v41 = vshll.u32 %v11829_v14, 16 }
 0x491   : > { %v11811_v9 = vadd.f32 %v5104_v38, %v4882_v27  ;;  %v5828_v7 = vpop.f32.mrf.mxu1  ;;  %v6346_v47 = vsel %vm2129_vm3, %v6343_v40, %v6345_v28  ;;  %v5707_v40 = vshll.u32 %v11562_v21, 16 }
 0x492   : > { %v11814_v5 = vadd.f32 %v5828_v7, %v11567_v34  ;;  %v6677_v7 = vshrl.u32 %v11829_v14, 16 }
 0x494   : > { %12483 = vst [vmem:[#allocation10_spill] sm:$0xff] %v11814_v5 }
 0x496   : > { %v4883_v42 = vpop.f32.mrf.mxu2 }
 0x497   : > { %v4884_v48 = vadd.f32 %v4883_v42, %v11644_v39 }
 0x498   : > { %v5106_v17 = vpop.f32.mrf.mxu3 }
 0x499   : > { %v11820_v27 = vadd.f32 %v5106_v17, %v4884_v48  ;;  %v5831_v38 = vpop.f32.mrf.mxu1  ;;  %v6679_v48 = vrot.slane %v6677_v7, 2  ;;  %v6682_v17 = vrot.slane %v6680_v41, 3 }
 0x49a   : > { %v11823_v34 = vadd.f32 %v5831_v38, %v11598_v20  ;;  %v11833_v20 = vpop.f32.mrf.mxu0  ;;  %v5706_v38 = vrot.slane %v5704_v11, 1  ;;  %v12488_v11 = vld [vmem:[#allocation8_spill] sm:$0xff] }
 0x49b   : > { %6094 = vmatmul.bf16.gmra.mxu2 %v12485_v8  ;;  %6871 = vmatmul.bf16.gmra.mxu0 %v6675_v31  ;;  %v5709_v31 = vrot.slane %v5707_v40, 2  ;;  %v5530_v8 = vld [vmem:[#allocation3 + $0x98] sm:$0x3] }
 0x49c   : > { %12484 = vst [vmem:[#allocation4_spill] sm:$0xff] %v11823_v34  ;;  %5870 = vmatmul.bf16.gmra.mxu1 %v5702_v23  ;;  %v6683_v23 = vor.u32 %v6682_v17, %v6679_v48  ;;  %v6347_v34 = vrot.slane %v11829_v14, 2  ;;  %v5549_v21 = vunpack.c.l.b16 %v5530_v8  ;;  %v9219_v48 = vld [vmem:[#allocation3 + $0x68] sm:$0xff] }
 0x49d   : > { %6479 = vmatmul.bf16.gmra.mxu3 %v6346_v47  ;;  %v5710_v5 = vor.u32 %v5709_v31, %v5706_v38  ;;  %v6686_v17 = vshrl.u32 %v9219_v48, 16  ;;  %v6689_v38 = vshll.u32 %v9219_v48, 16 }
 0x49e   : > { %v6055_v39 = vpop.f32.mrf.mxu2  ;;  %v6684_v41 = vsel %vm2774_vm5, %v6674_v18, %v6683_v23  ;;  %v6348_v40 = vsel %vm2129_vm3, %v6345_v28, %v6347_v34  ;;  %v11856_v14 = vpack.c.b16 %v5549_v21, %v5549_v21 }
 0x49f   : > { %v6145_v52 = vadd.f32 %v6055_v39, %v11654_v12 }
 0x4a0   : > { %v6440_v44 = vpop.f32.mrf.mxu3  ;;  %v5713_v18 = vshrl.u32 %v11856_v14, 16  ;;  %v5716_v8 = vshll.u32 %v11856_v14, 16 }
 0x4a1   : > { %v11838_v2 = vadd.f32 %v6440_v44, %v6145_v52  ;;  %v5833_v4 = vpop.f32.mrf.mxu1 }
 0x4a2   : > { %v11841_v42 = vadd.f32 %v5833_v4, %v11604_v6  ;;  %v11845_v52 = vpop.f32.mrf.mxu0 }
 0x4a4   : > { %12486 = vst [vmem:[#allocation37_spill] sm:$0xff] %v11841_v42 }
 0x4a6   : > { %v6057_v47 = vpop.f32.mrf.mxu2 }
 0x4a7   : > { %v6146_v12 = vadd.f32 %v6057_v47, %v11668_v26  ;;  %v5711_v26 = vsel %vm1736_vm2, %v5701_v54, %v5710_v5 }
 0x4a8   : > { %v6442_v39 = vpop.f32.mrf.mxu3 }
 0x4a9   : > { %v11847_v44 = vadd.f32 %v6442_v39, %v6146_v12  ;;  %v5836_v6 = vpop.f32.mrf.mxu1  ;;  %v6688_v12 = vrot.slane %v6686_v17, 2  ;;  %v6691_v39 = vrot.slane %v6689_v38, 3  ;;  %v12489_v17 = vld [vmem:[#allocation11_spill] sm:$0xff] }
 0x4aa   : > { %v11850_v7 = vadd.f32 %v5836_v6, %v11618_v33  ;;  %v11866_v21 = vpop.f32.mrf.mxu0  ;;  %v5715_v6 = vrot.slane %v5713_v18, 1 }
 0x4ab   : > { %6099 = vmatmul.bf16.gmra.mxu2 %v12488_v11  ;;  %6876 = vmatmul.bf16.gmra.mxu0 %v6684_v41  ;;  %v5718_v41 = vrot.slane %v5716_v8, 2  ;;  %v9220_v8 = vld [vmem:[#allocation3 + $0x70] sm:$0xff] }
 0x4ac   : > { %12487 = vst [vmem:[#allocation24_spill] sm:$0xff] %v11850_v7  ;;  %5875 = vmatmul.bf16.gmra.mxu1 %v5711_v26 }
 0x4ad   : > { %6484 = vmatmul.bf16.gmra.mxu3 %v6348_v40  ;;  %v6692_v40 = vor.u32 %v6691_v39, %v6688_v12  ;;  %v5719_v7 = vor.u32 %v5718_v41, %v5715_v6  ;;  %v6698_v12 = vshll.u32 %v9220_v8, 16  ;;  %v6958_v6 = vld [vmem:[#allocation3 + $0x10] sm:$0x8] }
 0x4ae   : > { %v6060_v4 = vpop.f32.mrf.mxu2 }
 0x4af   : > { %v6147_v33 = vadd.f32 %v6060_v4, %v11674_v24  ;;  %v6349_v4 = vrot.slane %v9219_v48, 2  ;;  %v5720_v18 = vsel %vm1736_vm2, %v5710_v5, %v5719_v7  ;;  %v6700_v5 = vrot.slane %v6698_v12, 3  ;;  %v12492_v12 = vld [vmem:[#allocation14_spill] sm:$0xff] }
 0x4b0   : > { %v6445_v31 = vpop.f32.mrf.mxu3  ;;  %v6977_v7 = vunpack.c.l.b16 %v6958_v6 }
 0x4b1   : > { %v11861_v47 = vadd.f32 %v6445_v31, %v6147_v33  ;;  %v5838_v28 = vpop.f32.mrf.mxu1  ;;  %v6350_v38 = vsel %vm2129_vm3, %v6347_v34, %v6349_v4 }
 0x4b2   : > { %v11864_v54 = vadd.f32 %v5838_v28, %v11628_v1  ;;  %v6693_v1 = vsel %vm2774_vm5, %v6683_v23, %v6692_v40  ;;  %v6695_v28 = vshrl.u32 %v9220_v8, 16 }
 0x4b6   : > { %v6062_v11 = vpop.f32.mrf.mxu2 }
 0x4b7   : > { %v6148_v24 = vadd.f32 %v6062_v11, %v11689_v59  ;;  %v11878_v59 = vpop.f32.mrf.mxu0  ;;  %v6697_v11 = vrot.slane %v6695_v28, 2 }
 0x4b8   : > { %v6447_v26 = vpop.f32.mrf.mxu3 }
 0x4b9   : > { %v11869_v42 = vadd.f32 %v6447_v26, %v6148_v24  ;;  %v5841_v33 = vpop.f32.mrf.mxu1  ;;  %v12490_v24 = vunpack.c.l.b16 %v11606_v56 }
 0x4ba   : > { %v11872_v31 = vadd.f32 %v5841_v33, %v11637_v29 }
 0x4bb   : > { %6104 = vmatmul.bf16.gmra.mxu2 %v12489_v17  ;;  %6881 = vmatmul.bf16.gmra.mxu0 %v6693_v1  ;;  %v6978_v26 = vpack.c.b16 %v12490_v24, %v6977_v7  ;;  %v6701_v1 = vor.u32 %v6700_v5, %v6697_v11  ;;  %v9221_v11 = vld [vmem:[#allocation3 + $0x78] sm:$0xff] }
 0x4bc   : > { %5880 = vmatmul.bf16.gmra.mxu1 %v5720_v18  ;;  %v6351_v18 = vrot.slane %v9220_v8, 2  ;;  %v6704_v5 = vshrl.u32 %v9221_v11, 16  ;;  %v6707_v7 = vshll.u32 %v9221_v11, 16 }
 0x4bd   : > { %6489 = vmatmul.bf16.gmra.mxu3 %v6350_v38  ;;  %v6702_v56 = vsel %vm2774_vm5, %v6692_v40, %v6701_v1 }
 0x4be   : > { %v6065_v48 = vpop.f32.mrf.mxu2  ;;  %v6352_v6 = vsel %vm2129_vm3, %v6349_v4, %v6351_v18 }
 0x4bf   : > { %v6149_v29 = vadd.f32 %v6065_v48, %v11697_v63  ;;  %v11888_v17 = vpop.f32.mrf.mxu0  ;;  %v12491_v48 = vld [vmem:[#allocation23_spill] sm:$0xff] }
 0x4c0   : > { %v6450_v39 = vpop.f32.mrf.mxu3 }
 0x4c1   : > { %v11881_v23 = vadd.f32 %v6450_v39, %v6149_v29  ;;  %v5843_v41 = vpop.f32.mrf.mxu1  ;;  %v6980_v29 = vrot.slane %v12491_v48, 3  ;;  %v6709_v48 = vrot.slane %v6707_v7, 3 }
 0x4c2   : > { %v11884_v34 = vadd.f32 %v5843_v41, %v11646_v13  ;;  %v6979_v41 = vrot.slane %v6978_v26, 3 }
 0x4c6   : > { %v6067_v33 = vpop.f32.mrf.mxu2 }
 0x4c7   : > { %v6150_v63 = vadd.f32 %v6067_v33, %v11709_v51  ;;  %v6981_v51 = vsel %vm3167_vm4, %v6979_v41, %v6980_v29  ;;  %v11904_v40 = vpop.f32.mrf.mxu0  ;;  %v9222_v41 = vld [vmem:[#allocation3 + $0x70] sm:$0xff] }
 0x4c8   : > { %v6452_v38 = vpop.f32.mrf.mxu3 }
 0x4c9   : > { %v11892_v39 = vadd.f32 %v6452_v38, %v6150_v63  ;;  %v5846_v13 = vpop.f32.mrf.mxu1  ;;  %v6706_v38 = vrot.slane %v6704_v5, 2 }
 0x4ca   : > { %v11895_v28 = vadd.f32 %v5846_v13, %v11659_v49  ;;  %v5515_v49 = vadd.f32 %v11648_v37, %v11651_v10  ;;  %v5516_v10 = vadd.f32 %v11663_v36, %v11665_v55 }
 0x4cb   : > { %6109 = vmatmul.bf16.gmra.mxu2 %v12492_v12  ;;  %6886 = vmatmul.bf16.gmra.mxu0 %v6702_v56  ;;  %v5968_v56 = vrot.slane %v9222_v41, 2  ;;  %v6710_v12 = vor.u32 %v6709_v48, %v6706_v38  ;;  %v9223_v48 = vld [vmem:[#allocation3 + $0x80] sm:$0xff] }
 0x4cc   : > { %7090 = vmatmul.bf16.vlgmr.msra.gmra.mxu1 %v6981_v51  ;;  %v6353_v51 = vrot.slane %v9221_v11, 2  ;;  %v12496_v11 = vld [vmem:[#allocation27_spill] sm:$0xff]  ;;  %v6716_v41 = vshll.u32 %v9223_v48, 16 }
 0x4cd   : > { %6494 = vmatmul.bf16.gmra.mxu3 %v6352_v6  ;;  %v6711_v7 = vsel %vm2774_vm5, %v6701_v1, %v6710_v12  ;;  %v12497_v38 = vrot.slane %v12496_v11, 3  ;;  %v5517_v1 = vadd.f32 %v11677_v3, %v11671_v35 }
 0x4ce   : > { %v6070_v8 = vpop.f32.mrf.mxu2 }
 0x4cf   : > { %v6151_v24 = vadd.f32 %v6070_v8, %v11717_v22  ;;  %v6983_v36 = vsel %vm3167_vm4, %v6980_v29, %v12497_v38 }
 0x4d0   : > { %v6455_v26 = vpop.f32.mrf.mxu3 }
 0x4d1   : > { %v11906_v33 = vadd.f32 %v6455_v26, %v6151_v24  ;;  %v5848_v4 = vpop.f32.mrf.mxu1  ;;  %v12494_v26 = vld [vmem:[#allocation9_spill] sm:$0xff] }
 0x4d2   : > { %v11908_v63 = vadd.f32 %v5848_v4, %v5515_v49  ;;  %v12495_v49 = vrot.slane %v12494_v26, 2  ;;  %v11921_v4 = vpop.f32.mrf.mxu0 }
 0x4d4   : > { %v5969_v5 = vsel %vm2129_vm3, %v12495_v49, %v5968_v56  ;;  %v6718_v49 = vrot.slane %v6716_v41, 3 }
 0x4d6   : > { %v6072_v13 = vpop.f32.mrf.mxu2 }
 0x4d7   : > { %v6152_v6 = vadd.f32 %v6072_v13, %v11733_v25  ;;  %v6354_v25 = vsel %vm2129_vm3, %v6351_v18, %v6353_v51  ;;  %v6713_v13 = vshrl.u32 %v9223_v48, 16 }
 0x4d8   : > { %v6457_v22 = vpop.f32.mrf.mxu3 }
 0x4d9   : > { %v11913_v37 = vadd.f32 %v6457_v22, %v6152_v6  ;;  %v5851_v8 = vpop.f32.mrf.mxu1  ;;  %v6715_v26 = vrot.slane %v6713_v13, 2 }
 0x4da   : > { %v11915_v24 = vadd.f32 %v5851_v8, %v5516_v10  ;;  %v11934_v29 = vpop.f32.mrf.mxu0 }
 0x4db   : > { %6114 = vmatmul.bf16.gmra.mxu2 %v5969_v5  ;;  %6891 = vmatmul.bf16.gmra.mxu0 %v6711_v7  ;;  %v9224_v7 = vld [vmem:[#allocation3 + $0x78] sm:$0xff]  ;;  %v6719_v11 = vor.u32 %v6718_v49, %v6715_v26 }
 0x4dc   : > { %12493 = vst [vmem:[#allocation13_spill] sm:$0xff] %v11915_v24  ;;  %7095 = vmatmul.bf16.gmra.mxu1 %v6983_v36  ;;  %v6355_v36 = vrot.slane %v9223_v48, 2 }
 0x4dd   : > { %6499 = vmatmul.bf16.gmra.mxu3 %v6354_v25  ;;  %v5970_v25 = vrot.slane %v9224_v7, 2  ;;  %v6720_v41 = vsel %vm2774_vm5, %v6710_v12, %v6719_v11 }
 0x4de   : > { %v6075_v55 = vpop.f32.mrf.mxu2 }
 0x4df   : > { %v6153_v6 = vadd.f32 %v6075_v55, %v11745_v16  ;;  %v12499_v55 = vld [vmem:[#allocation25_spill] sm:$0xff]  ;;  %v5971_v13 = vsel %vm2129_vm3, %v5968_v56, %v5970_v25 }
 0x4e0   : > { %v6460_v22 = vpop.f32.mrf.mxu3  ;;  %v5518_v35 = vadd.f32 %v12499_v55, %v11683_v50  ;;  %v12503_v56 = vld [vmem:[#allocation29_spill] sm:$0xff] }
 0x4e1   : > { %v11930_v10 = vadd.f32 %v6460_v22, %v6153_v6  ;;  %v5853_v18 = vpop.f32.mrf.mxu1 }
 0x4e2   : > { %v11932_v8 = vadd.f32 %v5853_v18, %v5517_v1  ;;  %v6356_v1 = vsel %vm2129_vm3, %v6353_v51, %v6355_v36  ;;  %v9225_v18 = vld [vmem:[#allocation3 + $0x88] sm:$0xff]  ;;  %v11947_v49 = vpop.f32.mrf.mxu0 }
 0x4e3   : > { %v6722_v26 = vshrl.u32 %v9225_v18, 16  ;;  %v6725_v50 = vshll.u32 %v9225_v18, 16 }
 0x4e4   : > { %12498 = vst [vmem:[#allocation26_spill] sm:$0xff] %v11932_v8  ;;  %v6357_v8 = vrot.slane %v9225_v18, 2  ;;  %v9227_v18 = vld [vmem:[#allocation3 + $0x90] sm:$0xff] }
 0x4e6   : > { %v6077_v5 = vpop.f32.mrf.mxu2 }
 0x4e7   : > { %v6154_v38 = vadd.f32 %v6077_v5, %v11760_v45  ;;  %v12501_v45 = vld [vmem:[#allocation28_spill] sm:$0xff] }
 0x4e8   : > { %v6462_v16 = vpop.f32.mrf.mxu3 }
 0x4e9   : > { %v11939_v3 = vadd.f32 %v6462_v16, %v6154_v38  ;;  %v5856_v6 = vpop.f32.mrf.mxu1  ;;  %v12502_v38 = vld [vmem:[#allocation21_spill] sm:$0xff] }
 0x4ea   : > { %v11941_v22 = vadd.f32 %v5856_v6, %v5518_v35  ;;  %v5519_v16 = vadd.f32 %v12503_v56, %v12502_v38  ;;  %v6724_v35 = vrot.slane %v6722_v26, 2  ;;  %v6727_v6 = vrot.slane %v6725_v50, 3 }
 0x4eb   : > { %6119 = vmatmul.bf16.gmra.mxu2 %v5971_v13  ;;  %6896 = vmatmul.bf16.gmra.mxu0 %v6720_v41  ;;  %v9226_v41 = vld [vmem:[#allocation3 + $0x80] sm:$0xff]  ;;  %v6358_v56 = vsel %vm2129_vm3, %v6355_v36, %v6357_v8 }
 0x4ec   : > { %12500 = vst [vmem:[#allocation30_spill] sm:$0xff] %v11941_v22  ;;  %7100 = vmatmul.bf16.gmra.mxu1 %v12501_v45  ;;  %v6728_v45 = vor.u32 %v6727_v6, %v6724_v35 }
 0x4ed   : > { %6504 = vmatmul.bf16.gmra.mxu3 %v6356_v1  ;;  %v5972_v1 = vrot.slane %v9226_v41, 2 }
 0x4ee   : > { %v6080_v48 = vpop.f32.mrf.mxu2  ;;  %v6729_v50 = vsel %vm2774_vm5, %v6719_v11, %v6728_v45  ;;  %v9228_v11 = vld [vmem:[#allocation3 + $0x88] sm:$0xff] }
 0x4ef   : > { %v6155_v5 = vadd.f32 %v6080_v48, %v11768_v62  ;;  %v5520_v62 = vadd.f32 %v11712_v46, %v11706_v0  ;;  %v11959_v48 = vpop.f32.mrf.mxu0  ;;  %v5973_v26 = vsel %vm2129_vm3, %v5970_v25, %v5972_v1  ;;  %v6731_v46 = vshrl.u32 %v9227_v18, 16 }
 0x4f0   : > { %v6465_v7 = vpop.f32.mrf.mxu3  ;;  %v6734_v0 = vshll.u32 %v9227_v18, 16  ;;  %v5974_v41 = vrot.slane %v9228_v11, 2 }
 0x4f1   : > { %v11952_v12 = vadd.f32 %v6465_v7, %v6155_v5  ;;  %v5858_v55 = vpop.f32.mrf.mxu1  ;;  %v6733_v6 = vrot.slane %v6731_v46, 2 }
 0x4f2   : > { %v11954_v51 = vadd.f32 %v5858_v55, %v5519_v16  ;;  %v12506_v16 = vld [vmem:[#allocation22_spill] sm:$0xff]  ;;  %v6736_v25 = vrot.slane %v6734_v0, 3  ;;  %v12511_v0 = vld [vmem:[#allocation7_spill] sm:$0xff] }
 0x4f4   : > { %v6737_v36 = vor.u32 %v6736_v25, %v6733_v6  ;;  %v12512_v6 = vld [vmem:[#allocation34_spill] sm:$0xff] }
 0x4f5   : > { %v5523_v25 = vadd.f32 %v11762_v30, %v12512_v6  ;;  %v6217_v6 = vld [vmem:[#allocation3 + $0xa0] sm:$0x3] }
 0x4f6   : > { %v6082_v13 = vpop.f32.mrf.mxu2 }
 0x4f7   : > { %v6156_v22 = vadd.f32 %v6082_v13, %v11786_v58  ;;  %v12505_v58 = vld [vmem:[#allocation31_spill] sm:$0xff]  ;;  %v11973_v13 = vpop.f32.mrf.mxu0 }
 0x4f8   : > { %v6467_v24 = vpop.f32.mrf.mxu3 }
 0x4f9   : > { %v11961_v5 = vadd.f32 %v6467_v24, %v6156_v22  ;;  %v5861_v7 = vpop.f32.mrf.mxu1  ;;  %v12507_v24 = vld [vmem:[#allocation5_spill] sm:$0xff] }
 0x4fa   : > { %v11963_v38 = vadd.f32 %v5861_v7, %v5520_v62  ;;  %v5521_v22 = vadd.f32 %v12507_v24, %v12506_v16  ;;  %v6359_v62 = vrot.slane %v9227_v18, 2  ;;  %v12508_v7 = vld [vmem:[#allocation32_spill] sm:$0xff]  ;;  %v6738_v16 = vsel %vm2774_vm5, %v6728_v45, %v6737_v36  ;;  %v9229_v18 = vld [vmem:[#allocation3 + $0x98] sm:$0xff] }
 0x4fb   : > { %6124 = vmatmul.bf16.gmra.mxu2 %v5973_v26  ;;  %6901 = vmatmul.bf16.gmra.mxu0 %v6729_v50  ;;  %v12509_v26 = vld [vmem:[#allocation6_spill] sm:$0xff] }
 0x4fc   : > { %12504 = vst [vmem:[#allocation33_spill] sm:$0xff] %v11963_v38  ;;  %7105 = vmatmul.bf16.gmra.mxu1 %v12505_v58  ;;  %v5522_v50 = vadd.f32 %v12509_v26, %v12508_v7  ;;  %v5975_v38 = vsel %vm2129_vm3, %v5972_v1, %v5974_v41  ;;  %v6360_v46 = vsel %vm2129_vm3, %v6357_v8, %v6359_v62 }
 0x4fd   : > { %6509 = vmatmul.bf16.gmra.mxu3 %v6358_v56 }
 0x4ff   : > { %v11983_v24 = vpop.f32.mrf.mxu0 }
 0x501   : > { %v5863_v55 = vpop.f32.mrf.mxu1 }
 0x502   : > { %v11971_v35 = vadd.f32 %v5863_v55, %v5521_v22  ;;  %v6740_v22 = vshrl.u32 %v9229_v18, 16  ;;  %v6743_v55 = vshll.u32 %v9229_v18, 16 }
 0x504   : > { %v6742_v1 = vrot.slane %v6740_v22, 2  ;;  %v6745_v45 = vrot.slane %v6743_v55, 3  ;;  %v12513_v55 = vld [vmem:[#allocation35_spill] sm:$0xff] }
 0x506   : > { %v6746_v8 = vor.u32 %v6745_v45, %v6742_v1 }
 0x508   : > { %v6747_v30 = vsel %vm2774_vm5, %v6737_v36, %v6746_v8 }
 0x509   : > { %v5866_v56 = vpop.f32.mrf.mxu1 }
 0x50a   : > { %v11977_v58 = vadd.f32 %v5866_v56, %v5522_v50  ;;  %v11989_v50 = vpop.f32.mrf.mxu0  ;;  %v6361_v56 = vrot.slane %v9229_v18, 2 }
 0x50b   : > { %6129 = vmatmul.bf16.gmra.mxu2 %v5975_v38  ;;  %6906 = vmatmul.bf16.gmra.mxu0 %v6738_v16  ;;  %v9230_v38 = vld [vmem:[#allocation3 + $0x90] sm:$0xff]  ;;  %v5524_v16 = vadd.f32 %v11781_v61, %v11757_v43  ;;  %v6308_v43 = vunpack.c.l.b16 %v6217_v6  ;;  %v5525_v61 = vadd.f32 %v11799_v57, %v11765_v60 }
 0x50c   : > { %12510 = vst [vmem:[#allocation8_spill] sm:$0xff] %v11977_v58  ;;  %7110 = vmatmul.bf16.gmra.mxu1 %v12511_v0  ;;  %v5976_v26 = vrot.slane %v9230_v38, 2  ;;  %v6362_v22 = vsel %vm2129_vm3, %v6359_v62, %v6361_v56  ;;  %v5978_v38 = vrot.slane %v11856_v14, 2  ;;  %v12515_v14 = vld [vmem:[#allocation36_spill] sm:$0xff] }
 0x50d   : > { %6514 = vmatmul.bf16.gmra.mxu3 %v6360_v46  ;;  %v6327_v45 = vpack.c.b16 %v6308_v43, %v6308_v43  ;;  %v12516_v43 = vld [vmem:[#allocation12_spill] sm:$0xff] }
 0x50e   : > { %v5977_v58 = vsel %vm2129_vm3, %v5974_v41, %v5976_v26  ;;  %v5979_v60 = vsel %vm2129_vm3, %v5976_v26, %v5978_v38  ;;  %v5528_v26 = vadd.f32 %v11845_v52, %v11811_v9 }
 0x511   : > { %v5868_v11 = vpop.f32.mrf.mxu1 }
 0x512   : > { %v11987_v7 = vadd.f32 %v5868_v11, %v5523_v25  ;;  %v12514_v25 = vld [vmem:[#allocation39_spill] sm:$0xff]  ;;  %v12003_v1 = vpop.f32.mrf.mxu0 }
 0x513   : > { %v6749_v18 = vshrl.u32 %v12514_v25, 16  ;;  %v6752_v11 = vshll.u32 %v12514_v25, 16 }
 0x515   : > { %v6754_v62 = vrot.slane %v6752_v11, 3 }
 0x519   : > { %v5871_v46 = vpop.f32.mrf.mxu1 }
 0x51a   : > { %v11993_v0 = vadd.f32 %v5871_v46, %v5524_v16  ;;  %v6363_v46 = vrot.slane %v6327_v45, 2  ;;  %v12014_v6 = vpop.f32.mrf.mxu0  ;;  %v12517_v45 = vld [vmem:[#allocation16_spill] sm:$0xff] }
 0x51b   : > { %6134 = vmatmul.bf16.gmra.mxu2 %v5977_v58  ;;  %6911 = vmatmul.bf16.gmra.mxu0 %v6747_v30  ;;  %v6751_v58 = vrot.slane %v6749_v18, 2  ;;  %v5526_v30 = vadd.f32 %v11816_v32, %v11783_v15  ;;  %v5527_v15 = vadd.f32 %v11833_v20, %v11790_v53  ;;  %v6922_v53 = vadd.f32 %v11878_v59, %v11838_v2  ;;  %v12036_v20 = vld [vmem:[%s12284_s4] ss:$0 sm:$0xff] }
 0x51c   : > { %7115 = vmatmul.bf16.gmra.mxu1 %v12513_v55  ;;  %v6364_v25 = vsel %vm2129_vm3, %v6361_v56, %v6363_v46  ;;  %v5529_v56 = vadd.f32 %v11866_v21, %v11820_v27  ;;  %v6923_v21 = vadd.f32 %v11888_v17, %v11847_v44  ;;  %v7258_v46 = vld [vmem:[%s9307_s14 + $0x1b] sm:$0xff]  ;;  %v7259_v44 = vld [vmem:[%s9307_s14 + $0x23] sm:$0xff] }
 0x51d   : > { %6519 = vmatmul.bf16.gmra.mxu3 %v6362_v22  ;;  %v6755_v16 = vor.u32 %v6754_v62, %v6751_v58  ;;  %v7257_v58 = vld [vmem:[%s9307_s14 + $0x13] sm:$0xff] }
 0x51f   : > { %v6756_v57 = vsel %vm2774_vm5, %v6746_v8, %v6755_v16 }
 0x521   : > { %v5873_v41 = vpop.f32.mrf.mxu1 }
 0x522   : > { %v12005_v36 = vadd.f32 %v5873_v41, %v5525_v61 }
 0x529   : > { %v5876_v22 = vpop.f32.mrf.mxu1 }
 0x52a   : > { %v12010_v55 = vadd.f32 %v5876_v22, %v5526_v30 }
 0x52b   : > { %6139 = vmatmul.bf16.gmra.mxu2 %v5979_v60  ;;  %6916 = vmatmul.bf16.gmra.mxu0 %v6756_v57  ;;  %v6924_v57 = vadd.f32 %v11904_v40, %v11861_v47 }
 0x52c   : > { %7120 = vmatmul.bf16.gmra.mxu1 %v12515_v14 }
 0x52d   : > { %6524 = vmatmul.bf16.gmra.mxu3 %v6364_v25 }
 0x531   : > { %v5878_v32 = vpop.f32.mrf.mxu1 }
 0x532   : > { %v12020_v18 = vadd.f32 %v5878_v32, %v5527_v15  ;;  %v12518_v32 = vld [vmem:[#allocation18_spill] sm:$0xff] }
 0x539   : > { %v5881_v8 = vpop.f32.mrf.mxu1 }
 0x53a   : > { %v12024_v11 = vadd.f32 %v5881_v8, %v5528_v26 }
 0x53c   : > { %7125 = vmatmul.bf16.gmra.mxu1 %v12516_v43  ;;  %v6925_v43 = vadd.f32 %v11921_v4, %v11869_v42  ;;  %v7261_v42 = vld [vmem:[%s9307_s14 + $0x33] sm:$0xff] }
 0x541   : > { %v5883_v61 = vpop.f32.mrf.mxu1 }
 0x542   : > { %v12029_v41 = vadd.f32 %v5883_v61, %v5529_v56  ;;  %v7260_v61 = vld [vmem:[%s9307_s14 + $0x2b] sm:$0xff] }
 0x549   : > { %v7091_v9 = vpop.f32.mrf.mxu1 }
 0x54a   : > { %v7181_v52 = vadd.f32 %v7091_v9, %v6922_v53 }
 0x54c   : > { %v7221_v62 = vadd.f32 %v12036_v20, %v7181_v52  ;;  %7130 = vmatmul.bf16.gmra.mxu1 %v12517_v45 }
 0x54e   : > { %v7293_v27 = vadd.f32 %v7257_v58, %v7221_v62  ;;  %v6926_v58 = vadd.f32 %v11934_v29, %v11881_v23 }
 0x550   : > { %vm7329_vm0 = vcmp.gt.f32.partialorder %v7293_v27, 0.0  ;;  %v7365_v2 = vmul.f32 0.01, %v7293_v27 }
 0x551   : > { %v7093_v59 = vpop.f32.mrf.mxu1 }
 0x552   : > { %v7401_v38 = vsel %vm7329_vm0, %v7293_v27, %v7365_v2  ;;  %v7182_v16 = vadd.f32 %v7093_v59, %v6923_v21  ;;  %v12519_v2 = vld [vmem:[#allocation17_spill] sm:$0xff]  ;;  %v12069_v59 = vpop.f32.mrf.mxu2 }
 0x553   : > { %7437 = vst [vmem:[%s12045_s17] sm:$0xff] %v7401_v38 }
 0x554   : > { %v7222_v30 = vadd.f32 %v12036_v20, %v7182_v16  ;;  %v6927_v16 = vadd.f32 %v11947_v49, %v11892_v39 }
 0x556   : > { %v7294_v22 = vadd.f32 %v7258_v46, %v7222_v30  ;;  %v7262_v30 = vld [vmem:[%s9307_s14 + $0x3b] sm:$0xff] }
 0x558   : > { %vm7330_vm1 = vcmp.gt.f32.partialorder %v7294_v22, 0.0  ;;  %v7366_v60 = vmul.f32 0.01, %v7294_v22 }
 0x559   : > { %v7096_v25 = vpop.f32.mrf.mxu1 }
 0x55a   : > { %v7402_v14 = vsel %vm7330_vm1, %v7294_v22, %v7366_v60  ;;  %v7183_v15 = vadd.f32 %v7096_v25, %v6924_v57  ;;  %v12076_v60 = vpop.f32.mrf.mxu3  ;;  %v12078_v25 = vpop.f32.mrf.mxu0 }
 0x55b   : > { %7438 = vst [vmem:[%s12045_s17 + $0x8] sm:$0xff] %v7402_v14  ;;  %v12082_v39 = vpop.f32.mrf.mxu2 }
 0x55c   : > { %v7223_v17 = vadd.f32 %v12036_v20, %v7183_v15  ;;  %7135 = vmatmul.bf16.gmra.mxu1 %v12518_v32  ;;  %v6928_v15 = vadd.f32 %v11959_v48, %v11906_v33  ;;  %v7263_v32 = vld [vmem:[%s9307_s14 + $0x43] sm:$0xff]  ;;  %v6929_v33 = vadd.f32 %v11973_v13, %v11913_v37 }
 0x55e   : > { %v7295_v26 = vadd.f32 %v7259_v44, %v7223_v17 }
 0x560   : > { %vm7331_vm2 = vcmp.gt.f32.partialorder %v7295_v26, 0.0  ;;  %v7367_v8 = vmul.f32 0.01, %v7295_v26 }
 0x561   : > { %v7098_v56 = vpop.f32.mrf.mxu1 }
 0x562   : > { %v7403_v47 = vsel %vm7331_vm2, %v7295_v26, %v7367_v8  ;;  %v7184_v40 = vadd.f32 %v7098_v56, %v6925_v43  ;;  %v12520_v8 = vld [vmem:[#allocation19_spill] sm:$0xff]  ;;  %v12088_v56 = vpop.f32.mrf.mxu3 }
 0x563   : > { %7439 = vst [vmem:[%s12045_s17 + $0x10] sm:$0xff] %v7403_v47 }
 0x564   : > { %v7224_v53 = vadd.f32 %v12036_v20, %v7184_v40  ;;  %v12092_v40 = vpop.f32.mrf.mxu0 }
 0x566   : > { %v7296_v9 = vadd.f32 %v7260_v61, %v7224_v53 }
 0x568   : > { %vm7332_vm3 = vcmp.gt.f32.partialorder %v7296_v9, 0.0  ;;  %v7368_v52 = vmul.f32 0.01, %v7296_v9 }
 0x569   : > { %v7101_v62 = vpop.f32.mrf.mxu1 }
 0x56a   : > { %v7404_v45 = vsel %vm7332_vm3, %v7296_v9, %v7368_v52  ;;  %v7185_v27 = vadd.f32 %v7101_v62, %v6926_v58  ;;  %v12094_v9 = vpop.f32.mrf.mxu2  ;;  %v7264_v52 = vld [vmem:[%s9307_s14 + $0x4b] sm:$0xff]  ;;  %v12101_v37 = vpop.f32.mrf.mxu3 }
 0x56b   : > { %7440 = vst [vmem:[%s12045_s17 + $0x18] sm:$0xff] %v7404_v45 }
 0x56c   : > { %v7225_v4 = vadd.f32 %v12036_v20, %v7185_v27  ;;  %7140 = vmatmul.bf16.gmra.mxu1 %v12519_v2  ;;  %v6930_v27 = vadd.f32 %v11983_v24, %v11930_v10  ;;  %v7265_v2 = vld [vmem:[%s9307_s14 + $0x53] sm:$0xff]  ;;  %v6931_v24 = vadd.f32 %v11989_v50, %v11939_v3  ;;  %v6932_v3 = vadd.f32 %v12003_v1, %v11952_v12 }
 0x56d   : > { %v6933_v1 = vadd.f32 %v12014_v6, %v11961_v5 }
 0x56e   : > { %v7297_v21 = vadd.f32 %v7261_v42, %v7225_v4 }
 0x570   : > { %vm7333_vm4 = vcmp.gt.f32.partialorder %v7297_v21, 0.0  ;;  %v7369_v38 = vmul.f32 0.01, %v7297_v21 }
 0x571   : > { %v7103_v23 = vpop.f32.mrf.mxu1 }
 0x572   : > { %v7405_v29 = vsel %vm7333_vm4, %v7297_v21, %v7369_v38  ;;  %v7186_v46 = vadd.f32 %v7103_v23, %v6927_v16  ;;  %v12105_v21 = vpop.f32.mrf.mxu0  ;;  %v12521_v16 = vld [vmem:[#allocation20_spill] sm:$0xff]  ;;  %v12109_v23 = vpop.f32.mrf.mxu2 }
 0x573   : > { %7441 = vst [vmem:[%s12045_s17 + $0x20] sm:$0xff] %v7405_v29 }
 0x574   : > { %v7226_v22 = vadd.f32 %v12036_v20, %v7186_v46 }
 0x576   : > { %v7298_v57 = vadd.f32 %v7262_v30, %v7226_v22 }
 0x578   : > { %vm7334_vm5 = vcmp.gt.f32.partialorder %v7298_v57, 0.0  ;;  %v7370_v14 = vmul.f32 0.01, %v7298_v57 }
 0x579   : > { %v7106_v49 = vpop.f32.mrf.mxu1 }
 0x57a   : > { %v7406_v44 = vsel %vm7334_vm5, %v7298_v57, %v7370_v14  ;;  %v7187_v17 = vadd.f32 %v7106_v49, %v6928_v15  ;;  %v12113_v57 = vpop.f32.mrf.mxu3  ;;  %v7266_v14 = vld [vmem:[%s9307_s14 + $0x5b] sm:$0xff]  ;;  %v12118_v49 = vpop.f32.mrf.mxu0 }
 0x57b   : > { %7442 = vst [vmem:[%s12045_s17 + $0x28] sm:$0xff] %v7406_v44 }
 0x57c   : > { %v7227_v26 = vadd.f32 %v12036_v20, %v7187_v17  ;;  %7145 = vmatmul.bf16.gmra.mxu1 %v12520_v8  ;;  %v12120_v17 = vpop.f32.mrf.mxu2 }
 0x57e   : > { %v7299_v43 = vadd.f32 %v7263_v32, %v7227_v26 }
 0x580   : > { %vm7335_vm9 = vcmp.gt.f32.partialorder %v7299_v43, 0.0  ;;  %v7371_v47 = vmul.f32 0.01, %v7299_v43 }
 0x581   : > { %v7108_v48 = vpop.f32.mrf.mxu1 }
 0x582   : > { %v7407_v61 = vsel %vm7335_vm9, %v7299_v43, %v7371_v47  ;;  %v7188_v53 = vadd.f32 %v7108_v48, %v6929_v33  ;;  %v7267_v43 = vld [vmem:[%s9307_s14 + $0x63] sm:$0xff]  ;;  %v12128_v48 = vpop.f32.mrf.mxu3 }
 0x583   : > { %7443 = vst [vmem:[%s12045_s17 + $0x30] sm:$0xff] %v7407_v61  ;;  %v12522_v33 = vld [vmem:[#allocation15_spill] sm:$0xff] }
 0x584   : > { %v7228_v58 = vadd.f32 %v12036_v20, %v7188_v53  ;;  %v6157_v53 = vadd.f32 %v12069_v59, %v11796_v19 }
 0x586   : > { %v7300_v62 = vadd.f32 %v7264_v52, %v7228_v58  ;;  %v12132_v52 = vpop.f32.mrf.mxu0  ;;  %v12136_v58 = vpop.f32.mrf.mxu2 }
 0x588   : > { %vm7336_vm6 = vcmp.gt.f32.partialorder %v7300_v62, 0.0  ;;  %v7372_v45 = vmul.f32 0.01, %v7300_v62 }
 0x589   : > { %v7111_v13 = vpop.f32.mrf.mxu1 }
 0x58a   : > { %v7408_v42 = vsel %vm7336_vm6, %v7300_v62, %v7372_v45  ;;  %v7189_v4 = vadd.f32 %v7111_v13, %v6930_v27  ;;  %v7268_v13 = vld [vmem:[%s9307_s14 + $0x6b] sm:$0xff] }
 0x58b   : > { %7444 = vst [vmem:[%s12045_s17 + $0x38] sm:$0xff] %v7408_v42  ;;  %v6542_v42 = vadd.f32 %v12076_v60, %v6157_v53  ;;  %v7269_v60 = vld [vmem:[%s9307_s14 + $0x73] sm:$0xff] }
 0x58c   : > { %v7229_v38 = vadd.f32 %v12036_v20, %v7189_v4  ;;  %7150 = vmatmul.bf16.gmra.mxu1 %v12521_v16  ;;  %v12142_v4 = vpop.f32.mrf.mxu3  ;;  %v12526_v53 = vld [vmem:[#allocation37_spill] sm:$0xff] }
 0x58d   : > { %v6934_v6 = vadd.f32 %v12078_v25, %v6542_v42 }
 0x58e   : > { %v7301_v29 = vadd.f32 %v7265_v2, %v7229_v38  ;;  %v12523_v2 = vld [vmem:[#allocation10_spill] sm:$0xff] }
 0x58f   : > { %v6158_v38 = vadd.f32 %v12082_v39, %v12523_v2  ;;  %v12524_v39 = vld [vmem:[#allocation38_spill] sm:$0xff] }
 0x590   : > { %vm7337_vm8 = vcmp.gt.f32.partialorder %v7301_v29, 0.0  ;;  %v7373_v10 = vmul.f32 0.01, %v7301_v29 }
 0x591   : > { %v7113_v46 = vpop.f32.mrf.mxu1 }
 0x592   : > { %v7409_v30 = vsel %vm7337_vm8, %v7301_v29, %v7373_v10  ;;  %v7190_v22 = vadd.f32 %v7113_v46, %v6931_v24  ;;  %v12147_v29 = vpop.f32.mrf.mxu0  ;;  %v12149_v46 = vpop.f32.mrf.mxu2 }
 0x593   : > { %7445 = vst [vmem:[%s12045_s17 + $0x40] sm:$0xff] %v7409_v30  ;;  %v6543_v30 = vadd.f32 %v12088_v56, %v6158_v38  ;;  %v7270_v56 = vld [vmem:[%s9307_s14 + $0x7b] sm:$0xff] }
 0x594   : > { %v7230_v15 = vadd.f32 %v12036_v20, %v7190_v22 }
 0x596   : > { %v7302_v44 = vadd.f32 %v7266_v14, %v7230_v15  ;;  %v12525_v15 = vld [vmem:[#allocation4_spill] sm:$0xff] }
 0x597   : > { %v6159_v25 = vadd.f32 %v12094_v9, %v12525_v15 }
 0x598   : > { %vm7338_vm10 = vcmp.gt.f32.partialorder %v7302_v44, 0.0  ;;  %v7374_v32 = vmul.f32 0.01, %v7302_v44 }
 0x599   : > { %v7116_v50 = vpop.f32.mrf.mxu1 }
 0x59a   : > { %v7410_v26 = vsel %vm7338_vm10, %v7302_v44, %v7374_v32  ;;  %v7191_v8 = vadd.f32 %v7116_v50, %v6932_v3  ;;  %v6935_v32 = vadd.f32 %v12092_v40, %v6543_v30  ;;  %v12159_v3 = vpop.f32.mrf.mxu3  ;;  %v6102_v9 = vpop.f32.mrf.mxu2  ;;  %v6160_v40 = vadd.f32 %v12109_v23, %v12526_v53 }
 0x59b   : > { %7446 = vst [vmem:[%s12045_s17 + $0x48] sm:$0xff] %v7410_v26 }
 0x59c   : > { %v7231_v47 = vadd.f32 %v12036_v20, %v7191_v8  ;;  %7155 = vmatmul.bf16.gmra.mxu1 %v12522_v33  ;;  %v6545_v42 = vadd.f32 %v12113_v57, %v6160_v40  ;;  %v7272_v57 = vld [vmem:[%s9307_s14 + $0x8b] sm:$0xff] }
 0x59e   : > { %v7303_v61 = vadd.f32 %v7267_v43, %v7231_v47  ;;  %v6544_v43 = vadd.f32 %v12101_v37, %v6159_v25  ;;  %v12164_v47 = vpop.f32.mrf.mxu0  ;;  %v7271_v37 = vld [vmem:[%s9307_s14 + $0x83] sm:$0xff] }
 0x5a0   : > { %vm7339_vm11 = vcmp.gt.f32.partialorder %v7303_v61, 0.0  ;;  %v7375_v12 = vmul.f32 0.01, %v7303_v61 }
 0x5a1   : > { %v7118_v62 = vpop.f32.mrf.mxu1 }
 0x5a2   : > { %v7411_v45 = vsel %vm7339_vm11, %v7303_v61, %v7375_v12  ;;  %v7192_v27 = vadd.f32 %v7118_v62, %v6933_v1  ;;  %v6936_v1 = vadd.f32 %v12105_v21, %v6544_v43  ;;  %v6105_v38 = vpop.f32.mrf.mxu2  ;;  %v12529_v43 = vld [vmem:[#allocation41_spill] sm:$0xff] }
 0x5a3   : > { %7447 = vst [vmem:[%s12045_s17 + $0x50] sm:$0xff] %v7411_v45 }
 0x5a4   : > { %v7232_v19 = vadd.f32 %v12036_v20, %v7192_v27 }
 0x5a6   : > { %v7304_v59 = vadd.f32 %v7268_v13, %v7232_v19  ;;  %v6487_v13 = vpop.f32.mrf.mxu3  ;;  %v12175_v2 = vpop.f32.mrf.mxu0 }
 0x5a8   : > { %vm7340_vm12 = vcmp.gt.f32.partialorder %v7304_v59, 0.0  ;;  %v7376_v5 = vmul.f32 0.01, %v7304_v59 }
 0x5a9   : > { %v7121_v16 = vpop.f32.mrf.mxu1 }
 0x5aa   : > { %v7412_v10 = vsel %vm7340_vm12, %v7304_v59, %v7376_v5  ;;  %v7193_v24 = vadd.f32 %v7121_v16, %v6934_v6  ;;  %v12527_v59 = vld [vmem:[#allocation40_spill] sm:$0xff]  ;;  %v6937_v16 = vadd.f32 %v12118_v49, %v6545_v42 }
 0x5ab   : > { %7448 = vst [vmem:[%s12045_s17 + $0x58] sm:$0xff] %v7412_v10  ;;  %v12528_v5 = vld [vmem:[#allocation24_spill] sm:$0xff] }
 0x5ac   : > { %v7233_v22 = vadd.f32 %v12036_v20, %v7193_v24  ;;  %7160 = vmatmul.bf16.gmra.mxu1 %v12524_v39  ;;  %v6161_v21 = vadd.f32 %v12120_v17, %v12528_v5  ;;  %v6162_v17 = vadd.f32 %v12136_v58, %v11864_v54  ;;  %v7275_v5 = vld [vmem:[%s9307_s14 + $0xa3] sm:$0xff] }
 0x5ae   : > { %v7305_v14 = vadd.f32 %v7269_v60, %v7233_v22  ;;  %v6546_v30 = vadd.f32 %v12128_v48, %v6161_v21  ;;  %v6490_v39 = vpop.f32.mrf.mxu3  ;;  %v12186_v15 = vpop.f32.mrf.mxu0  ;;  %v7273_v48 = vld [vmem:[%s9307_s14 + $0x93] sm:$0xff] }
 0x5b0   : > { %vm7341_vm13 = vcmp.gt.f32.partialorder %v7305_v14, 0.0  ;;  %v7377_v44 = vmul.f32 0.01, %v7305_v14  ;;  %v6938_v25 = vadd.f32 %v12132_v52, %v6546_v30 }
 0x5b1   : > { %v7123_v50 = vpop.f32.mrf.mxu1 }
 0x5b2   : > { %v7413_v26 = vsel %vm7341_vm13, %v7305_v14, %v7377_v44  ;;  %v7194_v8 = vadd.f32 %v7123_v50, %v6935_v32  ;;  %v6107_v44 = vpop.f32.mrf.mxu2 }
 0x5b3   : > { %7449 = vst [vmem:[%s12045_s17 + $0x60] sm:$0xff] %v7413_v26 }
 0x5b4   : > { %v7234_v33 = vadd.f32 %v12036_v20, %v7194_v8  ;;  %v6547_v8 = vadd.f32 %v12142_v4, %v6162_v17 }
 0x5b6   : > { %v7306_v61 = vadd.f32 %v7270_v56, %v7234_v33  ;;  %v6492_v58 = vpop.f32.mrf.mxu3  ;;  %v6163_v33 = vadd.f32 %v12149_v46, %v11872_v31  ;;  %v6884_v40 = vpop.f32.mrf.mxu0  ;;  %v6164_v31 = vadd.f32 %v6102_v9, %v11884_v34  ;;  %v6165_v9 = vadd.f32 %v6105_v38, %v11895_v28 }
 0x5b7   : > { %v6166_v28 = vadd.f32 %v6107_v44, %v11908_v63 }
 0x5b8   : > { %vm7342_vm14 = vcmp.gt.f32.partialorder %v7306_v61, 0.0  ;;  %v7378_v12 = vmul.f32 0.01, %v7306_v61  ;;  %v6549_v21 = vadd.f32 %v6487_v13, %v6164_v31  ;;  %v7276_v13 = vld [vmem:[%s9307_s14 + $0xab] sm:$0xff]  ;;  %v12532_v31 = vld [vmem:[#allocation26_spill] sm:$0xff] }
 0x5b9   : > { %v7126_v62 = vpop.f32.mrf.mxu1 }
 0x5ba   : > { %v7414_v45 = vsel %vm7342_vm14, %v7306_v61, %v7378_v12  ;;  %v7195_v27 = vadd.f32 %v7126_v62, %v6936_v1  ;;  %v6939_v61 = vadd.f32 %v12147_v29, %v6547_v8  ;;  %v6110_v4 = vpop.f32.mrf.mxu2  ;;  %v7274_v62 = vld [vmem:[%s9307_s14 + $0x9b] sm:$0xff]  ;;  %v7277_v8 = vld [vmem:[%s9307_s14 + $0xb3] sm:$0xff] }
 0x5bb   : > { %7450 = vst [vmem:[%s12045_s17 + $0x68] sm:$0xff] %v7414_v45  ;;  %v6548_v45 = vadd.f32 %v12159_v3, %v6163_v33  ;;  %v12531_v33 = vld [vmem:[#allocation13_spill] sm:$0xff] }
 0x5bc   : > { %v7235_v19 = vadd.f32 %v12036_v20, %v7195_v27  ;;  %7165 = vmatmul.bf16.gmra.mxu1 %v12527_v59 }
 0x5bd   : > { %v6940_v29 = vadd.f32 %v12164_v47, %v6548_v45 }
 0x5be   : > { %v7307_v23 = vadd.f32 %v7271_v37, %v7235_v19  ;;  %v6495_v42 = vpop.f32.mrf.mxu3 }
 0x5c0   : > { %vm7343_vm15 = vcmp.gt.f32.partialorder %v7307_v23, 0.0  ;;  %v7379_v6 = vmul.f32 0.01, %v7307_v23 }
 0x5c1   : > { %v7128_v10 = vpop.f32.mrf.mxu1 }
 0x5c2   : > { %v7415_v24 = vsel %vm7343_vm15, %v7307_v23, %v7379_v6  ;;  %v7196_v60 = vadd.f32 %v7128_v10, %v6937_v16  ;;  %v6887_v6 = vpop.f32.mrf.mxu0  ;;  %v12530_v16 = vld [vmem:[#allocation42_spill] sm:$0xff]  ;;  %v6112_v10 = vpop.f32.mrf.mxu2 }
 0x5c3   : > { %7451 = vst [vmem:[%s12045_s17 + $0x70] sm:$0xff] %v7415_v24  ;;  %v6941_v24 = vadd.f32 %v12175_v2, %v6549_v21  ;;  %v7279_v21 = vld [vmem:[%s9307_s14 + $0xc3] sm:$0xff] }
 0x5c4   : > { %v7236_v22 = vadd.f32 %v12036_v20, %v7196_v60 }
 0x5c6   : > { %v7308_v14 = vadd.f32 %v7272_v57, %v7236_v22  ;;  %v6497_v22 = vpop.f32.mrf.mxu3 }
 0x5c8   : > { %vm7344_vm7 = vcmp.gt.f32.partialorder %v7308_v14, 0.0  ;;  %v7380_v49 = vmul.f32 0.01, %v7308_v14 }
 0x5c9   : > { %v7131_v32 = vpop.f32.mrf.mxu1 }
 0x5ca   : > { %v7416_v50 = vsel %vm7344_vm7, %v7308_v14, %v7380_v49  ;;  %v7197_v26 = vadd.f32 %v7131_v32, %v6938_v25  ;;  %v6550_v14 = vadd.f32 %v6490_v39, %v6165_v9  ;;  %v6889_v49 = vpop.f32.mrf.mxu0  ;;  %v6115_v32 = vpop.f32.mrf.mxu2 }
 0x5cb   : > { %7452 = vst [vmem:[%s12045_s17 + $0x78] sm:$0xff] %v7416_v50 }
 0x5cc   : > { %v7237_v56 = vadd.f32 %v12036_v20, %v7197_v26  ;;  %7170 = vmatmul.bf16.gmra.mxu1 %v12529_v43  ;;  %v6942_v2 = vadd.f32 %v12186_v15, %v6550_v14 }
 0x5ce   : > { %v7309_v54 = vadd.f32 %v7273_v48, %v7237_v56  ;;  %v6551_v56 = vadd.f32 %v6492_v58, %v6166_v28  ;;  %v6500_v43 = vpop.f32.mrf.mxu3 }
 0x5d0   : > { %vm7345_vm0 = vcmp.gt.f32.partialorder %v7309_v54, 0.0  ;;  %v7381_v52 = vmul.f32 0.01, %v7309_v54  ;;  %v6943_v44 = vadd.f32 %v6884_v40, %v6551_v56 }
 0x5d1   : > { %v7133_v53 = vpop.f32.mrf.mxu1 }
 0x5d2   : > { %v7417_v12 = vsel %vm7345_vm0, %v7309_v54, %v7381_v52  ;;  %v7198_v1 = vadd.f32 %v7133_v53, %v6939_v61  ;;  %v6167_v52 = vadd.f32 %v6110_v4, %v12531_v33  ;;  %v6892_v61 = vpop.f32.mrf.mxu0  ;;  %v6117_v53 = vpop.f32.mrf.mxu2  ;;  %v12534_v33 = vld [vmem:[#allocation33_spill] sm:$0xff] }
 0x5d3   : > { %7453 = vst [vmem:[%s12045_s17 + $0x80] sm:$0xff] %v7417_v12  ;;  %v6170_v28 = vadd.f32 %v6117_v53, %v11954_v51 }
 0x5d4   : > { %v7238_v27 = vadd.f32 %v12036_v20, %v7198_v1  ;;  %v6552_v45 = vadd.f32 %v6495_v42, %v6167_v52 }
 0x5d6   : > { %v7310_v37 = vadd.f32 %v7274_v62, %v7238_v27  ;;  %v7278_v62 = vld [vmem:[%s9307_s14 + $0xbb] sm:$0xff] }
 0x5d8   : > { %vm7346_vm1 = vcmp.gt.f32.partialorder %v7310_v37, 0.0  ;;  %v7382_v46 = vmul.f32 0.01, %v7310_v37 }
 0x5d9   : > { %v7136_v19 = vpop.f32.mrf.mxu1 }
 0x5da   : > { %v7418_v59 = vsel %vm7346_vm1, %v7310_v37, %v7382_v46  ;;  %v7199_v23 = vadd.f32 %v7136_v19, %v6940_v29  ;;  %v6502_v37 = vpop.f32.mrf.mxu3  ;;  %v6168_v46 = vadd.f32 %v6112_v10, %v12532_v31  ;;  %v6944_v29 = vadd.f32 %v6887_v6, %v6552_v45  ;;  %v6894_v40 = vpop.f32.mrf.mxu0 }
 0x5db   : > { %7454 = vst [vmem:[%s12045_s17 + $0x88] sm:$0xff] %v7418_v59 }
 0x5dc   : > { %v7239_v3 = vadd.f32 %v12036_v20, %v7199_v23  ;;  %7175 = vmatmul.bf16.gmra.mxu1 %v12530_v16 }
 0x5de   : > { %v7311_v34 = vadd.f32 %v7275_v5, %v7239_v3  ;;  %v6120_v5 = vpop.f32.mrf.mxu2  ;;  %v6553_v3 = vadd.f32 %v6497_v22, %v6168_v46 }
 0x5df   : > { %v6171_v52 = vadd.f32 %v6120_v5, %v12534_v33 }
 0x5e0   : > { %vm7347_vm2 = vcmp.gt.f32.partialorder %v7311_v34, 0.0  ;;  %v7383_v47 = vmul.f32 0.01, %v7311_v34 }
 0x5e1   : > { %v7138_v60 = vpop.f32.mrf.mxu1 }
 0x5e2   : > { %v7419_v57 = vsel %vm7347_vm2, %v7311_v34, %v7383_v47  ;;  %v7200_v30 = vadd.f32 %v7138_v60, %v6941_v24  ;;  %v12533_v34 = vld [vmem:[#allocation30_spill] sm:$0xff]  ;;  %v6945_v47 = vadd.f32 %v6889_v49, %v6553_v3  ;;  %v6505_v24 = vpop.f32.mrf.mxu3  ;;  %v6897_v14 = vpop.f32.mrf.mxu0  ;;  %v12535_v3 = vld [vmem:[#allocation8_spill] sm:$0xff] }
 0x5e3   : > { %7455 = vst [vmem:[%s12045_s17 + $0x90] sm:$0xff] %v7419_v57  ;;  %v6169_v9 = vadd.f32 %v6115_v32, %v12533_v34 }
 0x5e4   : > { %v7240_v17 = vadd.f32 %v12036_v20, %v7200_v30  ;;  %v7280_v30 = vld [vmem:[%s9307_s14 + $0xcb] sm:$0xff] }
 0x5e6   : > { %v7312_v25 = vadd.f32 %v7276_v13, %v7240_v17  ;;  %v6554_v13 = vadd.f32 %v6500_v43, %v6169_v9  ;;  %v6122_v17 = vpop.f32.mrf.mxu2 }
 0x5e8   : > { %vm7348_vm3 = vcmp.gt.f32.partialorder %v7312_v25, 0.0  ;;  %v7384_v38 = vmul.f32 0.01, %v7312_v25 }
 0x5e9   : > { %v7141_v50 = vpop.f32.mrf.mxu1 }
 0x5ea   : > { %v7420_v26 = vsel %vm7348_vm3, %v7312_v25, %v7384_v38  ;;  %v7201_v48 = vadd.f32 %v7141_v50, %v6942_v2  ;;  %v6946_v38 = vadd.f32 %v6892_v61, %v6554_v13 }
 0x5eb   : > { %7456 = vst [vmem:[%s12045_s17 + $0x98] sm:$0xff] %v7420_v26  ;;  %v6507_v26 = vpop.f32.mrf.mxu3 }
 0x5ec   : > { %v7241_v39 = vadd.f32 %v12036_v20, %v7201_v48  ;;  %v7281_v48 = vld [vmem:[%s9307_s14 + $0xd3] sm:$0xff] }
 0x5ee   : > { %v7313_v54 = vadd.f32 %v7277_v8, %v7241_v39  ;;  %v6555_v8 = vadd.f32 %v6502_v37, %v6170_v28  ;;  %v6899_v39 = vpop.f32.mrf.mxu0 }
 0x5f0   : > { %vm7349_vm4 = vcmp.gt.f32.partialorder %v7313_v54, 0.0  ;;  %v7385_v63 = vmul.f32 0.01, %v7313_v54 }
 0x5f1   : > { %v7143_v15 = vpop.f32.mrf.mxu1 }
 0x5f2   : > { %v7421_v12 = vsel %vm7349_vm4, %v7313_v54, %v7385_v63  ;;  %v7202_v1 = vadd.f32 %v7143_v15, %v6943_v44  ;;  %v6125_v54 = vpop.f32.mrf.mxu2  ;;  %v6947_v63 = vadd.f32 %v6894_v40, %v6555_v8  ;;  %v7282_v15 = vld [vmem:[%s9307_s14 + $0xdb] sm:$0xff]  ;;  %v7283_v40 = vld [vmem:[%s9307_s14 + $0xe3] sm:$0xff] }
 0x5f3   : > { %7457 = vst [vmem:[%s12045_s17 + $0xa0] sm:$0xff] %v7421_v12  ;;  %v6556_v12 = vadd.f32 %v6505_v24, %v6171_v52  ;;  %v7286_v52 = vld [vmem:[%s9307_s14 + $0xfb] sm:$0xff] }
 0x5f4   : > { %v7242_v58 = vadd.f32 %v12036_v20, %v7202_v1 }
 0x5f5   : > { %v6948_v31 = vadd.f32 %v6897_v14, %v6556_v12 }
 0x5f6   : > { %v7314_v27 = vadd.f32 %v7278_v62, %v7242_v58  ;;  %v6510_v62 = vpop.f32.mrf.mxu3  ;;  %v6172_v58 = vadd.f32 %v6122_v17, %v11971_v35 }
 0x5f8   : > { %vm7350_vm5 = vcmp.gt.f32.partialorder %v7314_v27, 0.0  ;;  %v7386_v4 = vmul.f32 0.01, %v7314_v27 }
 0x5f9   : > { %v7146_v19 = vpop.f32.mrf.mxu1 }
 0x5fa   : > { %v7422_v59 = vsel %vm7350_vm5, %v7314_v27, %v7386_v4  ;;  %v7203_v23 = vadd.f32 %v7146_v19, %v6944_v29  ;;  %v6902_v27 = vpop.f32.mrf.mxu0  ;;  %v6127_v46 = vpop.f32.mrf.mxu2 }
 0x5fb   : > { %7458 = vst [vmem:[%s12045_s17 + $0xa8] sm:$0xff] %v7422_v59  ;;  %v6557_v59 = vadd.f32 %v6507_v26, %v6172_v58  ;;  %v6174_v13 = vadd.f32 %v6127_v46, %v11987_v7  ;;  %v7287_v58 = vld [vmem:[%s9307_s14 + $0x103] sm:$0xff] }
 0x5fc   : > { %v7243_v42 = vadd.f32 %v12036_v20, %v7203_v23 }
 0x5fe   : > { %v7315_v16 = vadd.f32 %v7279_v21, %v7243_v42  ;;  %v6512_v21 = vpop.f32.mrf.mxu3  ;;  %v6173_v42 = vadd.f32 %v6125_v54, %v12535_v3 }
 0x600   : > { %vm7351_vm9 = vcmp.gt.f32.partialorder %v7315_v16, 0.0  ;;  %v7387_v10 = vmul.f32 0.01, %v7315_v16 }
 0x601   : > { %v7148_v6 = vpop.f32.mrf.mxu1 }
 0x602   : > { %v7423_v60 = vsel %vm7351_vm9, %v7315_v16, %v7387_v10  ;;  %v7204_v57 = vadd.f32 %v7148_v6, %v6945_v47  ;;  %v6949_v16 = vadd.f32 %v6899_v39, %v6557_v59  ;;  %v6904_v9 = vpop.f32.mrf.mxu0  ;;  %v6130_v24 = vpop.f32.mrf.mxu2  ;;  %v7284_v6 = vld [vmem:[%s9307_s14 + $0xeb] sm:$0xff] }
 0x603   : > { %7459 = vst [vmem:[%s12045_s17 + $0xb0] sm:$0xff] %v7423_v60  ;;  %v6558_v60 = vadd.f32 %v6510_v62, %v6173_v42  ;;  %v6175_v8 = vadd.f32 %v6130_v24, %v11993_v0 }
 0x604   : > { %v7244_v22 = vadd.f32 %v12036_v20, %v7204_v57 }
 0x606   : > { %v7316_v25 = vadd.f32 %v7280_v30, %v7244_v22  ;;  %v6950_v22 = vadd.f32 %v6902_v27, %v6558_v60  ;;  %v6515_v17 = vpop.f32.mrf.mxu3 }
 0x608   : > { %vm7352_vm6 = vcmp.gt.f32.partialorder %v7316_v25, 0.0  ;;  %v7388_v32 = vmul.f32 0.01, %v7316_v25 }
 0x609   : > { %v7151_v49 = vpop.f32.mrf.mxu1 }
 0x60a   : > { %v7424_v2 = vsel %vm7352_vm6, %v7316_v25, %v7388_v32  ;;  %v7205_v50 = vadd.f32 %v7151_v49, %v6946_v38  ;;  %v7285_v38 = vld [vmem:[%s9307_s14 + $0xf3] sm:$0xff]  ;;  %v6559_v49 = vadd.f32 %v6512_v21, %v6174_v13  ;;  %v6132_v26 = vpop.f32.mrf.mxu2  ;;  %v7288_v21 = vld [vmem:[%s9307_s14 + $0x10b] sm:$0xff] }
 0x60b   : > { %7460 = vst [vmem:[%s12045_s17 + $0xb8] sm:$0xff] %v7424_v2  ;;  %v6907_v2 = vpop.f32.mrf.mxu0 }
 0x60c   : > { %v7245_v56 = vadd.f32 %v12036_v20, %v7205_v50 }
 0x60e   : > { %v7317_v43 = vadd.f32 %v7281_v48, %v7245_v56  ;;  %v6951_v56 = vadd.f32 %v6904_v9, %v6559_v49  ;;  %v6517_v33 = vpop.f32.mrf.mxu3  ;;  %v7290_v49 = vld [vmem:[%s9307_s14 + $0x11b] sm:$0xff] }
 0x610   : > { %vm7353_vm8 = vcmp.gt.f32.partialorder %v7317_v43, 0.0  ;;  %v7389_v51 = vmul.f32 0.01, %v7317_v43 }
 0x611   : > { %v7153_v61 = vpop.f32.mrf.mxu1 }
 0x612   : > { %v7425_v44 = vsel %vm7353_vm8, %v7317_v43, %v7389_v51  ;;  %v7206_v53 = vadd.f32 %v7153_v61, %v6947_v63  ;;  %v6560_v51 = vadd.f32 %v6515_v17, %v6175_v8 }
 0x613   : > { %7461 = vst [vmem:[%s12045_s17 + $0xc0] sm:$0xff] %v7425_v44  ;;  %v6909_v61 = vpop.f32.mrf.mxu0 }
 0x614   : > { %v7246_v1 = vadd.f32 %v12036_v20, %v7206_v53  ;;  %v6135_v53 = vpop.f32.mrf.mxu2  ;;  %v6952_v12 = vadd.f32 %v6907_v2, %v6560_v51 }
 0x616   : > { %v7318_v45 = vadd.f32 %v7282_v15, %v7246_v1  ;;  %v6176_v15 = vadd.f32 %v6132_v26, %v12005_v36 }
 0x618   : > { %vm7354_vm10 = vcmp.gt.f32.partialorder %v7318_v45, 0.0  ;;  %v7390_v37 = vmul.f32 0.01, %v7318_v45  ;;  %v6561_v27 = vadd.f32 %v6517_v33, %v6176_v15 }
 0x619   : > { %v7156_v4 = vpop.f32.mrf.mxu1 }
 0x61a   : > { %v7426_v29 = vsel %vm7354_vm10, %v7318_v45, %v7390_v37  ;;  %v7207_v19 = vadd.f32 %v7156_v4, %v6948_v31  ;;  %v6520_v31 = vpop.f32.mrf.mxu3 }
 0x61b   : > { %7462 = vst [vmem:[%s12045_s17 + $0xc8] sm:$0xff] %v7426_v29  ;;  %v6912_v4 = vpop.f32.mrf.mxu0  ;;  %v6177_v29 = vadd.f32 %v6135_v53, %v12010_v55 }
 0x61c   : > { %v7247_v23 = vadd.f32 %v12036_v20, %v7207_v19  ;;  %v6953_v19 = vadd.f32 %v6909_v61, %v6561_v27 }
 0x61d   : > { %v6562_v3 = vadd.f32 %v6520_v31, %v6177_v29 }
 0x61e   : > { %v7319_v5 = vadd.f32 %v7283_v40, %v7247_v23  ;;  %v6137_v40 = vpop.f32.mrf.mxu2 }
 0x61f   : > { %v6954_v9 = vadd.f32 %v6912_v4, %v6562_v3 }
 0x620   : > { %vm7355_vm11 = vcmp.gt.f32.partialorder %v7319_v5, 0.0  ;;  %v7391_v35 = vmul.f32 0.01, %v7319_v5 }
 0x621   : > { %v7158_v34 = vpop.f32.mrf.mxu1 }
 0x622   : > { %v7427_v10 = vsel %vm7355_vm11, %v7319_v5, %v7391_v35  ;;  %v7208_v47 = vadd.f32 %v7158_v34, %v6949_v16  ;;  %v6522_v16 = vpop.f32.mrf.mxu3  ;;  %v6178_v34 = vadd.f32 %v6137_v40, %v12020_v18 }
 0x623   : > { %7463 = vst [vmem:[%s12045_s17 + $0xd0] sm:$0xff] %v7427_v10 }
 0x624   : > { %v7248_v57 = vadd.f32 %v12036_v20, %v7208_v47 }
 0x626   : > { %v7320_v30 = vadd.f32 %v7284_v6, %v7248_v57  ;;  %v6914_v6 = vpop.f32.mrf.mxu0  ;;  %v6140_v60 = vpop.f32.mrf.mxu2  ;;  %v7289_v57 = vld [vmem:[%s9307_s14 + $0x113] sm:$0xff] }
 0x628   : > { %vm7356_vm12 = vcmp.gt.f32.partialorder %v7320_v30, 0.0  ;;  %v7392_v14 = vmul.f32 0.01, %v7320_v30 }
 0x629   : > { %v7161_v25 = vpop.f32.mrf.mxu1 }
 0x62a   : > { %v7428_v28 = vsel %vm7356_vm12, %v7320_v30, %v7392_v14  ;;  %v7209_v32 = vadd.f32 %v7161_v25, %v6950_v22  ;;  %v6563_v30 = vadd.f32 %v6522_v16, %v6178_v34  ;;  %v6179_v22 = vadd.f32 %v6140_v60, %v12024_v11  ;;  %v6525_v25 = vpop.f32.mrf.mxu3 }
 0x62b   : > { %7464 = vst [vmem:[%s12045_s17 + $0xd8] sm:$0xff] %v7428_v28 }
 0x62c   : > { %v7249_v50 = vadd.f32 %v12036_v20, %v7209_v32  ;;  %v6955_v17 = vadd.f32 %v6914_v6, %v6563_v30  ;;  %v6564_v2 = vadd.f32 %v6525_v25, %v6179_v22 }
 0x62e   : > { %v7321_v48 = vadd.f32 %v7285_v38, %v7249_v50  ;;  %v6917_v26 = vpop.f32.mrf.mxu0 }
 0x630   : > { %vm7357_vm13 = vcmp.gt.f32.partialorder %v7321_v48, 0.0  ;;  %v7393_v7 = vmul.f32 0.01, %v7321_v48 }
 0x631   : > { %v7163_v39 = vpop.f32.mrf.mxu1 }
 0x632   : > { %v7429_v43 = vsel %vm7357_vm13, %v7321_v48, %v7393_v7  ;;  %v7210_v54 = vadd.f32 %v7163_v39, %v6951_v56  ;;  %v6142_v48 = vpop.f32.mrf.mxu2  ;;  %v6956_v56 = vadd.f32 %v6917_v26, %v6564_v2  ;;  %v6527_v33 = vpop.f32.mrf.mxu3 }
 0x633   : > { %7465 = vst [vmem:[%s12045_s17 + $0xe0] sm:$0xff] %v7429_v43  ;;  %v6180_v7 = vadd.f32 %v6142_v48, %v12029_v41 }
 0x634   : > { %v7250_v63 = vadd.f32 %v12036_v20, %v7210_v54 }
 0x635   : > { %v6565_v51 = vadd.f32 %v6527_v33, %v6180_v7 }
 0x636   : > { %v7322_v44 = vadd.f32 %v7286_v52, %v7250_v63  ;;  %v7291_v52 = vld [vmem:[%s9307_s14 + $0x123] sm:$0xff] }
 0x638   : > { %vm7358_vm14 = vcmp.gt.f32.partialorder %v7322_v44, 0.0  ;;  %v7394_v0 = vmul.f32 0.01, %v7322_v44 }
 0x639   : > { %v7166_v1 = vpop.f32.mrf.mxu1 }
 0x63a   : > { %v7430_v62 = vsel %vm7358_vm14, %v7322_v44, %v7394_v0  ;;  %v7211_v45 = vadd.f32 %v7166_v1, %v6952_v12  ;;  %v6919_v44 = vpop.f32.mrf.mxu0  ;;  %v7292_v1 = vld [vmem:[%s9307_s14 + $0x12b] sm:$0xff] }
 0x63b   : > { %7466 = vst [vmem:[%s12045_s17 + $0xe8] sm:$0xff] %v7430_v62  ;;  %v6957_v41 = vadd.f32 %v6919_v44, %v6565_v51 }
 0x63c   : > { %v7251_v37 = vadd.f32 %v12036_v20, %v7211_v45 }
 0x63e   : > { %v7323_v46 = vadd.f32 %v7287_v58, %v7251_v37 }
 0x640   : > { %vm7359_vm15 = vcmp.gt.f32.partialorder %v7323_v46, 0.0  ;;  %v7395_v36 = vmul.f32 0.01, %v7323_v46 }
 0x641   : > { %v7168_v59 = vpop.f32.mrf.mxu1 }
 0x642   : > { %v7431_v23 = vsel %vm7359_vm15, %v7323_v46, %v7395_v36  ;;  %v7212_v5 = vadd.f32 %v7168_v59, %v6953_v19 }
 0x643   : > { %7467 = vst [vmem:[%s12045_s17 + $0xf0] sm:$0xff] %v7431_v23 }
 0x644   : > { %v7252_v42 = vadd.f32 %v12036_v20, %v7212_v5 }
 0x646   : > { %v7324_v35 = vadd.f32 %v7288_v21, %v7252_v42 }
 0x648   : > { %vm7360_vm7 = vcmp.gt.f32.partialorder %v7324_v35, 0.0  ;;  %v7396_v55 = vmul.f32 0.01, %v7324_v35 }
 0x649   : > { %v7171_v10 = vpop.f32.mrf.mxu1 }
 0x64a   : > { %v7432_v47 = vsel %vm7360_vm7, %v7324_v35, %v7396_v55  ;;  %v7213_v24 = vadd.f32 %v7171_v10, %v6954_v9 }
 0x64b   : > { %7468 = vst [vmem:[%s12045_s17 + $0xf8] sm:$0xff] %v7432_v47 }
 0x64c   : > { %v7253_v13 = vadd.f32 %v12036_v20, %v7213_v24 }
 0x64e   : > { %v7325_v14 = vadd.f32 %v7289_v57, %v7253_v13 }
 0x650   : > { %vm7361_vm0 = vcmp.gt.f32.partialorder %v7325_v14, 0.0  ;;  %v7397_v18 = vmul.f32 0.01, %v7325_v14 }
 0x651   : > { %v7173_v28 = vpop.f32.mrf.mxu1 }
 0x652   : > { %v7433_v32 = vsel %vm7361_vm0, %v7325_v14, %v7397_v18  ;;  %v7214_v38 = vadd.f32 %v7173_v28, %v6955_v17 }
 0x653   : > { %7469 = vst [vmem:[%s12045_s17 + $0x100] sm:$0xff] %v7433_v32 }
 0x654   : > { %v7254_v50 = vadd.f32 %v12036_v20, %v7214_v38 }
 0x656   : > { %v7326_v8 = vadd.f32 %v7290_v49, %v7254_v50 }
 0x658   : > { %vm7362_vm1 = vcmp.gt.f32.partialorder %v7326_v8, 0.0  ;;  %v7398_v11 = vmul.f32 0.01, %v7326_v8 }
 0x659   : > { %v7176_v39 = vpop.f32.mrf.mxu1 }
 0x65a   : > { %v7434_v43 = vsel %vm7362_vm1, %v7326_v8, %v7398_v11  ;;  %v7215_v54 = vadd.f32 %v7176_v39, %v6956_v56 }
 0x65b   : > { %7470 = vst [vmem:[%s12045_s17 + $0x108] sm:$0xff] %v7434_v43 }
 0x65c   : > { %v7255_v63 = vadd.f32 %v12036_v20, %v7215_v54 }
 0x65e   : > { %v7327_v61 = vadd.f32 %v7291_v52, %v7255_v63 }
 0x660   : > { %vm7363_vm2 = vcmp.gt.f32.partialorder %v7327_v61, 0.0  ;;  %v7399_v53 = vmul.f32 0.01, %v7327_v61 }
 0x661   : > { %v7178_v15 = vpop.f32.mrf.mxu1 }
 0x662   : > { %v7435_v0 = vsel %vm7363_vm2, %v7327_v61, %v7399_v53  ;;  %v7216_v12 = vadd.f32 %v7178_v15, %v6957_v41 }
 0x663   : > { %7471 = vst [vmem:[%s12045_s17 + $0x110] sm:$0xff] %v7435_v0 }
 0x664   : > { %v7256_v62 = vadd.f32 %v12036_v20, %v7216_v12 }
 0x666   : > { %v7328_v45 = vadd.f32 %v7292_v1, %v7256_v62 }
 0x668   : > { %vm7364_vm3 = vcmp.gt.f32.partialorder %v7328_v45, 0.0  ;;  %v7400_v58 = vmul.f32 0.01, %v7328_v45 }
 0x66a   : > { %v7436_v27 = vsel %vm7364_vm3, %v7328_v45, %v7400_v58 }
 0x66b   : > { %7472 = vst [vmem:[%s12045_s17 + $0x118] sm:$0xff] %v7436_v27 }
 0x66c PF: > { %s16_s21 = sadd.s32 1, %s9237_s21  }
 0x66d   : > { %p13_p4 = scmp.ge.s32.totalorder %s16_s21, 4  }
 0x66f   :  { %15 = sbr.rel (!%p13_p4) target bundleno = 1 (0x1), region = 90 }

</bundles_post_ra>
